<compile_context>
chip_gen: v7x
topology: tpu7x:2x2x1
jax: 0.10.0
libtpu: 0.0.40
codegen_flags: <defaults>
</compile_context>

<pallas_src>
import functools
import math

import jax
import jax.numpy as jnp
from jax.experimental import pallas as pl
from jax.experimental.pallas import tpu as pltpu


def cross_attention_kernel(x_ref, y_ref,
                           wq_ref, bq_ref,
                           wk_ref, bk_ref,
                           wv_ref, bv_ref,
                           wo_ref, bo_ref,
                           o_ref,
                           k_scr, v_scr, pack_scr,
                           *, n_heads: int, d_head: int, kv_chunk: int,
                           scale: float):
    """One grid step = (batch element b, query tile t).

    x_ref : (1, TQ, d_embed)        y_ref : (1, Lkv, d_cross)
    wq_ref: (d_embed, d_embed)      wk/wv : (d_cross, d_embed)
    wo_ref: (d_embed, d_embed)      b*_ref: (1, d_embed) f32
    o_ref : (1, TQ, d_embed)
    k_scr/v_scr: (H, Lkv, d_head)   compute-dtype VMEM (cached per batch element)
    pack_scr   : (TQ, d_embed)      compute-dtype VMEM (attn head re-pack)
    """
    qt = pl.program_id(1)
    cdt = k_scr.dtype                       # MXU operand dtype (bf16 by default)
    n_kv = k_scr.shape[1]
    n_chunks = n_kv // kv_chunk             # static

    # ---- fused K / V projections: once per batch element, reused by q tiles ----
    @pl.when(qt == 0)
    def _():
        y = y_ref[0]                                               # (Lkv, d_cross)
        k_full = (jnp.dot(y, wk_ref[...],
                          preferred_element_type=jnp.float32)
                  + bk_ref[...]).astype(cdt)                       # (Lkv, d_embed)
        v_full = (jnp.dot(y, wv_ref[...],
                          preferred_element_type=jnp.float32)
                  + bv_ref[...]).astype(cdt)
        # Head split: 128-aligned lane-slice copies into head-major scratch
        # (cheap copies, not XLU relayouts, when d_head is a multiple of 128).
        for h in range(n_heads):
            sl = slice(h * d_head, (h + 1) * d_head)
            k_scr[h] = k_full[:, sl]
            v_scr[h] = v_full[:, sl]

    # ---- fused Q projection for this query tile (1/sqrt(d_head) folded in) ----
    x = x_ref[0]                                                   # (TQ, d_embed)
    q_full = ((jnp.dot(x, wq_ref[...], preferred_element_type=jnp.float32)
               + bq_ref[...]) * scale).astype(cdt)                 # (TQ, d_embed)
    # Head-major Q as an in-register stacked value (no VMEM round trip).
    q = jnp.stack([q_full[:, h * d_head:(h + 1) * d_head]
                   for h in range(n_heads)], axis=0)               # (H, TQ, dh)

    # ---- head-batched attention core, streamed over Lkv chunks (online softmax) ----
    tq = q_full.shape[0]
    m = jnp.full((n_heads, tq, 1), -jnp.inf, jnp.float32)
    l = jnp.zeros((n_heads, tq, 1), jnp.float32)
    acc = jnp.zeros((n_heads, tq, d_head), jnp.float32)
    for c in range(n_chunks):                                      # static chunk loop
        sl = slice(c * kv_chunk, (c + 1) * kv_chunk)
        k_c = k_scr[:, sl, :]                                      # (H, TKV, dh)
        v_c = v_scr[:, sl, :]
        s = jnp.einsum("hqd,hkd->hqk", q, k_c,
                       preferred_element_type=jnp.float32)         # (H, TQ, TKV) f32
        m_new = jnp.maximum(m, jnp.max(s, axis=-1, keepdims=True))
        alpha = jnp.exp(m - m_new)                                 # f32 (exp(-inf)=0 on c==0)
        p = jnp.exp(s - m_new)                                     # f32
        l = alpha * l + jnp.sum(p, axis=-1, keepdims=True)         # f32 denominator
        acc = alpha * acc + jnp.einsum("hqk,hkd->hqd", p.astype(cdt), v_c,
                                       preferred_element_type=jnp.float32)
        m = m_new
    attn = acc * pl.reciprocal(l, approx=True)                     # (H, TQ, dh) f32

    # ---- fused output projection: pack heads (128-aligned lane writes), one dot ----
    for h in range(n_heads):
        pack_scr[:, h * d_head:(h + 1) * d_head] = attn[h].astype(cdt)
    out = (jnp.dot(pack_scr[...], wo_ref[...],
                   preferred_element_type=jnp.float32) + bo_ref[...])
    o_ref[0] = out.astype(o_ref.dtype)


def cross_attention(x, y, params, *, n_heads: int, q_tile: int = 256,
                    kv_chunk: int = 512, compute_dtype=jnp.bfloat16):
    """x: (B, Lq, d_embed), y: (B, Lkv, d_cross) -> (B, Lq, d_embed)."""
    B, Lq, d_embed = x.shape
    _, Lkv, d_cross = y.shape
    assert d_embed % n_heads == 0
    d_head = d_embed // n_heads

    q_tile = min(q_tile, Lq)
    assert Lq % q_tile == 0, "Lq must be divisible by the query tile size"
    n_qt = Lq // q_tile
    kv_chunk = min(kv_chunk, Lkv)
    assert Lkv % kv_chunk == 0, "Lkv must be divisible by the kv chunk size"

    cdt = jnp.dtype(compute_dtype)
    wq, bq, wk, bk, wv, bv, wo, bo = params
    wq_c = wq.astype(cdt)
    wk_c = wk.astype(cdt)
    wv_c = wv.astype(cdt)
    wo_c = wo.astype(cdt)
    bq_2 = bq.reshape(1, d_embed).astype(jnp.float32)
    bk_2 = bk.reshape(1, d_embed).astype(jnp.float32)
    bv_2 = bv.reshape(1, d_embed).astype(jnp.float32)
    bo_2 = bo.reshape(1, d_embed).astype(jnp.float32)

    kernel = functools.partial(cross_attention_kernel,
                               n_heads=n_heads, d_head=d_head,
                               kv_chunk=kv_chunk,
                               scale=1.0 / math.sqrt(d_head))

    def const(arr):
        nd = arr.ndim
        return pl.BlockSpec(arr.shape, lambda b, t: (0,) * nd)

    # ---- generation-aware VMEM budget (leave headroom on v7x's 64 MiB) ----
    isz = cdt.itemsize
    osz = jnp.dtype(x.dtype).itemsize
    blocks = 2 * (q_tile * d_embed * isz          # x block (double-buffered)
                  + q_tile * d_embed * osz        # out block
                  + Lkv * d_cross * isz)          # y block
    weights = 2 * ((wq_c.size + wk_c.size + wv_c.size + wo_c.size) * isz
                   + 4 * d_embed * 4)             # biases (f32)
    scratch = (2 * n_heads * Lkv * d_head + q_tile * d_embed) * isz
    live = (n_heads * q_tile * kv_chunk * 4       # f32 score chunk
            + 4 * n_heads * q_tile * d_head * 4   # q / acc / attn temps
            + 2 * q_tile * d_embed * 4)           # q_full / out f32 temps
    needed = blocks + weights + scratch + live
    try:
        vmem_cap = int(getattr(pltpu.get_tpu_info(), "vmem_capacity_bytes",
                               64 * 1024 * 1024))
    except Exception:
        vmem_cap = 64 * 1024 * 1024               # conservative (v7x per-core)
    vmem_limit = int(min(0.75 * vmem_cap,
                         max(1.5 * needed, 32 * 1024 * 1024)))

    flops = 2 * B * (Lq * d_embed * d_embed           # Q projection
                     + 2 * Lkv * d_cross * d_embed    # K, V projections
                     + 2 * Lq * Lkv * d_embed         # QK^T + PV
                     + Lq * d_embed * d_embed)        # output projection
    bytes_accessed = int(isz * (x.size + y.size + wq_c.size + wk_c.size
                                + wv_c.size + wo_c.size)
                         + osz * x.size)

    return pl.pallas_call(
        kernel,
        out_shape=jax.ShapeDtypeStruct((B, Lq, d_embed), x.dtype),
        grid=(B, n_qt),
        in_specs=[
            pl.BlockSpec((1, q_tile, d_embed), lambda b, t: (b, t, 0)),   # x
            pl.BlockSpec((1, Lkv, d_cross), lambda b, t: (b, 0, 0)),      # y (resident per b)
            const(wq_c), const(bq_2),
            const(wk_c), const(bk_2),
            const(wv_c), const(bv_2),
            const(wo_c), const(bo_2),
        ],
        out_specs=pl.BlockSpec((1, q_tile, d_embed), lambda b, t: (b, t, 0)),
        scratch_shapes=[
            pltpu.VMEM((n_heads, Lkv, d_head), cdt),   # K cache (per batch element)
            pltpu.VMEM((n_heads, Lkv, d_head), cdt),   # V cache
            pltpu.VMEM((q_tile, d_embed), cdt),        # attn head re-pack
        ],
        compiler_params=pltpu.CompilerParams(
            dimension_semantics=("parallel", "arbitrary"),
            vmem_limit_bytes=vmem_limit,
        ),
        cost_estimate=pl.CostEstimate(
            flops=int(flops),
            transcendentals=int(B * n_heads * Lq * Lkv),
            bytes_accessed=bytes_accessed,
        ),
    )(x.astype(cdt), y.astype(cdt),
      wq_c, bq_2, wk_c, bk_2, wv_c, bv_2, wo_c, bo_2)


def reference_cross_attention(x, y, params, *, n_heads: int):
    """Pure-JAX mirror of the PyTorch forward (for verification, f32 HIGHEST)."""
    wq, bq, wk, bk, wv, bv, wo, bo = params
    B, Lq, d_embed = x.shape
    _, Lkv, _ = y.shape
    d_head = d_embed // n_heads
    hp = jax.lax.Precision.HIGHEST

    q = jnp.einsum("ble,ef->blf", x, wq, precision=hp) + bq
    k = jnp.einsum("ble,ef->blf", y, wk, precision=hp) + bk
    v = jnp.einsum("ble,ef->blf", y, wv, precision=hp) + bv

    q = q.reshape(B, Lq, n_heads, d_head).transpose(0, 2, 1, 3)
    k = k.reshape(B, Lkv, n_heads, d_head).transpose(0, 2, 1, 3)
    v = v.reshape(B, Lkv, n_heads, d_head).transpose(0, 2, 1, 3)

    w = jnp.einsum("bhqd,bhkd->bhqk", q, k, precision=hp) / math.sqrt(d_head)
    w = jax.nn.softmax(w, axis=-1)
    out = jnp.einsum("bhqk,bhkd->bhqd", w, v, precision=hp)
    out = out.transpose(0, 2, 1, 3).reshape(B, Lq, d_embed)
    return jnp.einsum("ble,ef->blf", out, wo, precision=hp) + bo


def init_params(key, d_embed, d_cross):
    """Deterministic init; weights stored as (d_in, d_out) = torch Linear weight.T."""
    ks = jax.random.split(key, 8)

    def lin(kw, kb, d_in, d_out):
        bound = 1.0 / math.sqrt(d_in)
        w = jax.random.uniform(kw, (d_in, d_out), jnp.float32, -bound, bound)
        b = jax.random.uniform(kb, (1, d_out), jnp.float32, -bound, bound)
        return w, b

    wq, bq = lin(ks[0], ks[1], d_embed, d_embed)
    wk, bk = lin(ks[2], ks[3], d_cross, d_embed)
    wv, bv = lin(ks[4], ks[5], d_cross, d_embed)
    wo, bo = lin(ks[6], ks[7], d_embed, d_embed)
    return (wq, bq, wk, bk, wv, bv, wo, bo)


if __name__ == "__main__":
    # Small, lane-aligned demo shapes (feature dims multiples of 128, d_head=128).
    # q_tile=256 with Lq=512 -> 2 query tiles (exercises per-batch K/V cache reuse);
    # kv_chunk=128 with Lkv=256 -> 2 chunks (exercises the online-softmax streaming).
    B, Lq, Lkv = 2, 512, 256
    n_heads, d_embed, d_cross = 2, 256, 128

    key = jax.random.PRNGKey(0)
    kx, ky, kp = jax.random.split(key, 3)
    x = jax.random.normal(kx, (B, Lq, d_embed), jnp.float32)
    y = jax.random.normal(ky, (B, Lkv, d_cross), jnp.float32)
    params = init_params(kp, d_embed, d_cross)

    out = cross_attention(x, y, params, n_heads=n_heads,
                          q_tile=256, kv_chunk=128)
    out = jax.block_until_ready(out)

    ref = reference_cross_attention(x, y, params, n_heads=n_heads)
    assert out.shape == (B, Lq, d_embed)
    # Tolerance absorbs bf16 MXU operands + approximate (EUP) softmax reciprocal.
    max_err = jnp.max(jnp.abs(out - ref))
    assert jnp.allclose(out, ref, atol=2e-2, rtol=2e-2), f"max abs err {max_err}"

    print("KERNEL_OK")
</pallas_src>

<mosaic_0001>
module attributes {stable_mosaic.version = 11 : i64} {
  func.func @cross_attention_kernel(%arg0: i32, %arg1: i32, %arg2: memref<1x256x256xbf16, #tpu.memory_space<vmem>>, %arg3: memref<1x256x128xbf16, #tpu.memory_space<vmem>>, %arg4: memref<256x256xbf16, #tpu.memory_space<vmem>>, %arg5: memref<1x256xf32, #tpu.memory_space<vmem>>, %arg6: memref<128x256xbf16, #tpu.memory_space<vmem>>, %arg7: memref<1x256xf32, #tpu.memory_space<vmem>>, %arg8: memref<128x256xbf16, #tpu.memory_space<vmem>>, %arg9: memref<1x256xf32, #tpu.memory_space<vmem>>, %arg10: memref<256x256xbf16, #tpu.memory_space<vmem>>, %arg11: memref<1x256xf32, #tpu.memory_space<vmem>>, %arg12: memref<1x256x256xf32, #tpu.memory_space<vmem>>, %arg13: memref<2x256x128xbf16, #tpu.memory_space<vmem>>, %arg14: memref<2x256x128xbf16, #tpu.memory_space<vmem>>, %arg15: memref<256x256xbf16, #tpu.memory_space<vmem>>) attributes {dimension_semantics = [#tpu.dimension_semantics<parallel>, #tpu.dimension_semantics<arbitrary>], iteration_bounds = array<i64: 2, 2>, scalar_prefetch = 0 : i64, scratch_operands = 3 : i64, tpu.core_type = #tpu.core_type<tc>, window_params = [{transform_indices = @transform_0, window_bounds = array<i64: 1, 256, 256>}, {transform_indices = @transform_1, window_bounds = array<i64: 1, 256, 128>}, {pipeline_mode = #tpu.pipeline_mode<synchronous>, transform_indices = @transform_2, window_bounds = array<i64: 256, 256>}, {pipeline_mode = #tpu.pipeline_mode<synchronous>, transform_indices = @transform_3, window_bounds = array<i64: 1, 256>}, {pipeline_mode = #tpu.pipeline_mode<synchronous>, transform_indices = @transform_4, window_bounds = array<i64: 128, 256>}, {pipeline_mode = #tpu.pipeline_mode<synchronous>, transform_indices = @transform_5, window_bounds = array<i64: 1, 256>}, {pipeline_mode = #tpu.pipeline_mode<synchronous>, transform_indices = @transform_6, window_bounds = array<i64: 128, 256>}, {pipeline_mode = #tpu.pipeline_mode<synchronous>, transform_indices = @transform_7, window_bounds = array<i64: 1, 256>}, {pipeline_mode = #tpu.pipeline_mode<synchronous>, transform_indices = @transform_8, window_bounds = array<i64: 256, 256>}, {pipeline_mode = #tpu.pipeline_mode<synchronous>, transform_indices = @transform_9, window_bounds = array<i64: 1, 256>}, {transform_indices = @transform_10, window_bounds = array<i64: 1, 256, 256>}]} {
    %c0_i32 = arith.constant 0 : i32
    %0 = arith.cmpi eq, %arg1, %c0_i32 : i32
    %1 = arith.extui %0 : i1 to i32
    %c0_i32_0 = arith.constant 0 : i32
    %2 = arith.cmpi ne, %1, %c0_i32_0 : i32
    scf.if %2 {
      %c0_44 = arith.constant 0 : index
      %c0_45 = arith.constant 0 : index
      %c0_46 = arith.constant 0 : index
      %81 = vector.load %arg3[%c0_44, %c0_45, %c0_46] : memref<1x256x128xbf16, #tpu.memory_space<vmem>>, vector<1x256x128xbf16>
      %82 = vector.shape_cast %81 : vector<1x256x128xbf16> to vector<256x128xbf16>
      %c0_47 = arith.constant 0 : index
      %c0_48 = arith.constant 0 : index
      %83 = vector.load %arg6[%c0_47, %c0_48] : memref<128x256xbf16, #tpu.memory_space<vmem>>, vector<128x256xbf16>
      %cst_49 = arith.constant dense<0.000000e+00> : vector<256x256xf32>
      %84 = tpu.matmul %82, %83, %cst_49 {dimension_numbers = #tpu.dot_dimension_numbers<[1], [0], [0], [1], [0, 0, 1, 1], [], []>} : vector<256x128xbf16>, vector<128x256xbf16>, vector<256x256xf32> -> vector<256x256xf32>
      %c0_50 = arith.constant 0 : index
      %c0_51 = arith.constant 0 : index
      %85 = vector.load %arg7[%c0_50, %c0_51] : memref<1x256xf32, #tpu.memory_space<vmem>>, vector<1x256xf32>
      %86 = vector.broadcast %85 : vector<1x256xf32> to vector<256x256xf32>
      %87 = arith.addf %84, %86 : vector<256x256xf32>
      %88 = arith.truncf %87 : vector<256x256xf32> to vector<256x256xbf16>
      %c0_52 = arith.constant 0 : index
      %c0_53 = arith.constant 0 : index
      %89 = vector.load %arg8[%c0_52, %c0_53] : memref<128x256xbf16, #tpu.memory_space<vmem>>, vector<128x256xbf16>
      %cst_54 = arith.constant dense<0.000000e+00> : vector<256x256xf32>
      %90 = tpu.matmul %82, %89, %cst_54 {dimension_numbers = #tpu.dot_dimension_numbers<[1], [0], [0], [1], [0, 0, 1, 1], [], []>} : vector<256x128xbf16>, vector<128x256xbf16>, vector<256x256xf32> -> vector<256x256xf32>
      %c0_55 = arith.constant 0 : index
      %c0_56 = arith.constant 0 : index
      %91 = vector.load %arg9[%c0_55, %c0_56] : memref<1x256xf32, #tpu.memory_space<vmem>>, vector<1x256xf32>
      %92 = vector.broadcast %91 : vector<1x256xf32> to vector<256x256xf32>
      %93 = arith.addf %90, %92 : vector<256x256xf32>
      %94 = arith.truncf %93 : vector<256x256xf32> to vector<256x256xbf16>
      %95 = vector.extract_strided_slice %88 {offsets = [0, 0], sizes = [256, 128], strides = [1, 1]} : vector<256x256xbf16> to vector<256x128xbf16>
      %c0_57 = arith.constant 0 : index
      %c0_58 = arith.constant 0 : index
      %c0_59 = arith.constant 0 : index
      %96 = vector.load %arg13[%c0_57, %c0_58, %c0_59] : memref<2x256x128xbf16, #tpu.memory_space<vmem>>, vector<1x256x128xbf16>
      %97 = vector.shape_cast %96 : vector<1x256x128xbf16> to vector<256x128xbf16>
      %98 = vector.shape_cast %95 : vector<256x128xbf16> to vector<1x256x128xbf16>
      tpu.vector_store %arg13[%c0_57, %c0_58, %c0_59], %98 {strides = array<i32>} : memref<2x256x128xbf16, #tpu.memory_space<vmem>>, vector<1x256x128xbf16>,
      %99 = vector.extract_strided_slice %94 {offsets = [0, 0], sizes = [256, 128], strides = [1, 1]} : vector<256x256xbf16> to vector<256x128xbf16>
      %c0_60 = arith.constant 0 : index
      %c0_61 = arith.constant 0 : index
      %c0_62 = arith.constant 0 : index
      %100 = vector.load %arg14[%c0_60, %c0_61, %c0_62] : memref<2x256x128xbf16, #tpu.memory_space<vmem>>, vector<1x256x128xbf16>
      %101 = vector.shape_cast %100 : vector<1x256x128xbf16> to vector<256x128xbf16>
      %102 = vector.shape_cast %99 : vector<256x128xbf16> to vector<1x256x128xbf16>
      tpu.vector_store %arg14[%c0_60, %c0_61, %c0_62], %102 {strides = array<i32>} : memref<2x256x128xbf16, #tpu.memory_space<vmem>>, vector<1x256x128xbf16>,
      %103 = vector.extract_strided_slice %88 {offsets = [0, 128], sizes = [256, 128], strides = [1, 1]} : vector<256x256xbf16> to vector<256x128xbf16>
      %c1 = arith.constant 1 : index
      %c0_63 = arith.constant 0 : index
      %c0_64 = arith.constant 0 : index
      %104 = vector.load %arg13[%c1, %c0_63, %c0_64] : memref<2x256x128xbf16, #tpu.memory_space<vmem>>, vector<1x256x128xbf16>
      %105 = vector.shape_cast %104 : vector<1x256x128xbf16> to vector<256x128xbf16>
      %106 = vector.shape_cast %103 : vector<256x128xbf16> to vector<1x256x128xbf16>
      tpu.vector_store %arg13[%c1, %c0_63, %c0_64], %106 {strides = array<i32>} : memref<2x256x128xbf16, #tpu.memory_space<vmem>>, vector<1x256x128xbf16>,
      %107 = vector.extract_strided_slice %94 {offsets = [0, 128], sizes = [256, 128], strides = [1, 1]} : vector<256x256xbf16> to vector<256x128xbf16>
      %c1_65 = arith.constant 1 : index
      %c0_66 = arith.constant 0 : index
      %c0_67 = arith.constant 0 : index
      %108 = vector.load %arg14[%c1_65, %c0_66, %c0_67] : memref<2x256x128xbf16, #tpu.memory_space<vmem>>, vector<1x256x128xbf16>
      %109 = vector.shape_cast %108 : vector<1x256x128xbf16> to vector<256x128xbf16>
      %110 = vector.shape_cast %107 : vector<256x128xbf16> to vector<1x256x128xbf16>
      tpu.vector_store %arg14[%c1_65, %c0_66, %c0_67], %110 {strides = array<i32>} : memref<2x256x128xbf16, #tpu.memory_space<vmem>>, vector<1x256x128xbf16>,
    } else {
    }
    %c0 = arith.constant 0 : index
    %c0_1 = arith.constant 0 : index
    %c0_2 = arith.constant 0 : index
    %3 = vector.load %arg2[%c0, %c0_1, %c0_2] : memref<1x256x256xbf16, #tpu.memory_space<vmem>>, vector<1x256x256xbf16>
    %4 = vector.shape_cast %3 : vector<1x256x256xbf16> to vector<256x256xbf16>
    %c0_3 = arith.constant 0 : index
    %c0_4 = arith.constant 0 : index
    %5 = vector.load %arg4[%c0_3, %c0_4] : memref<256x256xbf16, #tpu.memory_space<vmem>>, vector<256x256xbf16>
    %cst = arith.constant dense<0.000000e+00> : vector<256x256xf32>
    %6 = tpu.matmul %4, %5, %cst {dimension_numbers = #tpu.dot_dimension_numbers<[1], [0], [0], [1], [0, 0, 1, 1], [], []>} : vector<256x256xbf16>, vector<256x256xbf16>, vector<256x256xf32> -> vector<256x256xf32>
    %c0_5 = arith.constant 0 : index
    %c0_6 = arith.constant 0 : index
    %7 = vector.load %arg5[%c0_5, %c0_6] : memref<1x256xf32, #tpu.memory_space<vmem>>, vector<1x256xf32>
    %8 = vector.broadcast %7 : vector<1x256xf32> to vector<256x256xf32>
    %9 = arith.addf %6, %8 : vector<256x256xf32>
    %cst_7 = arith.constant 0.0883883461 : f32
    %10 = vector.broadcast %cst_7 : f32 to vector<256x256xf32>
    %11 = arith.mulf %9, %10 : vector<256x256xf32>
    %12 = arith.truncf %11 : vector<256x256xf32> to vector<256x256xbf16>
    %13 = vector.extract_strided_slice %12 {offsets = [0, 0], sizes = [256, 128], strides = [1, 1]} : vector<256x256xbf16> to vector<256x128xbf16>
    %14 = vector.extract_strided_slice %12 {offsets = [0, 128], sizes = [256, 128], strides = [1, 1]} : vector<256x256xbf16> to vector<256x128xbf16>
    %15 = vector.shape_cast %13 : vector<256x128xbf16> to vector<1x256x128xbf16>
    %16 = vector.shape_cast %14 : vector<256x128xbf16> to vector<1x256x128xbf16>
    %17 = tpu.concatenate %15, %16 in 0 : vector<1x256x128xbf16>, vector<1x256x128xbf16> -> vector<2x256x128xbf16>
    %cst_8 = arith.constant 0xFF800000 : f32
    %18 = vector.broadcast %cst_8 : f32 to vector<2x256x1xf32>
    %cst_9 = arith.constant 0.000000e+00 : f32
    %19 = vector.broadcast %cst_9 : f32 to vector<2x256x1xf32>
    %cst_10 = arith.constant 0.000000e+00 : f32
    %20 = vector.broadcast %cst_10 : f32 to vector<2x256x128xf32>
    %c0_11 = arith.constant 0 : index
    %c0_12 = arith.constant 0 : index
    %c0_13 = arith.constant 0 : index
    %21 = vector.load %arg13[%c0_11, %c0_12, %c0_13] : memref<2x256x128xbf16, #tpu.memory_space<vmem>>, vector<2x128x128xbf16>
    %c0_14 = arith.constant 0 : index
    %c0_15 = arith.constant 0 : index
    %c0_16 = arith.constant 0 : index
    %22 = vector.load %arg14[%c0_14, %c0_15, %c0_16] : memref<2x256x128xbf16, #tpu.memory_space<vmem>>, vector<2x128x128xbf16>
    "tpu.trace_start"() <{level = 10 : i32, message = "hqd,hkd->hqk"}> : () -> ()
    %cst_17 = arith.constant dense<0.000000e+00> : vector<2x256x128xf32>
    %23 = tpu.matmul %17, %21, %cst_17 {dimension_numbers = #tpu.dot_dimension_numbers<[2], [2], [1], [1], [0, 0, 0, 1, 1, 1], [0], [0]>} : vector<2x256x128xbf16>, vector<2x128x128xbf16>, vector<2x256x128xf32> -> vector<2x256x128xf32>
    "tpu.trace_stop"() : () -> ()
    %cst_18 = arith.constant dense<0xFF800000> : vector<2x256xf32>
    %24 = vector.multi_reduction <maximumf>, %23, %cst_18 [2] : vector<2x256x128xf32> to vector<2x256xf32>
    %25 = vector.shape_cast %24 : vector<2x256xf32> to vector<2x256x1xf32>
    %26 = arith.maximumf %18, %25 : vector<2x256x1xf32>
    %27 = arith.subf %18, %26 : vector<2x256x1xf32>
    %28 = math.exp %27 : vector<2x256x1xf32>
    %29 = vector.broadcast %26 : vector<2x256x1xf32> to vector<2x256x128xf32>
    %30 = arith.subf %23, %29 : vector<2x256x128xf32>
    %31 = math.exp %30 : vector<2x256x128xf32>
    %32 = arith.mulf %28, %19 : vector<2x256x1xf32>
    %cst_19 = arith.constant dense<0.000000e+00> : vector<2x256xf32>
    %33 = vector.multi_reduction <add>, %31, %cst_19 [2] : vector<2x256x128xf32> to vector<2x256xf32>
    %34 = vector.shape_cast %33 : vector<2x256xf32> to vector<2x256x1xf32>
    %35 = arith.addf %32, %34 : vector<2x256x1xf32>
    %36 = vector.broadcast %28 : vector<2x256x1xf32> to vector<2x256x128xf32>
    %37 = arith.mulf %36, %20 : vector<2x256x128xf32>
    %38 = arith.truncf %31 : vector<2x256x128xf32> to vector<2x256x128xbf16>
    "tpu.trace_start"() <{level = 10 : i32, message = "hqk,hkd->hqd"}> : () -> ()
    %cst_20 = arith.constant dense<0.000000e+00> : vector<2x256x128xf32>
    %39 = tpu.matmul %38, %22, %cst_20 {dimension_numbers = #tpu.dot_dimension_numbers<[2], [1], [1], [2], [0, 0, 0, 1, 1, 2], [0], [0]>} : vector<2x256x128xbf16>, vector<2x128x128xbf16>, vector<2x256x128xf32> -> vector<2x256x128xf32>
    "tpu.trace_stop"() : () -> ()
    %40 = arith.addf %37, %39 : vector<2x256x128xf32>
    %c0_21 = arith.constant 0 : index
    %c128 = arith.constant 128 : index
    %c0_22 = arith.constant 0 : index
    %41 = vector.load %arg13[%c0_21, %c128, %c0_22] : memref<2x256x128xbf16, #tpu.memory_space<vmem>>, vector<2x128x128xbf16>
    %c0_23 = arith.constant 0 : index
    %c128_24 = arith.constant 128 : index
    %c0_25 = arith.constant 0 : index
    %42 = vector.load %arg14[%c0_23, %c128_24, %c0_25] : memref<2x256x128xbf16, #tpu.memory_space<vmem>>, vector<2x128x128xbf16>
    "tpu.trace_start"() <{level = 10 : i32, message = "hqd,hkd->hqk"}> : () -> ()
    %cst_26 = arith.constant dense<0.000000e+00> : vector<2x256x128xf32>
    %43 = tpu.matmul %17, %41, %cst_26 {dimension_numbers = #tpu.dot_dimension_numbers<[2], [2], [1], [1], [0, 0, 0, 1, 1, 1], [0], [0]>} : vector<2x256x128xbf16>, vector<2x128x128xbf16>, vector<2x256x128xf32> -> vector<2x256x128xf32>
    "tpu.trace_stop"() : () -> ()
    %cst_27 = arith.constant dense<0xFF800000> : vector<2x256xf32>
    %44 = vector.multi_reduction <maximumf>, %43, %cst_27 [2] : vector<2x256x128xf32> to vector<2x256xf32>
    %45 = vector.shape_cast %44 : vector<2x256xf32> to vector<2x256x1xf32>
    %46 = arith.maximumf %26, %45 : vector<2x256x1xf32>
    %47 = arith.subf %26, %46 : vector<2x256x1xf32>
    %48 = math.exp %47 : vector<2x256x1xf32>
    %49 = vector.broadcast %46 : vector<2x256x1xf32> to vector<2x256x128xf32>
    %50 = arith.subf %43, %49 : vector<2x256x128xf32>
    %51 = math.exp %50 : vector<2x256x128xf32>
    %52 = arith.mulf %48, %35 : vector<2x256x1xf32>
    %cst_28 = arith.constant dense<0.000000e+00> : vector<2x256xf32>
    %53 = vector.multi_reduction <add>, %51, %cst_28 [2] : vector<2x256x128xf32> to vector<2x256xf32>
    %54 = vector.shape_cast %53 : vector<2x256xf32> to vector<2x256x1xf32>
    %55 = arith.addf %52, %54 : vector<2x256x1xf32>
    %56 = vector.broadcast %48 : vector<2x256x1xf32> to vector<2x256x128xf32>
    %57 = arith.mulf %56, %40 : vector<2x256x128xf32>
    %58 = arith.truncf %51 : vector<2x256x128xf32> to vector<2x256x128xbf16>
    "tpu.trace_start"() <{level = 10 : i32, message = "hqk,hkd->hqd"}> : () -> ()
    %cst_29 = arith.constant dense<0.000000e+00> : vector<2x256x128xf32>
    %59 = tpu.matmul %58, %42, %cst_29 {dimension_numbers = #tpu.dot_dimension_numbers<[2], [1], [1], [2], [0, 0, 0, 1, 1, 2], [0], [0]>} : vector<2x256x128xbf16>, vector<2x128x128xbf16>, vector<2x256x128xf32> -> vector<2x256x128xf32>
    "tpu.trace_stop"() : () -> ()
    %60 = arith.addf %57, %59 : vector<2x256x128xf32>
    %61 = tpu.reciprocal %55 {approx = true} : vector<2x256x1xf32> -> vector<2x256x1xf32>
    %62 = vector.broadcast %61 : vector<2x256x1xf32> to vector<2x256x128xf32>
    %63 = arith.mulf %60, %62 : vector<2x256x128xf32>
    %64 = vector.extract_strided_slice %63 {offsets = [0, 0, 0], sizes = [1, 256, 128], strides = [1, 1, 1]} : vector<2x256x128xf32> to vector<1x256x128xf32>
    %65 = vector.shape_cast %64 : vector<1x256x128xf32> to vector<256x128xf32>
    %66 = arith.truncf %65 : vector<256x128xf32> to vector<256x128xbf16>
    %c0_30 = arith.constant 0 : index
    %c0_31 = arith.constant 0 : index
    %67 = vector.load %arg15[%c0_30, %c0_31] : memref<256x256xbf16, #tpu.memory_space<vmem>>, vector<256x128xbf16>
    tpu.vector_store %arg15[%c0_30, %c0_31], %66 {strides = array<i32>} : memref<256x256xbf16, #tpu.memory_space<vmem>>, vector<256x128xbf16>,
    %68 = vector.extract_strided_slice %63 {offsets = [1, 0, 0], sizes = [1, 256, 128], strides = [1, 1, 1]} : vector<2x256x128xf32> to vector<1x256x128xf32>
    %69 = vector.shape_cast %68 : vector<1x256x128xf32> to vector<256x128xf32>
    %70 = arith.truncf %69 : vector<256x128xf32> to vector<256x128xbf16>
    %c0_32 = arith.constant 0 : index
    %c128_33 = arith.constant 128 : index
    %71 = vector.load %arg15[%c0_32, %c128_33] : memref<256x256xbf16, #tpu.memory_space<vmem>>, vector<256x128xbf16>
    tpu.vector_store %arg15[%c0_32, %c128_33], %70 {strides = array<i32>} : memref<256x256xbf16, #tpu.memory_space<vmem>>, vector<256x128xbf16>,
    %c0_34 = arith.constant 0 : index
    %c0_35 = arith.constant 0 : index
    %72 = vector.load %arg15[%c0_34, %c0_35] : memref<256x256xbf16, #tpu.memory_space<vmem>>, vector<256x256xbf16>
    %c0_36 = arith.constant 0 : index
    %c0_37 = arith.constant 0 : index
    %73 = vector.load %arg10[%c0_36, %c0_37] : memref<256x256xbf16, #tpu.memory_space<vmem>>, vector<256x256xbf16>
    %cst_38 = arith.constant dense<0.000000e+00> : vector<256x256xf32>
    %74 = tpu.matmul %72, %73, %cst_38 {dimension_numbers = #tpu.dot_dimension_numbers<[1], [0], [0], [1], [0, 0, 1, 1], [], []>} : vector<256x256xbf16>, vector<256x256xbf16>, vector<256x256xf32> -> vector<256x256xf32>
    %c0_39 = arith.constant 0 : index
    %c0_40 = arith.constant 0 : index
    %75 = vector.load %arg11[%c0_39, %c0_40] : memref<1x256xf32, #tpu.memory_space<vmem>>, vector<1x256xf32>
    %76 = vector.broadcast %75 : vector<1x256xf32> to vector<256x256xf32>
    %77 = arith.addf %74, %76 : vector<256x256xf32>
    %c0_41 = arith.constant 0 : index
    %c0_42 = arith.constant 0 : index
    %c0_43 = arith.constant 0 : index
    %78 = vector.load %arg12[%c0_41, %c0_42, %c0_43] : memref<1x256x256xf32, #tpu.memory_space<vmem>>, vector<1x256x256xf32>
    %79 = vector.shape_cast %78 : vector<1x256x256xf32> to vector<256x256xf32>
    %80 = vector.shape_cast %77 : vector<256x256xf32> to vector<1x256x256xf32>
    tpu.vector_store %arg12[%c0_41, %c0_42, %c0_43], %80 {strides = array<i32>} : memref<1x256x256xf32, #tpu.memory_space<vmem>>, vector<1x256x256xf32>,
    return
  }
  func.func @transform_0(%arg0: i32, %arg1: i32) -> (i32, i32, i32) {
    %c0_i32 = arith.constant 0 : i32
    %c0_i32_0 = arith.constant 0 : i32
    return %arg0, %arg1, %c0_i32 : i32, i32, i32
  }
  func.func @transform_1(%arg0: i32, %arg1: i32) -> (i32, i32, i32) {
    %c0_i32 = arith.constant 0 : i32
    %c0_i32_0 = arith.constant 0 : i32
    %c0_i32_1 = arith.constant 0 : i32
    return %arg0, %c0_i32, %c0_i32_0 : i32, i32, i32
  }
  func.func @transform_2(%arg0: i32, %arg1: i32) -> (i32, i32) {
    %c0_i32 = arith.constant 0 : i32
    %c0_i32_0 = arith.constant 0 : i32
    %c0_i32_1 = arith.constant 0 : i32
    return %c0_i32, %c0_i32_0 : i32, i32
  }
  func.func @transform_3(%arg0: i32, %arg1: i32) -> (i32, i32) {
    %c0_i32 = arith.constant 0 : i32
    %c0_i32_0 = arith.constant 0 : i32
    %c0_i32_1 = arith.constant 0 : i32
    return %c0_i32, %c0_i32_0 : i32, i32
  }
  func.func @transform_4(%arg0: i32, %arg1: i32) -> (i32, i32) {
    %c0_i32 = arith.constant 0 : i32
    %c0_i32_0 = arith.constant 0 : i32
    %c0_i32_1 = arith.constant 0 : i32
    return %c0_i32, %c0_i32_0 : i32, i32
  }
  func.func @transform_5(%arg0: i32, %arg1: i32) -> (i32, i32) {
    %c0_i32 = arith.constant 0 : i32
    %c0_i32_0 = arith.constant 0 : i32
    %c0_i32_1 = arith.constant 0 : i32
    return %c0_i32, %c0_i32_0 : i32, i32
  }
  func.func @transform_6(%arg0: i32, %arg1: i32) -> (i32, i32) {
    %c0_i32 = arith.constant 0 : i32
    %c0_i32_0 = arith.constant 0 : i32
    %c0_i32_1 = arith.constant 0 : i32
    return %c0_i32, %c0_i32_0 : i32, i32
  }
  func.func @transform_7(%arg0: i32, %arg1: i32) -> (i32, i32) {
    %c0_i32 = arith.constant 0 : i32
    %c0_i32_0 = arith.constant 0 : i32
    %c0_i32_1 = arith.constant 0 : i32
    return %c0_i32, %c0_i32_0 : i32, i32
  }
  func.func @transform_8(%arg0: i32, %arg1: i32) -> (i32, i32) {
    %c0_i32 = arith.constant 0 : i32
    %c0_i32_0 = arith.constant 0 : i32
    %c0_i32_1 = arith.constant 0 : i32
    return %c0_i32, %c0_i32_0 : i32, i32
  }
  func.func @transform_9(%arg0: i32, %arg1: i32) -> (i32, i32) {
    %c0_i32 = arith.constant 0 : i32
    %c0_i32_0 = arith.constant 0 : i32
    %c0_i32_1 = arith.constant 0 : i32
    return %c0_i32, %c0_i32_0 : i32, i32
  }
  func.func @transform_10(%arg0: i32, %arg1: i32) -> (i32, i32, i32) {
    %c0_i32 = arith.constant 0 : i32
    %c0_i32_0 = arith.constant 0 : i32
    return %arg0, %arg1, %c0_i32 : i32, i32, i32
  }
}

</mosaic_0001>

<bundles_post_ra>
// kernel: tpu_custom_call.1
= control target key start
LH: loop header
LB: loop body
LE: loop exit
PB: predicated region body
PF: predicated region fallthrough
CT: control target
= control target key end

     0   :  { %s12216_s0 = inlined_call_operand.hbm [shape: bf16[2,512,256], index: 0, kind: input, shape index: {}]   ;;  %s12217_s1 = inlined_call_operand.hbm [shape: bf16[2,256,128], index: 1, kind: input, shape index: {}]   ;;  %s12218_s2 = inlined_call_operand.hbm [shape: bf16[256,256], index: 2, kind: input, shape index: {}]   ;;  %s12219_s3 = inlined_call_operand.vmem [shape: f32[1,256], index: 3, kind: input, shape index: {}]   ;;  %s12220_s4 = inlined_call_operand.hbm [shape: bf16[128,256], index: 4, kind: input, shape index: {}]   ;;  %s12221_s5 = inlined_call_operand.vmem [shape: f32[1,256], index: 5, kind: input, shape index: {}]   ;;  %s12222_s6 = inlined_call_operand.hbm [shape: bf16[128,256], index: 6, kind: input, shape index: {}]   ;;  %s12223_s7 = inlined_call_operand.vmem [shape: f32[1,256], index: 7, kind: input, shape index: {}]   ;;  %s12224_s8 = inlined_call_operand.hbm [shape: bf16[256,256], index: 8, kind: input, shape index: {}]   ;;  %s12225_s9 = inlined_call_operand.vmem [shape: f32[1,256], index: 9, kind: input, shape index: {}]   ;;  %s12226_s10 = inlined_call_operand.hbm [shape: f32[2,512,256], index: 10, kind: output, shape index: {}]  }
   0x1   :  { %12663 = sst [smem:[#allocation329_spill]] %s12216_s0 }
   0x2   :  { %12664 = sst [smem:[#allocation330_spill]] %s12218_s2 }
   0x3   :  { %12665 = sst [smem:[#allocation331_spill]] %s12219_s3 }
   0x4   :  { %12666 = sst [smem:[#allocation332_spill]] %s12220_s4 }
   0x5   :  { %12667 = sst [smem:[#allocation333_spill]] %s12221_s5 }
   0x6   :  { %12668 = sst [smem:[#allocation334_spill]] %s12222_s6 }
   0x7   :  { %12669 = sst [smem:[#allocation335_spill]] %s12223_s7 }
   0x8   :  { %12670 = sst [smem:[#allocation336_spill]] %s12224_s8 }
   0x9   :  { %12671 = sst [smem:[#allocation337_spill]] %s12225_s9 }
   0xa   :  { %12672 = sst [smem:[#allocation338_spill]] %s12226_s10 }
   0xb   :  { %15 = vsyncpa [#allocation6], 0 }
   0xc   :  { %17 = vsyncpa [#allocation6 + $0x1], 0 }
   0xd   :  { %18 = vsyncpa [#allocation9], 0 }
   0xe   :  { %20 = vsyncpa [#allocation9 + $0x1], 0 }
   0xf   :  { %21 = vsyncpa [#allocation12], 0 }
  0x10   :  { %22 = vsyncpa [#allocation15], 0 }
  0x11   :  { %23 = vsyncpa [#allocation7], 0 }
  0x12   :  { %25 = vsyncpa [#allocation7 + $0x1], 0  ;;  %s8279_s13 = smov 0   ;;  %s8281_s14 = smov 0  }
  0x13   :  { %s8283_s15 = smov 0   ;;  %s8285_s16 = smov 0  }
  0x14   :  { %s8287_s17 = smov 0   ;;  %s8289_s18 = smov 0  }
  0x15   :  { %s8291_s19 = smov 0   ;;  %s8293_s20 = smov 0  }
  0x16   :  { %s8295_s21 = smov 0   ;;  %s8297_s22 = smov 0  }
  0x17   :  { %s8299_s23 = smov 0  }
  0x18 LB: > { %12673 = sst [smem:[#allocation23_spill]] %s8192_s19  ;;  %s8333_s24 = sadd.s32 4294967295, %s8208_s23   ;;  %s8208_s23 = sphi %s8299_s23, %s31_s23   ;;  %s8204_s22 = sphi %s8297_s22, %s13835_s22   ;;  %s8200_s21 = sphi %s8295_s21, %s13834_s21   ;;  %s8196_s20 = sphi %s8293_s20, %s13833_s20   ;;  %s8192_s19 = sphi %s8291_s19, %s13832_s19   ;;  %s8188_s18 = sphi %s8289_s18, %s13831_s18   ;;  %s8184_s17 = sphi %s8287_s17, %s13830_s17   ;;  %s8180_s16 = sphi %s8285_s16, %s13829_s16   ;;  %s8176_s15 = sphi %s8283_s15, %s13828_s15   ;;  %s8172_s14 = sphi %s8281_s14, %s13827_s14   ;;  %s8168_s13 = sphi %s8279_s13, %s13826_s13  }
  0x19   : > { %12674 = sst [smem:[#allocation24_spill]] %s8196_s20  ;;  %p91_p0 = scmp.ne.s32.totalorder %s8172_s14, %s8168_s13 }
  0x1a   : > { %p12228_p1 = scmp.eq.s32.totalorder %s8333_s24, 0  ;;  %p6110_p3 = scmp.ge.s32.totalorder %s8208_s23, 1 }
  0x1b   : > { %p298_p4 = scmp.lt.s32.totalorder %s8208_s23, 5  ;;  %s8210_s27 = smov [#allocation10]  }
  0x1c   : > { %p8342_p5 = por %p91_p0, %p12228_p1  ;;  %s310_s28 = sshll.u32 %s8210_s27, 4  ;;  %s311_s28 = int_to_ptr.vmem [resolvable:$true] %s310_s28 }
  0x1d   : > { %p8346_p6 = pnand %p6110_p3, %p298_p4  ;;  %s8211_s30 = smov [#allocation11]  }
  0x1e   : > { %s12675_s25 = scalar_select %p8342_p5, 1, 0 }
  0x1f   : > { %s12677_s26 = scalar_select %p8346_p6, 1, 0 }
  0x20   : > { %12676 = sst [smem:[#allocation25_spill]] %s12675_s25  ;;  %p6917_p7 = pneg %p8346_p6 }
  0x21   : > { %12678 = sst [smem:[#allocation26_spill]] %s12677_s26  ;;  %s326_s11 = sshll.u32 %s8211_s30, 4  ;;  %s8358_s11 = int_to_ptr.vmem [resolvable:$true] %s326_s11 }
  0x22   : > { %p8354_p8 = pnand %p6917_p7, %p12228_p1  ;;  %s12680_s2 = sld [smem:[#allocation330_spill]] }
  0x24   : > { %p8368_p10 = pneg %p8354_p8 }
  0x28   : > { %s7898_s10 = scalar_lea.hbm %s12680_s2, 4096 }
  0x29   : > { %p7899_p9 = scmp.ne.s32.totalorder %s12680_s2, %s7898_s10  ;;  %p7905_p13 = scmp.lt.u32.totalorder %s7898_s10, %s12680_s2 }
  0x2b   : > { %p7901_p11 = pnand %p8368_p10, %p7899_p9 }
  0x2d   : > { %p7902_p12 = pneg %p7901_p11 }
  0x2f   : > { %p7907_p0 = pnand %p7905_p13, %p7902_p12 }
  0x31   : > { %7910 = shalt.err (!%p7907_p0)
}
  0x32   : > { %s7911_s12 = scalar_lea.vmem %s311_s28, 4096  ;;  %p7919_p1 = scmp.lt.s32.totalorder %s311_s28, %s311_s28 }
  0x33   : > { %p7912_p3 = scmp.ne.s32.totalorder %s311_s28, %s7911_s12  ;;  %p7920_p2 = scmp.lt.s32.totalorder %s7911_s12, %s7911_s12 }
  0x35   : > { %p7914_p4 = pnand %p7912_p3, %p8368_p10  ;;  %p7921_p5 = por %p7920_p2, %p7919_p1 }
  0x37   : > { %p7915_p7 = pneg %p7914_p4 }
  0x39   : > { %p7922_p6 = pnand %p7921_p5, %p7915_p7 }
  0x3b   : > { %7925 = shalt.err (!%p7922_p6)
}
  0x3c   : > { %s12234_s9 = smov 128   ;;  %s12235_s20 = smov 8  }
  0x3d   : > { %6920 = dma.hbm_to_vmem [thread:$0]  (!%p8354_p8), %s12680_s2, 4096, %s311_s28, [#allocation9], %s12234_s9, %s12234_s9, %s12235_s20  }
  0x3e   : > { %s12682_s4 = sld [smem:[#allocation332_spill]] }
  0x44   : > { %s7926_s7 = scalar_lea.hbm %s12682_s4, 2048 }
  0x45   : > { %p7927_p1 = scmp.ne.s32.totalorder %s12682_s4, %s7926_s7  ;;  %p7933_p6 = scmp.lt.u32.totalorder %s7926_s7, %s12682_s4 }
  0x47   : > { %p7929_p2 = pnand %p7927_p1, %p8368_p10 }
  0x49   : > { %p7930_p5 = pneg %p7929_p2 }
  0x4b   : > { %p7935_p9 = pnand %p7933_p6, %p7930_p5 }
  0x4d   : > { %7938 = shalt.err (!%p7935_p9)
}
  0x4e   : > { %s7939_s28 = scalar_lea.vmem %s8358_s11, 2048  ;;  %p7947_p0 = scmp.lt.s32.totalorder %s8358_s11, %s8358_s11 }
  0x4f   : > { %p7940_p11 = scmp.ne.s32.totalorder %s8358_s11, %s7939_s28  ;;  %p7948_p3 = scmp.lt.s32.totalorder %s7939_s28, %s7939_s28 }
  0x51   : > { %p7942_p12 = pnand %p7940_p11, %p8368_p10  ;;  %p7949_p4 = por %p7948_p3, %p7947_p0 }
  0x53   : > { %p7943_p13 = pneg %p7942_p12 }
  0x55   : > { %p7950_p7 = pnand %p7949_p4, %p7943_p13 }
  0x57   : > { %7953 = shalt.err (!%p7950_p7)
}
  0x58   : > { %6923 = dma.hbm_to_vmem [thread:$0]  (!%p8354_p8), %s12682_s4, 2048, %s8358_s11, [#allocation12], %s12234_s9, %s12234_s9, %s12235_s20  }
  0x59   : > { %s8214_s19 = smov [#allocation13]   ;;  %s8215_s3 = smov [#allocation14]  }
  0x5a   : > { %s342_s25 = sshll.u32 %s8214_s19, 4  ;;  %s358_s10 = sshll.u32 %s8215_s3, 4  ;;  %s343_s25 = int_to_ptr.vmem [resolvable:$true] %s342_s25  ;;  %s359_s10 = int_to_ptr.vmem [resolvable:$true] %s358_s10 }
  0x5b   : > { %s12683_s6 = sld [smem:[#allocation334_spill]] }
  0x61   : > { %s7954_s12 = scalar_lea.hbm %s12683_s6, 2048 }
  0x62   : > { %p7955_p1 = scmp.ne.s32.totalorder %s12683_s6, %s7954_s12  ;;  %p7961_p6 = scmp.lt.u32.totalorder %s7954_s12, %s12683_s6 }
  0x64   : > { %p7957_p2 = pnand %p7955_p1, %p8368_p10 }
  0x66   : > { %p7958_p5 = pneg %p7957_p2 }
  0x68   : > { %p7963_p9 = pnand %p7961_p6, %p7958_p5 }
  0x6a   : > { %7966 = shalt.err (!%p7963_p9)
}
  0x6b   : > { %s7967_s11 = scalar_lea.vmem %s343_s25, 2048  ;;  %p7975_p0 = scmp.lt.s32.totalorder %s343_s25, %s343_s25 }
  0x6c   : > { %p7968_p11 = scmp.ne.s32.totalorder %s343_s25, %s7967_s11  ;;  %p7976_p3 = scmp.lt.s32.totalorder %s7967_s11, %s7967_s11 }
  0x6e   : > { %p7970_p12 = pnand %p7968_p11, %p8368_p10  ;;  %p7977_p4 = por %p7976_p3, %p7975_p0 }
  0x70   : > { %p7971_p13 = pneg %p7970_p12 }
  0x72   : > { %p7978_p7 = pnand %p7977_p4, %p7971_p13 }
  0x74   : > { %7981 = shalt.err (!%p7978_p7)
}
  0x75   : > { %6926 = dma.hbm_to_vmem [thread:$0]  (!%p8354_p8), %s12683_s6, 2048, %s343_s25, [#allocation12], %s12234_s9, %s12234_s9, %s12235_s20  }
  0x76   : > { %s12684_s8 = sld [smem:[#allocation336_spill]] }
  0x7c   : > { %s7982_s3 = scalar_lea.hbm %s12684_s8, 4096 }
  0x7d   : > { %p7983_p1 = scmp.ne.s32.totalorder %s12684_s8, %s7982_s3  ;;  %p7989_p6 = scmp.lt.u32.totalorder %s7982_s3, %s12684_s8 }
  0x7f   : > { %p7985_p2 = pnand %p7983_p1, %p8368_p10 }
  0x81   : > { %p7986_p5 = pneg %p7985_p2 }
  0x83   : > { %p7991_p9 = pnand %p7989_p6, %p7986_p5 }
  0x85   : > { %7994 = shalt.err (!%p7991_p9)
}
  0x86   : > { %s7995_s5 = scalar_lea.vmem %s359_s10, 4096  ;;  %p8003_p0 = scmp.lt.s32.totalorder %s359_s10, %s359_s10 }
  0x87   : > { %p7996_p11 = scmp.ne.s32.totalorder %s359_s10, %s7995_s5  ;;  %p8004_p3 = scmp.lt.s32.totalorder %s7995_s5, %s7995_s5 }
  0x89   : > { %p7998_p12 = pnand %p7996_p11, %p8368_p10  ;;  %p8005_p4 = por %p8004_p3, %p8003_p0 }
  0x8b   : > { %p7999_p13 = pneg %p7998_p12 }
  0x8d   : > { %p8006_p7 = pnand %p8005_p4, %p7999_p13 }
  0x8f   : > { %8009 = shalt.err (!%p8006_p7)
}
  0x90   : > { %6929 = dma.hbm_to_vmem [thread:$0]  (!%p8354_p8), %s12684_s8, 4096, %s359_s10, [#allocation15], %s12234_s9, %s12234_s9, %s12235_s20  }
  0x91   : > { %s6109_s29 = sadd.s32 4294967294, %s8208_s23   ;;  %s40_s27 = sadd.s32 1, %s8200_s21 }
  0x92   : > { %s43_s2 = sadd.s32 1, %s8204_s22  ;;  %p41_p10 = scmp.ge.s32.totalorder %s40_s27, 2 }
  0x93   : > { %s52_s26 = sadd.s32 1, %s8188_s18  ;;  %p59_p1 = scmp.ne.s32.totalorder %s8188_s18, %s8184_s17 }
  0x94   : > { %p12237_p2 = scmp.eq.s32.totalorder %s8208_s23, 0  ;;  %s13837_s27 = smov (%p41_p10, %s40_s27), 0 }
  0x95   : > { %s13839_s2 = smov (!%p41_p10, %s43_s2), %s8204_s22  ;;  %s48_s7 = ssub.s32 %s8200_s21, %s13837_s27 }
  0x96   : > { %p8469_p5 = por %p12237_p2, %p59_p1  ;;  %p45_p8 = scmp.ge.s32.totalorder %s13839_s2, 2 }
  0x97   : > { %p65_p6 = scmp.ne.s32.totalorder %s8184_s17, %s8180_s16  ;;  %p12686_p9 = scmp.eq.s32.totalorder %s8333_s24, 3 }
  0x98   : > { %p291_p12 = scmp.eq.s32.totalorder %s6109_s29, 3  ;;  %s13841_s2 = smov (%p45_p8, %s13839_s2), 0 }
  0x99   : > { %p8477_p11 = por %p12686_p9, %p59_p1  ;;  %p12688_p13 = scmp.eq.s32.totalorder %s8333_s24, 0 }
  0x9a   : > { %p8489_p3 = por %p291_p12, %p65_p6  ;;  %s8495_s30 = ssub.s32 %s8204_s22, %s13841_s2 }
  0x9b   : > { %s12687_s19 = scalar_select %p8477_p11, 1, 0 }
  0x9c   : > { %p8485_p0 = por %p12688_p13, %p65_p6  ;;  %p12236_p4 = scmp.lt.s32.totalorder %s8208_s23, 4 }
  0x9d   : > { %s12690_s13 = scalar_select %p8489_p3, 1, 0 }
  0x9e   : > { %s49_s12 = sor.u32 %s48_s7, %s8495_s30  ;;  %s375_s28 = sand.u32 1, %s8188_s18  }
  0x9f   : > { %p50_p10 = scmp.eq.s32.totalorder %s49_s12, 0  ;;  %s6116_s5 = sshll.u32 %s375_s28, 8 }
  0xa0   : > { %s6284_s11 = sshll.u32 %s8200_s21, 6  ;;  %s6119_s29 = sshll.u32 %s8204_s22, 7 }
  0xa1   : > { %s8502_s25 = scalar_select %p50_p10, %s8188_s18, %s52_s26  }
  0xa2   : > { %s379_s9 = scalar_lea.vmem [#allocation5], %s6116_s5  ;;  %s386_s4 = sadd.s32 %s6284_s11, %s6119_s29 }
  0xa3   : > { %s389_s20 = sshll.u32 %s379_s9, 4  ;;  %s6120_s6 = sshll.u32 %s386_s4, 6  ;;  %s8506_s20 = int_to_ptr.vmem [resolvable:$true] %s389_s20 }
  0xa4   : > { %p8512_p1 = pnand %p12236_p4, %p8469_p5  ;;  %s12692_s0 = sld [smem:[#allocation329_spill]] }
  0xa5   : > { %s8521_s9 = scalar_lea.sflag [#allocation6], %s375_s28 }
  0xa6   : > { %p8012_p5 = pneg %p8512_p1 }
  0xaa   : > { %s8519_s26 = scalar_lea.hbm %s12692_s0, %s6120_s6  ;;  %s8015_s11 = scalar_lea.hbm %s12692_s0, 16384 }
  0xab   : > { %s8010_s4 = scalar_lea.hbm %s8519_s26, 4096  ;;  %p8016_p12 = scmp.lt.u32.totalorder %s8519_s26, %s12692_s0 }
  0xac   : > { %p8011_p8 = scmp.ne.s32.totalorder %s8519_s26, %s8010_s4  ;;  %p8017_p13 = scmp.lt.u32.totalorder %s8015_s11, %s8010_s4 }
  0xad   : > { %p8019_p4 = scmp.lt.u32.totalorder %s8010_s4, %s8519_s26 }
  0xae   : > { %p8013_p6 = pnand %p8012_p5, %p8011_p8  ;;  %p8018_p10 = por %p8017_p13, %p8016_p12 }
  0xb0   : > { %p8014_p9 = pneg %p8013_p6  ;;  %p8020_p2 = por %p8019_p4, %p8018_p10 }
  0xb2   : > { %p8021_p7 = pnand %p8020_p2, %p8014_p9 }
  0xb4   : > { %8024 = shalt.err (!%p8021_p7)
}
  0xb5   : > { %s8025_s28 = scalar_lea.vmem %s8506_s20, 4096  ;;  %s8216_s7 = smov [#allocation5]  }
  0xb6   : > { %p8026_p8 = scmp.ne.s32.totalorder %s8506_s20, %s8025_s28  ;;  %s8030_s12 = sshll.u32 %s8216_s7, 4  ;;  %s8031_s12 = int_to_ptr.vmem [resolvable:$false] %s8030_s12 }
  0xb7   : > { %s8032_s10 = scalar_lea.vmem %s8031_s12, 8192  ;;  %p8033_p11 = scmp.lt.s32.totalorder %s8506_s20, %s8031_s12 }
  0xb8   : > { %p8028_p6 = pnand %p8026_p8, %p8012_p5  ;;  %p8034_p12 = scmp.lt.s32.totalorder %s8032_s10, %s8025_s28 }
  0xba   : > { %p8029_p3 = pneg %p8028_p6  ;;  %p8035_p13 = por %p8034_p12, %p8033_p11 }
  0xbc   : > { %p8036_p4 = pnand %p8035_p13, %p8029_p3 }
  0xbe   : > { %8039 = shalt.err (!%p8036_p4)
}
  0xbf   : > { %s12693_s4 = smov 8   ;;  %s12694_s5 = smov 128  }
  0xc0   : > { %6933 = dma.hbm_to_vmem [thread:$0]  (!%p8512_p1), %s8519_s26, 4096, %s8506_s20, %s8521_s9, %s12694_s5, %s12694_s5, %s12693_s4  }
  0xc1   : > { %s78_s11 = sadd.s32 1, %s8176_s15  ;;  %p85_p2 = scmp.ne.s32.totalorder %s8176_s15, %s8172_s14 }
  0xc2   : > { %p12695_p11 = scmp.eq.s32.totalorder %s8495_s30, 0  ;;  %p12696_p3 = scmp.eq.s32.totalorder %s8208_s23, 0 }
  0xc3   : > { %s399_s6 = sand.u32 1, %s8208_s23   ;;  %s401_s29 = sand.u32 1, %s8176_s15  }
  0xc4   : > { %s8558_s8 = scalar_select %p12695_p11, %s8176_s15, %s78_s11  }
  0xc5   : > { %p87_p7 = por %p85_p2, %p12696_p3  ;;  %s6121_s28 = sshll.u32 %s401_s29, 7 }
  0xc6   : > { %s6285_s7 = sshll.u32 %s8204_s22, 11  ;;  %s403_s20 = scalar_lea.vmem [#allocation8], %s6121_s28 }
  0xc7   : > { %s8568_s0 = scalar_lea.hbm %s12217_s1, %s6285_s7  ;;  %s410_s26 = sshll.u32 %s403_s20, 4  ;;  %s8576_s26 = int_to_ptr.vmem [resolvable:$true] %s410_s26 }
  0xc8   : > { %p12697_p1 = scmp.lt.s32.totalorder %s8208_s23, 4  ;;  %s8578_s9 = scalar_lea.sflag [#allocation9], %s399_s6 }
  0xc9   : > { %s8040_s4 = scalar_lea.hbm %s8568_s0, 2048  ;;  %s8045_s29 = scalar_lea.hbm %s12217_s1, 4096 }
  0xca   : > { %p8572_p5 = pnand %p12697_p1, %p87_p7  ;;  %p8041_p9 = scmp.ne.s32.totalorder %s8568_s0, %s8040_s4 }
  0xcb   : > { %p8046_p12 = scmp.lt.u32.totalorder %s8568_s0, %s12217_s1  ;;  %p8047_p13 = scmp.lt.u32.totalorder %s8045_s29, %s8040_s4 }
  0xcc   : > { %p8042_p10 = pneg %p8572_p5  ;;  %p8049_p2 = scmp.lt.u32.totalorder %s8040_s4, %s8568_s0 }
  0xcd   : > { %p8048_p4 = por %p8047_p13, %p8046_p12 }
  0xce   : > { %p8043_p8 = pnand %p8042_p10, %p8041_p9 }
  0xcf   : > { %p8050_p11 = por %p8049_p2, %p8048_p4 }
  0xd0   : > { %p8044_p6 = pneg %p8043_p8 }
  0xd2   : > { %p8051_p3 = pnand %p8050_p11, %p8044_p6 }
  0xd4   : > { %8054 = shalt.err (!%p8051_p3)
}
  0xd5   : > { %s8055_s6 = scalar_lea.vmem %s8576_s26, 2048  ;;  %s8217_s12 = smov [#allocation8]  }
  0xd6   : > { %p8056_p7 = scmp.ne.s32.totalorder %s8576_s26, %s8055_s6  ;;  %s8060_s10 = sshll.u32 %s8217_s12, 4  ;;  %s8061_s10 = int_to_ptr.vmem [resolvable:$false] %s8060_s10 }
  0xd7   : > { %s8062_s20 = scalar_lea.vmem %s8061_s10, 4096  ;;  %p8063_p8 = scmp.lt.s32.totalorder %s8576_s26, %s8061_s10 }
  0xd8   : > { %p8058_p1 = pnand %p8056_p7, %p8042_p10  ;;  %p8064_p12 = scmp.lt.s32.totalorder %s8062_s20, %s8055_s6 }
  0xda   : > { %p8059_p9 = pneg %p8058_p1  ;;  %p8065_p13 = por %p8064_p12, %p8063_p8 }
  0xdc   : > { %p8066_p4 = pnand %p8065_p13, %p8059_p9 }
  0xde   : > { %8069 = shalt.err (!%p8066_p4)
}
  0xdf   : > { %s8218_s4 = smov 64   ;;  %s8219_s5 = smov 4  }
  0xe0   : > { %6936 = dma.hbm_to_vmem [thread:$0]  (!%p8572_p5), %s8568_s0, 2048, %s8576_s26, %s8578_s9, %s8218_s4, %s8218_s4, %s8219_s5  }
  0xe1   : > { %s12699_s11 = sld [smem:[#allocation26_spill]] }
  0xe7   : > { %p12700_p10 = scmp.ne.s32.totalorder %s12699_s11, 0 }
  0xe9   : > { %422 = sbr.rel (%p12700_p10) target bundleno = 2481 (0x9b1), region = 60 }
  0xf0   : > { %s8609_s29 = sand.u32 1, %s8184_s17  }
  0xf1   : > { %s6125_s28 = sshll.u32 %s8609_s29, 8  ;;  %s425_s7 = scalar_lea.sflag [#allocation6], %s8609_s29 }
  0xf2   : > { %s8613_s6 = scalar_lea.vmem [#allocation5], %s6125_s28 }
  0xf3   : > { %8143 = dma.done.wait (%p8485_p0), %s425_s7, 4096  }
  0xf4   : > { %8145 = vsyncadd (%p8485_p0), %s425_s7, 4294963200  ;;  %s12701_s0 = sld [smem:[#allocation25_spill]]  ;;  %s433_s26 = sand.u32 1, %s8333_s24  }
  0xf5   : > { %s435_s30 = sand.u32 1, %s8172_s14   ;;  %s434_s12 = scalar_lea.sflag [#allocation9], %s433_s26 }
  0xf6   : > { %s6126_s9 = sshll.u32 %s435_s30, 7 }
  0xf7   : > { %s8621_s10 = scalar_lea.vmem [#allocation8], %s6126_s9 }
  0xfa   : > { %p12702_p5 = scmp.ne.s32.totalorder %s12701_s0, 0 }
  0xfc   : > { %8147 = dma.done.wait (%p12702_p5), %s434_s12, 2048  }
  0xfd   : > { %8149 = vsyncadd (%p12702_p5), %s434_s12, 4294965248  ;;  %p12703_p6 = scmp.eq.s32.totalorder %s8333_s24, 0 }
  0xff   : > { %8151 = dma.done.wait (%p12703_p6), [#allocation9], 4096   ;;  %p12704_p2 = pmov %p12703_p6 }
 0x101   : > { %8153 = vsyncadd (%p12704_p2), [#allocation9], 4294963200  ;;  %p12705_p0 = pmov %p12704_p2 }
 0x103   : > { %8155 = dma.done.wait (%p12705_p0), [#allocation12], 4096   ;;  %p12706_p11 = pmov %p12705_p0 }
 0x104   : > { %p12707_p3 = pmov %p12705_p0 }
 0x105   : > { %8157 = vsyncadd (%p12706_p11), [#allocation12], 4294963200 }
 0x106   : > { %8159 = dma.done.wait (%p12707_p3), [#allocation15], 4096   ;;  %p12708_p7 = pmov %p12705_p0 }
 0x107   : > { %s6131_s3 = sshll.u32 %s8609_s29, 9  ;;  %s12709_s4 = sld [smem:[#allocation23_spill]] }
 0x108   : > { %8161 = vsyncadd (%p12708_p7), [#allocation15], 4294963200  ;;  %s8640_s20 = scalar_lea.vmem [#allocation16], %s6131_s3 }
 0x10d   : > { %p6132_p1 = scmp.ne.s32.totalorder %s12709_s4, 0 }
 0x10e   : > { %v7050_v0 = vld [vmem:[#allocation11 + $0x4] ss:$8 sps:$4 sm:$0xff] (!%p6132_p1)   ;;  %v8220_v2 = vmov (!%p6132_p1), 0   ;;  %v7054_v3 = vld [vmem:[#allocation11] ss:$8 sps:$4 sm:$0xff] (!%p6132_p1)   ;;  %v7100_v35 = vld [vmem:[%s8621_s10 + $0x10] sm:$0xff] (!%p6132_p1)   ;;  %v552_v49 = vlaneseq (!%p6132_p1) }
 0x10f   : > { %501 = sbr.rel (%p6132_p1) target bundleno = 644 (0x284), region = 88  ;;  %v7052_v1 = vld [vmem:[#allocation13 + $0x4] ss:$8 sps:$4 sm:$0xff] (!%p6132_p1)   ;;  %770 = vmatprep.mubr.bf16.mxu0 (!%p6132_p1), %v8220_v2  ;;  %1103 = vmatprep.mubr.bf16.mxu1 (!%p6132_p1), %v8220_v2  ;;  %v7055_v4 = vld [vmem:[#allocation13] ss:$8 sps:$4 sm:$0xff] (!%p6132_p1)   ;;  %v7101_v36 = vld [vmem:[%s8621_s10 + $0x18] sm:$0xff] (!%p6132_p1)  }
 0x110   : > { %738 = vmatprep.subr.bf16.mxu0 (!%p6132_p1), %v7050_v0  ;;  %1071 = vmatprep.subr.bf16.mxu1 (!%p6132_p1), %v7052_v1  ;;  %v7056_v5 = vld [vmem:[#allocation11 + $0x14] ss:$8 sps:$4 sm:$0xff] (!%p6132_p1)   ;;  %v7060_v7 = vld [vmem:[#allocation11 + $0x10] ss:$8 sps:$4 sm:$0xff] (!%p6132_p1)   ;;  %v7062_v9 = vld [vmem:[#allocation11 + $0x24] ss:$8 sps:$4 sm:$0xff] (!%p6132_p1)  }
 0x111   : > { %739 = vmatpush1.bf16.msra.mxu0 (!%p6132_p1), %v7054_v3  ;;  %1072 = vmatpush1.bf16.msra.mxu1 (!%p6132_p1), %v7055_v4  ;;  %v7058_v6 = vld [vmem:[#allocation13 + $0x14] ss:$8 sps:$4 sm:$0xff] (!%p6132_p1)   ;;  %v7061_v8 = vld [vmem:[#allocation13 + $0x10] ss:$8 sps:$4 sm:$0xff] (!%p6132_p1)   ;;  %v7064_v10 = vld [vmem:[#allocation13 + $0x24] ss:$8 sps:$4 sm:$0xff] (!%p6132_p1)  }
 0x112   : > { %740 = vmatprep.subr.bf16.mxu0 (!%p6132_p1), %v7056_v5  ;;  %1073 = vmatprep.subr.bf16.mxu1 (!%p6132_p1), %v7058_v6  ;;  %v7066_v11 = vld [vmem:[#allocation11 + $0x20] ss:$8 sps:$4 sm:$0xff] (!%p6132_p1)   ;;  %v7068_v13 = vld [vmem:[#allocation11 + $0x34] ss:$8 sps:$4 sm:$0xff] (!%p6132_p1)   ;;  %v7072_v15 = vld [vmem:[#allocation11 + $0x30] ss:$8 sps:$4 sm:$0xff] (!%p6132_p1)  }
 0x113   : > { %v7067_v12 = vld [vmem:[#allocation13 + $0x20] ss:$8 sps:$4 sm:$0xff] (!%p6132_p1)   ;;  %v7070_v14 = vld [vmem:[#allocation13 + $0x34] ss:$8 sps:$4 sm:$0xff] (!%p6132_p1)   ;;  %v7073_v16 = vld [vmem:[#allocation13 + $0x30] ss:$8 sps:$4 sm:$0xff] (!%p6132_p1)  }
 0x114   : > { %v7074_v17 = vld [vmem:[#allocation11 + $0x44] ss:$8 sps:$4 sm:$0xff] (!%p6132_p1)   ;;  %v7078_v19 = vld [vmem:[#allocation11 + $0x40] ss:$8 sps:$4 sm:$0xff] (!%p6132_p1)   ;;  %v7080_v21 = vld [vmem:[#allocation11 + $0x54] ss:$8 sps:$4 sm:$0xff] (!%p6132_p1)  }
 0x115   : > { %741 = vmatpush1.bf16.msra.mxu0 (!%p6132_p1), %v7060_v7  ;;  %1074 = vmatpush1.bf16.msra.mxu1 (!%p6132_p1), %v7061_v8  ;;  %v7076_v18 = vld [vmem:[#allocation13 + $0x44] ss:$8 sps:$4 sm:$0xff] (!%p6132_p1)   ;;  %v7079_v20 = vld [vmem:[#allocation13 + $0x40] ss:$8 sps:$4 sm:$0xff] (!%p6132_p1)   ;;  %v7082_v22 = vld [vmem:[#allocation13 + $0x54] ss:$8 sps:$4 sm:$0xff] (!%p6132_p1)  }
 0x116   : > { %742 = vmatprep.subr.bf16.mxu0 %v7062_v9  ;;  %1075 = vmatprep.subr.bf16.mxu1 %v7064_v10  ;;  %v7084_v23 = vld [vmem:[#allocation11 + $0x50] ss:$8 sps:$4 sm:$0xff]   ;;  %v7086_v25 = vld [vmem:[#allocation11 + $0x64] ss:$8 sps:$4 sm:$0xff]   ;;  %v7090_v27 = vld [vmem:[#allocation11 + $0x60] ss:$8 sps:$4 sm:$0xff]  }
 0x117   : > { %v7085_v24 = vld [vmem:[#allocation13 + $0x50] ss:$8 sps:$4 sm:$0xff]   ;;  %v7088_v26 = vld [vmem:[#allocation13 + $0x64] ss:$8 sps:$4 sm:$0xff]   ;;  %v7091_v28 = vld [vmem:[#allocation13 + $0x60] ss:$8 sps:$4 sm:$0xff]  }
 0x118   : > { %v7092_v29 = vld [vmem:[#allocation11 + $0x74] ss:$8 sps:$4 sm:$0xff]   ;;  %v7096_v31 = vld [vmem:[#allocation11 + $0x70] ss:$8 sps:$4 sm:$0xff]   ;;  %v7098_v33 = vld [vmem:[%s8621_s10] sm:$0xff]   ;;  %v553_v50 = vshrl.u32 %v552_v49, 7 }
 0x119   : > { %743 = vmatpush1.bf16.msra.mxu0 %v7066_v11  ;;  %1076 = vmatpush1.bf16.msra.mxu1 %v7067_v12  ;;  %v7094_v30 = vld [vmem:[#allocation13 + $0x74] ss:$8 sps:$4 sm:$0xff]   ;;  %v7097_v32 = vld [vmem:[#allocation13 + $0x70] ss:$8 sps:$4 sm:$0xff]   ;;  %v7099_v34 = vld [vmem:[%s8621_s10 + $0x8] sm:$0xff]   ;;  %s12710_s11 = sld [smem:[#allocation333_spill]] }
 0x11a   : > { %744 = vmatprep.subr.bf16.mxu0 %v7068_v13  ;;  %1077 = vmatprep.subr.bf16.mxu1 %v7070_v14  ;;  %v7102_v37 = vld [vmem:[%s8621_s10 + $0x20] sm:$0xff]   ;;  %v7103_v38 = vld [vmem:[%s8621_s10 + $0x28] sm:$0xff]   ;;  %v7104_v39 = vld [vmem:[%s8621_s10 + $0x30] sm:$0xff]   ;;  %v554_v51 = vsub.s32 0, %v553_v50  ;;  %s12711_s0 = sld [smem:[#allocation335_spill]]  ;;  %v558_v54 = vsub.s32 1, %v553_v50 }
 0x11b   : > { %v7105_v40 = vld [vmem:[%s8621_s10 + $0x38] sm:$0xff]   ;;  %v7106_v41 = vld [vmem:[%s8621_s10 + $0x40] sm:$0xff]   ;;  %v7107_v42 = vld [vmem:[%s8621_s10 + $0x48] sm:$0xff]  }
 0x11c   : > { %v7108_v43 = vld [vmem:[%s8621_s10 + $0x50] sm:$0xff]   ;;  %v7109_v44 = vld [vmem:[%s8621_s10 + $0x58] sm:$0xff]   ;;  %v7110_v45 = vld [vmem:[%s8621_s10 + $0x60] sm:$0xff]  }
 0x11d   : > { %745 = vmatpush1.bf16.msra.mxu0 %v7072_v15  ;;  %1078 = vmatpush1.bf16.msra.mxu1 %v7073_v16  ;;  %v7111_v46 = vld [vmem:[%s8621_s10 + $0x68] sm:$0xff]   ;;  %v7112_v47 = vld [vmem:[%s8621_s10 + $0x70] sm:$0xff]   ;;  %v7113_v48 = vld [vmem:[%s8621_s10 + $0x78] sm:$0xff]  }
 0x11e   : > { %746 = vmatprep.subr.bf16.mxu0 %v7074_v17  ;;  %1079 = vmatprep.subr.bf16.mxu1 %v7076_v18 }
 0x11f   : > { %v550_v52 = vld [vmem:[%s12710_s11] sm:$0x3] }
 0x120   : > { %v979_v53 = vld [vmem:[%s12711_s0] sm:$0x3]  ;;  %v8697_v55 = vrot.slane %v550_v52, %v554_v51  ;;  %v8701_v59 = vrot.slane %v550_v52, %v558_v54 }
 0x121   : > { %747 = vmatpush1.bf16.msra.mxu0 %v7078_v19  ;;  %1080 = vmatpush1.bf16.msra.mxu1 %v7079_v20  ;;  %v8699_v56 = vrot.slane %v979_v53, %v554_v51  ;;  %v8703_v60 = vrot.slane %v979_v53, %v558_v54 }
 0x122   : > { %748 = vmatprep.subr.bf16.mxu0 %v7080_v21  ;;  %1081 = vmatprep.subr.bf16.mxu1 %v7082_v22 }
 0x125   : > { %749 = vmatpush1.bf16.msra.mxu0 %v7084_v23  ;;  %1082 = vmatpush1.bf16.msra.mxu1 %v7085_v24 }
 0x126   : > { %750 = vmatprep.subr.bf16.mxu0 %v7086_v25  ;;  %1083 = vmatprep.subr.bf16.mxu1 %v7088_v26 }
 0x129   : > { %751 = vmatpush1.bf16.msra.mxu0 %v7090_v27  ;;  %1084 = vmatpush1.bf16.msra.mxu1 %v7091_v28 }
 0x12a   : > { %752 = vmatprep.subr.bf16.mxu0 %v7092_v29  ;;  %1085 = vmatprep.subr.bf16.mxu1 %v7094_v30 }
 0x12d   : > { %753 = vmatpush1.bf16.msra.mxu0 %v7096_v31  ;;  %1086 = vmatpush1.bf16.msra.mxu1 %v7097_v32 }
 0x130   : > { %771 = vmatmul.mubr.bf16.vlgmr.msra.gmra.mrb[0].mxu0 %v7098_v33  ;;  %1104 = vmatmul.mubr.bf16.vlgmr.msra.gmra.mrb[0].mxu1 %v7098_v33 }
 0x131   : > { %780 = vmatprep.mubr.bf16.mxu0 %v8220_v2  ;;  %1113 = vmatprep.mubr.bf16.mxu1 %v8220_v2 }
 0x138   : > { %781 = vmatmul.mubr.bf16.gmra.mrb[4].mxu0 %v7099_v34  ;;  %1114 = vmatmul.mubr.bf16.gmra.mrb[4].mxu1 %v7099_v34 }
 0x139   : > { %790 = vmatprep.mubr.bf16.mxu0 %v8220_v2  ;;  %1123 = vmatprep.mubr.bf16.mxu1 %v8220_v2 }
 0x140   : > { %791 = vmatmul.mubr.bf16.gmra.mrb[8].mxu0 %v7100_v35  ;;  %1124 = vmatmul.mubr.bf16.gmra.mrb[8].mxu1 %v7100_v35 }
 0x141   : > { %800 = vmatprep.mubr.bf16.mxu0 %v8220_v2  ;;  %1133 = vmatprep.mubr.bf16.mxu1 %v8220_v2 }
 0x148   : > { %801 = vmatmul.mubr.bf16.gmra.mrb[12].mxu0 %v7101_v36  ;;  %1134 = vmatmul.mubr.bf16.gmra.mrb[12].mxu1 %v7101_v36 }
 0x149   : > { %810 = vmatprep.mubr.bf16.mxu0 %v8220_v2  ;;  %1143 = vmatprep.mubr.bf16.mxu1 %v8220_v2 }
 0x150   : > { %811 = vmatmul.mubr.bf16.gmra.mrb[16].mxu0 %v7102_v37  ;;  %1144 = vmatmul.mubr.bf16.gmra.mrb[16].mxu1 %v7102_v37 }
 0x151   : > { %820 = vmatprep.mubr.bf16.mxu0 %v8220_v2  ;;  %1153 = vmatprep.mubr.bf16.mxu1 %v8220_v2 }
 0x158   : > { %821 = vmatmul.mubr.bf16.gmra.mrb[20].mxu0 %v7103_v38  ;;  %1154 = vmatmul.mubr.bf16.gmra.mrb[20].mxu1 %v7103_v38 }
 0x159   : > { %830 = vmatprep.mubr.bf16.mxu0 %v8220_v2  ;;  %1163 = vmatprep.mubr.bf16.mxu1 %v8220_v2 }
 0x160   : > { %831 = vmatmul.mubr.bf16.gmra.mrb[24].mxu0 %v7104_v39  ;;  %1164 = vmatmul.mubr.bf16.gmra.mrb[24].mxu1 %v7104_v39 }
 0x161   : > { %840 = vmatprep.mubr.bf16.mxu0 %v8220_v2  ;;  %1173 = vmatprep.mubr.bf16.mxu1 %v8220_v2 }
 0x168   : > { %841 = vmatmul.mubr.bf16.gmra.mrb[28].mxu0 %v7105_v40  ;;  %1174 = vmatmul.mubr.bf16.gmra.mrb[28].mxu1 %v7105_v40 }
 0x169   : > { %850 = vmatprep.mubr.bf16.mxu0 %v8220_v2  ;;  %1183 = vmatprep.mubr.bf16.mxu1 %v8220_v2 }
 0x170   : > { %851 = vmatmul.mubr.bf16.gmra.mrb[32].mxu0 %v7106_v41  ;;  %1184 = vmatmul.mubr.bf16.gmra.mrb[32].mxu1 %v7106_v41 }
 0x171   : > { %860 = vmatprep.mubr.bf16.mxu0 %v8220_v2  ;;  %1193 = vmatprep.mubr.bf16.mxu1 %v8220_v2 }
 0x178   : > { %861 = vmatmul.mubr.bf16.gmra.mrb[36].mxu0 %v7107_v42  ;;  %1194 = vmatmul.mubr.bf16.gmra.mrb[36].mxu1 %v7107_v42 }
 0x179   : > { %870 = vmatprep.mubr.bf16.mxu0 %v8220_v2  ;;  %1203 = vmatprep.mubr.bf16.mxu1 %v8220_v2 }
 0x180   : > { %871 = vmatmul.mubr.bf16.gmra.mrb[40].mxu0 %v7108_v43  ;;  %1204 = vmatmul.mubr.bf16.gmra.mrb[40].mxu1 %v7108_v43 }
 0x181   : > { %880 = vmatprep.mubr.bf16.mxu0 %v8220_v2  ;;  %1213 = vmatprep.mubr.bf16.mxu1 %v8220_v2 }
 0x188   : > { %881 = vmatmul.mubr.bf16.gmra.mrb[44].mxu0 %v7109_v44  ;;  %1214 = vmatmul.mubr.bf16.gmra.mrb[44].mxu1 %v7109_v44 }
 0x189   : > { %890 = vmatprep.mubr.bf16.mxu0 %v8220_v2  ;;  %1223 = vmatprep.mubr.bf16.mxu1 %v8220_v2 }
 0x190   : > { %891 = vmatmul.mubr.bf16.gmra.mrb[48].mxu0 %v7110_v45  ;;  %1224 = vmatmul.mubr.bf16.gmra.mrb[48].mxu1 %v7110_v45 }
 0x191   : > { %900 = vmatprep.mubr.bf16.mxu0 %v8220_v2  ;;  %1233 = vmatprep.mubr.bf16.mxu1 %v8220_v2 }
 0x198   : > { %901 = vmatmul.mubr.bf16.gmra.mrb[52].mxu0 %v7111_v46  ;;  %1234 = vmatmul.mubr.bf16.gmra.mrb[52].mxu1 %v7111_v46 }
 0x199   : > { %910 = vmatprep.mubr.bf16.mxu0 %v8220_v2  ;;  %1243 = vmatprep.mubr.bf16.mxu1 %v8220_v2 }
 0x1a0   : > { %911 = vmatmul.mubr.bf16.gmra.mrb[56].mxu0 %v7112_v47  ;;  %1244 = vmatmul.mubr.bf16.gmra.mrb[56].mxu1 %v7112_v47 }
 0x1a1   : > { %920 = vmatprep.mubr.bf16.mxu0 %v8220_v2  ;;  %1253 = vmatprep.mubr.bf16.mxu1 %v8220_v2 }
 0x1a8   : > { %921 = vmatmul.mubr.bf16.gmra.mrb[60].mxu0 %v7113_v48  ;;  %1254 = vmatmul.mubr.bf16.gmra.mrb[60].mxu1 %v7113_v48 }
 0x203   : > { %v772_v57 = vpop.f32.mrb[0].mxu0  ;;  %v1105_v58 = vpop.f32.mrb[0].mxu1 }
 0x204   : > { %v774_v61 = vpop.f32.mrb[1].mxu0  ;;  %v1107_v62 = vpop.f32.mrb[1].mxu1  ;;  %v773_v1 = vadd.f32 %v772_v57, %v8697_v55  ;;  %v1106_v2 = vadd.f32 %v1105_v58, %v8699_v56 }
 0x205   : > { %v776_v63 = vpop.f32.mrb[2].mxu0  ;;  %v1109_v0 = vpop.f32.mrb[2].mxu1  ;;  %v775_v7 = vadd.f32 %v774_v61, %v8701_v59  ;;  %v1108_v8 = vadd.f32 %v1107_v62, %v8703_v60 }
 0x206   : > { %v777_v3 = vadd.f32 %v776_v63, %v8697_v55  ;;  %v1110_v4 = vadd.f32 %v1109_v0, %v8699_v56  ;;  %v778_v5 = vpop.f32.mrb[3].mxu0  ;;  %v1111_v6 = vpop.f32.mrb[3].mxu1 }
 0x207   : > { %v779_v9 = vadd.f32 %v778_v5, %v8701_v59  ;;  %v1112_v10 = vadd.f32 %v1111_v6, %v8703_v60 }
 0x208   : > { %v931_v11 = vpack.c.bf16 %v777_v3, %v773_v1  ;;  %v1264_v12 = vpack.c.bf16 %v1110_v4, %v1106_v2 }
 0x209   : > { %v932_v13 = vpack.c.bf16 %v779_v9, %v775_v7  ;;  %v1265_v14 = vpack.c.bf16 %v1112_v10, %v1108_v8 }
 0x20a   : > { %1296 = vst [vmem:[#allocation2] sm:$0xff] %v931_v11  ;;  %1312 = vst [vmem:[#allocation3] sm:$0xff] %v1264_v12 }
 0x20b   : > { %1329 = vst [vmem:[#allocation2 + $0x80] sm:$0xff] %v932_v13  ;;  %1346 = vst [vmem:[#allocation3 + $0x80] sm:$0xff] %v1265_v14  ;;  %v782_v15 = vpop.f32.mrb[4].mxu0  ;;  %v1115_v16 = vpop.f32.mrb[4].mxu1 }
 0x20c   : > { %v784_v17 = vpop.f32.mrb[5].mxu0  ;;  %v1117_v18 = vpop.f32.mrb[5].mxu1  ;;  %v783_v21 = vadd.f32 %v782_v15, %v8697_v55  ;;  %v1116_v22 = vadd.f32 %v1115_v16, %v8699_v56 }
 0x20d   : > { %v786_v19 = vpop.f32.mrb[6].mxu0  ;;  %v1119_v20 = vpop.f32.mrb[6].mxu1  ;;  %v785_v27 = vadd.f32 %v784_v17, %v8701_v59  ;;  %v1118_v28 = vadd.f32 %v1117_v18, %v8703_v60 }
 0x20e   : > { %v787_v23 = vadd.f32 %v786_v19, %v8697_v55  ;;  %v1120_v24 = vadd.f32 %v1119_v20, %v8699_v56  ;;  %v788_v25 = vpop.f32.mrb[7].mxu0  ;;  %v1121_v26 = vpop.f32.mrb[7].mxu1 }
 0x20f   : > { %v789_v29 = vadd.f32 %v788_v25, %v8701_v59  ;;  %v1122_v30 = vadd.f32 %v1121_v26, %v8703_v60 }
 0x210   : > { %v933_v31 = vpack.c.bf16 %v787_v23, %v783_v21  ;;  %v1266_v32 = vpack.c.bf16 %v1120_v24, %v1116_v22 }
 0x211   : > { %v934_v33 = vpack.c.bf16 %v789_v29, %v785_v27  ;;  %v1267_v34 = vpack.c.bf16 %v1122_v30, %v1118_v28 }
 0x212   : > { %1297 = vst [vmem:[#allocation2 + $0x8] sm:$0xff] %v933_v31  ;;  %1313 = vst [vmem:[#allocation3 + $0x8] sm:$0xff] %v1266_v32 }
 0x213   : > { %1330 = vst [vmem:[#allocation2 + $0x88] sm:$0xff] %v934_v33  ;;  %1347 = vst [vmem:[#allocation3 + $0x88] sm:$0xff] %v1267_v34  ;;  %v792_v35 = vpop.f32.mrb[8].mxu0  ;;  %v1125_v36 = vpop.f32.mrb[8].mxu1 }
 0x214   : > { %v794_v37 = vpop.f32.mrb[9].mxu0  ;;  %v1127_v38 = vpop.f32.mrb[9].mxu1  ;;  %v793_v41 = vadd.f32 %v792_v35, %v8697_v55  ;;  %v1126_v42 = vadd.f32 %v1125_v36, %v8699_v56 }
 0x215   : > { %v796_v39 = vpop.f32.mrb[10].mxu0  ;;  %v1129_v40 = vpop.f32.mrb[10].mxu1  ;;  %v795_v47 = vadd.f32 %v794_v37, %v8701_v59  ;;  %v1128_v48 = vadd.f32 %v1127_v38, %v8703_v60 }
 0x216   : > { %v797_v43 = vadd.f32 %v796_v39, %v8697_v55  ;;  %v1130_v44 = vadd.f32 %v1129_v40, %v8699_v56  ;;  %v798_v45 = vpop.f32.mrb[11].mxu0  ;;  %v1131_v46 = vpop.f32.mrb[11].mxu1 }
 0x217   : > { %v799_v49 = vadd.f32 %v798_v45, %v8701_v59  ;;  %v1132_v50 = vadd.f32 %v1131_v46, %v8703_v60 }
 0x218   : > { %v935_v51 = vpack.c.bf16 %v797_v43, %v793_v41  ;;  %v1268_v52 = vpack.c.bf16 %v1130_v44, %v1126_v42 }
 0x219   : > { %v936_v53 = vpack.c.bf16 %v799_v49, %v795_v47  ;;  %v1269_v54 = vpack.c.bf16 %v1132_v50, %v1128_v48 }
 0x21a   : > { %1298 = vst [vmem:[#allocation2 + $0x10] sm:$0xff] %v935_v51  ;;  %1314 = vst [vmem:[#allocation3 + $0x10] sm:$0xff] %v1268_v52 }
 0x21b   : > { %1331 = vst [vmem:[#allocation2 + $0x90] sm:$0xff] %v936_v53  ;;  %1348 = vst [vmem:[#allocation3 + $0x90] sm:$0xff] %v1269_v54  ;;  %v802_v57 = vpop.f32.mrb[12].mxu0  ;;  %v1135_v58 = vpop.f32.mrb[12].mxu1 }
 0x21c   : > { %v804_v61 = vpop.f32.mrb[13].mxu0  ;;  %v1137_v62 = vpop.f32.mrb[13].mxu1  ;;  %v803_v1 = vadd.f32 %v802_v57, %v8697_v55  ;;  %v1136_v2 = vadd.f32 %v1135_v58, %v8699_v56 }
 0x21d   : > { %v806_v63 = vpop.f32.mrb[14].mxu0  ;;  %v1139_v0 = vpop.f32.mrb[14].mxu1  ;;  %v805_v7 = vadd.f32 %v804_v61, %v8701_v59  ;;  %v1138_v8 = vadd.f32 %v1137_v62, %v8703_v60 }
 0x21e   : > { %v807_v3 = vadd.f32 %v806_v63, %v8697_v55  ;;  %v1140_v4 = vadd.f32 %v1139_v0, %v8699_v56  ;;  %v808_v5 = vpop.f32.mrb[15].mxu0  ;;  %v1141_v6 = vpop.f32.mrb[15].mxu1 }
 0x21f   : > { %v809_v9 = vadd.f32 %v808_v5, %v8701_v59  ;;  %v1142_v10 = vadd.f32 %v1141_v6, %v8703_v60 }
 0x220   : > { %v937_v11 = vpack.c.bf16 %v807_v3, %v803_v1  ;;  %v1270_v12 = vpack.c.bf16 %v1140_v4, %v1136_v2 }
 0x221   : > { %v938_v13 = vpack.c.bf16 %v809_v9, %v805_v7  ;;  %v1271_v14 = vpack.c.bf16 %v1142_v10, %v1138_v8 }
 0x222   : > { %1299 = vst [vmem:[#allocation2 + $0x18] sm:$0xff] %v937_v11  ;;  %1315 = vst [vmem:[#allocation3 + $0x18] sm:$0xff] %v1270_v12 }
 0x223   : > { %1332 = vst [vmem:[#allocation2 + $0x98] sm:$0xff] %v938_v13  ;;  %1349 = vst [vmem:[#allocation3 + $0x98] sm:$0xff] %v1271_v14  ;;  %v812_v15 = vpop.f32.mrb[16].mxu0  ;;  %v1145_v16 = vpop.f32.mrb[16].mxu1 }
 0x224   : > { %v814_v17 = vpop.f32.mrb[17].mxu0  ;;  %v1147_v18 = vpop.f32.mrb[17].mxu1  ;;  %v813_v21 = vadd.f32 %v812_v15, %v8697_v55  ;;  %v1146_v22 = vadd.f32 %v1145_v16, %v8699_v56 }
 0x225   : > { %v816_v19 = vpop.f32.mrb[18].mxu0  ;;  %v1149_v20 = vpop.f32.mrb[18].mxu1  ;;  %v815_v27 = vadd.f32 %v814_v17, %v8701_v59  ;;  %v1148_v28 = vadd.f32 %v1147_v18, %v8703_v60 }
 0x226   : > { %v817_v23 = vadd.f32 %v816_v19, %v8697_v55  ;;  %v1150_v24 = vadd.f32 %v1149_v20, %v8699_v56  ;;  %v818_v25 = vpop.f32.mrb[19].mxu0  ;;  %v1151_v26 = vpop.f32.mrb[19].mxu1 }
 0x227   : > { %v819_v29 = vadd.f32 %v818_v25, %v8701_v59  ;;  %v1152_v30 = vadd.f32 %v1151_v26, %v8703_v60 }
 0x228   : > { %v939_v31 = vpack.c.bf16 %v817_v23, %v813_v21  ;;  %v1272_v32 = vpack.c.bf16 %v1150_v24, %v1146_v22 }
 0x229   : > { %v940_v33 = vpack.c.bf16 %v819_v29, %v815_v27  ;;  %v1273_v34 = vpack.c.bf16 %v1152_v30, %v1148_v28 }
 0x22a   : > { %1300 = vst [vmem:[#allocation2 + $0x20] sm:$0xff] %v939_v31  ;;  %1316 = vst [vmem:[#allocation3 + $0x20] sm:$0xff] %v1272_v32 }
 0x22b   : > { %1333 = vst [vmem:[#allocation2 + $0xa0] sm:$0xff] %v940_v33  ;;  %1350 = vst [vmem:[#allocation3 + $0xa0] sm:$0xff] %v1273_v34  ;;  %v822_v35 = vpop.f32.mrb[20].mxu0  ;;  %v1155_v36 = vpop.f32.mrb[20].mxu1 }
 0x22c   : > { %v824_v37 = vpop.f32.mrb[21].mxu0  ;;  %v1157_v38 = vpop.f32.mrb[21].mxu1  ;;  %v823_v41 = vadd.f32 %v822_v35, %v8697_v55  ;;  %v1156_v42 = vadd.f32 %v1155_v36, %v8699_v56 }
 0x22d   : > { %v826_v39 = vpop.f32.mrb[22].mxu0  ;;  %v1159_v40 = vpop.f32.mrb[22].mxu1  ;;  %v825_v47 = vadd.f32 %v824_v37, %v8701_v59  ;;  %v1158_v48 = vadd.f32 %v1157_v38, %v8703_v60 }
 0x22e   : > { %v827_v43 = vadd.f32 %v826_v39, %v8697_v55  ;;  %v1160_v44 = vadd.f32 %v1159_v40, %v8699_v56  ;;  %v828_v45 = vpop.f32.mrb[23].mxu0  ;;  %v1161_v46 = vpop.f32.mrb[23].mxu1 }
 0x22f   : > { %v829_v49 = vadd.f32 %v828_v45, %v8701_v59  ;;  %v1162_v50 = vadd.f32 %v1161_v46, %v8703_v60 }
 0x230   : > { %v941_v51 = vpack.c.bf16 %v827_v43, %v823_v41  ;;  %v1274_v52 = vpack.c.bf16 %v1160_v44, %v1156_v42 }
 0x231   : > { %v942_v53 = vpack.c.bf16 %v829_v49, %v825_v47  ;;  %v1275_v54 = vpack.c.bf16 %v1162_v50, %v1158_v48 }
 0x232   : > { %1301 = vst [vmem:[#allocation2 + $0x28] sm:$0xff] %v941_v51  ;;  %1317 = vst [vmem:[#allocation3 + $0x28] sm:$0xff] %v1274_v52 }
 0x233   : > { %1334 = vst [vmem:[#allocation2 + $0xa8] sm:$0xff] %v942_v53  ;;  %1351 = vst [vmem:[#allocation3 + $0xa8] sm:$0xff] %v1275_v54  ;;  %v832_v57 = vpop.f32.mrb[24].mxu0  ;;  %v1165_v58 = vpop.f32.mrb[24].mxu1 }
 0x234   : > { %v834_v61 = vpop.f32.mrb[25].mxu0  ;;  %v1167_v62 = vpop.f32.mrb[25].mxu1  ;;  %v833_v1 = vadd.f32 %v832_v57, %v8697_v55  ;;  %v1166_v2 = vadd.f32 %v1165_v58, %v8699_v56 }
 0x235   : > { %v836_v63 = vpop.f32.mrb[26].mxu0  ;;  %v1169_v0 = vpop.f32.mrb[26].mxu1  ;;  %v835_v7 = vadd.f32 %v834_v61, %v8701_v59  ;;  %v1168_v8 = vadd.f32 %v1167_v62, %v8703_v60 }
 0x236   : > { %v837_v3 = vadd.f32 %v836_v63, %v8697_v55  ;;  %v1170_v4 = vadd.f32 %v1169_v0, %v8699_v56  ;;  %v838_v5 = vpop.f32.mrb[27].mxu0  ;;  %v1171_v6 = vpop.f32.mrb[27].mxu1 }
 0x237   : > { %v839_v9 = vadd.f32 %v838_v5, %v8701_v59  ;;  %v1172_v10 = vadd.f32 %v1171_v6, %v8703_v60 }
 0x238   : > { %v943_v11 = vpack.c.bf16 %v837_v3, %v833_v1  ;;  %v1276_v12 = vpack.c.bf16 %v1170_v4, %v1166_v2 }
 0x239   : > { %v944_v13 = vpack.c.bf16 %v839_v9, %v835_v7  ;;  %v1277_v14 = vpack.c.bf16 %v1172_v10, %v1168_v8 }
 0x23a   : > { %1302 = vst [vmem:[#allocation2 + $0x30] sm:$0xff] %v943_v11  ;;  %1318 = vst [vmem:[#allocation3 + $0x30] sm:$0xff] %v1276_v12 }
 0x23b   : > { %1335 = vst [vmem:[#allocation2 + $0xb0] sm:$0xff] %v944_v13  ;;  %1352 = vst [vmem:[#allocation3 + $0xb0] sm:$0xff] %v1277_v14  ;;  %v842_v15 = vpop.f32.mrb[28].mxu0  ;;  %v1175_v16 = vpop.f32.mrb[28].mxu1 }
 0x23c   : > { %v844_v17 = vpop.f32.mrb[29].mxu0  ;;  %v1177_v18 = vpop.f32.mrb[29].mxu1  ;;  %v843_v21 = vadd.f32 %v842_v15, %v8697_v55  ;;  %v1176_v22 = vadd.f32 %v1175_v16, %v8699_v56 }
 0x23d   : > { %v846_v19 = vpop.f32.mrb[30].mxu0  ;;  %v1179_v20 = vpop.f32.mrb[30].mxu1  ;;  %v845_v27 = vadd.f32 %v844_v17, %v8701_v59  ;;  %v1178_v28 = vadd.f32 %v1177_v18, %v8703_v60 }
 0x23e   : > { %v847_v23 = vadd.f32 %v846_v19, %v8697_v55  ;;  %v1180_v24 = vadd.f32 %v1179_v20, %v8699_v56  ;;  %v848_v25 = vpop.f32.mrb[31].mxu0  ;;  %v1181_v26 = vpop.f32.mrb[31].mxu1 }
 0x23f   : > { %v849_v29 = vadd.f32 %v848_v25, %v8701_v59  ;;  %v1182_v30 = vadd.f32 %v1181_v26, %v8703_v60 }
 0x240   : > { %v945_v31 = vpack.c.bf16 %v847_v23, %v843_v21  ;;  %v1278_v32 = vpack.c.bf16 %v1180_v24, %v1176_v22 }
 0x241   : > { %v946_v33 = vpack.c.bf16 %v849_v29, %v845_v27  ;;  %v1279_v34 = vpack.c.bf16 %v1182_v30, %v1178_v28 }
 0x242   : > { %1303 = vst [vmem:[#allocation2 + $0x38] sm:$0xff] %v945_v31  ;;  %1319 = vst [vmem:[#allocation3 + $0x38] sm:$0xff] %v1278_v32 }
 0x243   : > { %1336 = vst [vmem:[#allocation2 + $0xb8] sm:$0xff] %v946_v33  ;;  %1353 = vst [vmem:[#allocation3 + $0xb8] sm:$0xff] %v1279_v34  ;;  %v852_v35 = vpop.f32.mrb[32].mxu0  ;;  %v1185_v36 = vpop.f32.mrb[32].mxu1 }
 0x244   : > { %v854_v37 = vpop.f32.mrb[33].mxu0  ;;  %v1187_v38 = vpop.f32.mrb[33].mxu1  ;;  %v853_v41 = vadd.f32 %v852_v35, %v8697_v55  ;;  %v1186_v42 = vadd.f32 %v1185_v36, %v8699_v56 }
 0x245   : > { %v856_v39 = vpop.f32.mrb[34].mxu0  ;;  %v1189_v40 = vpop.f32.mrb[34].mxu1  ;;  %v855_v47 = vadd.f32 %v854_v37, %v8701_v59  ;;  %v1188_v48 = vadd.f32 %v1187_v38, %v8703_v60 }
 0x246   : > { %v857_v43 = vadd.f32 %v856_v39, %v8697_v55  ;;  %v1190_v44 = vadd.f32 %v1189_v40, %v8699_v56  ;;  %v858_v45 = vpop.f32.mrb[35].mxu0  ;;  %v1191_v46 = vpop.f32.mrb[35].mxu1 }
 0x247   : > { %v859_v49 = vadd.f32 %v858_v45, %v8701_v59  ;;  %v1192_v50 = vadd.f32 %v1191_v46, %v8703_v60 }
 0x248   : > { %v947_v51 = vpack.c.bf16 %v857_v43, %v853_v41  ;;  %v1280_v52 = vpack.c.bf16 %v1190_v44, %v1186_v42 }
 0x249   : > { %v948_v53 = vpack.c.bf16 %v859_v49, %v855_v47  ;;  %v1281_v54 = vpack.c.bf16 %v1192_v50, %v1188_v48 }
 0x24a   : > { %1304 = vst [vmem:[#allocation2 + $0x40] sm:$0xff] %v947_v51  ;;  %1320 = vst [vmem:[#allocation3 + $0x40] sm:$0xff] %v1280_v52 }
 0x24b   : > { %1337 = vst [vmem:[#allocation2 + $0xc0] sm:$0xff] %v948_v53  ;;  %1354 = vst [vmem:[#allocation3 + $0xc0] sm:$0xff] %v1281_v54  ;;  %v862_v57 = vpop.f32.mrb[36].mxu0  ;;  %v1195_v58 = vpop.f32.mrb[36].mxu1 }
 0x24c   : > { %v864_v61 = vpop.f32.mrb[37].mxu0  ;;  %v1197_v62 = vpop.f32.mrb[37].mxu1  ;;  %v863_v1 = vadd.f32 %v862_v57, %v8697_v55  ;;  %v1196_v2 = vadd.f32 %v1195_v58, %v8699_v56 }
 0x24d   : > { %v866_v63 = vpop.f32.mrb[38].mxu0  ;;  %v1199_v0 = vpop.f32.mrb[38].mxu1  ;;  %v865_v7 = vadd.f32 %v864_v61, %v8701_v59  ;;  %v1198_v8 = vadd.f32 %v1197_v62, %v8703_v60 }
 0x24e   : > { %v867_v3 = vadd.f32 %v866_v63, %v8697_v55  ;;  %v1200_v4 = vadd.f32 %v1199_v0, %v8699_v56  ;;  %v868_v5 = vpop.f32.mrb[39].mxu0  ;;  %v1201_v6 = vpop.f32.mrb[39].mxu1 }
 0x24f   : > { %v869_v9 = vadd.f32 %v868_v5, %v8701_v59  ;;  %v1202_v10 = vadd.f32 %v1201_v6, %v8703_v60 }
 0x250   : > { %v949_v11 = vpack.c.bf16 %v867_v3, %v863_v1  ;;  %v1282_v12 = vpack.c.bf16 %v1200_v4, %v1196_v2 }
 0x251   : > { %v950_v13 = vpack.c.bf16 %v869_v9, %v865_v7  ;;  %v1283_v14 = vpack.c.bf16 %v1202_v10, %v1198_v8 }
 0x252   : > { %1305 = vst [vmem:[#allocation2 + $0x48] sm:$0xff] %v949_v11  ;;  %1321 = vst [vmem:[#allocation3 + $0x48] sm:$0xff] %v1282_v12 }
 0x253   : > { %1338 = vst [vmem:[#allocation2 + $0xc8] sm:$0xff] %v950_v13  ;;  %1355 = vst [vmem:[#allocation3 + $0xc8] sm:$0xff] %v1283_v14  ;;  %v872_v15 = vpop.f32.mrb[40].mxu0  ;;  %v1205_v16 = vpop.f32.mrb[40].mxu1 }
 0x254   : > { %v874_v17 = vpop.f32.mrb[41].mxu0  ;;  %v1207_v18 = vpop.f32.mrb[41].mxu1  ;;  %v873_v21 = vadd.f32 %v872_v15, %v8697_v55  ;;  %v1206_v22 = vadd.f32 %v1205_v16, %v8699_v56 }
 0x255   : > { %v876_v19 = vpop.f32.mrb[42].mxu0  ;;  %v1209_v20 = vpop.f32.mrb[42].mxu1  ;;  %v875_v27 = vadd.f32 %v874_v17, %v8701_v59  ;;  %v1208_v28 = vadd.f32 %v1207_v18, %v8703_v60 }
 0x256   : > { %v877_v23 = vadd.f32 %v876_v19, %v8697_v55  ;;  %v1210_v24 = vadd.f32 %v1209_v20, %v8699_v56  ;;  %v878_v25 = vpop.f32.mrb[43].mxu0  ;;  %v1211_v26 = vpop.f32.mrb[43].mxu1 }
 0x257   : > { %v879_v29 = vadd.f32 %v878_v25, %v8701_v59  ;;  %v1212_v30 = vadd.f32 %v1211_v26, %v8703_v60 }
 0x258   : > { %v951_v31 = vpack.c.bf16 %v877_v23, %v873_v21  ;;  %v1284_v32 = vpack.c.bf16 %v1210_v24, %v1206_v22 }
 0x259   : > { %v952_v33 = vpack.c.bf16 %v879_v29, %v875_v27  ;;  %v1285_v34 = vpack.c.bf16 %v1212_v30, %v1208_v28 }
 0x25a   : > { %1306 = vst [vmem:[#allocation2 + $0x50] sm:$0xff] %v951_v31  ;;  %1322 = vst [vmem:[#allocation3 + $0x50] sm:$0xff] %v1284_v32 }
 0x25b   : > { %1339 = vst [vmem:[#allocation2 + $0xd0] sm:$0xff] %v952_v33  ;;  %1356 = vst [vmem:[#allocation3 + $0xd0] sm:$0xff] %v1285_v34  ;;  %v882_v35 = vpop.f32.mrb[44].mxu0  ;;  %v1215_v36 = vpop.f32.mrb[44].mxu1 }
 0x25c   : > { %v884_v37 = vpop.f32.mrb[45].mxu0  ;;  %v1217_v38 = vpop.f32.mrb[45].mxu1  ;;  %v883_v41 = vadd.f32 %v882_v35, %v8697_v55  ;;  %v1216_v42 = vadd.f32 %v1215_v36, %v8699_v56 }
 0x25d   : > { %v886_v39 = vpop.f32.mrb[46].mxu0  ;;  %v1219_v40 = vpop.f32.mrb[46].mxu1  ;;  %v885_v47 = vadd.f32 %v884_v37, %v8701_v59  ;;  %v1218_v48 = vadd.f32 %v1217_v38, %v8703_v60 }
 0x25e   : > { %v887_v43 = vadd.f32 %v886_v39, %v8697_v55  ;;  %v1220_v44 = vadd.f32 %v1219_v40, %v8699_v56  ;;  %v888_v45 = vpop.f32.mrb[47].mxu0  ;;  %v1221_v46 = vpop.f32.mrb[47].mxu1 }
 0x25f   : > { %v889_v49 = vadd.f32 %v888_v45, %v8701_v59  ;;  %v1222_v50 = vadd.f32 %v1221_v46, %v8703_v60 }
 0x260   : > { %v953_v51 = vpack.c.bf16 %v887_v43, %v883_v41  ;;  %v1286_v52 = vpack.c.bf16 %v1220_v44, %v1216_v42 }
 0x261   : > { %v954_v53 = vpack.c.bf16 %v889_v49, %v885_v47  ;;  %v1287_v54 = vpack.c.bf16 %v1222_v50, %v1218_v48 }
 0x262   : > { %1307 = vst [vmem:[#allocation2 + $0x58] sm:$0xff] %v953_v51  ;;  %1323 = vst [vmem:[#allocation3 + $0x58] sm:$0xff] %v1286_v52 }
 0x263   : > { %1340 = vst [vmem:[#allocation2 + $0xd8] sm:$0xff] %v954_v53  ;;  %1357 = vst [vmem:[#allocation3 + $0xd8] sm:$0xff] %v1287_v54  ;;  %v892_v57 = vpop.f32.mrb[48].mxu0  ;;  %v1225_v58 = vpop.f32.mrb[48].mxu1 }
 0x264   : > { %v894_v61 = vpop.f32.mrb[49].mxu0  ;;  %v1227_v62 = vpop.f32.mrb[49].mxu1  ;;  %v893_v1 = vadd.f32 %v892_v57, %v8697_v55  ;;  %v1226_v2 = vadd.f32 %v1225_v58, %v8699_v56 }
 0x265   : > { %v896_v63 = vpop.f32.mrb[50].mxu0  ;;  %v1229_v0 = vpop.f32.mrb[50].mxu1  ;;  %v895_v7 = vadd.f32 %v894_v61, %v8701_v59  ;;  %v1228_v8 = vadd.f32 %v1227_v62, %v8703_v60 }
 0x266   : > { %v897_v3 = vadd.f32 %v896_v63, %v8697_v55  ;;  %v1230_v4 = vadd.f32 %v1229_v0, %v8699_v56  ;;  %v898_v5 = vpop.f32.mrb[51].mxu0  ;;  %v1231_v6 = vpop.f32.mrb[51].mxu1 }
 0x267   : > { %v899_v9 = vadd.f32 %v898_v5, %v8701_v59  ;;  %v1232_v10 = vadd.f32 %v1231_v6, %v8703_v60 }
 0x268   : > { %v955_v11 = vpack.c.bf16 %v897_v3, %v893_v1  ;;  %v1288_v12 = vpack.c.bf16 %v1230_v4, %v1226_v2 }
 0x269   : > { %v956_v13 = vpack.c.bf16 %v899_v9, %v895_v7  ;;  %v1289_v14 = vpack.c.bf16 %v1232_v10, %v1228_v8 }
 0x26a   : > { %1308 = vst [vmem:[#allocation2 + $0x60] sm:$0xff] %v955_v11  ;;  %1324 = vst [vmem:[#allocation3 + $0x60] sm:$0xff] %v1288_v12 }
 0x26b   : > { %1341 = vst [vmem:[#allocation2 + $0xe0] sm:$0xff] %v956_v13  ;;  %1358 = vst [vmem:[#allocation3 + $0xe0] sm:$0xff] %v1289_v14  ;;  %v902_v15 = vpop.f32.mrb[52].mxu0  ;;  %v1235_v16 = vpop.f32.mrb[52].mxu1 }
 0x26c   : > { %v904_v17 = vpop.f32.mrb[53].mxu0  ;;  %v1237_v18 = vpop.f32.mrb[53].mxu1  ;;  %v903_v21 = vadd.f32 %v902_v15, %v8697_v55  ;;  %v1236_v22 = vadd.f32 %v1235_v16, %v8699_v56 }
 0x26d   : > { %v906_v19 = vpop.f32.mrb[54].mxu0  ;;  %v1239_v20 = vpop.f32.mrb[54].mxu1  ;;  %v905_v27 = vadd.f32 %v904_v17, %v8701_v59  ;;  %v1238_v28 = vadd.f32 %v1237_v18, %v8703_v60 }
 0x26e   : > { %v907_v23 = vadd.f32 %v906_v19, %v8697_v55  ;;  %v1240_v24 = vadd.f32 %v1239_v20, %v8699_v56  ;;  %v908_v25 = vpop.f32.mrb[55].mxu0  ;;  %v1241_v26 = vpop.f32.mrb[55].mxu1 }
 0x26f   : > { %v909_v29 = vadd.f32 %v908_v25, %v8701_v59  ;;  %v1242_v30 = vadd.f32 %v1241_v26, %v8703_v60 }
 0x270   : > { %v957_v31 = vpack.c.bf16 %v907_v23, %v903_v21  ;;  %v1290_v32 = vpack.c.bf16 %v1240_v24, %v1236_v22 }
 0x271   : > { %v958_v33 = vpack.c.bf16 %v909_v29, %v905_v27  ;;  %v1291_v34 = vpack.c.bf16 %v1242_v30, %v1238_v28 }
 0x272   : > { %1309 = vst [vmem:[#allocation2 + $0x68] sm:$0xff] %v957_v31  ;;  %1325 = vst [vmem:[#allocation3 + $0x68] sm:$0xff] %v1290_v32 }
 0x273   : > { %1342 = vst [vmem:[#allocation2 + $0xe8] sm:$0xff] %v958_v33  ;;  %1359 = vst [vmem:[#allocation3 + $0xe8] sm:$0xff] %v1291_v34  ;;  %v912_v35 = vpop.f32.mrb[56].mxu0  ;;  %v1245_v36 = vpop.f32.mrb[56].mxu1 }
 0x274   : > { %v914_v37 = vpop.f32.mrb[57].mxu0  ;;  %v1247_v38 = vpop.f32.mrb[57].mxu1  ;;  %v913_v41 = vadd.f32 %v912_v35, %v8697_v55  ;;  %v1246_v42 = vadd.f32 %v1245_v36, %v8699_v56 }
 0x275   : > { %v916_v39 = vpop.f32.mrb[58].mxu0  ;;  %v1249_v40 = vpop.f32.mrb[58].mxu1  ;;  %v915_v47 = vadd.f32 %v914_v37, %v8701_v59  ;;  %v1248_v48 = vadd.f32 %v1247_v38, %v8703_v60 }
 0x276   : > { %v917_v43 = vadd.f32 %v916_v39, %v8697_v55  ;;  %v1250_v44 = vadd.f32 %v1249_v40, %v8699_v56  ;;  %v918_v45 = vpop.f32.mrb[59].mxu0  ;;  %v1251_v46 = vpop.f32.mrb[59].mxu1 }
 0x277   : > { %v919_v49 = vadd.f32 %v918_v45, %v8701_v59  ;;  %v1252_v50 = vadd.f32 %v1251_v46, %v8703_v60 }
 0x278   : > { %v959_v51 = vpack.c.bf16 %v917_v43, %v913_v41  ;;  %v1292_v52 = vpack.c.bf16 %v1250_v44, %v1246_v42 }
 0x279   : > { %v960_v53 = vpack.c.bf16 %v919_v49, %v915_v47  ;;  %v1293_v54 = vpack.c.bf16 %v1252_v50, %v1248_v48 }
 0x27a   : > { %1310 = vst [vmem:[#allocation2 + $0x70] sm:$0xff] %v959_v51  ;;  %1326 = vst [vmem:[#allocation3 + $0x70] sm:$0xff] %v1292_v52 }
 0x27b   : > { %1343 = vst [vmem:[#allocation2 + $0xf0] sm:$0xff] %v960_v53  ;;  %1360 = vst [vmem:[#allocation3 + $0xf0] sm:$0xff] %v1293_v54  ;;  %v922_v57 = vpop.f32.mrb[60].mxu0  ;;  %v1255_v58 = vpop.f32.mrb[60].mxu1 }
 0x27c   : > { %v924_v61 = vpop.f32.mrb[61].mxu0  ;;  %v1257_v62 = vpop.f32.mrb[61].mxu1  ;;  %v923_v1 = vadd.f32 %v922_v57, %v8697_v55  ;;  %v1256_v2 = vadd.f32 %v1255_v58, %v8699_v56 }
 0x27d   : > { %v926_v63 = vpop.f32.mrb[62].mxu0  ;;  %v1259_v0 = vpop.f32.mrb[62].mxu1  ;;  %v925_v7 = vadd.f32 %v924_v61, %v8701_v59  ;;  %v1258_v8 = vadd.f32 %v1257_v62, %v8703_v60 }
 0x27e   : > { %v927_v3 = vadd.f32 %v926_v63, %v8697_v55  ;;  %v1260_v4 = vadd.f32 %v1259_v0, %v8699_v56  ;;  %v928_v5 = vpop.f32.mrb[63].mxu0  ;;  %v1261_v6 = vpop.f32.mrb[63].mxu1 }
 0x27f   : > { %v929_v9 = vadd.f32 %v928_v5, %v8701_v59  ;;  %v1262_v10 = vadd.f32 %v1261_v6, %v8703_v60 }
 0x280   : > { %v961_v11 = vpack.c.bf16 %v927_v3, %v923_v1  ;;  %v1294_v12 = vpack.c.bf16 %v1260_v4, %v1256_v2 }
 0x281   : > { %v962_v13 = vpack.c.bf16 %v929_v9, %v925_v7  ;;  %v1295_v14 = vpack.c.bf16 %v1262_v10, %v1258_v8 }
 0x282   : > { %1311 = vst [vmem:[#allocation2 + $0x78] sm:$0xff] %v961_v11  ;;  %1327 = vst [vmem:[#allocation3 + $0x78] sm:$0xff] %v1294_v12 }
 0x283   : > { %1344 = vst [vmem:[#allocation2 + $0xf8] sm:$0xff] %v962_v13  ;;  %1361 = vst [vmem:[#allocation3 + $0xf8] sm:$0xff] %v1295_v14 }
 0x284 PF: > { %v7114_v55 = vld [vmem:[#allocation10 + $0x4] ss:$8 sps:$4 sm:$0xff]   ;;  %v7116_v56 = vld [vmem:[#allocation10] ss:$8 sps:$4 sm:$0xff]   ;;  %v7117_v15 = vld [vmem:[#allocation10 + $0x14] ss:$8 sps:$4 sm:$0xff]  }
 0x285   : > { %1758 = vmatprep.subr.bf16.mxu0 %v7114_v55  ;;  %6863 = vmatprep.subr.bf16.mxu1 %v7114_v55  ;;  %v7119_v16 = vld [vmem:[#allocation10 + $0x10] ss:$8 sps:$4 sm:$0xff]   ;;  %v7120_v59 = vld [vmem:[#allocation10 + $0x24] ss:$8 sps:$4 sm:$0xff]   ;;  %v7122_v60 = vld [vmem:[#allocation10 + $0x20] ss:$8 sps:$4 sm:$0xff]  }
 0x286   : > { %1759 = vmatpush1.bf16.msra.mxu0 %v7116_v56  ;;  %6879 = vmatpush1.bf16.msra.mxu1 %v7116_v56  ;;  %v7123_v17 = vld [vmem:[#allocation10 + $0x34] ss:$8 sps:$4 sm:$0xff]   ;;  %v7125_v18 = vld [vmem:[#allocation10 + $0x30] ss:$8 sps:$4 sm:$0xff]   ;;  %v7126_v19 = vld [vmem:[#allocation10 + $0x44] ss:$8 sps:$4 sm:$0xff]  }
 0x287   : > { %1760 = vmatprep.subr.bf16.mxu0 %v7117_v15  ;;  %6864 = vmatprep.subr.bf16.mxu1 %v7117_v15  ;;  %v7128_v20 = vld [vmem:[#allocation10 + $0x40] ss:$8 sps:$4 sm:$0xff]   ;;  %v7129_v21 = vld [vmem:[#allocation10 + $0x54] ss:$8 sps:$4 sm:$0xff]   ;;  %v7131_v22 = vld [vmem:[#allocation10 + $0x50] ss:$8 sps:$4 sm:$0xff]  }
 0x288   : > { %v7132_v23 = vld [vmem:[#allocation10 + $0x64] ss:$8 sps:$4 sm:$0xff]   ;;  %v7134_v25 = vld [vmem:[#allocation10 + $0x60] ss:$8 sps:$4 sm:$0xff]   ;;  %v7135_v26 = vld [vmem:[#allocation10 + $0x74] ss:$8 sps:$4 sm:$0xff]  }
 0x289   : > { %v7164_v24 = vld [vmem:[%s8613_s6 + $0x4] ss:$8 sps:$4 sm:$0xff]   ;;  %v7137_v27 = vld [vmem:[#allocation10 + $0x70] ss:$8 sps:$4 sm:$0xff]   ;;  %v7140_v30 = vld [vmem:[#allocation10 + $0x80] ss:$8 sps:$4 sm:$0xff]  }
 0x28a   : > { %1761 = vmatpush1.bf16.msra.mxu0 %v7119_v16  ;;  %6880 = vmatpush1.bf16.msra.mxu1 %v7119_v16  ;;  %v7176_v28 = vld [vmem:[%s8613_s6 + $0x84] ss:$8 sps:$4 sm:$0xff]   ;;  %v7141_v31 = vld [vmem:[#allocation10 + $0x94] ss:$8 sps:$4 sm:$0xff]   ;;  %v7143_v32 = vld [vmem:[#allocation10 + $0x90] ss:$8 sps:$4 sm:$0xff]  }
 0x28b   : > { %1762 = vmatprep.subr.bf16.mxu0 %v7120_v59  ;;  %6865 = vmatprep.subr.bf16.mxu1 %v7120_v59  ;;  %v7138_v29 = vld [vmem:[#allocation10 + $0x84] ss:$8 sps:$4 sm:$0xff]   ;;  %v7146_v34 = vld [vmem:[#allocation10 + $0xa0] ss:$8 sps:$4 sm:$0xff]   ;;  %v7147_v35 = vld [vmem:[#allocation10 + $0xb4] ss:$8 sps:$4 sm:$0xff]  }
 0x28c   : > { %1790 = vmatprep.mubr.bf16.mxu0 %v7164_v24  ;;  %1870 = vmatprep.mubr.bf16.mxu1 %v7176_v28  ;;  %v7144_v33 = vld [vmem:[#allocation10 + $0xa4] ss:$8 sps:$4 sm:$0xff]   ;;  %v7149_v36 = vld [vmem:[#allocation10 + $0xb0] ss:$8 sps:$4 sm:$0xff]   ;;  %v7152_v38 = vld [vmem:[#allocation10 + $0xc0] ss:$8 sps:$4 sm:$0xff]  }
 0x28d   : > { %v7150_v37 = vld [vmem:[#allocation10 + $0xc4] ss:$8 sps:$4 sm:$0xff]   ;;  %v7153_v39 = vld [vmem:[#allocation10 + $0xd4] ss:$8 sps:$4 sm:$0xff]   ;;  %v7155_v40 = vld [vmem:[#allocation10 + $0xd0] ss:$8 sps:$4 sm:$0xff]  }
 0x28e   : > { %1763 = vmatpush1.bf16.msra.mxu0 %v7122_v60  ;;  %6881 = vmatpush1.bf16.msra.mxu1 %v7122_v60  ;;  %v7156_v41 = vld [vmem:[#allocation10 + $0xe4] ss:$8 sps:$4 sm:$0xff]   ;;  %v7158_v42 = vld [vmem:[#allocation10 + $0xe0] ss:$8 sps:$4 sm:$0xff]   ;;  %v7159_v43 = vld [vmem:[#allocation10 + $0xf4] ss:$8 sps:$4 sm:$0xff]  }
 0x28f   : > { %1764 = vmatprep.subr.bf16.mxu0 %v7123_v17  ;;  %6866 = vmatprep.subr.bf16.mxu1 %v7123_v17  ;;  %v7161_v44 = vld [vmem:[#allocation10 + $0xf0] ss:$8 sps:$4 sm:$0xff]   ;;  %v2047_v45 = vld [vmem:[#allocation2] sm:$0xff]  ;;  %v7165_v48 = vld [vmem:[%s8613_s6 + $0x14] ss:$8 sps:$4 sm:$0xff]   ;;  %s13817_s10 = sld [smem:[#allocation337_spill]] }
 0x290   : > { %v7162_v46 = vld [vmem:[%s8613_s6] ss:$8 sps:$4 sm:$0xff]   ;;  %v7180_v49 = vld [vmem:[%s8613_s6 + $0x94] ss:$8 sps:$4 sm:$0xff]   ;;  %v7167_v50 = vld [vmem:[%s8613_s6 + $0x10] ss:$8 sps:$4 sm:$0xff]  }
 0x291   : > { %v7174_v47 = vld [vmem:[%s8613_s6 + $0x80] ss:$8 sps:$4 sm:$0xff]   ;;  %v7182_v51 = vld [vmem:[%s8613_s6 + $0x90] ss:$8 sps:$4 sm:$0xff]   ;;  %v7168_v53 = vld [vmem:[%s8613_s6 + $0x24] ss:$8 sps:$4 sm:$0xff]  }
 0x292   : > { %1765 = vmatpush1.bf16.msra.mxu0 %v7125_v18  ;;  %6882 = vmatpush1.bf16.msra.mxu1 %v7125_v18  ;;  %v2048_v52 = vld [vmem:[#allocation2 + $0x8] sm:$0xff]  ;;  %v2049_v61 = vld [vmem:[#allocation2 + $0x10] sm:$0xff]  ;;  %v2050_v2 = vld [vmem:[#allocation2 + $0x18] sm:$0xff]  ;;  %s13821_s3 = sld [smem:[#allocation23_spill]]  ;;  %s13822_s4 = sld [smem:[#allocation24_spill]] }
 0x293   : > { %1766 = vmatprep.subr.bf16.mxu0 %v7126_v19  ;;  %6867 = vmatprep.subr.bf16.mxu1 %v7126_v19  ;;  %v7186_v54 = vld [vmem:[%s8613_s6 + $0xa4] ss:$8 sps:$4 sm:$0xff]   ;;  %v7170_v57 = vld [vmem:[%s8613_s6 + $0x20] ss:$8 sps:$4 sm:$0xff]   ;;  %v7171_v62 = vld [vmem:[%s8613_s6 + $0x34] ss:$8 sps:$4 sm:$0xff]  }
 0x294   : > { %v7188_v58 = vld [vmem:[%s8613_s6 + $0xa0] ss:$8 sps:$4 sm:$0xff]   ;;  %v7192_v63 = vld [vmem:[%s8613_s6 + $0xb4] ss:$8 sps:$4 sm:$0xff]   ;;  %v7173_v0 = vld [vmem:[%s8613_s6 + $0x30] ss:$8 sps:$4 sm:$0xff]  }
 0x295   : > { %v7194_v1 = vld [vmem:[%s8613_s6 + $0xb0] ss:$8 sps:$4 sm:$0xff]   ;;  %v7177_v3 = vld [vmem:[%s8613_s6 + $0x44] ss:$8 sps:$4 sm:$0xff]   ;;  %v7179_v5 = vld [vmem:[%s8613_s6 + $0x40] ss:$8 sps:$4 sm:$0xff]  }
 0x296   : > { %1767 = vmatpush1.bf16.msra.mxu0 %v7128_v20  ;;  %6883 = vmatpush1.bf16.msra.mxu1 %v7128_v20  ;;  %v7198_v4 = vld [vmem:[%s8613_s6 + $0xc4] ss:$8 sps:$4 sm:$0xff]   ;;  %v7200_v6 = vld [vmem:[%s8613_s6 + $0xc0] ss:$8 sps:$4 sm:$0xff]   ;;  %v7183_v8 = vld [vmem:[%s8613_s6 + $0x54] ss:$8 sps:$4 sm:$0xff]   ;;  %v1428_v20 = vlaneseq }
 0x297   : > { %1768 = vmatprep.subr.bf16.mxu0 %v7129_v21  ;;  %6868 = vmatprep.subr.bf16.mxu1 %v7129_v21  ;;  %v2051_v7 = vld [vmem:[#allocation2 + $0x20] sm:$0xff]  ;;  %v7201_v9 = vld [vmem:[%s8613_s6 + $0xd4] ss:$8 sps:$4 sm:$0xff]   ;;  %v7185_v10 = vld [vmem:[%s8613_s6 + $0x50] ss:$8 sps:$4 sm:$0xff]   ;;  %s5957_s28 = sshll.u32 %s8640_s20, 4  ;;  %s12144_s28 = int_to_ptr.vmem [resolvable:$true] %s5957_s28 }
 0x298   : > { %v7203_v11 = vld [vmem:[%s8613_s6 + $0xd0] ss:$8 sps:$4 sm:$0xff]   ;;  %v2052_v12 = vld [vmem:[#allocation2 + $0x28] sm:$0xff]  ;;  %v7195_v15 = vld [vmem:[%s8613_s6 + $0x74] ss:$8 sps:$4 sm:$0xff]   ;;  %v8868_v21 = vshrl.u32 %v1428_v20, 7 }
 0x299   : > { %v7189_v13 = vld [vmem:[%s8613_s6 + $0x64] ss:$8 sps:$4 sm:$0xff]   ;;  %v7191_v55 = vld [vmem:[%s8613_s6 + $0x60] ss:$8 sps:$4 sm:$0xff]   ;;  %v7207_v16 = vld [vmem:[%s8613_s6 + $0xf4] ss:$8 sps:$4 sm:$0xff]  }
 0x29a   : > { %1769 = vmatpush1.bf16.msra.mxu0 %v7131_v22  ;;  %6884 = vmatpush1.bf16.msra.mxu1 %v7131_v22  ;;  %v7204_v14 = vld [vmem:[%s8613_s6 + $0xe4] ss:$8 sps:$4 sm:$0xff]   ;;  %v7206_v56 = vld [vmem:[%s8613_s6 + $0xe0] ss:$8 sps:$4 sm:$0xff]   ;;  %v7197_v59 = vld [vmem:[%s8613_s6 + $0x70] ss:$8 sps:$4 sm:$0xff]  }
 0x29b   : > { %1770 = vmatprep.subr.bf16.mxu0 %v7132_v23  ;;  %6869 = vmatprep.subr.bf16.mxu1 %v7132_v23  ;;  %v7209_v60 = vld [vmem:[%s8613_s6 + $0xf0] ss:$8 sps:$4 sm:$0xff]   ;;  %v8865_v19 = vld [vmem:[#allocation2 + $0x80] sm:$0xff]  ;;  %12712 = vst [vmem:[#allocation27_spill] sm:$0xff] %v8868_v21  ;;  %v12240_v22 = vsub.s32 0, %v8868_v21  ;;  %s12713_s6 = sld [smem:[#allocation331_spill]] }
 0x29c   : > { %v2053_v17 = vld [vmem:[#allocation2 + $0x30] sm:$0xff]  ;;  %v2054_v18 = vld [vmem:[#allocation2 + $0x38] sm:$0xff]  ;;  %v12239_v24 = vsub.s32 1, %v8868_v21  ;;  %s6286_s24 = sshll.u32 %s13821_s3, 6  ;;  %s6280_s5 = sshll.u32 %s13822_s4, 7 }
 0x29d   : > { %s5954_s11 = sadd.s32 %s6286_s24, %s6280_s5  ;;  %s13823_s30 = sld [smem:[#allocation338_spill]] }
 0x29e   : > { %1771 = vmatpush1.bf16.msra.mxu0 %v7134_v25  ;;  %6885 = vmatpush1.bf16.msra.mxu1 %v7134_v25  ;;  %s6281_s7 = sshll.u32 %s5954_s11, 7  ;;  %s5941_s9 = scalar_lea.sflag [#allocation7], %s8609_s29 }
 0x29f   : > { %1772 = vmatprep.subr.bf16.mxu0 %v7135_v26  ;;  %6870 = vmatprep.subr.bf16.mxu1 %v7135_v26  ;;  %s8070_s12 = scalar_lea.vmem %s12144_s28, 8192  ;;  %p13824_p8 = scmp.ne.s32.totalorder %s12687_s19, 0 }
 0x2a0   : > { %p8071_p9 = scmp.ne.s32.totalorder %s12144_s28, %s8070_s12 }
 0x2a1   : > { %v1426_v23 = vld [vmem:[%s12713_s6] sm:$0x3] }
 0x2a2   : > { %1773 = vmatpush1.bf16.msra.mxu0 %v7137_v27  ;;  %6886 = vmatpush1.bf16.msra.mxu1 %v7137_v27  ;;  %v8877_v25 = vrot.slane %v1426_v23, %v12240_v22  ;;  %v8881_v26 = vrot.slane %v1426_v23, %v12239_v24  ;;  %p8072_p12 = pnand %p8071_p9, %p13824_p8 }
 0x2a3   : > { %1774 = vmatprep.subr.bf16.mxu0 %v7138_v29  ;;  %6871 = vmatprep.subr.bf16.mxu1 %v7138_v29  ;;  %s12151_s6 = scalar_lea.hbm %s13823_s30, %s6281_s7 }
 0x2a4   : > { %p8073_p13 = pneg %p8072_p12 }
 0x2a6   : > { %1775 = vmatpush1.bf16.msra.mxu0 %v7140_v30  ;;  %6887 = vmatpush1.bf16.msra.mxu1 %v7140_v30 }
 0x2a7   : > { %1776 = vmatprep.subr.bf16.mxu0 %v7141_v31  ;;  %6872 = vmatprep.subr.bf16.mxu1 %v7141_v31 }
 0x2aa   : > { %1777 = vmatpush1.bf16.msra.mxu0 %v7143_v32  ;;  %6888 = vmatpush1.bf16.msra.mxu1 %v7143_v32 }
 0x2ab   : > { %1778 = vmatprep.subr.bf16.mxu0 %v7144_v33  ;;  %6873 = vmatprep.subr.bf16.mxu1 %v7144_v33 }
 0x2ae   : > { %1779 = vmatpush1.bf16.msra.mxu0 %v7146_v34  ;;  %6889 = vmatpush1.bf16.msra.mxu1 %v7146_v34 }
 0x2af   : > { %1780 = vmatprep.subr.bf16.mxu0 %v7147_v35  ;;  %6874 = vmatprep.subr.bf16.mxu1 %v7147_v35 }
 0x2b2   : > { %1781 = vmatpush1.bf16.msra.mxu0 %v7149_v36  ;;  %6890 = vmatpush1.bf16.msra.mxu1 %v7149_v36 }
 0x2b3   : > { %1782 = vmatprep.subr.bf16.mxu0 %v7150_v37  ;;  %6875 = vmatprep.subr.bf16.mxu1 %v7150_v37 }
 0x2b6   : > { %1783 = vmatpush1.bf16.msra.mxu0 %v7152_v38  ;;  %6891 = vmatpush1.bf16.msra.mxu1 %v7152_v38 }
 0x2b7   : > { %1784 = vmatprep.subr.bf16.mxu0 %v7153_v39  ;;  %6876 = vmatprep.subr.bf16.mxu1 %v7153_v39 }
 0x2ba   : > { %1785 = vmatpush1.bf16.msra.mxu0 %v7155_v40  ;;  %6892 = vmatpush1.bf16.msra.mxu1 %v7155_v40 }
 0x2bb   : > { %1786 = vmatprep.subr.bf16.mxu0 %v7156_v41  ;;  %6877 = vmatprep.subr.bf16.mxu1 %v7156_v41 }
 0x2be   : > { %1787 = vmatpush1.bf16.msra.mxu0 %v7158_v42  ;;  %6893 = vmatpush1.bf16.msra.mxu1 %v7158_v42 }
 0x2bf   : > { %1788 = vmatprep.subr.bf16.mxu0 %v7159_v43  ;;  %6878 = vmatprep.subr.bf16.mxu1 %v7159_v43 }
 0x2c2   : > { %1789 = vmatpush1.bf16.msra.mxu0 %v7161_v44  ;;  %6894 = vmatpush1.bf16.msra.mxu1 %v7161_v44 }
 0x2c3   : > { %6479 = vmatprep.subr.bf16.mxu1 %v2047_v45 }
 0x2c5   : > { %1791 = vmatmul.mubr.bf16.vlgmr.msra.gmra.mrb[0].mxu0 %v7162_v46  ;;  %1871 = vmatmul.mubr.bf16.vlgmr.msra.gmra.mrb[0].mxu1 %v7174_v47 }
 0x2c6   : > { %1800 = vmatprep.mubr.bf16.mxu0 %v7165_v48  ;;  %1880 = vmatprep.mubr.bf16.mxu1 %v7180_v49 }
 0x2cb   : > { %6480 = vmatpush3.bf16.xpose.msra.mxu1 %v2047_v45 }
 0x2cc   : > { %6481 = vmatprep.subr.bf16.mxu1 %v2048_v52 }
 0x2cd   : > { %1801 = vmatmul.mubr.bf16.gmra.mrb[4].mxu0 %v7167_v50  ;;  %1881 = vmatmul.mubr.bf16.gmra.mrb[4].mxu1 %v7182_v51 }
 0x2ce   : > { %1810 = vmatprep.mubr.bf16.mxu0 %v7168_v53  ;;  %1890 = vmatprep.mubr.bf16.mxu1 %v7186_v54 }
 0x2d3   : > { %6482 = vmatpush3.bf16.xpose.msra.mxu1 %v2048_v52 }
 0x2d4   : > { %6483 = vmatprep.subr.bf16.mxu1 %v2049_v61 }
 0x2d5   : > { %1811 = vmatmul.mubr.bf16.gmra.mrb[8].mxu0 %v7170_v57  ;;  %1891 = vmatmul.mubr.bf16.gmra.mrb[8].mxu1 %v7188_v58 }
 0x2d6   : > { %1820 = vmatprep.mubr.bf16.mxu0 %v7171_v62  ;;  %1900 = vmatprep.mubr.bf16.mxu1 %v7192_v63 }
 0x2db   : > { %6484 = vmatpush3.bf16.xpose.msra.mxu1 %v2049_v61 }
 0x2dc   : > { %6485 = vmatprep.subr.bf16.mxu1 %v2050_v2 }
 0x2dd   : > { %1821 = vmatmul.mubr.bf16.gmra.mrb[12].mxu0 %v7173_v0  ;;  %1901 = vmatmul.mubr.bf16.gmra.mrb[12].mxu1 %v7194_v1 }
 0x2de   : > { %1830 = vmatprep.mubr.bf16.mxu0 %v7177_v3  ;;  %1910 = vmatprep.mubr.bf16.mxu1 %v7198_v4 }
 0x2e3   : > { %6486 = vmatpush3.bf16.xpose.msra.mxu1 %v2050_v2 }
 0x2e4   : > { %6487 = vmatprep.subr.bf16.mxu1 %v2051_v7 }
 0x2e5   : > { %1831 = vmatmul.mubr.bf16.gmra.mrb[16].mxu0 %v7179_v5  ;;  %1911 = vmatmul.mubr.bf16.gmra.mrb[16].mxu1 %v7200_v6 }
 0x2e6   : > { %1840 = vmatprep.mubr.bf16.mxu0 %v7183_v8  ;;  %1920 = vmatprep.mubr.bf16.mxu1 %v7201_v9 }
 0x2eb   : > { %6488 = vmatpush3.bf16.xpose.msra.mxu1 %v2051_v7 }
 0x2ec   : > { %6489 = vmatprep.subr.bf16.mxu1 %v2052_v12 }
 0x2ed   : > { %1841 = vmatmul.mubr.bf16.gmra.mrb[20].mxu0 %v7185_v10  ;;  %1921 = vmatmul.mubr.bf16.gmra.mrb[20].mxu1 %v7203_v11 }
 0x2ee   : > { %1850 = vmatprep.mubr.bf16.mxu0 %v7189_v13  ;;  %1930 = vmatprep.mubr.bf16.mxu1 %v7204_v14 }
 0x2f3   : > { %6490 = vmatpush3.bf16.xpose.msra.mxu1 %v2052_v12 }
 0x2f4   : > { %6491 = vmatprep.subr.bf16.mxu1 %v2053_v17 }
 0x2f5   : > { %1851 = vmatmul.mubr.bf16.gmra.mrb[24].mxu0 %v7191_v55  ;;  %1931 = vmatmul.mubr.bf16.gmra.mrb[24].mxu1 %v7206_v56 }
 0x2f6   : > { %1860 = vmatprep.mubr.bf16.mxu0 %v7195_v15  ;;  %1940 = vmatprep.mubr.bf16.mxu1 %v7207_v16 }
 0x2fb   : > { %6492 = vmatpush3.bf16.xpose.msra.mxu1 %v2053_v17 }
 0x2fc   : > { %6493 = vmatprep.subr.bf16.mxu1 %v2054_v18 }
 0x2fd   : > { %1861 = vmatmul.mubr.bf16.gmra.mrb[28].mxu0 %v7197_v59  ;;  %1941 = vmatmul.mubr.bf16.gmra.mrb[28].mxu1 %v7209_v60 }
 0x303   : > { %6494 = vmatpush3.bf16.xpose.msra.mxu1 %v2054_v18 }
 0x304   : > { %6527 = vmatprep.subr.bf16.mxu1 %v8865_v19 }
 0x398   : > { %v1792_v27 = vpop.f32.mrb[0].mxu0  ;;  %v1872_v28 = vpop.f32.mrb[0].mxu1 }
 0x399   : > { %v1793_v29 = vadd.f32 %v1792_v27, %v8877_v25  ;;  %v1794_v30 = vpop.f32.mrb[1].mxu0  ;;  %v1873_v31 = vadd.f32 %v1872_v28, %v8877_v25  ;;  %v1874_v32 = vpop.f32.mrb[1].mxu1  ;;  %v2056_v27 = vld [vmem:[#allocation2 + $0x88] sm:$0xff] }
 0x39a   : > { %v1795_v33 = vadd.f32 %v1794_v30, %v8881_v26  ;;  %v1796_v34 = vpop.f32.mrb[2].mxu0  ;;  %v1875_v35 = vadd.f32 %v1874_v32, %v8881_v26  ;;  %v1876_v36 = vpop.f32.mrb[2].mxu1 }
 0x39b   : > { %v1797_v37 = vadd.f32 %v1796_v34, %v8877_v25  ;;  %v1798_v38 = vpop.f32.mrb[3].mxu0  ;;  %v1983_v39 = vmul.f32 0.088388346, %v1873_v31  ;;  %v1877_v40 = vadd.f32 %v1876_v36, %v8877_v25  ;;  %v1878_v41 = vpop.f32.mrb[3].mxu1  ;;  %v1951_v45 = vmul.f32 0.088388346, %v1793_v29 }
 0x39c   : > { %v1799_v42 = vadd.f32 %v1798_v38, %v8881_v26  ;;  %v1984_v43 = vmul.f32 0.088388346, %v1875_v35  ;;  %v1879_v44 = vadd.f32 %v1878_v41, %v8881_v26  ;;  %v1952_v48 = vmul.f32 0.088388346, %v1795_v33 }
 0x39d   : > { %v1953_v46 = vmul.f32 0.088388346, %v1797_v37  ;;  %v1985_v47 = vmul.f32 0.088388346, %v1877_v40 }
 0x39e   : > { %v1954_v49 = vmul.f32 0.088388346, %v1799_v42  ;;  %v1986_v50 = vmul.f32 0.088388346, %v1879_v44 }
 0x39f   : > { %v8891_v51 = vpack.c.bf16 %v1953_v46, %v1951_v45  ;;  %v8893_v52 = vpack.c.bf16 %v1985_v47, %v1983_v39 }
 0x3a0   : > { %v8895_v53 = vpack.c.bf16 %v1954_v49, %v1952_v48  ;;  %v1802_v54 = vpop.f32.mrb[4].mxu0  ;;  %v8897_v57 = vpack.c.bf16 %v1986_v50, %v1984_v43  ;;  %v1882_v58 = vpop.f32.mrb[4].mxu1 }
 0x3a1   : > { %12714 = vst [vmem:[#allocation28_spill] sm:$0xff] %v8891_v51  ;;  %12715 = vst [vmem:[#allocation29_spill] sm:$0xff] %v8893_v52  ;;  %v1803_v61 = vadd.f32 %v1802_v54, %v8877_v25  ;;  %v1804_v62 = vpop.f32.mrb[5].mxu0  ;;  %6495 = vmatprep.mubr.bf16.mxu1 %v8891_v51  ;;  %v1883_v63 = vadd.f32 %v1882_v58, %v8877_v25  ;;  %v1884_v0 = vpop.f32.mrb[5].mxu1 }
 0x3a2   : > { %12716 = vst [vmem:[#allocation30_spill] sm:$0xff] %v8895_v53  ;;  %12717 = vst [vmem:[#allocation31_spill] sm:$0xff] %v8897_v57  ;;  %v1805_v1 = vadd.f32 %v1804_v62, %v8881_v26  ;;  %v1806_v2 = vpop.f32.mrb[6].mxu0  ;;  %v1885_v3 = vadd.f32 %v1884_v0, %v8881_v26  ;;  %v1886_v4 = vpop.f32.mrb[6].mxu1 }
 0x3a3   : > { %v1807_v5 = vadd.f32 %v1806_v2, %v8877_v25  ;;  %v1808_v6 = vpop.f32.mrb[7].mxu0  ;;  %v1987_v7 = vmul.f32 0.088388346, %v1883_v63  ;;  %v1887_v8 = vadd.f32 %v1886_v4, %v8877_v25  ;;  %v1888_v9 = vpop.f32.mrb[7].mxu1  ;;  %v1955_v13 = vmul.f32 0.088388346, %v1803_v61 }
 0x3a4   : > { %v1809_v10 = vadd.f32 %v1808_v6, %v8881_v26  ;;  %v1988_v11 = vmul.f32 0.088388346, %v1885_v3  ;;  %v1889_v12 = vadd.f32 %v1888_v9, %v8881_v26  ;;  %v1956_v56 = vmul.f32 0.088388346, %v1805_v1  ;;  %v2057_v63 = vld [vmem:[#allocation2 + $0x90] sm:$0xff] }
 0x3a5   : > { %v1957_v14 = vmul.f32 0.088388346, %v1807_v5  ;;  %v1989_v55 = vmul.f32 0.088388346, %v1887_v8 }
 0x3a6   : > { %v1958_v15 = vmul.f32 0.088388346, %v1809_v10  ;;  %v1990_v16 = vmul.f32 0.088388346, %v1889_v12 }
 0x3a7   : > { %v8908_v59 = vpack.c.bf16 %v1957_v14, %v1955_v13  ;;  %v8910_v60 = vpack.c.bf16 %v1989_v55, %v1987_v7 }
 0x3a8   : > { %v8912_v17 = vpack.c.bf16 %v1958_v15, %v1956_v56  ;;  %v1812_v18 = vpop.f32.mrb[8].mxu0  ;;  %v8914_v20 = vpack.c.bf16 %v1990_v16, %v1988_v11  ;;  %v1892_v23 = vpop.f32.mrb[8].mxu1 }
 0x3a9   : > { %12718 = vst [vmem:[#allocation32_spill] sm:$0xff] %v8908_v59  ;;  %12719 = vst [vmem:[#allocation33_spill] sm:$0xff] %v8910_v60  ;;  %v1813_v28 = vadd.f32 %v1812_v18, %v8877_v25  ;;  %v1814_v29 = vpop.f32.mrb[9].mxu0  ;;  %6496 = vmatmul.mubr.bf16.vlgmr.msra.gmra.mrb[32].mxu1 %v8908_v59  ;;  %v1893_v30 = vadd.f32 %v1892_v23, %v8877_v25  ;;  %v1894_v31 = vpop.f32.mrb[9].mxu1 }
 0x3aa   : > { %12720 = vst [vmem:[#allocation34_spill] sm:$0xff] %v8912_v17  ;;  %12721 = vst [vmem:[#allocation35_spill] sm:$0xff] %v8914_v20  ;;  %v1815_v32 = vadd.f32 %v1814_v29, %v8881_v26  ;;  %v1816_v33 = vpop.f32.mrb[10].mxu0  ;;  %6528 = vmatpush3.bf16.xpose.msra.mxu1 %v8865_v19  ;;  %v1895_v34 = vadd.f32 %v1894_v31, %v8881_v26  ;;  %v1896_v35 = vpop.f32.mrb[10].mxu1 }
 0x3ab   : > { %v1817_v36 = vadd.f32 %v1816_v33, %v8877_v25  ;;  %v1818_v37 = vpop.f32.mrb[11].mxu0  ;;  %v1991_v38 = vmul.f32 0.088388346, %v1893_v30  ;;  %v1897_v39 = vadd.f32 %v1896_v35, %v8877_v25  ;;  %v1898_v40 = vpop.f32.mrb[11].mxu1  ;;  %6529 = vmatprep.subr.bf16.mxu1 %v2056_v27  ;;  %v1959_v44 = vmul.f32 0.088388346, %v1813_v28 }
 0x3ac   : > { %v1819_v41 = vadd.f32 %v1818_v37, %v8881_v26  ;;  %v1992_v42 = vmul.f32 0.088388346, %v1895_v34  ;;  %v1899_v43 = vadd.f32 %v1898_v40, %v8881_v26  ;;  %v1960_v19 = vmul.f32 0.088388346, %v1815_v32  ;;  %v2058_v34 = vld [vmem:[#allocation2 + $0x98] sm:$0xff] }
 0x3ad   : > { %v1961_v45 = vmul.f32 0.088388346, %v1817_v36  ;;  %v1993_v46 = vmul.f32 0.088388346, %v1897_v39 }
 0x3ae   : > { %v1962_v47 = vmul.f32 0.088388346, %v1819_v41  ;;  %v1994_v48 = vmul.f32 0.088388346, %v1899_v43 }
 0x3af   : > { %v8926_v49 = vpack.c.bf16 %v1961_v45, %v1959_v44  ;;  %v8928_v50 = vpack.c.bf16 %v1993_v46, %v1991_v38 }
 0x3b0   : > { %v8930_v54 = vpack.c.bf16 %v1962_v47, %v1960_v19  ;;  %v1822_v58 = vpop.f32.mrb[12].mxu0  ;;  %v8932_v61 = vpack.c.bf16 %v1994_v48, %v1992_v42  ;;  %v1902_v62 = vpop.f32.mrb[12].mxu1 }
 0x3b1   : > { %12722 = vst [vmem:[#allocation36_spill] sm:$0xff] %v8926_v49  ;;  %12723 = vst [vmem:[#allocation37_spill] sm:$0xff] %v8928_v50  ;;  %v1823_v0 = vadd.f32 %v1822_v58, %v8877_v25  ;;  %v1824_v1 = vpop.f32.mrb[13].mxu0  ;;  %6499 = vmatprep.mubr.bf16.mxu1 %v8926_v49  ;;  %v1903_v2 = vadd.f32 %v1902_v62, %v8877_v25  ;;  %v1904_v3 = vpop.f32.mrb[13].mxu1 }
 0x3b2   : > { %12724 = vst [vmem:[#allocation38_spill] sm:$0xff] %v8930_v54  ;;  %12725 = vst [vmem:[#allocation39_spill] sm:$0xff] %v8932_v61  ;;  %v1825_v4 = vadd.f32 %v1824_v1, %v8881_v26  ;;  %v1826_v5 = vpop.f32.mrb[14].mxu0  ;;  %6530 = vmatpush3.bf16.xpose.msra.mxu1 %v2056_v27  ;;  %v1905_v6 = vadd.f32 %v1904_v3, %v8881_v26  ;;  %v1906_v7 = vpop.f32.mrb[14].mxu1 }
 0x3b3   : > { %v1827_v8 = vadd.f32 %v1826_v5, %v8877_v25  ;;  %v1828_v9 = vpop.f32.mrb[15].mxu0  ;;  %v1995_v10 = vmul.f32 0.088388346, %v1903_v2  ;;  %v1907_v11 = vadd.f32 %v1906_v7, %v8877_v25  ;;  %v1908_v12 = vpop.f32.mrb[15].mxu1  ;;  %6531 = vmatprep.subr.bf16.mxu1 %v2057_v63  ;;  %v1963_v56 = vmul.f32 0.088388346, %v1823_v0 }
 0x3b4   : > { %v1829_v13 = vadd.f32 %v1828_v9, %v8881_v26  ;;  %v1996_v14 = vmul.f32 0.088388346, %v1905_v6  ;;  %v1909_v55 = vadd.f32 %v1908_v12, %v8881_v26  ;;  %v1964_v18 = vmul.f32 0.088388346, %v1825_v4 }
 0x3b5   : > { %v1965_v15 = vmul.f32 0.088388346, %v1827_v8  ;;  %v1997_v16 = vmul.f32 0.088388346, %v1907_v11 }
 0x3b6   : > { %v1966_v23 = vmul.f32 0.088388346, %v1829_v13  ;;  %v1998_v27 = vmul.f32 0.088388346, %v1909_v55 }
 0x3b7   : > { %v8943_v28 = vpack.c.bf16 %v1965_v15, %v1963_v56  ;;  %v8945_v29 = vpack.c.bf16 %v1997_v16, %v1995_v10  ;;  %v2059_v10 = vld [vmem:[#allocation2 + $0xa0] sm:$0xff] }
 0x3b8   : > { %v8947_v30 = vpack.c.bf16 %v1966_v23, %v1964_v18  ;;  %v1832_v31 = vpop.f32.mrb[16].mxu0  ;;  %v8949_v32 = vpack.c.bf16 %v1998_v27, %v1996_v14  ;;  %v1912_v33 = vpop.f32.mrb[16].mxu1 }
 0x3b9   : > { %12726 = vst [vmem:[#allocation40_spill] sm:$0xff] %v8943_v28  ;;  %12727 = vst [vmem:[#allocation41_spill] sm:$0xff] %v8945_v29  ;;  %v1833_v35 = vadd.f32 %v1832_v31, %v8877_v25  ;;  %v1834_v36 = vpop.f32.mrb[17].mxu0  ;;  %6500 = vmatmul.mubr.bf16.gmra.mrb[36].mxu1 %v8943_v28  ;;  %v1913_v37 = vadd.f32 %v1912_v33, %v8877_v25  ;;  %v1914_v38 = vpop.f32.mrb[17].mxu1 }
 0x3ba   : > { %12728 = vst [vmem:[#allocation42_spill] sm:$0xff] %v8947_v30  ;;  %12729 = vst [vmem:[#allocation43_spill] sm:$0xff] %v8949_v32  ;;  %v1835_v39 = vadd.f32 %v1834_v36, %v8881_v26  ;;  %v1836_v40 = vpop.f32.mrb[18].mxu0  ;;  %6532 = vmatpush3.bf16.xpose.msra.mxu1 %v2057_v63  ;;  %v1915_v41 = vadd.f32 %v1914_v38, %v8881_v26  ;;  %v1916_v42 = vpop.f32.mrb[18].mxu1 }
 0x3bb   : > { %v1837_v43 = vadd.f32 %v1836_v40, %v8877_v25  ;;  %v1838_v44 = vpop.f32.mrb[19].mxu0  ;;  %v1999_v45 = vmul.f32 0.088388346, %v1913_v37  ;;  %v1917_v46 = vadd.f32 %v1916_v42, %v8877_v25  ;;  %v1918_v19 = vpop.f32.mrb[19].mxu1  ;;  %6533 = vmatprep.subr.bf16.mxu1 %v2058_v34  ;;  %v1967_v62 = vmul.f32 0.088388346, %v1833_v35 }
 0x3bc   : > { %v1839_v47 = vadd.f32 %v1838_v44, %v8881_v26  ;;  %v2000_v48 = vmul.f32 0.088388346, %v1915_v41  ;;  %v1919_v58 = vadd.f32 %v1918_v19, %v8881_v26  ;;  %v1968_v63 = vmul.f32 0.088388346, %v1835_v39 }
 0x3bd   : > { %v1969_v0 = vmul.f32 0.088388346, %v1837_v43  ;;  %v2001_v1 = vmul.f32 0.088388346, %v1917_v46 }
 0x3be   : > { %v1970_v2 = vmul.f32 0.088388346, %v1839_v47  ;;  %v2002_v3 = vmul.f32 0.088388346, %v1919_v58 }
 0x3bf   : > { %v8960_v4 = vpack.c.bf16 %v1969_v0, %v1967_v62  ;;  %v8962_v5 = vpack.c.bf16 %v2001_v1, %v1999_v45 }
 0x3c0   : > { %v8964_v6 = vpack.c.bf16 %v1970_v2, %v1968_v63  ;;  %v1842_v7 = vpop.f32.mrb[20].mxu0  ;;  %v8966_v8 = vpack.c.bf16 %v2002_v3, %v2000_v48  ;;  %v1922_v9 = vpop.f32.mrb[20].mxu1  ;;  %v2060_v48 = vld [vmem:[#allocation2 + $0xa8] sm:$0xff] }
 0x3c1   : > { %12730 = vst [vmem:[#allocation44_spill] sm:$0xff] %v8960_v4  ;;  %12731 = vst [vmem:[#allocation45_spill] sm:$0xff] %v8962_v5  ;;  %v1843_v11 = vadd.f32 %v1842_v7, %v8877_v25  ;;  %v1844_v12 = vpop.f32.mrb[21].mxu0  ;;  %6503 = vmatprep.mubr.bf16.mxu1 %v8960_v4  ;;  %v1923_v13 = vadd.f32 %v1922_v9, %v8877_v25  ;;  %v1924_v14 = vpop.f32.mrb[21].mxu1  ;;  %v9199_v4 = vld [vmem:[#allocation2 + $0xc0] sm:$0xff] }
 0x3c2   : > { %12732 = vst [vmem:[#allocation46_spill] sm:$0xff] %v8964_v6  ;;  %12733 = vst [vmem:[#allocation47_spill] sm:$0xff] %v8966_v8  ;;  %v1845_v55 = vadd.f32 %v1844_v12, %v8881_v26  ;;  %v1846_v56 = vpop.f32.mrb[22].mxu0  ;;  %6534 = vmatpush3.bf16.xpose.msra.mxu1 %v2058_v34  ;;  %v1925_v15 = vadd.f32 %v1924_v14, %v8881_v26  ;;  %v1926_v16 = vpop.f32.mrb[22].mxu1 }
 0x3c3   : > { %v1847_v18 = vadd.f32 %v1846_v56, %v8877_v25  ;;  %v1848_v23 = vpop.f32.mrb[23].mxu0  ;;  %v2003_v27 = vmul.f32 0.088388346, %v1923_v13  ;;  %v1927_v31 = vadd.f32 %v1926_v16, %v8877_v25  ;;  %v1928_v33 = vpop.f32.mrb[23].mxu1  ;;  %6535 = vmatprep.subr.bf16.mxu1 %v2059_v10  ;;  %v1971_v38 = vmul.f32 0.088388346, %v1843_v11 }
 0x3c4   : > { %v1849_v35 = vadd.f32 %v1848_v23, %v8881_v26  ;;  %v2004_v36 = vmul.f32 0.088388346, %v1925_v15  ;;  %v1929_v37 = vadd.f32 %v1928_v33, %v8881_v26  ;;  %v1972_v34 = vmul.f32 0.088388346, %v1845_v55 }
 0x3c5   : > { %v1973_v39 = vmul.f32 0.088388346, %v1847_v18  ;;  %v2005_v40 = vmul.f32 0.088388346, %v1927_v31 }
 0x3c6   : > { %v1974_v41 = vmul.f32 0.088388346, %v1849_v35  ;;  %v2006_v42 = vmul.f32 0.088388346, %v1929_v37 }
 0x3c7   : > { %v8977_v43 = vpack.c.bf16 %v1973_v39, %v1971_v38  ;;  %v8979_v44 = vpack.c.bf16 %v2005_v40, %v2003_v27  ;;  %v2061_v40 = vld [vmem:[#allocation2 + $0xb0] sm:$0xff] }
 0x3c8   : > { %v8981_v45 = vpack.c.bf16 %v1974_v41, %v1972_v34  ;;  %v1852_v46 = vpop.f32.mrb[24].mxu0  ;;  %v8983_v19 = vpack.c.bf16 %v2006_v42, %v2004_v36  ;;  %v1932_v47 = vpop.f32.mrb[24].mxu1 }
 0x3c9   : > { %12734 = vst [vmem:[#allocation48_spill] sm:$0xff] %v8977_v43  ;;  %12735 = vst [vmem:[#allocation49_spill] sm:$0xff] %v8979_v44  ;;  %v1853_v58 = vadd.f32 %v1852_v46, %v8877_v25  ;;  %v1854_v62 = vpop.f32.mrb[25].mxu0  ;;  %6504 = vmatmul.mubr.bf16.gmra.mrb[40].mxu1 %v8977_v43  ;;  %v1933_v0 = vadd.f32 %v1932_v47, %v8877_v25  ;;  %v1934_v1 = vpop.f32.mrb[25].mxu1 }
 0x3ca   : > { %12736 = vst [vmem:[#allocation50_spill] sm:$0xff] %v8981_v45  ;;  %12737 = vst [vmem:[#allocation51_spill] sm:$0xff] %v8983_v19  ;;  %v1855_v63 = vadd.f32 %v1854_v62, %v8881_v26  ;;  %v1856_v2 = vpop.f32.mrb[26].mxu0  ;;  %6536 = vmatpush3.bf16.xpose.msra.mxu1 %v2059_v10  ;;  %v1935_v3 = vadd.f32 %v1934_v1, %v8881_v26  ;;  %v1936_v7 = vpop.f32.mrb[26].mxu1 }
 0x3cb   : > { %v1857_v9 = vadd.f32 %v1856_v2, %v8877_v25  ;;  %v1858_v11 = vpop.f32.mrb[27].mxu0  ;;  %v2007_v12 = vmul.f32 0.088388346, %v1933_v0  ;;  %v1937_v13 = vadd.f32 %v1936_v7, %v8877_v25  ;;  %v1938_v14 = vpop.f32.mrb[27].mxu1  ;;  %6537 = vmatprep.subr.bf16.mxu1 %v2060_v48  ;;  %v1975_v16 = vmul.f32 0.088388346, %v1853_v58 }
 0x3cc   : > { %v1859_v55 = vadd.f32 %v1858_v11, %v8881_v26  ;;  %v2008_v56 = vmul.f32 0.088388346, %v1935_v3  ;;  %v1939_v15 = vadd.f32 %v1938_v14, %v8881_v26  ;;  %v1976_v10 = vmul.f32 0.088388346, %v1855_v63 }
 0x3cd   : > { %v1977_v18 = vmul.f32 0.088388346, %v1857_v9  ;;  %v2009_v23 = vmul.f32 0.088388346, %v1937_v13 }
 0x3ce   : > { %v1978_v27 = vmul.f32 0.088388346, %v1859_v55  ;;  %v2010_v31 = vmul.f32 0.088388346, %v1939_v15 }
 0x3cf   : > { %v8994_v33 = vpack.c.bf16 %v1977_v18, %v1975_v16  ;;  %v8996_v35 = vpack.c.bf16 %v2009_v23, %v2007_v12 }
 0x3d0   : > { %v8998_v36 = vpack.c.bf16 %v1978_v27, %v1976_v10  ;;  %v1862_v37 = vpop.f32.mrb[28].mxu0  ;;  %v9000_v38 = vpack.c.bf16 %v2010_v31, %v2008_v56  ;;  %v1942_v39 = vpop.f32.mrb[28].mxu1  ;;  %v2062_v10 = vld [vmem:[#allocation2 + $0xb8] sm:$0xff] }
 0x3d1   : > { %12738 = vst [vmem:[#allocation52_spill] sm:$0xff] %v8994_v33  ;;  %12739 = vst [vmem:[#allocation53_spill] sm:$0xff] %v8996_v35  ;;  %v1863_v34 = vadd.f32 %v1862_v37, %v8877_v25  ;;  %v1864_v41 = vpop.f32.mrb[29].mxu0  ;;  %6507 = vmatprep.mubr.bf16.mxu1 %v8994_v33  ;;  %v1943_v42 = vadd.f32 %v1942_v39, %v8877_v25  ;;  %v1944_v46 = vpop.f32.mrb[29].mxu1  ;;  %v2063_v39 = vld [vmem:[#allocation3] sm:$0xff]  ;;  %v2077_v33 = vld [vmem:[#allocation3 + $0xb0] sm:$0xff] }
 0x3d2   : > { %12740 = vst [vmem:[#allocation54_spill] sm:$0xff] %v8998_v36  ;;  %12741 = vst [vmem:[#allocation55_spill] sm:$0xff] %v9000_v38  ;;  %v1865_v47 = vadd.f32 %v1864_v41, %v8881_v26  ;;  %v1866_v58 = vpop.f32.mrb[30].mxu0  ;;  %6538 = vmatpush3.bf16.xpose.msra.mxu1 %v2060_v48  ;;  %v1945_v62 = vadd.f32 %v1944_v46, %v8881_v26  ;;  %v1946_v0 = vpop.f32.mrb[30].mxu1  ;;  %6575 = vmatprep.subr.bf16.mxu0 %v2063_v39 }
 0x3d3   : > { %v1867_v1 = vadd.f32 %v1866_v58, %v8877_v25  ;;  %v1868_v63 = vpop.f32.mrb[31].mxu0  ;;  %v2011_v2 = vmul.f32 0.088388346, %v1943_v42  ;;  %v1947_v3 = vadd.f32 %v1946_v0, %v8877_v25  ;;  %v1948_v7 = vpop.f32.mrb[31].mxu1  ;;  %6539 = vmatprep.subr.bf16.mxu1 %v2061_v40  ;;  %v1979_v13 = vmul.f32 0.088388346, %v1863_v34  ;;  %6576 = vmatpush3.bf16.msra.mxu0 %v2063_v39 }
 0x3d4   : > { %v1869_v9 = vadd.f32 %v1868_v63, %v8881_v26  ;;  %v2012_v11 = vmul.f32 0.088388346, %v1945_v62  ;;  %v1949_v12 = vadd.f32 %v1948_v7, %v8881_v26  ;;  %v1980_v48 = vmul.f32 0.088388346, %v1865_v47  ;;  %v2065_v42 = vld [vmem:[#allocation3 + $0x10] sm:$0xff]  ;;  %v2066_v58 = vld [vmem:[#allocation3 + $0x18] sm:$0xff] }
 0x3d5   : > { %v1981_v14 = vmul.f32 0.088388346, %v1867_v1  ;;  %v2013_v55 = vmul.f32 0.088388346, %v1947_v3  ;;  %v2067_v62 = vld [vmem:[#allocation3 + $0x20] sm:$0xff]  ;;  %v2068_v0 = vld [vmem:[#allocation3 + $0x28] sm:$0xff] }
 0x3d6   : > { %v1982_v56 = vmul.f32 0.088388346, %v1869_v9  ;;  %v2014_v15 = vmul.f32 0.088388346, %v1949_v12  ;;  %v2070_v9 = vld [vmem:[#allocation3 + $0x38] sm:$0xff] }
 0x3d7   : > { %v9011_v16 = vpack.c.bf16 %v1981_v14, %v1979_v13  ;;  %v9013_v18 = vpack.c.bf16 %v2013_v55, %v2011_v2  ;;  %v2069_v2 = vld [vmem:[#allocation3 + $0x30] sm:$0xff] }
 0x3d8   : > { %v9015_v23 = vpack.c.bf16 %v1982_v56, %v1980_v48  ;;  %v9017_v25 = vpack.c.bf16 %v2014_v15, %v2012_v11 }
 0x3d9   : > { %12742 = vst [vmem:[#allocation56_spill] sm:$0xff] %v9011_v16  ;;  %12743 = vst [vmem:[#allocation57_spill] sm:$0xff] %v9013_v18  ;;  %6508 = vmatmul.mubr.bf16.gmra.mrb[44].mxu1 %v9011_v16 }
 0x3da   : > { %12744 = vst [vmem:[#allocation58_spill] sm:$0xff] %v9015_v23  ;;  %12745 = vst [vmem:[#allocation59_spill] sm:$0xff] %v9017_v25  ;;  %6511 = vmatprep.mubr.bf16.mxu1 %v8893_v52  ;;  %6540 = vmatpush3.bf16.xpose.msra.mxu1 %v2061_v40  ;;  %v2064_v40 = vld [vmem:[#allocation3 + $0x8] sm:$0xff]  ;;  %v2075_v52 = vld [vmem:[#allocation3 + $0xa0] sm:$0xff] }
 0x3db   : > { %6541 = vmatprep.subr.bf16.mxu1 %v2062_v10  ;;  %6577 = vmatprep.subr.bf16.mxu0 %v2064_v40 }
 0x3dc   : > { %6578 = vmatpush3.bf16.msra.mxu0 %v2064_v40 }
 0x3dd   : > { %6579 = vmatprep.subr.bf16.mxu0 %v2065_v42 }
 0x3e0   : > { %6580 = vmatpush3.bf16.msra.mxu0 %v2065_v42 }
 0x3e1   : > { %6512 = vmatmul.mubr.bf16.gmra.mrb[48].mxu1 %v8910_v60  ;;  %6581 = vmatprep.subr.bf16.mxu0 %v2066_v58 }
 0x3e2   : > { %6515 = vmatprep.mubr.bf16.mxu1 %v8928_v50  ;;  %6542 = vmatpush3.bf16.xpose.msra.mxu1 %v2062_v10  ;;  %v2073_v50 = vld [vmem:[#allocation3 + $0x90] sm:$0xff] }
 0x3e4   : > { %6582 = vmatpush3.bf16.msra.mxu0 %v2066_v58 }
 0x3e5   : > { %6583 = vmatprep.subr.bf16.mxu0 %v2067_v62 }
 0x3e8   : > { %6584 = vmatpush3.bf16.msra.mxu0 %v2067_v62 }
 0x3e9   : > { %6516 = vmatmul.mubr.bf16.gmra.mrb[52].mxu1 %v8945_v29  ;;  %6585 = vmatprep.subr.bf16.mxu0 %v2068_v0 }
 0x3ea   : > { %6519 = vmatprep.mubr.bf16.mxu1 %v8962_v5 }
 0x3ec   : > { %6586 = vmatpush3.bf16.msra.mxu0 %v2068_v0 }
 0x3ed   : > { %6587 = vmatprep.subr.bf16.mxu0 %v2069_v2 }
 0x3f0   : > { %6588 = vmatpush3.bf16.msra.mxu0 %v2069_v2 }
 0x3f1   : > { %6520 = vmatmul.mubr.bf16.gmra.mrb[56].mxu1 %v8979_v44  ;;  %6589 = vmatprep.subr.bf16.mxu0 %v2070_v9 }
 0x3f2   : > { %6523 = vmatprep.mubr.bf16.mxu1 %v8996_v35 }
 0x3f4   : > { %6590 = vmatpush3.bf16.msra.mxu0 %v2070_v9 }
 0x3f9   : > { %6524 = vmatmul.mubr.bf16.gmra.mrb[60].mxu1 %v9013_v18 }
 0x3fa   : > { %6543 = vmatprep.mubr.bf16.mxu1 %v8895_v53 }
 0x401   : > { %6544 = vmatmul.mubr.bf16.vlgmr.msra.gmra.mrb[64].mxu1 %v8912_v17 }
 0x402   : > { %6547 = vmatprep.mubr.bf16.mxu1 %v8930_v54 }
 0x409   : > { %6548 = vmatmul.mubr.bf16.gmra.mrb[68].mxu1 %v8947_v30  ;;  %v9210_v30 = vld [vmem:[#allocation2 + $0x40] sm:$0xff] }
 0x40a   : > { %6551 = vmatprep.mubr.bf16.mxu1 %v8964_v6  ;;  %6671 = vmatprep.subr.bf16.mxu0 %v9210_v30 }
 0x411   : > { %6552 = vmatmul.mubr.bf16.gmra.mrb[72].mxu1 %v8981_v45 }
 0x412   : > { %6555 = vmatprep.mubr.bf16.mxu1 %v8998_v36 }
 0x419   : > { %6556 = vmatmul.mubr.bf16.gmra.mrb[76].mxu1 %v9015_v23 }
 0x41a   : > { %6559 = vmatprep.mubr.bf16.mxu1 %v8897_v57 }
 0x421   : > { %6560 = vmatmul.mubr.bf16.gmra.mrb[80].mxu1 %v8914_v20 }
 0x422   : > { %6563 = vmatprep.mubr.bf16.mxu1 %v8932_v61 }
 0x429   : > { %6564 = vmatmul.mubr.bf16.gmra.mrb[84].mxu1 %v8949_v32 }
 0x42a   : > { %6567 = vmatprep.mubr.bf16.mxu1 %v8966_v8 }
 0x431   : > { %6568 = vmatmul.mubr.bf16.gmra.mrb[88].mxu1 %v8983_v19  ;;  %v2072_v19 = vld [vmem:[#allocation3 + $0x88] sm:$0xff] }
 0x432   : > { %6571 = vmatprep.mubr.bf16.mxu1 %v9000_v38  ;;  %v2071_v38 = vld [vmem:[#allocation3 + $0x80] sm:$0xff] }
 0x433   : > { %6623 = vmatprep.subr.bf16.mxu1 %v2071_v38 }
 0x434   : > { %6624 = vmatpush3.bf16.msra.mxu1 %v2071_v38  ;;  %v2074_v38 = vld [vmem:[#allocation3 + $0x98] sm:$0xff] }
 0x435   : > { %6625 = vmatprep.subr.bf16.mxu1 %v2072_v19 }
 0x438   : > { %6626 = vmatpush3.bf16.msra.mxu1 %v2072_v19 }
 0x439   : > { %6572 = vmatmul.mubr.bf16.gmra.mrb[92].mxu1 %v9017_v25  ;;  %6627 = vmatprep.subr.bf16.mxu1 %v2073_v50 }
 0x43c   : > { %6628 = vmatpush3.bf16.msra.mxu1 %v2073_v50  ;;  %v2076_v50 = vld [vmem:[#allocation3 + $0xa8] sm:$0xff] }
 0x43d   : > { %6629 = vmatprep.subr.bf16.mxu1 %v2074_v38 }
 0x440   : > { %6630 = vmatpush3.bf16.msra.mxu1 %v2074_v38 }
 0x441   : > { %6631 = vmatprep.subr.bf16.mxu1 %v2075_v52 }
 0x444   : > { %6632 = vmatpush3.bf16.msra.mxu1 %v2075_v52  ;;  %v2078_v52 = vld [vmem:[#allocation3 + $0xb8] sm:$0xff] }
 0x445   : > { %6633 = vmatprep.subr.bf16.mxu1 %v2076_v50 }
 0x448   : > { %6634 = vmatpush3.bf16.msra.mxu1 %v2076_v50 }
 0x449   : > { %6635 = vmatprep.subr.bf16.mxu1 %v2077_v33 }
 0x44c   : > { %6636 = vmatpush3.bf16.msra.mxu1 %v2077_v33 }
 0x44d   : > { %6637 = vmatprep.subr.bf16.mxu1 %v2078_v52 }
 0x450   : > { %6638 = vmatpush3.bf16.msra.mxu1 %v2078_v52 }
 0x451   : > { %6719 = vmatprep.subr.bf16.mxu1 %v9199_v4 }
 0x47c   : > { %v9044_v26 = vpop.f32.mrb[32].mxu1 }
 0x47d   : > { %2405 = vmax.xlane.f32.xlu0 %v9044_v26  ;;  %v9047_v27 = vpop.f32.mrb[33].mxu1 }
 0x47e   : > { %2401 = vmax.xlane.f32.xlu1 %v9047_v27  ;;  %v9050_v31 = vpop.f32.mrb[34].mxu1 }
 0x47f   : > { %v9052_v37 = vpop.f32.mrb[35].mxu1 }
 0x482   : > { %2407 = vmax.xlane.f32.xlu1 %v9050_v31 }
 0x486   : > { %2403 = vmax.xlane.f32.xlu1 %v9052_v37 }
 0x48c   : > { %v9056_v34 = vpop.f32.mrb[36].mxu1 }
 0x48d   : > { %2413 = vmax.xlane.f32.xlu0 %v9056_v34  ;;  %v9059_v41 = vpop.f32.mrb[37].mxu1 }
 0x48e   : > { %v9061_v46 = vpop.f32.mrb[38].mxu1 }
 0x48f   : > { %2415 = vmax.xlane.f32.xlu1 %v9061_v46  ;;  %v9064_v47 = vpop.f32.mrb[39].mxu1 }
 0x491   : > { %2409 = vmax.xlane.f32.xlu0 %v9059_v41 }
 0x493   : > { %2411 = vmax.xlane.f32.xlu1 %v9064_v47 }
 0x49c   : > { %v9068_v1 = vpop.f32.mrb[40].mxu1 }
 0x49d   : > { %2421 = vmax.xlane.f32.xlu0 %v9068_v1  ;;  %v9071_v63 = vpop.f32.mrb[41].mxu1 }
 0x49e   : > { %v9073_v3 = vpop.f32.mrb[42].mxu1 }
 0x49f   : > { %2423 = vmax.xlane.f32.xlu1 %v9073_v3  ;;  %v9076_v7 = vpop.f32.mrb[43].mxu1 }
 0x4a1   : > { %2417 = vmax.xlane.f32.xlu0 %v9071_v63 }
 0x4a3   : > { %2419 = vmax.xlane.f32.xlu1 %v9076_v7 }
 0x4ac   : > { %v9080_v11 = vpop.f32.mrb[44].mxu1 }
 0x4ad   : > { %2429 = vmax.xlane.f32.xlu0 %v9080_v11  ;;  %v9083_v12 = vpop.f32.mrb[45].mxu1 }
 0x4ae   : > { %v9085_v13 = vpop.f32.mrb[46].mxu1 }
 0x4af   : > { %2431 = vmax.xlane.f32.xlu1 %v9085_v13  ;;  %v9088_v14 = vpop.f32.mrb[47].mxu1 }
 0x4b1   : > { %2425 = vmax.xlane.f32.xlu0 %v9083_v12 }
 0x4b3   : > { %2427 = vmax.xlane.f32.xlu1 %v9088_v14 }
 0x4b4   : > { %v9092_v55 = vpop.f32.mrb[48].mxu1 }
 0x4b5   : > { %2437 = vmax.xlane.f32.xlu0 %v9092_v55  ;;  %v9095_v48 = vpop.f32.mrb[49].mxu1 }
 0x4b6   : > { %v9097_v56 = vpop.f32.mrb[50].mxu1 }
 0x4b7   : > { %2439 = vmax.xlane.f32.xlu1 %v9097_v56  ;;  %v9100_v15 = vpop.f32.mrb[51].mxu1 }
 0x4b9   : > { %2433 = vmax.xlane.f32.xlu0 %v9095_v48 }
 0x4bb   : > { %2435 = vmax.xlane.f32.xlu1 %v9100_v15 }
 0x4bc   : > { %v9104_v10 = vpop.f32.mrb[52].mxu1 }
 0x4bd   : > { %2445 = vmax.xlane.f32.xlu0 %v9104_v10  ;;  %v9107_v39 = vpop.f32.mrb[53].mxu1 }
 0x4be   : > { %v9109_v40 = vpop.f32.mrb[54].mxu1 }
 0x4bf   : > { %2447 = vmax.xlane.f32.xlu1 %v9109_v40  ;;  %v9112_v42 = vpop.f32.mrb[55].mxu1 }
 0x4c1   : > { %2441 = vmax.xlane.f32.xlu0 %v9107_v39 }
 0x4c3   : > { %2443 = vmax.xlane.f32.xlu1 %v9112_v42 }
 0x4c4   : > { %v9116_v58 = vpop.f32.mrb[56].mxu1 }
 0x4c5   : > { %2453 = vmax.xlane.f32.xlu0 %v9116_v58  ;;  %v9119_v62 = vpop.f32.mrb[57].mxu1 }
 0x4c6   : > { %v9121_v0 = vpop.f32.mrb[58].mxu1 }
 0x4c7   : > { %2455 = vmax.xlane.f32.xlu1 %v9121_v0  ;;  %v9124_v2 = vpop.f32.mrb[59].mxu1 }
 0x4c9   : > { %2449 = vmax.xlane.f32.xlu0 %v9119_v62 }
 0x4cb   : > { %2451 = vmax.xlane.f32.xlu1 %v9124_v2 }
 0x4cc   : > { %v9128_v9 = vpop.f32.mrb[60].mxu1 }
 0x4cd   : > { %v9130_v24 = vpop.f32.mrb[61].mxu1 }
 0x4ce   : > { %2457 = vmax.xlane.f32.xlu0 %v9130_v24  ;;  %v9133_v22 = vpop.f32.mrb[62].mxu1 }
 0x4cf   : > { %v9135_v21 = vpop.f32.mrb[63].mxu1 }
 0x4d0   : > { %2459 = vmax.xlane.f32.xlu1 %v9135_v21 }
 0x4d4   : > { %v9138_v18 = vpop.f32.mrb[64].mxu1 }
 0x4d5   : > { %2469 = vmax.xlane.f32.xlu0 %v9138_v18  ;;  %v9141_v25 = vpop.f32.mrb[65].mxu1 }
 0x4d6   : > { %v9143_v35 = vpop.f32.mrb[66].mxu1 }
 0x4d7   : > { %2471 = vmax.xlane.f32.xlu1 %v9143_v35  ;;  %v9146_v44 = vpop.f32.mrb[67].mxu1 }
 0x4d9   : > { %2465 = vmax.xlane.f32.xlu0 %v9141_v25 }
 0x4dc   : > { %v9149_v5 = vpop.f32.mrb[68].mxu1 }
 0x4dd   : > { %2467 = vmax.xlane.f32.xlu0 %v9146_v44  ;;  %v9152_v29 = vpop.f32.mrb[69].mxu1 }
 0x4de   : > { %v9154_v8 = vpop.f32.mrb[70].mxu1 }
 0x4df   : > { %2479 = vmax.xlane.f32.xlu1 %v9154_v8  ;;  %v9157_v32 = vpop.f32.mrb[71].mxu1 }
 0x4e1   : > { %2477 = vmax.xlane.f32.xlu0 %v9149_v5 }
 0x4e3   : > { %2475 = vmax.xlane.f32.xlu1 %v9157_v32 }
 0x4e4   : > { %v9161_v60 = vpop.f32.mrb[72].mxu1 }
 0x4e5   : > { %2473 = vmax.xlane.f32.xlu0 %v9152_v29  ;;  %v9164_v19 = vpop.f32.mrb[73].mxu1 }
 0x4e6   : > { %v9166_v61 = vpop.f32.mrb[74].mxu1 }
 0x4e7   : > { %2487 = vmax.xlane.f32.xlu1 %v9166_v61  ;;  %v9169_v20 = vpop.f32.mrb[75].mxu1 }
 0x4e9   : > { %2485 = vmax.xlane.f32.xlu0 %v9161_v60 }
 0x4eb   : > { %2483 = vmax.xlane.f32.xlu1 %v9169_v20 }
 0x4ec   : > { %v9173_v16 = vpop.f32.mrb[76].mxu1 }
 0x4ed   : > { %2481 = vmax.xlane.f32.xlu0 %v9164_v19  ;;  %v9176_v38 = vpop.f32.mrb[77].mxu1 }
 0x4ee   : > { %v9178_v57 = vpop.f32.mrb[78].mxu1 }
 0x4ef   : > { %2495 = vmax.xlane.f32.xlu1 %v9178_v57  ;;  %v9181_v23 = vpop.f32.mrb[79].mxu1 }
 0x4f1   : > { %2493 = vmax.xlane.f32.xlu0 %v9173_v16 }
 0x4f3   : > { %2491 = vmax.xlane.f32.xlu1 %v9181_v23 }
 0x4f4   : > { %v9185_v43 = vpop.f32.mrb[80].mxu1 }
 0x4f5   : > { %2489 = vmax.xlane.f32.xlu0 %v9176_v38  ;;  %v9188_v50 = vpop.f32.mrb[81].mxu1 }
 0x4f6   : > { %12746 = vst [vmem:[#allocation60_spill] sm:$0xff] %v9188_v50  ;;  %v9190_v36 = vpop.f32.mrb[82].mxu1 }
 0x4f7   : > { %12747 = vst [vmem:[#allocation61_spill] sm:$0xff] %v9190_v36  ;;  %2503 = vmax.xlane.f32.xlu1 %v9190_v36  ;;  %v9193_v45 = vpop.f32.mrb[83].mxu1 }
 0x4f8   : > { %12748 = vst [vmem:[#allocation62_spill] sm:$0xff] %v9193_v45 }
 0x4f9   : > { %2501 = vmax.xlane.f32.xlu0 %v9185_v43 }
 0x4fb   : > { %2499 = vmax.xlane.f32.xlu1 %v9193_v45 }
 0x4fc   : > { %v9197_v33 = vpop.f32.mrb[84].mxu1 }
 0x4fd   : > { %12749 = vst [vmem:[#allocation63_spill] sm:$0xff] %v9197_v33  ;;  %2497 = vmax.xlane.f32.xlu0 %v9188_v50  ;;  %v9202_v28 = vpop.f32.mrb[85].mxu1 }
 0x4fe   : > { %12750 = vst [vmem:[#allocation64_spill] sm:$0xff] %v9202_v28  ;;  %v9205_v52 = vpop.f32.mrb[86].mxu1 }
 0x4ff   : > { %12751 = vst [vmem:[#allocation65_spill] sm:$0xff] %v9205_v52  ;;  %2511 = vmax.xlane.f32.xlu1 %v9205_v52  ;;  %v9208_v6 = vpop.f32.mrb[87].mxu1 }
 0x500   : > { %12752 = vst [vmem:[#allocation66_spill] sm:$0xff] %v9208_v6 }
 0x501   : > { %2509 = vmax.xlane.f32.xlu0 %v9197_v33 }
 0x503   : > { %2507 = vmax.xlane.f32.xlu1 %v9208_v6 }
 0x504   : > { %v9215_v49 = vpop.f32.mrb[88].mxu1 }
 0x505   : > { %12753 = vst [vmem:[#allocation67_spill] sm:$0xff] %v9215_v49  ;;  %2505 = vmax.xlane.f32.xlu0 %v9202_v28  ;;  %v9218_v59 = vpop.f32.mrb[89].mxu1 }
 0x506   : > { %12754 = vst [vmem:[#allocation68_spill] sm:$0xff] %v9218_v59  ;;  %v9220_v54 = vpop.f32.mrb[90].mxu1 }
 0x507   : > { %12755 = vst [vmem:[#allocation69_spill] sm:$0xff] %v9220_v54  ;;  %2519 = vmax.xlane.f32.xlu1 %v9220_v54  ;;  %v9223_v17 = vpop.f32.mrb[91].mxu1 }
 0x508   : > { %12756 = vst [vmem:[#allocation70_spill] sm:$0xff] %v9223_v17 }
 0x509   : > { %2517 = vmax.xlane.f32.xlu0 %v9215_v49 }
 0x50a   : > { %v9234_v28 = vpop.xlane.xlu0 %2405 }
 0x50b   : > { %v9226_v51 = vpop.xlane.xlu1 %2401  ;;  %2515 = vmax.xlane.f32.xlu1 %v9223_v17  ;;  %12758 = vst [vmem:[#allocation72_spill] sm:$0xff] %v9234_v28 }
 0x50c   : > { %12757 = vst [vmem:[#allocation71_spill] sm:$0xff] %v9226_v51  ;;  %v9229_v53 = vpop.f32.mrb[92].mxu1  ;;  %v2721_v52 = vsub.f32 %v9047_v27, %v9226_v51 }
 0x50d   : > { %2513 = vmax.xlane.f32.xlu0 %v9218_v59  ;;  %v9232_v6 = vpop.f32.mrb[93].mxu1  ;;  %v2723_v59 = vsub.f32 %v9044_v26, %v9234_v28 }
 0x50e   : > { %v9238_v54 = vpop.f32.mrb[94].mxu1  ;;  %v2785_v50 = vmul.f32 1.442695, %v2721_v52 }
 0x50f   : > { %12759 = vst [vmem:[#allocation73_spill] sm:$0xff] %v9238_v54  ;;  %v9240_v33 = vpop.xlane.xlu1 %2407  ;;  %2527 = vmax.xlane.f32.xlu1 %v9238_v54  ;;  %v9243_v49 = vpop.f32.mrb[95].mxu1  ;;  %v2789_v51 = vmul.f32 1.442695, %v2723_v59 }
 0x510   : > { %12760 = vst [vmem:[#allocation74_spill] sm:$0xff] %v9240_v33  ;;  %v2724_v17 = vsub.f32 %v9050_v31, %v9240_v33  ;;  %7258 = vpow2.f32 %v2785_v50 }
 0x511   : > { %2525 = vmax.xlane.f32.xlu0 %v9229_v53 }
 0x512   : > { %v2791_v45 = vmul.f32 1.442695, %v2724_v17 }
 0x513   : > { %v9250_v36 = vpop.xlane.xlu1 %2403  ;;  %2523 = vmax.xlane.f32.xlu1 %v9243_v49 }
 0x514   : > { %12761 = vst [vmem:[#allocation75_spill] sm:$0xff] %v9250_v36  ;;  %v2722_v27 = vsub.f32 %v9052_v37, %v9250_v36  ;;  %7260 = vpow2.f32 %v2791_v45 }
 0x515   : > { %2521 = vmax.xlane.f32.xlu0 %v9232_v6 }
 0x516   : > { %v2787_v54 = vmul.f32 1.442695, %v2722_v27 }
 0x517   : > { %2463 = vmax.xlane.f32.xlu1 %v9133_v22 }
 0x518   : > { %7262 = vpow2.f32 %v2787_v54 }
 0x519   : > { %7264 = vpow2.f32 %v2789_v51  ;;  %2461 = vmax.xlane.f32.xlu0 %v9128_v9 }
 0x51a   : > { %v9258_v17 = vpop.xlane.xlu0 %2413  ;;  %v9270_v54 = vpop.eup %7258 }
 0x51b   : > { %12762 = vst [vmem:[#allocation76_spill] sm:$0xff] %v9258_v17  ;;  %v2727_v59 = vsub.f32 %v9056_v34, %v9258_v17  ;;  %12765 = vst [vmem:[#allocation79_spill] sm:$0xff] %v9270_v54 }
 0x51c   : > { %v9260_v26 = vpop.xlane.xlu1 %2415 }
 0x51d   : > { %12763 = vst [vmem:[#allocation77_spill] sm:$0xff] %v9260_v26  ;;  %v2728_v31 = vsub.f32 %v9061_v46, %v9260_v26  ;;  %v2797_v26 = vmul.f32 1.442695, %v2727_v59 }
 0x51e   : > { %v9266_v37 = vpop.xlane.xlu0 %2409  ;;  %v9274_v52 = vpop.eup %7260 }
 0x51f   : > { %12764 = vst [vmem:[#allocation78_spill] sm:$0xff] %v9266_v37  ;;  %v2799_v50 = vmul.f32 1.442695, %v2728_v31  ;;  %v2725_v45 = vsub.f32 %v9059_v41, %v9266_v37  ;;  %12767 = vst [vmem:[#allocation81_spill] sm:$0xff] %v9274_v52 }
 0x520   : > { %v9272_v51 = vpop.xlane.xlu1 %2411 }
 0x521   : > { %12766 = vst [vmem:[#allocation80_spill] sm:$0xff] %v9272_v51  ;;  %v2793_v27 = vmul.f32 1.442695, %v2725_v45  ;;  %v2726_v36 = vsub.f32 %v9064_v47, %v9272_v51  ;;  %7266 = vpow2.f32 %v2799_v50  ;;  %v3588_v45 = vld [vmem:[#allocation2 + $0x48] sm:$0xff] }
 0x522   : > { %v9278_v46 = vpop.eup %7262 }
 0x523   : > { %12768 = vst [vmem:[#allocation82_spill] sm:$0xff] %v9278_v46  ;;  %v9280_v34 = vpop.eup %7264  ;;  %v2795_v31 = vmul.f32 1.442695, %v2726_v36  ;;  %v3169_v41 = vpack.c.bf16 %v9278_v46, %v9270_v54  ;;  %7268 = vpow2.f32 %v2793_v27  ;;  %v3589_v27 = vld [vmem:[#allocation2 + $0x50] sm:$0xff] }
 0x524   : > { %12769 = vst [vmem:[#allocation83_spill] sm:$0xff] %v9280_v34  ;;  %v3170_v37 = vpack.c.bf16 %v9274_v52, %v9280_v34 }
 0x525   : > { %7270 = vpow2.f32 %v2795_v31  ;;  %6591 = vmatprep.mubr.bf16.mxu0 %v3169_v41 }
 0x526   : > { %7272 = vpow2.f32 %v2797_v26  ;;  %6592 = vmatmul.mubr.bf16.vlgmr.msra.gmra.mrb[32].mxu0 %v3170_v37 }
 0x527   : > { %6672 = vmatpush3.bf16.xpose.msra.mxu0 %v9210_v30 }
 0x528   : > { %6673 = vmatprep.subr.bf16.mxu0 %v3588_v45 }
 0x52a   : > { %v9287_v47 = vpop.xlane.xlu0 %2421 }
 0x52b   : > { %12770 = vst [vmem:[#allocation84_spill] sm:$0xff] %v9287_v47  ;;  %v9291_v36 = vpop.eup %7266  ;;  %v2731_v31 = vsub.f32 %v9068_v1, %v9287_v47 }
 0x52c   : > { %v9289_v59 = vpop.xlane.xlu1 %2423  ;;  %12772 = vst [vmem:[#allocation86_spill] sm:$0xff] %v9291_v36 }
 0x52d   : > { %12771 = vst [vmem:[#allocation85_spill] sm:$0xff] %v9289_v59  ;;  %v2732_v50 = vsub.f32 %v9073_v3, %v9289_v59  ;;  %v9295_v46 = vpop.eup %7268 }
 0x52e   : > { %12773 = vst [vmem:[#allocation87_spill] sm:$0xff] %v9295_v46  ;;  %v9299_v26 = vpop.xlane.xlu0 %2417 }
 0x52f   : > { %12774 = vst [vmem:[#allocation88_spill] sm:$0xff] %v9299_v26  ;;  %v9301_v37 = vpop.eup %7270  ;;  %v2807_v30 = vmul.f32 1.442695, %v2732_v50  ;;  %v2729_v41 = vsub.f32 %v9071_v63, %v9299_v26  ;;  %6674 = vmatpush3.bf16.xpose.msra.mxu0 %v3588_v45  ;;  %v2805_v50 = vmul.f32 1.442695, %v2731_v31  ;;  %v3590_v45 = vld [vmem:[#allocation2 + $0x58] sm:$0xff] }
 0x530   : > { %12775 = vst [vmem:[#allocation89_spill] sm:$0xff] %v9301_v37  ;;  %v9305_v52 = vpop.eup %7272  ;;  %v9307_v34 = vpop.xlane.xlu1 %2419  ;;  %v3171_v3 = vpack.c.bf16 %v9301_v37, %v9295_v46  ;;  %6675 = vmatprep.subr.bf16.mxu0 %v3589_v27  ;;  %v3591_v31 = vld [vmem:[#allocation2 + $0x60] sm:$0xff] }
 0x531   : > { %12776 = vst [vmem:[#allocation90_spill] sm:$0xff] %v9305_v52  ;;  %12777 = vst [vmem:[#allocation91_spill] sm:$0xff] %v9307_v34  ;;  %v2801_v54 = vmul.f32 1.442695, %v2729_v41  ;;  %v2730_v1 = vsub.f32 %v9076_v7, %v9307_v34  ;;  %v3172_v59 = vpack.c.bf16 %v9291_v36, %v9305_v52  ;;  %7274 = vpow2.f32 %v2807_v30 }
 0x532   : > { %6595 = vmatprep.mubr.bf16.mxu0 %v3171_v3 }
 0x533   : > { %v2803_v63 = vmul.f32 1.442695, %v2730_v1  ;;  %6596 = vmatmul.mubr.bf16.gmra.mrb[36].mxu0 %v3172_v59  ;;  %7276 = vpow2.f32 %v2801_v54 }
 0x535   : > { %7278 = vpow2.f32 %v2803_v63 }
 0x536   : > { %7280 = vpow2.f32 %v2805_v50 }
 0x537   : > { %6676 = vmatpush3.bf16.xpose.msra.mxu0 %v3589_v27 }
 0x538   : > { %6677 = vmatprep.subr.bf16.mxu0 %v3590_v45 }
 0x53a   : > { %v9315_v37 = vpop.xlane.xlu0 %2429 }
 0x53b   : > { %12778 = vst [vmem:[#allocation92_spill] sm:$0xff] %v9315_v37  ;;  %v9319_v46 = vpop.eup %7274  ;;  %v2735_v54 = vsub.f32 %v9080_v11, %v9315_v37 }
 0x53c   : > { %v9317_v41 = vpop.xlane.xlu1 %2431  ;;  %12780 = vst [vmem:[#allocation94_spill] sm:$0xff] %v9319_v46 }
 0x53d   : > { %12779 = vst [vmem:[#allocation93_spill] sm:$0xff] %v9317_v41  ;;  %v2736_v7 = vsub.f32 %v9085_v13, %v9317_v41  ;;  %v9323_v3 = vpop.eup %7276 }
 0x53e   : > { %12781 = vst [vmem:[#allocation95_spill] sm:$0xff] %v9323_v3  ;;  %v9327_v59 = vpop.xlane.xlu0 %2425 }
 0x53f   : > { %12782 = vst [vmem:[#allocation96_spill] sm:$0xff] %v9327_v59  ;;  %v9329_v30 = vpop.eup %7278  ;;  %v2815_v27 = vmul.f32 1.442695, %v2736_v7  ;;  %v2733_v1 = vsub.f32 %v9083_v12, %v9327_v59  ;;  %6678 = vmatpush3.bf16.xpose.msra.mxu0 %v3590_v45  ;;  %v2813_v7 = vmul.f32 1.442695, %v2735_v54 }
 0x540   : > { %12783 = vst [vmem:[#allocation97_spill] sm:$0xff] %v9329_v30  ;;  %v9333_v50 = vpop.eup %7280  ;;  %v9335_v63 = vpop.xlane.xlu1 %2427  ;;  %v3173_v13 = vpack.c.bf16 %v9329_v30, %v9323_v3  ;;  %6679 = vmatprep.subr.bf16.mxu0 %v3591_v31  ;;  %v3592_v30 = vld [vmem:[#allocation2 + $0x68] sm:$0xff] }
 0x541   : > { %12784 = vst [vmem:[#allocation98_spill] sm:$0xff] %v9333_v50  ;;  %12785 = vst [vmem:[#allocation99_spill] sm:$0xff] %v9335_v63  ;;  %v2809_v36 = vmul.f32 1.442695, %v2733_v1  ;;  %v2734_v11 = vsub.f32 %v9088_v14, %v9335_v63  ;;  %v3174_v52 = vpack.c.bf16 %v9319_v46, %v9333_v50  ;;  %7282 = vpow2.f32 %v2815_v27 }
 0x542   : > { %6599 = vmatprep.mubr.bf16.mxu0 %v3173_v13  ;;  %v9343_v41 = vpop.xlane.xlu0 %2437 }
 0x543   : > { %12786 = vst [vmem:[#allocation100_spill] sm:$0xff] %v9343_v41  ;;  %v2811_v12 = vmul.f32 1.442695, %v2734_v11  ;;  %6600 = vmatmul.mubr.bf16.gmra.mrb[40].mxu0 %v3174_v52  ;;  %7284 = vpow2.f32 %v2809_v36  ;;  %v2739_v14 = vsub.f32 %v9092_v55, %v9343_v41 }
 0x544   : > { %v9345_v45 = vpop.xlane.xlu1 %2439 }
 0x545   : > { %12787 = vst [vmem:[#allocation101_spill] sm:$0xff] %v9345_v45  ;;  %7286 = vpow2.f32 %v2811_v12  ;;  %v2740_v1 = vsub.f32 %v9097_v56, %v9345_v45  ;;  %v2821_v56 = vmul.f32 1.442695, %v2739_v14 }
 0x546   : > { %7288 = vpow2.f32 %v2813_v7  ;;  %v9351_v46 = vpop.xlane.xlu0 %2433 }
 0x547   : > { %12788 = vst [vmem:[#allocation102_spill] sm:$0xff] %v9351_v46  ;;  %v2823_v54 = vmul.f32 1.442695, %v2740_v1  ;;  %v2737_v27 = vsub.f32 %v9095_v48, %v9351_v46  ;;  %6680 = vmatpush3.bf16.xpose.msra.mxu0 %v3591_v31  ;;  %v3593_v31 = vld [vmem:[#allocation2 + $0x70] sm:$0xff] }
 0x548   : > { %v9355_v52 = vpop.xlane.xlu1 %2435  ;;  %6681 = vmatprep.subr.bf16.mxu0 %v3592_v30 }
 0x549   : > { %12789 = vst [vmem:[#allocation103_spill] sm:$0xff] %v9355_v52  ;;  %v2817_v36 = vmul.f32 1.442695, %v2737_v27  ;;  %v2738_v13 = vsub.f32 %v9100_v15, %v9355_v52  ;;  %7290 = vpow2.f32 %v2823_v54 }
 0x54a   : > { %v9359_v11 = vpop.xlane.xlu0 %2445 }
 0x54b   : > { %12790 = vst [vmem:[#allocation104_spill] sm:$0xff] %v9359_v11  ;;  %v2819_v7 = vmul.f32 1.442695, %v2738_v13  ;;  %7292 = vpow2.f32 %v2817_v36  ;;  %v9363_v12 = vpop.eup %7282  ;;  %v2743_v15 = vsub.f32 %v9104_v10, %v9359_v11 }
 0x54c   : > { %v9361_v55 = vpop.xlane.xlu1 %2447  ;;  %12792 = vst [vmem:[#allocation106_spill] sm:$0xff] %v9363_v12 }
 0x54d   : > { %12791 = vst [vmem:[#allocation105_spill] sm:$0xff] %v9361_v55  ;;  %7294 = vpow2.f32 %v2819_v7  ;;  %v2744_v48 = vsub.f32 %v9109_v40, %v9361_v55  ;;  %v9367_v1 = vpop.eup %7284 }
 0x54e   : > { %12793 = vst [vmem:[#allocation107_spill] sm:$0xff] %v9367_v1  ;;  %7296 = vpow2.f32 %v2821_v56  ;;  %v9371_v14 = vpop.xlane.xlu0 %2441 }
 0x54f   : > { %12794 = vst [vmem:[#allocation108_spill] sm:$0xff] %v9371_v14  ;;  %v9373_v54 = vpop.eup %7286  ;;  %v2831_v27 = vmul.f32 1.442695, %v2744_v48  ;;  %v2741_v36 = vsub.f32 %v9107_v39, %v9371_v14  ;;  %6682 = vmatpush3.bf16.xpose.msra.mxu0 %v3592_v30  ;;  %v2829_v48 = vmul.f32 1.442695, %v2743_v15 }
 0x550   : > { %12795 = vst [vmem:[#allocation109_spill] sm:$0xff] %v9373_v54  ;;  %v9377_v13 = vpop.eup %7288  ;;  %v9379_v7 = vpop.xlane.xlu1 %2443  ;;  %v3175_v40 = vpack.c.bf16 %v9373_v54, %v9367_v1  ;;  %6683 = vmatprep.subr.bf16.mxu0 %v3593_v31 }
 0x551   : > { %12796 = vst [vmem:[#allocation110_spill] sm:$0xff] %v9377_v13  ;;  %12797 = vst [vmem:[#allocation111_spill] sm:$0xff] %v9379_v7  ;;  %v2825_v56 = vmul.f32 1.442695, %v2741_v36  ;;  %v2742_v10 = vsub.f32 %v9112_v42, %v9379_v7  ;;  %v3176_v50 = vpack.c.bf16 %v9363_v12, %v9377_v13  ;;  %7298 = vpow2.f32 %v2831_v27  ;;  %v3594_v42 = vld [vmem:[#allocation2 + $0x78] sm:$0xff] }
 0x552   : > { %6603 = vmatprep.mubr.bf16.mxu0 %v3175_v40  ;;  %v9387_v3 = vpop.xlane.xlu0 %2453 }
 0x553   : > { %12798 = vst [vmem:[#allocation112_spill] sm:$0xff] %v9387_v3  ;;  %v2827_v39 = vmul.f32 1.442695, %v2742_v10  ;;  %6604 = vmatmul.mubr.bf16.gmra.mrb[44].mxu0 %v3176_v50  ;;  %7300 = vpow2.f32 %v2825_v56  ;;  %v9391_v14 = vpop.eup %7290  ;;  %v2747_v15 = vsub.f32 %v9116_v58, %v9387_v3 }
 0x554   : > { %v9389_v30 = vpop.xlane.xlu1 %2455  ;;  %12800 = vst [vmem:[#allocation114_spill] sm:$0xff] %v9391_v14 }
 0x555   : > { %12799 = vst [vmem:[#allocation113_spill] sm:$0xff] %v9389_v30  ;;  %7302 = vpow2.f32 %v2827_v39  ;;  %v2748_v36 = vsub.f32 %v9121_v0, %v9389_v30  ;;  %v9395_v54 = vpop.eup %7292 }
 0x556   : > { %12801 = vst [vmem:[#allocation115_spill] sm:$0xff] %v9395_v54  ;;  %7304 = vpow2.f32 %v2829_v48  ;;  %v9399_v40 = vpop.xlane.xlu0 %2449 }
 0x557   : > { %12802 = vst [vmem:[#allocation116_spill] sm:$0xff] %v9399_v40  ;;  %v9401_v27 = vpop.eup %7294  ;;  %v2839_v50 = vmul.f32 1.442695, %v2748_v36  ;;  %v2745_v56 = vsub.f32 %v9119_v62, %v9399_v40  ;;  %6684 = vmatpush3.bf16.xpose.msra.mxu0 %v3593_v31  ;;  %v2837_v36 = vmul.f32 1.442695, %v2747_v15 }
 0x558   : > { %12803 = vst [vmem:[#allocation117_spill] sm:$0xff] %v9401_v27  ;;  %v9405_v10 = vpop.eup %7296  ;;  %v9407_v39 = vpop.xlane.xlu1 %2451  ;;  %v3177_v0 = vpack.c.bf16 %v9401_v27, %v9395_v54  ;;  %6685 = vmatprep.subr.bf16.mxu0 %v3594_v42 }
 0x559   : > { %12804 = vst [vmem:[#allocation118_spill] sm:$0xff] %v9405_v10  ;;  %12805 = vst [vmem:[#allocation119_spill] sm:$0xff] %v9407_v39  ;;  %v2833_v48 = vmul.f32 1.442695, %v2745_v56  ;;  %v2746_v58 = vsub.f32 %v9124_v2, %v9407_v39  ;;  %v3178_v12 = vpack.c.bf16 %v9391_v14, %v9405_v10  ;;  %7306 = vpow2.f32 %v2839_v50 }
 0x55a   : > { %6607 = vmatprep.mubr.bf16.mxu0 %v3177_v0 }
 0x55b   : > { %v2835_v62 = vmul.f32 1.442695, %v2746_v58  ;;  %6608 = vmatmul.mubr.bf16.gmra.mrb[48].mxu0 %v3178_v12  ;;  %v9415_v31 = vpop.xlane.xlu0 %2457  ;;  %7308 = vpow2.f32 %v2833_v48  ;;  %v9419_v27 = vpop.eup %7298 }
 0x55c   : > { %12806 = vst [vmem:[#allocation120_spill] sm:$0xff] %v9415_v31  ;;  %v2749_v13 = vsub.f32 %v9130_v24, %v9415_v31  ;;  %12807 = vst [vmem:[#allocation121_spill] sm:$0xff] %v9419_v27 }
 0x55d   : > { %7310 = vpow2.f32 %v2835_v62  ;;  %v9421_v56 = vpop.xlane.xlu1 %2459  ;;  %v9423_v2 = vpop.eup %7300 }
 0x55e   : > { %12808 = vst [vmem:[#allocation122_spill] sm:$0xff] %v9421_v56  ;;  %12809 = vst [vmem:[#allocation123_spill] sm:$0xff] %v9423_v2  ;;  %7312 = vpow2.f32 %v2837_v36  ;;  %v2841_v14 = vmul.f32 1.442695, %v2749_v13  ;;  %v2750_v15 = vsub.f32 %v9135_v21, %v9421_v56 }
 0x55f   : > { %v9427_v50 = vpop.eup %7302  ;;  %6686 = vmatpush3.bf16.xpose.msra.mxu0 %v3594_v42 }
 0x560   : > { %12810 = vst [vmem:[#allocation124_spill] sm:$0xff] %v9427_v50  ;;  %v9429_v12 = vpop.eup %7304  ;;  %v2843_v0 = vmul.f32 1.442695, %v2750_v15  ;;  %v3179_v24 = vpack.c.bf16 %v9427_v50, %v9423_v2  ;;  %7314 = vpow2.f32 %v2841_v14 }
 0x561   : > { %12811 = vst [vmem:[#allocation125_spill] sm:$0xff] %v9429_v12  ;;  %v3180_v48 = vpack.c.bf16 %v9419_v27, %v9429_v12 }
 0x562   : > { %7316 = vpow2.f32 %v2843_v0  ;;  %6611 = vmatprep.mubr.bf16.mxu0 %v3179_v24  ;;  %v9435_v58 = vpop.xlane.xlu0 %2469 }
 0x563   : > { %12812 = vst [vmem:[#allocation126_spill] sm:$0xff] %v9435_v58  ;;  %6612 = vmatmul.mubr.bf16.gmra.mrb[52].mxu0 %v3180_v48  ;;  %v9439_v21 = vpop.eup %7306  ;;  %v2755_v24 = vsub.f32 %v9138_v18, %v9435_v58 }
 0x564   : > { %v9437_v13 = vpop.xlane.xlu1 %2471  ;;  %12814 = vst [vmem:[#allocation128_spill] sm:$0xff] %v9439_v21 }
 0x565   : > { %12813 = vst [vmem:[#allocation127_spill] sm:$0xff] %v9437_v13  ;;  %v2756_v42 = vsub.f32 %v9143_v35, %v9437_v13  ;;  %v9443_v36 = vpop.eup %7308  ;;  %v2853_v18 = vmul.f32 1.442695, %v2755_v24 }
 0x566   : > { %12815 = vst [vmem:[#allocation129_spill] sm:$0xff] %v9443_v36  ;;  %v9445_v62 = vpop.xlane.xlu0 %2465 }
 0x567   : > { %12816 = vst [vmem:[#allocation130_spill] sm:$0xff] %v9445_v62  ;;  %v9447_v14 = vpop.eup %7310  ;;  %v2753_v15 = vsub.f32 %v9141_v25, %v9445_v62  ;;  %v2855_v27 = vmul.f32 1.442695, %v2756_v42 }
 0x568   : > { %12817 = vst [vmem:[#allocation131_spill] sm:$0xff] %v9447_v14  ;;  %v9451_v0 = vpop.eup %7312  ;;  %v3181_v48 = vpack.c.bf16 %v9447_v14, %v9443_v36  ;;  %v3596_v14 = vld [vmem:[#allocation2 + $0xc8] sm:$0xff] }
 0x569   : > { %12818 = vst [vmem:[#allocation132_spill] sm:$0xff] %v9451_v0  ;;  %v3182_v35 = vpack.c.bf16 %v9439_v21, %v9451_v0  ;;  %v2849_v12 = vmul.f32 1.442695, %v2753_v15  ;;  %7318 = vpow2.f32 %v2855_v27 }
 0x56a   : > { %6615 = vmatprep.mubr.bf16.mxu0 %v3181_v48  ;;  %v9459_v50 = vpop.xlane.xlu0 %2467  ;;  %v9461_v2 = vpop.eup %7314 }
 0x56b   : > { %12819 = vst [vmem:[#allocation133_spill] sm:$0xff] %v9459_v50  ;;  %12820 = vst [vmem:[#allocation134_spill] sm:$0xff] %v9461_v2  ;;  %v2754_v25 = vsub.f32 %v9146_v44, %v9459_v50  ;;  %6616 = vmatmul.mubr.bf16.gmra.mrb[56].mxu0 %v3182_v35  ;;  %7320 = vpow2.f32 %v2849_v12 }
 0x56c   : > { %v9465_v10 = vpop.eup %7316  ;;  %v9467_v54 = vpop.xlane.xlu1 %2479 }
 0x56d   : > { %12821 = vst [vmem:[#allocation135_spill] sm:$0xff] %v9465_v10  ;;  %12822 = vst [vmem:[#allocation136_spill] sm:$0xff] %v9467_v54  ;;  %v2851_v42 = vmul.f32 1.442695, %v2754_v25  ;;  %v3183_v21 = vpack.c.bf16 %v9465_v10, %v9461_v2  ;;  %v2760_v44 = vsub.f32 %v9154_v8, %v9467_v54 }
 0x56e   : > { %v9471_v15 = vpop.xlane.xlu0 %2477 }
 0x56f   : > { %12823 = vst [vmem:[#allocation137_spill] sm:$0xff] %v9471_v15  ;;  %7322 = vpow2.f32 %v2851_v42  ;;  %v2759_v48 = vsub.f32 %v9149_v5, %v9471_v15  ;;  %6619 = vmatprep.mubr.bf16.mxu0 %v3183_v21  ;;  %v2863_v10 = vmul.f32 1.442695, %v2760_v44 }
 0x570   : > { %7324 = vpow2.f32 %v2853_v18  ;;  %v9477_v24 = vpop.xlane.xlu1 %2475 }
 0x571   : > { %12824 = vst [vmem:[#allocation138_spill] sm:$0xff] %v9477_v24  ;;  %v2861_v35 = vmul.f32 1.442695, %v2759_v48  ;;  %v2758_v27 = vsub.f32 %v9157_v32, %v9477_v24 }
 0x572   : > { %v9481_v25 = vpop.xlane.xlu0 %2473 }
 0x573   : > { %12825 = vst [vmem:[#allocation139_spill] sm:$0xff] %v9481_v25  ;;  %v2859_v12 = vmul.f32 1.442695, %v2758_v27  ;;  %v2757_v42 = vsub.f32 %v9152_v29, %v9481_v25  ;;  %7326 = vpow2.f32 %v2861_v35  ;;  %v9489_v8 = vpop.eup %7318 }
 0x574   : > { %v9485_v2 = vpop.xlane.xlu1 %2487  ;;  %12828 = vst [vmem:[#allocation142_spill] sm:$0xff] %v9489_v8 }
 0x575   : > { %12826 = vst [vmem:[#allocation140_spill] sm:$0xff] %v9485_v2  ;;  %v2857_v5 = vmul.f32 1.442695, %v2757_v42  ;;  %7328 = vpow2.f32 %v2859_v12  ;;  %v9493_v18 = vpop.eup %7320  ;;  %v2764_v29 = vsub.f32 %v9166_v61, %v9485_v2 }
 0x576   : > { %v9487_v21 = vpop.xlane.xlu0 %2485  ;;  %12829 = vst [vmem:[#allocation143_spill] sm:$0xff] %v9493_v18 }
 0x577   : > { %12827 = vst [vmem:[#allocation141_spill] sm:$0xff] %v9487_v21  ;;  %7330 = vpow2.f32 %v2857_v5  ;;  %v2763_v32 = vsub.f32 %v9161_v60, %v9487_v21  ;;  %v2871_v0 = vmul.f32 1.442695, %v2764_v29 }
 0x578   : > { %7332 = vpow2.f32 %v2863_v10  ;;  %v9497_v48 = vpop.xlane.xlu1 %2483 }
 0x579   : > { %12830 = vst [vmem:[#allocation144_spill] sm:$0xff] %v9497_v48  ;;  %v9499_v44 = vpop.eup %7322  ;;  %v2869_v35 = vmul.f32 1.442695, %v2763_v32  ;;  %v2762_v27 = vsub.f32 %v9169_v20, %v9497_v48 }
 0x57a   : > { %12831 = vst [vmem:[#allocation145_spill] sm:$0xff] %v9499_v44  ;;  %v9503_v12 = vpop.eup %7324  ;;  %v9505_v42 = vpop.xlane.xlu0 %2481  ;;  %v3185_v60 = vpack.c.bf16 %v9499_v44, %v9493_v18  ;;  %v3608_v18 = vld [vmem:[#allocation3 + $0x68] sm:$0xff] }
 0x57b   : > { %12832 = vst [vmem:[#allocation146_spill] sm:$0xff] %v9503_v12  ;;  %12833 = vst [vmem:[#allocation147_spill] sm:$0xff] %v9505_v42  ;;  %v2867_v5 = vmul.f32 1.442695, %v2762_v27  ;;  %v2761_v10 = vsub.f32 %v9164_v19, %v9505_v42  ;;  %v3186_v61 = vpack.c.bf16 %v9489_v8, %v9503_v12  ;;  %7334 = vpow2.f32 %v2869_v35  ;;  %v3597_v12 = vld [vmem:[#allocation2 + $0xd0] sm:$0xff]  ;;  %v3610_v42 = vld [vmem:[#allocation3 + $0x78] sm:$0xff] }
 0x57c   : > { %6639 = vmatprep.mubr.bf16.mxu1 %v3185_v60  ;;  %v9513_v32 = vpop.xlane.xlu1 %2495 }
 0x57d   : > { %12834 = vst [vmem:[#allocation148_spill] sm:$0xff] %v9513_v32  ;;  %v2865_v20 = vmul.f32 1.442695, %v2761_v10  ;;  %6640 = vmatmul.mubr.bf16.vlgmr.msra.gmra.mrb[96].mxu1 %v3186_v61  ;;  %7336 = vpow2.f32 %v2867_v5  ;;  %v9518_v27 = vpop.eup %7326  ;;  %v2768_v35 = vsub.f32 %v9178_v57, %v9513_v32 }
 0x57e   : > { %6720 = vmatpush3.bf16.xpose.msra.mxu1 %v9199_v4  ;;  %v9516_v36 = vpop.xlane.xlu0 %2493  ;;  %12836 = vst [vmem:[#allocation150_spill] sm:$0xff] %v9518_v27 }
 0x57f   : > { %12835 = vst [vmem:[#allocation149_spill] sm:$0xff] %v9516_v36  ;;  %7338 = vpow2.f32 %v2865_v20  ;;  %v2767_v19 = vsub.f32 %v9173_v16, %v9516_v36  ;;  %6721 = vmatprep.subr.bf16.mxu1 %v3596_v14  ;;  %v9522_v29 = vpop.eup %7328  ;;  %v2879_v8 = vmul.f32 1.442695, %v2768_v35  ;;  %v12846_v35 = vld [vmem:[#allocation61_spill] sm:$0xff] }
 0x580   : > { %12837 = vst [vmem:[#allocation151_spill] sm:$0xff] %v9522_v29  ;;  %7340 = vpow2.f32 %v2871_v0  ;;  %v9526_v60 = vpop.xlane.xlu1 %2491 }
 0x581   : > { %12838 = vst [vmem:[#allocation152_spill] sm:$0xff] %v9526_v60  ;;  %v9528_v5 = vpop.eup %7330  ;;  %v2877_v4 = vmul.f32 1.442695, %v2767_v19  ;;  %v2766_v10 = vsub.f32 %v9181_v23, %v9526_v60 }
 0x582   : > { %12839 = vst [vmem:[#allocation153_spill] sm:$0xff] %v9528_v5  ;;  %v9532_v61 = vpop.eup %7332  ;;  %v9534_v20 = vpop.xlane.xlu0 %2489  ;;  %v3187_v16 = vpack.c.bf16 %v9522_v29, %v9528_v5 }
 0x583   : > { %12840 = vst [vmem:[#allocation154_spill] sm:$0xff] %v9532_v61  ;;  %12841 = vst [vmem:[#allocation155_spill] sm:$0xff] %v9534_v20  ;;  %v2875_v1 = vmul.f32 1.442695, %v2766_v10  ;;  %v2765_v0 = vsub.f32 %v9176_v38, %v9534_v20  ;;  %v3188_v57 = vpack.c.bf16 %v9532_v61, %v9518_v27  ;;  %7342 = vpow2.f32 %v2877_v4 }
 0x584   : > { %6643 = vmatprep.mubr.bf16.mxu1 %v3187_v16  ;;  %v9542_v19 = vpop.xlane.xlu1 %2503 }
 0x585   : > { %12842 = vst [vmem:[#allocation156_spill] sm:$0xff] %v9542_v19  ;;  %v2873_v23 = vmul.f32 1.442695, %v2765_v0  ;;  %6644 = vmatmul.mubr.bf16.gmra.mrb[100].mxu1 %v3188_v57  ;;  %7344 = vpow2.f32 %v2875_v1  ;;  %v9546_v29 = vpop.eup %7334  ;;  %v2772_v16 = vsub.f32 %v12846_v35, %v9542_v19  ;;  %v3598_v19 = vld [vmem:[#allocation2 + $0xd8] sm:$0xff] }
 0x586   : > { %6722 = vmatpush3.bf16.xpose.msra.mxu1 %v3596_v14  ;;  %v9544_v44 = vpop.xlane.xlu0 %2501  ;;  %12844 = vst [vmem:[#allocation158_spill] sm:$0xff] %v9546_v29  ;;  %v12849_v14 = vld [vmem:[#allocation62_spill] sm:$0xff] }
 0x587   : > { %12843 = vst [vmem:[#allocation157_spill] sm:$0xff] %v9544_v44  ;;  %7346 = vpow2.f32 %v2873_v23  ;;  %v2771_v38 = vsub.f32 %v9185_v43, %v9544_v44  ;;  %6723 = vmatprep.subr.bf16.mxu1 %v3597_v12  ;;  %v9550_v10 = vpop.eup %7336  ;;  %v2887_v44 = vmul.f32 1.442695, %v2772_v16  ;;  %v12858_v16 = vld [vmem:[#allocation65_spill] sm:$0xff] }
 0x588   : > { %12845 = vst [vmem:[#allocation159_spill] sm:$0xff] %v9550_v10  ;;  %7348 = vpow2.f32 %v2879_v8  ;;  %v9554_v4 = vpop.xlane.xlu1 %2499  ;;  %v12852_v8 = vld [vmem:[#allocation60_spill] sm:$0xff] }
 0x589   : > { %12847 = vst [vmem:[#allocation61_spill] sm:$0xff] %v9554_v4  ;;  %v9556_v0 = vpop.eup %7338  ;;  %v2885_v1 = vmul.f32 1.442695, %v2771_v38  ;;  %v2770_v57 = vsub.f32 %v12849_v14, %v9554_v4 }
 0x58a   : > { %12848 = vst [vmem:[#allocation160_spill] sm:$0xff] %v9556_v0  ;;  %v9560_v61 = vpop.eup %7340  ;;  %v9562_v23 = vpop.xlane.xlu0 %2497  ;;  %v3189_v43 = vpack.c.bf16 %v9550_v10, %v9556_v0 }
 0x58b   : > { %12850 = vst [vmem:[#allocation62_spill] sm:$0xff] %v9560_v61  ;;  %12851 = vst [vmem:[#allocation161_spill] sm:$0xff] %v9562_v23  ;;  %v2883_v27 = vmul.f32 1.442695, %v2770_v57  ;;  %v2769_v5 = vsub.f32 %v12852_v8, %v9562_v23  ;;  %v3190_v35 = vpack.c.bf16 %v9560_v61, %v9546_v29  ;;  %7350 = vpow2.f32 %v2885_v1  ;;  %v12856_v57 = vld [vmem:[#allocation63_spill] sm:$0xff] }
 0x58c   : > { %6647 = vmatprep.mubr.bf16.mxu1 %v3189_v43  ;;  %v9570_v38 = vpop.xlane.xlu1 %2511  ;;  %v3599_v23 = vld [vmem:[#allocation2 + $0xe0] sm:$0xff] }
 0x58d   : > { %12853 = vst [vmem:[#allocation60_spill] sm:$0xff] %v9570_v38  ;;  %v2881_v14 = vmul.f32 1.442695, %v2769_v5  ;;  %6648 = vmatmul.mubr.bf16.gmra.mrb[104].mxu1 %v3190_v35  ;;  %7352 = vpow2.f32 %v2883_v27  ;;  %v9574_v10 = vpop.eup %7342  ;;  %v2776_v43 = vsub.f32 %v12858_v16, %v9570_v38  ;;  %v12861_v27 = vld [vmem:[#allocation66_spill] sm:$0xff] }
 0x58e   : > { %6724 = vmatpush3.bf16.xpose.msra.mxu1 %v3597_v12  ;;  %v9572_v4 = vpop.xlane.xlu0 %2509  ;;  %12855 = vst [vmem:[#allocation163_spill] sm:$0xff] %v9574_v10 }
 0x58f   : > { %12854 = vst [vmem:[#allocation162_spill] sm:$0xff] %v9572_v4  ;;  %7354 = vpow2.f32 %v2881_v14  ;;  %v2775_v8 = vsub.f32 %v12856_v57, %v9572_v4  ;;  %6725 = vmatprep.subr.bf16.mxu1 %v3598_v19  ;;  %v9578_v61 = vpop.eup %7344  ;;  %v2895_v38 = vmul.f32 1.442695, %v2776_v43  ;;  %v12870_v43 = vld [vmem:[#allocation69_spill] sm:$0xff] }
 0x590   : > { %12857 = vst [vmem:[#allocation63_spill] sm:$0xff] %v9578_v61  ;;  %7356 = vpow2.f32 %v2887_v44  ;;  %v9582_v1 = vpop.xlane.xlu1 %2507  ;;  %v12864_v44 = vld [vmem:[#allocation64_spill] sm:$0xff] }
 0x591   : > { %12859 = vst [vmem:[#allocation65_spill] sm:$0xff] %v9582_v1  ;;  %v9584_v5 = vpop.eup %7346  ;;  %v2893_v12 = vmul.f32 1.442695, %v2775_v8  ;;  %v2774_v35 = vsub.f32 %v12861_v27, %v9582_v1 }
 0x592   : > { %12860 = vst [vmem:[#allocation164_spill] sm:$0xff] %v9584_v5  ;;  %v9588_v29 = vpop.eup %7348  ;;  %v9590_v14 = vpop.xlane.xlu0 %2505  ;;  %v3191_v57 = vpack.c.bf16 %v9578_v61, %v9584_v5 }
 0x593   : > { %12862 = vst [vmem:[#allocation66_spill] sm:$0xff] %v9588_v29  ;;  %12863 = vst [vmem:[#allocation165_spill] sm:$0xff] %v9590_v14  ;;  %v2891_v0 = vmul.f32 1.442695, %v2774_v35  ;;  %v2773_v4 = vsub.f32 %v12864_v44, %v9590_v14  ;;  %v3192_v16 = vpack.c.bf16 %v9588_v29, %v9574_v10  ;;  %7358 = vpow2.f32 %v2893_v12  ;;  %v12868_v35 = vld [vmem:[#allocation67_spill] sm:$0xff]  ;;  %v3600_v14 = vld [vmem:[#allocation2 + $0xe8] sm:$0xff] }
 0x594   : > { %6651 = vmatprep.mubr.bf16.mxu1 %v3191_v57  ;;  %v9598_v8 = vpop.xlane.xlu1 %2519 }
 0x595   : > { %12865 = vst [vmem:[#allocation64_spill] sm:$0xff] %v9598_v8  ;;  %v2889_v27 = vmul.f32 1.442695, %v2773_v4  ;;  %6652 = vmatmul.mubr.bf16.gmra.mrb[108].mxu1 %v3192_v16  ;;  %7360 = vpow2.f32 %v2891_v0  ;;  %v9602_v61 = vpop.eup %7350  ;;  %v2780_v57 = vsub.f32 %v12870_v43, %v9598_v8  ;;  %v12873_v0 = vld [vmem:[#allocation70_spill] sm:$0xff] }
 0x596   : > { %6726 = vmatpush3.bf16.xpose.msra.mxu1 %v3598_v19  ;;  %v9600_v1 = vpop.xlane.xlu0 %2517  ;;  %12867 = vst [vmem:[#allocation167_spill] sm:$0xff] %v9602_v61 }
 0x597   : > { %12866 = vst [vmem:[#allocation166_spill] sm:$0xff] %v9600_v1  ;;  %7362 = vpow2.f32 %v2889_v27  ;;  %v2779_v44 = vsub.f32 %v12868_v35, %v9600_v1  ;;  %6727 = vmatprep.subr.bf16.mxu1 %v3599_v23  ;;  %v9606_v29 = vpop.eup %7352  ;;  %v2903_v8 = vmul.f32 1.442695, %v2780_v57  ;;  %v12881_v57 = vld [vmem:[#allocation73_spill] sm:$0xff] }
 0x598   : > { %12869 = vst [vmem:[#allocation67_spill] sm:$0xff] %v9606_v29  ;;  %7364 = vpow2.f32 %v2895_v38  ;;  %v9610_v12 = vpop.xlane.xlu1 %2515  ;;  %v12876_v38 = vld [vmem:[#allocation68_spill] sm:$0xff] }
 0x599   : > { %12871 = vst [vmem:[#allocation69_spill] sm:$0xff] %v9610_v12  ;;  %v9612_v4 = vpop.eup %7354  ;;  %v2901_v19 = vmul.f32 1.442695, %v2779_v44  ;;  %v2778_v16 = vsub.f32 %v12873_v0, %v9610_v12 }
 0x59a   : > { %12872 = vst [vmem:[#allocation168_spill] sm:$0xff] %v9612_v4  ;;  %v9616_v10 = vpop.eup %7356  ;;  %v9618_v27 = vpop.xlane.xlu0 %2513  ;;  %v3193_v35 = vpack.c.bf16 %v9606_v29, %v9612_v4 }
 0x59b   : > { %12874 = vst [vmem:[#allocation70_spill] sm:$0xff] %v9616_v10  ;;  %12875 = vst [vmem:[#allocation169_spill] sm:$0xff] %v9618_v27  ;;  %v2899_v5 = vmul.f32 1.442695, %v2778_v16  ;;  %v2777_v1 = vsub.f32 %v12876_v38, %v9618_v27  ;;  %v3194_v43 = vpack.c.bf16 %v9616_v10, %v9602_v61  ;;  %7366 = vpow2.f32 %v2901_v19  ;;  %v3601_v61 = vld [vmem:[#allocation2 + $0xf0] sm:$0xff] }
 0x59c   : > { %6655 = vmatprep.mubr.bf16.mxu1 %v3193_v35  ;;  %v9626_v44 = vpop.xlane.xlu1 %2527 }
 0x59d   : > { %12877 = vst [vmem:[#allocation68_spill] sm:$0xff] %v9626_v44  ;;  %v2897_v0 = vmul.f32 1.442695, %v2777_v1  ;;  %6656 = vmatmul.mubr.bf16.gmra.mrb[112].mxu1 %v3194_v43  ;;  %7368 = vpow2.f32 %v2899_v5  ;;  %v9630_v29 = vpop.eup %7358  ;;  %v2784_v35 = vsub.f32 %v12881_v57, %v9626_v44  ;;  %v3606_v44 = vld [vmem:[#allocation3 + $0x58] sm:$0xff] }
 0x59e   : > { %6728 = vmatpush3.bf16.xpose.msra.mxu1 %v3599_v23  ;;  %v9628_v12 = vpop.xlane.xlu0 %2525  ;;  %12879 = vst [vmem:[#allocation171_spill] sm:$0xff] %v9630_v29 }
 0x59f   : > { %12878 = vst [vmem:[#allocation170_spill] sm:$0xff] %v9628_v12  ;;  %7370 = vpow2.f32 %v2897_v0  ;;  %v2783_v16 = vsub.f32 %v9229_v53, %v9628_v12  ;;  %6729 = vmatprep.subr.bf16.mxu1 %v3600_v14  ;;  %v9634_v38 = vpop.eup %7360  ;;  %v2911_v10 = vmul.f32 1.442695, %v2784_v35 }
 0x5a0   : > { %12880 = vst [vmem:[#allocation172_spill] sm:$0xff] %v9634_v38  ;;  %7372 = vpow2.f32 %v2903_v8  ;;  %v9638_v19 = vpop.xlane.xlu1 %2523 }
 0x5a1   : > { %12882 = vst [vmem:[#allocation73_spill] sm:$0xff] %v9638_v19  ;;  %v9640_v1 = vpop.eup %7362  ;;  %v2909_v23 = vmul.f32 1.442695, %v2783_v16  ;;  %v2782_v5 = vsub.f32 %v9243_v49, %v9638_v19 }
 0x5a2   : > { %12883 = vst [vmem:[#allocation173_spill] sm:$0xff] %v9640_v1  ;;  %v9644_v43 = vpop.eup %7364  ;;  %v9646_v0 = vpop.xlane.xlu0 %2521  ;;  %v3195_v53 = vpack.c.bf16 %v9634_v38, %v9640_v1 }
 0x5a3   : > { %12884 = vst [vmem:[#allocation174_spill] sm:$0xff] %v9644_v43  ;;  %12885 = vst [vmem:[#allocation175_spill] sm:$0xff] %v9646_v0  ;;  %v2907_v12 = vmul.f32 1.442695, %v2782_v5  ;;  %v2781_v8 = vsub.f32 %v9232_v6, %v9646_v0  ;;  %v3196_v57 = vpack.c.bf16 %v9644_v43, %v9630_v29  ;;  %7374 = vpow2.f32 %v2909_v23 }
 0x5a4   : > { %6659 = vmatprep.mubr.bf16.mxu1 %v3195_v53  ;;  %v9654_v16 = vpop.xlane.xlu1 %2463 }
 0x5a5   : > { %12886 = vst [vmem:[#allocation176_spill] sm:$0xff] %v9654_v16  ;;  %v2905_v49 = vmul.f32 1.442695, %v2781_v8  ;;  %v2752_v19 = vsub.f32 %v9133_v22, %v9654_v16  ;;  %6660 = vmatmul.mubr.bf16.gmra.mrb[116].mxu1 %v3196_v57  ;;  %7376 = vpow2.f32 %v2907_v12  ;;  %v9660_v38 = vpop.eup %7366 }
 0x5a6   : > { %6730 = vmatpush3.bf16.xpose.msra.mxu1 %v3600_v14  ;;  %v9658_v5 = vpop.xlane.xlu0 %2461  ;;  %12888 = vst [vmem:[#allocation178_spill] sm:$0xff] %v9660_v38 }
 0x5a7   : > { %12887 = vst [vmem:[#allocation177_spill] sm:$0xff] %v9658_v5  ;;  %7378 = vpow2.f32 %v2905_v49  ;;  %v2847_v6 = vmul.f32 1.442695, %v2752_v19  ;;  %v2751_v35 = vsub.f32 %v9128_v9, %v9658_v5  ;;  %6731 = vmatprep.subr.bf16.mxu1 %v3601_v61  ;;  %v9664_v53 = vpop.eup %7368  ;;  %v3602_v19 = vld [vmem:[#allocation2 + $0xf8] sm:$0xff]  ;;  %v3607_v5 = vld [vmem:[#allocation3 + $0x60] sm:$0xff] }
 0x5a8   : > { %12889 = vst [vmem:[#allocation179_spill] sm:$0xff] %v9664_v53  ;;  %7380 = vpow2.f32 %v2911_v10 }
 0x5a9   : > { %v9666_v23 = vpop.eup %7370  ;;  %v2845_v8 = vmul.f32 1.442695, %v2751_v35  ;;  %7382 = vpow2.f32 %v2847_v6 }
 0x5aa   : > { %12890 = vst [vmem:[#allocation180_spill] sm:$0xff] %v9666_v23  ;;  %v9668_v22 = vpop.eup %7372  ;;  %v3197_v14 = vpack.c.bf16 %v9664_v53, %v9666_v23 }
 0x5ab   : > { %12891 = vst [vmem:[#allocation181_spill] sm:$0xff] %v9668_v22  ;;  %7384 = vpow2.f32 %v2845_v8  ;;  %v3198_v12 = vpack.c.bf16 %v9668_v22, %v9660_v38  ;;  %v12899_v22 = vld [vmem:[#allocation28_spill] sm:$0xff]  ;;  %v12900_v38 = vld [vmem:[#allocation34_spill] sm:$0xff] }
 0x5ac   : > { %6663 = vmatprep.mubr.bf16.mxu1 %v3197_v14 }
 0x5ad   : > { %6664 = vmatmul.mubr.bf16.gmra.mrb[120].mxu1 %v3198_v12  ;;  %v9674_v9 = vpop.eup %7374 }
 0x5ae   : > { %6732 = vmatpush3.bf16.xpose.msra.mxu1 %v3601_v61  ;;  %12892 = vst [vmem:[#allocation182_spill] sm:$0xff] %v9674_v9  ;;  %v12898_v61 = vld [vmem:[#allocation30_spill] sm:$0xff] }
 0x5af   : > { %6733 = vmatprep.subr.bf16.mxu1 %v3602_v19  ;;  %v9676_v10 = vpop.eup %7376 }
 0x5b0   : > { %12893 = vst [vmem:[#allocation183_spill] sm:$0xff] %v9676_v10 }
 0x5b1   : > { %v9678_v57 = vpop.eup %7378 }
 0x5b2   : > { %12894 = vst [vmem:[#allocation184_spill] sm:$0xff] %v9678_v57  ;;  %v9680_v49 = vpop.eup %7380  ;;  %v3199_v6 = vpack.c.bf16 %v9676_v10, %v9678_v57  ;;  %v12901_v10 = vld [vmem:[#allocation38_spill] sm:$0xff] }
 0x5b3   : > { %12895 = vst [vmem:[#allocation185_spill] sm:$0xff] %v9680_v49  ;;  %v3200_v35 = vpack.c.bf16 %v9680_v49, %v9674_v9  ;;  %v9686_v8 = vpop.eup %7382  ;;  %v12902_v49 = vld [vmem:[#allocation32_spill] sm:$0xff] }
 0x5b4   : > { %12896 = vst [vmem:[#allocation186_spill] sm:$0xff] %v9686_v8  ;;  %6667 = vmatprep.mubr.bf16.mxu1 %v3199_v6  ;;  %v12903_v9 = vld [vmem:[#allocation36_spill] sm:$0xff]  ;;  %v12904_v6 = vld [vmem:[#allocation42_spill] sm:$0xff] }
 0x5b5   : > { %v9688_v14 = vpop.eup %7384  ;;  %6668 = vmatmul.mubr.bf16.gmra.mrb[124].mxu1 %v3200_v35  ;;  %v12905_v35 = vld [vmem:[#allocation46_spill] sm:$0xff] }
 0x5b6   : > { %12897 = vst [vmem:[#allocation187_spill] sm:$0xff] %v9688_v14  ;;  %6734 = vmatpush3.bf16.xpose.msra.mxu1 %v3602_v19  ;;  %6735 = vmatprep.mubr.bf16.mxu1 %v12898_v61  ;;  %v3184_v12 = vpack.c.bf16 %v9686_v8, %v9688_v14  ;;  %v12906_v19 = vld [vmem:[#allocation40_spill] sm:$0xff]  ;;  %v12908_v8 = vld [vmem:[#allocation50_spill] sm:$0xff] }
 0x5b7   : > { %v12907_v61 = vld [vmem:[#allocation44_spill] sm:$0xff] }
 0x5b8   : > { %6620 = vmatmul.mubr.bf16.gmra.mrb[60].mxu0 %v3184_v12  ;;  %v12909_v12 = vld [vmem:[#allocation54_spill] sm:$0xff] }
 0x5b9   : > { %6687 = vmatprep.mubr.bf16.mxu0 %v12899_v22  ;;  %v12910_v22 = vld [vmem:[#allocation48_spill] sm:$0xff] }
 0x5bd   : > { %6736 = vmatmul.mubr.bf16.vlgmr.msra.gmra.mrb[128].mxu1 %v12900_v38  ;;  %v12911_v38 = vld [vmem:[#allocation52_spill] sm:$0xff] }
 0x5be   : > { %6739 = vmatprep.mubr.bf16.mxu1 %v12901_v10  ;;  %v12912_v10 = vld [vmem:[#allocation58_spill] sm:$0xff] }
 0x5c0   : > { %6688 = vmatmul.mubr.bf16.vlgmr.msra.gmra.mrb[64].mxu0 %v12902_v49  ;;  %v12913_v49 = vld [vmem:[#allocation31_spill] sm:$0xff] }
 0x5c1   : > { %6691 = vmatprep.mubr.bf16.mxu0 %v12903_v9  ;;  %v12914_v9 = vld [vmem:[#allocation56_spill] sm:$0xff] }
 0x5c5   : > { %6740 = vmatmul.mubr.bf16.gmra.mrb[132].mxu1 %v12904_v6  ;;  %v12915_v6 = vld [vmem:[#allocation29_spill] sm:$0xff] }
 0x5c6   : > { %6743 = vmatprep.mubr.bf16.mxu1 %v12905_v35  ;;  %v12916_v35 = vld [vmem:[#allocation35_spill] sm:$0xff] }
 0x5c8   : > { %6692 = vmatmul.mubr.bf16.gmra.mrb[68].mxu0 %v12906_v19  ;;  %v12917_v19 = vld [vmem:[#allocation39_spill] sm:$0xff] }
 0x5c9   : > { %6695 = vmatprep.mubr.bf16.mxu0 %v12907_v61  ;;  %v12918_v61 = vld [vmem:[#allocation33_spill] sm:$0xff] }
 0x5cd   : > { %6744 = vmatmul.mubr.bf16.gmra.mrb[136].mxu1 %v12908_v8  ;;  %v12919_v8 = vld [vmem:[#allocation37_spill] sm:$0xff] }
 0x5ce   : > { %6747 = vmatprep.mubr.bf16.mxu1 %v12909_v12  ;;  %v12920_v12 = vld [vmem:[#allocation43_spill] sm:$0xff] }
 0x5d0   : > { %6696 = vmatmul.mubr.bf16.gmra.mrb[72].mxu0 %v12910_v22  ;;  %v12921_v22 = vld [vmem:[#allocation47_spill] sm:$0xff] }
 0x5d1   : > { %6699 = vmatprep.mubr.bf16.mxu0 %v12911_v38  ;;  %v12922_v38 = vld [vmem:[#allocation41_spill] sm:$0xff] }
 0x5d5   : > { %6748 = vmatmul.mubr.bf16.gmra.mrb[140].mxu1 %v12912_v10  ;;  %v12923_v10 = vld [vmem:[#allocation45_spill] sm:$0xff] }
 0x5d6   : > { %6751 = vmatprep.mubr.bf16.mxu1 %v12913_v49  ;;  %v12924_v49 = vld [vmem:[#allocation51_spill] sm:$0xff] }
 0x5d8   : > { %6700 = vmatmul.mubr.bf16.gmra.mrb[76].mxu0 %v12914_v9  ;;  %v12925_v9 = vld [vmem:[#allocation55_spill] sm:$0xff] }
 0x5d9   : > { %6703 = vmatprep.mubr.bf16.mxu0 %v12915_v6  ;;  %v12926_v6 = vld [vmem:[#allocation49_spill] sm:$0xff] }
 0x5dd   : > { %6752 = vmatmul.mubr.bf16.gmra.mrb[144].mxu1 %v12916_v35  ;;  %v12927_v35 = vld [vmem:[#allocation53_spill] sm:$0xff] }
 0x5de   : > { %6755 = vmatprep.mubr.bf16.mxu1 %v12917_v19  ;;  %v12928_v19 = vld [vmem:[#allocation59_spill] sm:$0xff] }
 0x5e0   : > { %6704 = vmatmul.mubr.bf16.gmra.mrb[80].mxu0 %v12918_v61  ;;  %v12929_v61 = vld [vmem:[#allocation57_spill] sm:$0xff] }
 0x5e1   : > { %6707 = vmatprep.mubr.bf16.mxu0 %v12919_v8 }
 0x5e5   : > { %6756 = vmatmul.mubr.bf16.gmra.mrb[148].mxu1 %v12920_v12 }
 0x5e6   : > { %6759 = vmatprep.mubr.bf16.mxu1 %v12921_v22 }
 0x5e8   : > { %6708 = vmatmul.mubr.bf16.gmra.mrb[84].mxu0 %v12922_v38 }
 0x5e9   : > { %6711 = vmatprep.mubr.bf16.mxu0 %v12923_v10 }
 0x5ed   : > { %6760 = vmatmul.mubr.bf16.gmra.mrb[152].mxu1 %v12924_v49 }
 0x5ee   : > { %6763 = vmatprep.mubr.bf16.mxu1 %v12925_v9 }
 0x5f0   : > { %6712 = vmatmul.mubr.bf16.gmra.mrb[88].mxu0 %v12926_v6 }
 0x5f1   : > { %6715 = vmatprep.mubr.bf16.mxu0 %v12927_v35 }
 0x5f5   : > { %6764 = vmatmul.mubr.bf16.gmra.mrb[156].mxu1 %v12928_v19 }
 0x5f8   : > { %6716 = vmatmul.mubr.bf16.gmra.mrb[92].mxu0 %v12929_v61 }
 0x5f9   : > { %v9724_v8 = vpop.f32.mrb[32].mxu0 }
 0x5fa   : > { %12930 = vst [vmem:[#allocation30_spill] sm:$0xff] %v9724_v8  ;;  %v9726_v12 = vpop.f32.mrb[33].mxu0  ;;  %v3612_v8 = vld [vmem:[#allocation3 + $0xc8] sm:$0xff] }
 0x5fb   : > { %12931 = vst [vmem:[#allocation28_spill] sm:$0xff] %v9726_v12  ;;  %v9728_v22 = vpop.f32.mrb[34].mxu0 }
 0x5fc   : > { %12932 = vst [vmem:[#allocation34_spill] sm:$0xff] %v9728_v22  ;;  %v9730_v38 = vpop.f32.mrb[35].mxu0 }
 0x5fd   : > { %12933 = vst [vmem:[#allocation38_spill] sm:$0xff] %v9730_v38 }
 0x606   : > { %v9732_v10 = vpop.f32.mrb[36].mxu0 }
 0x607   : > { %12934 = vst [vmem:[#allocation32_spill] sm:$0xff] %v9732_v10  ;;  %v9734_v49 = vpop.f32.mrb[37].mxu0 }
 0x608   : > { %12935 = vst [vmem:[#allocation36_spill] sm:$0xff] %v9734_v49  ;;  %v9736_v9 = vpop.f32.mrb[38].mxu0  ;;  %v3604_v49 = vld [vmem:[#allocation3 + $0x48] sm:$0xff] }
 0x609   : > { %12936 = vst [vmem:[#allocation42_spill] sm:$0xff] %v9736_v9  ;;  %v9738_v6 = vpop.f32.mrb[39].mxu0  ;;  %v3603_v9 = vld [vmem:[#allocation3 + $0x40] sm:$0xff] }
 0x60a   : > { %12937 = vst [vmem:[#allocation46_spill] sm:$0xff] %v9738_v6  ;;  %6767 = vmatprep.subr.bf16.mxu0 %v3603_v9 }
 0x60b   : > { %6768 = vmatpush3.bf16.msra.mxu0 %v3603_v9 }
 0x60c   : > { %6769 = vmatprep.subr.bf16.mxu0 %v3604_v49 }
 0x60f   : > { %6770 = vmatpush3.bf16.msra.mxu0 %v3604_v49 }
 0x616   : > { %v9740_v35 = vpop.f32.mrb[40].mxu0 }
 0x617   : > { %12938 = vst [vmem:[#allocation40_spill] sm:$0xff] %v9740_v35  ;;  %v9742_v19 = vpop.f32.mrb[41].mxu0 }
 0x618   : > { %12939 = vst [vmem:[#allocation44_spill] sm:$0xff] %v9742_v19  ;;  %v9744_v61 = vpop.f32.mrb[42].mxu0 }
 0x619   : > { %12940 = vst [vmem:[#allocation50_spill] sm:$0xff] %v9744_v61  ;;  %v9746_v14 = vpop.f32.mrb[43].mxu0 }
 0x61a   : > { %12941 = vst [vmem:[#allocation54_spill] sm:$0xff] %v9746_v14 }
 0x626   : > { %v9748_v57 = vpop.f32.mrb[44].mxu0 }
 0x627   : > { %12942 = vst [vmem:[#allocation48_spill] sm:$0xff] %v9748_v57  ;;  %v9750_v53 = vpop.f32.mrb[45].mxu0 }
 0x628   : > { %12943 = vst [vmem:[#allocation52_spill] sm:$0xff] %v9750_v53  ;;  %v9752_v23 = vpop.f32.mrb[46].mxu0 }
 0x629   : > { %12944 = vst [vmem:[#allocation58_spill] sm:$0xff] %v9752_v23  ;;  %v9754_v43 = vpop.f32.mrb[47].mxu0 }
 0x62a   : > { %12945 = vst [vmem:[#allocation31_spill] sm:$0xff] %v9754_v43 }
 0x62e   : > { %v9756_v0 = vpop.f32.mrb[48].mxu0 }
 0x62f   : > { %12946 = vst [vmem:[#allocation56_spill] sm:$0xff] %v9756_v0  ;;  %v9758_v29 = vpop.f32.mrb[49].mxu0 }
 0x630   : > { %12947 = vst [vmem:[#allocation29_spill] sm:$0xff] %v9758_v29  ;;  %v9760_v1 = vpop.f32.mrb[50].mxu0 }
 0x631   : > { %12948 = vst [vmem:[#allocation35_spill] sm:$0xff] %v9760_v1  ;;  %v9762_v4 = vpop.f32.mrb[51].mxu0 }
 0x632   : > { %12949 = vst [vmem:[#allocation39_spill] sm:$0xff] %v9762_v4 }
 0x636   : > { %v9764_v19 = vpop.f32.mrb[52].mxu0 }
 0x637   : > { %12950 = vst [vmem:[#allocation33_spill] sm:$0xff] %v9764_v19  ;;  %v9766_v61 = vpop.f32.mrb[53].mxu0 }
 0x638   : > { %12951 = vst [vmem:[#allocation37_spill] sm:$0xff] %v9766_v61  ;;  %v9768_v14 = vpop.f32.mrb[54].mxu0 }
 0x639   : > { %12952 = vst [vmem:[#allocation43_spill] sm:$0xff] %v9768_v14  ;;  %v9770_v57 = vpop.f32.mrb[55].mxu0 }
 0x63a   : > { %12953 = vst [vmem:[#allocation47_spill] sm:$0xff] %v9770_v57 }
 0x63e   : > { %v9772_v53 = vpop.f32.mrb[56].mxu0 }
 0x63f   : > { %12954 = vst [vmem:[#allocation41_spill] sm:$0xff] %v9772_v53  ;;  %v9774_v23 = vpop.f32.mrb[57].mxu0 }
 0x640   : > { %12955 = vst [vmem:[#allocation45_spill] sm:$0xff] %v9774_v23  ;;  %v9776_v43 = vpop.f32.mrb[58].mxu0 }
 0x641   : > { %12956 = vst [vmem:[#allocation51_spill] sm:$0xff] %v9776_v43  ;;  %v9778_v0 = vpop.f32.mrb[59].mxu0 }
 0x642   : > { %12957 = vst [vmem:[#allocation55_spill] sm:$0xff] %v9778_v0 }
 0x650   : > { %v9780_v29 = vpop.f32.mrb[96].mxu1 }
 0x651   : > { %12958 = vst [vmem:[#allocation49_spill] sm:$0xff] %v9780_v29  ;;  %v9782_v1 = vpop.f32.mrb[97].mxu1 }
 0x652   : > { %12959 = vst [vmem:[#allocation53_spill] sm:$0xff] %v9782_v1  ;;  %v9784_v4 = vpop.f32.mrb[98].mxu1 }
 0x653   : > { %12960 = vst [vmem:[#allocation59_spill] sm:$0xff] %v9784_v4  ;;  %v9786_v19 = vpop.f32.mrb[99].mxu1 }
 0x654   : > { %12961 = vst [vmem:[#allocation57_spill] sm:$0xff] %v9786_v19 }
 0x658   : > { %v9788_v61 = vpop.f32.mrb[100].mxu1 }
 0x659   : > { %12962 = vst [vmem:[#allocation188_spill] sm:$0xff] %v9788_v61  ;;  %v9790_v14 = vpop.f32.mrb[101].mxu1 }
 0x65a   : > { %12963 = vst [vmem:[#allocation189_spill] sm:$0xff] %v9790_v14  ;;  %v9792_v57 = vpop.f32.mrb[102].mxu1 }
 0x65b   : > { %12964 = vst [vmem:[#allocation190_spill] sm:$0xff] %v9792_v57  ;;  %v9794_v53 = vpop.f32.mrb[103].mxu1 }
 0x65c   : > { %12965 = vst [vmem:[#allocation191_spill] sm:$0xff] %v9794_v53 }
 0x660   : > { %v9796_v23 = vpop.f32.mrb[104].mxu1 }
 0x661   : > { %12966 = vst [vmem:[#allocation192_spill] sm:$0xff] %v9796_v23  ;;  %v9798_v43 = vpop.f32.mrb[105].mxu1 }
 0x662   : > { %12967 = vst [vmem:[#allocation193_spill] sm:$0xff] %v9798_v43  ;;  %v9800_v0 = vpop.f32.mrb[106].mxu1 }
 0x663   : > { %12968 = vst [vmem:[#allocation194_spill] sm:$0xff] %v9800_v0  ;;  %v9802_v29 = vpop.f32.mrb[107].mxu1 }
 0x664   : > { %12969 = vst [vmem:[#allocation195_spill] sm:$0xff] %v9802_v29 }
 0x668   : > { %v9804_v1 = vpop.f32.mrb[108].mxu1 }
 0x669   : > { %12970 = vst [vmem:[#allocation196_spill] sm:$0xff] %v9804_v1  ;;  %v9806_v4 = vpop.f32.mrb[109].mxu1 }
 0x66a   : > { %12971 = vst [vmem:[#allocation197_spill] sm:$0xff] %v9806_v4  ;;  %v9808_v19 = vpop.f32.mrb[110].mxu1 }
 0x66b   : > { %12972 = vst [vmem:[#allocation198_spill] sm:$0xff] %v9808_v19  ;;  %v9810_v61 = vpop.f32.mrb[111].mxu1 }
 0x66c   : > { %12973 = vst [vmem:[#allocation199_spill] sm:$0xff] %v9810_v61 }
 0x670   : > { %v9812_v14 = vpop.f32.mrb[112].mxu1 }
 0x671   : > { %12974 = vst [vmem:[#allocation200_spill] sm:$0xff] %v9812_v14  ;;  %v9814_v57 = vpop.f32.mrb[113].mxu1 }
 0x672   : > { %12975 = vst [vmem:[#allocation201_spill] sm:$0xff] %v9814_v57  ;;  %v9816_v53 = vpop.f32.mrb[114].mxu1 }
 0x673   : > { %12976 = vst [vmem:[#allocation202_spill] sm:$0xff] %v9816_v53  ;;  %v9818_v23 = vpop.f32.mrb[115].mxu1 }
 0x674   : > { %12977 = vst [vmem:[#allocation203_spill] sm:$0xff] %v9818_v23 }
 0x678   : > { %v9820_v43 = vpop.f32.mrb[116].mxu1 }
 0x679   : > { %12978 = vst [vmem:[#allocation204_spill] sm:$0xff] %v9820_v43  ;;  %v9822_v0 = vpop.f32.mrb[117].mxu1 }
 0x67a   : > { %12979 = vst [vmem:[#allocation205_spill] sm:$0xff] %v9822_v0  ;;  %v9824_v29 = vpop.f32.mrb[118].mxu1 }
 0x67b   : > { %12980 = vst [vmem:[#allocation206_spill] sm:$0xff] %v9824_v29  ;;  %v9826_v1 = vpop.f32.mrb[119].mxu1 }
 0x67c   : > { %12981 = vst [vmem:[#allocation207_spill] sm:$0xff] %v9826_v1 }
 0x680   : > { %v9828_v4 = vpop.f32.mrb[120].mxu1 }
 0x681   : > { %12982 = vst [vmem:[#allocation208_spill] sm:$0xff] %v9828_v4  ;;  %v9830_v19 = vpop.f32.mrb[121].mxu1 }
 0x682   : > { %12983 = vst [vmem:[#allocation209_spill] sm:$0xff] %v9830_v19  ;;  %v9832_v61 = vpop.f32.mrb[122].mxu1 }
 0x683   : > { %12984 = vst [vmem:[#allocation210_spill] sm:$0xff] %v9832_v61  ;;  %v9834_v14 = vpop.f32.mrb[123].mxu1 }
 0x684   : > { %12985 = vst [vmem:[#allocation211_spill] sm:$0xff] %v9834_v14 }
 0x688   : > { %v9836_v57 = vpop.f32.mrb[124].mxu1 }
 0x689   : > { %12986 = vst [vmem:[#allocation212_spill] sm:$0xff] %v9836_v57  ;;  %v9838_v53 = vpop.f32.mrb[125].mxu1 }
 0x68a   : > { %12987 = vst [vmem:[#allocation213_spill] sm:$0xff] %v9838_v53  ;;  %v9840_v23 = vpop.f32.mrb[126].mxu1 }
 0x68b   : > { %12988 = vst [vmem:[#allocation214_spill] sm:$0xff] %v9840_v23  ;;  %v9842_v43 = vpop.f32.mrb[60].mxu0  ;;  %v9844_v0 = vpop.f32.mrb[127].mxu1 }
 0x68c   : > { %12989 = vst [vmem:[#allocation215_spill] sm:$0xff] %v9842_v43  ;;  %12990 = vst [vmem:[#allocation216_spill] sm:$0xff] %v9844_v0  ;;  %v9846_v29 = vpop.f32.mrb[61].mxu0  ;;  %v3611_v43 = vld [vmem:[#allocation3 + $0xc0] sm:$0xff] }
 0x68d   : > { %12991 = vst [vmem:[#allocation217_spill] sm:$0xff] %v9846_v29  ;;  %v9848_v1 = vpop.f32.mrb[62].mxu0  ;;  %6815 = vmatprep.subr.bf16.mxu1 %v3611_v43 }
 0x68e   : > { %12992 = vst [vmem:[#allocation218_spill] sm:$0xff] %v9848_v1  ;;  %v9850_v4 = vpop.f32.mrb[63].mxu0  ;;  %6816 = vmatpush3.bf16.msra.mxu1 %v3611_v43 }
 0x68f   : > { %12993 = vst [vmem:[#allocation219_spill] sm:$0xff] %v9850_v4  ;;  %6817 = vmatprep.subr.bf16.mxu1 %v3612_v8 }
 0x690   : > { %v9852_v19 = vpop.f32.mrb[128].mxu1 }
 0x691   : > { %12994 = vst [vmem:[#allocation220_spill] sm:$0xff] %v9852_v19  ;;  %v9854_v61 = vpop.f32.mrb[129].mxu1 }
 0x692   : > { %12995 = vst [vmem:[#allocation221_spill] sm:$0xff] %v9854_v61  ;;  %v9856_v14 = vpop.f32.mrb[130].mxu1  ;;  %6818 = vmatpush3.bf16.msra.mxu1 %v3612_v8 }
 0x693   : > { %12996 = vst [vmem:[#allocation222_spill] sm:$0xff] %v9856_v14  ;;  %v9858_v57 = vpop.f32.mrb[64].mxu0  ;;  %v9860_v53 = vpop.f32.mrb[131].mxu1 }
 0x694   : > { %12997 = vst [vmem:[#allocation223_spill] sm:$0xff] %v9858_v57  ;;  %12998 = vst [vmem:[#allocation224_spill] sm:$0xff] %v9860_v53  ;;  %3945 = vmax.xlane.f32.xlu0 %v9858_v57  ;;  %v9863_v23 = vpop.f32.mrb[65].mxu0 }
 0x695   : > { %12999 = vst [vmem:[#allocation225_spill] sm:$0xff] %v9863_v23  ;;  %v9865_v0 = vpop.f32.mrb[66].mxu0 }
 0x696   : > { %13000 = vst [vmem:[#allocation226_spill] sm:$0xff] %v9865_v0  ;;  %3947 = vmax.xlane.f32.xlu1 %v9865_v0  ;;  %v9868_v1 = vpop.f32.mrb[67].mxu0 }
 0x697   : > { %13001 = vst [vmem:[#allocation227_spill] sm:$0xff] %v9868_v1 }
 0x698   : > { %3941 = vmax.xlane.f32.xlu0 %v9863_v23  ;;  %v9871_v4 = vpop.f32.mrb[132].mxu1 }
 0x699   : > { %13002 = vst [vmem:[#allocation228_spill] sm:$0xff] %v9871_v4  ;;  %v9873_v29 = vpop.f32.mrb[133].mxu1 }
 0x69a   : > { %13003 = vst [vmem:[#allocation229_spill] sm:$0xff] %v9873_v29  ;;  %3943 = vmax.xlane.f32.xlu1 %v9868_v1  ;;  %v9876_v35 = vpop.f32.mrb[134].mxu1 }
 0x69b   : > { %13004 = vst [vmem:[#allocation230_spill] sm:$0xff] %v9876_v35  ;;  %v9878_v57 = vpop.f32.mrb[68].mxu0  ;;  %v9880_v6 = vpop.f32.mrb[135].mxu1 }
 0x69c   : > { %13005 = vst [vmem:[#allocation231_spill] sm:$0xff] %v9878_v57  ;;  %13006 = vst [vmem:[#allocation232_spill] sm:$0xff] %v9880_v6  ;;  %3953 = vmax.xlane.f32.xlu0 %v9878_v57  ;;  %v9883_v0 = vpop.f32.mrb[69].mxu0 }
 0x69d   : > { %13007 = vst [vmem:[#allocation233_spill] sm:$0xff] %v9883_v0  ;;  %v9885_v23 = vpop.f32.mrb[70].mxu0 }
 0x69e   : > { %13008 = vst [vmem:[#allocation234_spill] sm:$0xff] %v9885_v23  ;;  %3955 = vmax.xlane.f32.xlu1 %v9885_v23  ;;  %v9888_v1 = vpop.f32.mrb[71].mxu0 }
 0x69f   : > { %13009 = vst [vmem:[#allocation235_spill] sm:$0xff] %v9888_v1 }
 0x6a0   : > { %3949 = vmax.xlane.f32.xlu0 %v9883_v0  ;;  %v9891_v10 = vpop.f32.mrb[136].mxu1  ;;  %v3605_v0 = vld [vmem:[#allocation3 + $0x50] sm:$0xff] }
 0x6a1   : > { %13010 = vst [vmem:[#allocation236_spill] sm:$0xff] %v9891_v10  ;;  %v9893_v38 = vpop.f32.mrb[137].mxu1  ;;  %6771 = vmatprep.subr.bf16.mxu0 %v3605_v0 }
 0x6a2   : > { %13011 = vst [vmem:[#allocation237_spill] sm:$0xff] %v9893_v38  ;;  %3951 = vmax.xlane.f32.xlu1 %v9888_v1  ;;  %v9896_v43 = vpop.f32.mrb[138].mxu1  ;;  %6772 = vmatpush3.bf16.msra.mxu0 %v3605_v0 }
 0x6a3   : > { %13012 = vst [vmem:[#allocation238_spill] sm:$0xff] %v9896_v43  ;;  %v9898_v57 = vpop.f32.mrb[72].mxu0  ;;  %v9900_v9 = vpop.f32.mrb[139].mxu1  ;;  %6773 = vmatprep.subr.bf16.mxu0 %v3606_v44 }
 0x6a4   : > { %13013 = vst [vmem:[#allocation239_spill] sm:$0xff] %v9898_v57  ;;  %13014 = vst [vmem:[#allocation240_spill] sm:$0xff] %v9900_v9  ;;  %3961 = vmax.xlane.f32.xlu0 %v9898_v57  ;;  %v9903_v23 = vpop.f32.mrb[73].mxu0 }
 0x6a5   : > { %13015 = vst [vmem:[#allocation241_spill] sm:$0xff] %v9903_v23  ;;  %v9905_v22 = vpop.f32.mrb[74].mxu0 }
 0x6a6   : > { %13016 = vst [vmem:[#allocation242_spill] sm:$0xff] %v9905_v22  ;;  %3963 = vmax.xlane.f32.xlu1 %v9905_v22  ;;  %v9908_v12 = vpop.f32.mrb[75].mxu0  ;;  %6774 = vmatpush3.bf16.msra.mxu0 %v3606_v44  ;;  %v3613_v44 = vld [vmem:[#allocation3 + $0xd0] sm:$0xff] }
 0x6a7   : > { %13017 = vst [vmem:[#allocation243_spill] sm:$0xff] %v9908_v12  ;;  %6775 = vmatprep.subr.bf16.mxu0 %v3607_v5  ;;  %6819 = vmatprep.subr.bf16.mxu1 %v3613_v44 }
 0x6a8   : > { %3957 = vmax.xlane.f32.xlu0 %v9903_v23  ;;  %v9911_v49 = vpop.f32.mrb[140].mxu1  ;;  %6820 = vmatpush3.bf16.msra.mxu1 %v3613_v44 }
 0x6a9   : > { %13018 = vst [vmem:[#allocation244_spill] sm:$0xff] %v9911_v49  ;;  %v9913_v1 = vpop.f32.mrb[141].mxu1 }
 0x6aa   : > { %13019 = vst [vmem:[#allocation245_spill] sm:$0xff] %v9913_v1  ;;  %3959 = vmax.xlane.f32.xlu1 %v9908_v12  ;;  %v9916_v57 = vpop.f32.mrb[142].mxu1  ;;  %6776 = vmatpush3.bf16.msra.mxu0 %v3607_v5 }
 0x6ab   : > { %13020 = vst [vmem:[#allocation246_spill] sm:$0xff] %v9916_v57  ;;  %v9918_v27 = vpop.f32.mrb[76].mxu0  ;;  %v9920_v22 = vpop.f32.mrb[143].mxu1  ;;  %6777 = vmatprep.subr.bf16.mxu0 %v3608_v18 }
 0x6ac   : > { %13021 = vst [vmem:[#allocation247_spill] sm:$0xff] %v9918_v27  ;;  %13022 = vst [vmem:[#allocation248_spill] sm:$0xff] %v9920_v22  ;;  %v9922_v0 = vpop.f32.mrb[77].mxu0 }
 0x6ad   : > { %13023 = vst [vmem:[#allocation249_spill] sm:$0xff] %v9922_v0  ;;  %3965 = vmax.xlane.f32.xlu0 %v9922_v0  ;;  %v9925_v23 = vpop.f32.mrb[78].mxu0 }
 0x6ae   : > { %13024 = vst [vmem:[#allocation250_spill] sm:$0xff] %v9925_v23  ;;  %v9927_v16 = vpop.f32.mrb[79].mxu0  ;;  %6778 = vmatpush3.bf16.msra.mxu0 %v3608_v18  ;;  %v3614_v18 = vld [vmem:[#allocation3 + $0xd8] sm:$0xff] }
 0x6af   : > { %13025 = vst [vmem:[#allocation251_spill] sm:$0xff] %v9927_v16  ;;  %3967 = vmax.xlane.f32.xlu1 %v9927_v16  ;;  %6821 = vmatprep.subr.bf16.mxu1 %v3614_v18 }
 0x6b0   : > { %v9930_v12 = vpop.f32.mrb[144].mxu1  ;;  %6822 = vmatpush3.bf16.msra.mxu1 %v3614_v18  ;;  %v3615_v18 = vld [vmem:[#allocation3 + $0xe0] sm:$0xff] }
 0x6b1   : > { %13026 = vst [vmem:[#allocation252_spill] sm:$0xff] %v9930_v12  ;;  %4009 = vmax.xlane.f32.xlu0 %v9852_v19  ;;  %v9933_v8 = vpop.f32.mrb[145].mxu1  ;;  %v3609_v19 = vld [vmem:[#allocation3 + $0x70] sm:$0xff]  ;;  %6823 = vmatprep.subr.bf16.mxu1 %v3615_v18 }
 0x6b2   : > { %13027 = vst [vmem:[#allocation253_spill] sm:$0xff] %v9933_v8  ;;  %v9935_v20 = vpop.f32.mrb[146].mxu1  ;;  %6779 = vmatprep.subr.bf16.mxu0 %v3609_v19 }
 0x6b3   : > { %13028 = vst [vmem:[#allocation254_spill] sm:$0xff] %v9935_v20  ;;  %v9937_v0 = vpop.f32.mrb[80].mxu0  ;;  %4011 = vmax.xlane.f32.xlu1 %v9856_v14  ;;  %v9940_v60 = vpop.f32.mrb[147].mxu1  ;;  %6780 = vmatpush3.bf16.msra.mxu0 %v3609_v19 }
 0x6b4   : > { %13029 = vst [vmem:[#allocation255_spill] sm:$0xff] %v9937_v0  ;;  %13030 = vst [vmem:[#allocation256_spill] sm:$0xff] %v9940_v60  ;;  %v9942_v16 = vpop.f32.mrb[81].mxu0  ;;  %6781 = vmatprep.subr.bf16.mxu0 %v3610_v42  ;;  %6824 = vmatpush3.bf16.msra.mxu1 %v3615_v18  ;;  %v13060_v60 = vld [vmem:[#allocation77_spill] sm:$0xff] }
 0x6b5   : > { %13031 = vst [vmem:[#allocation257_spill] sm:$0xff] %v9942_v16  ;;  %v9944_v5 = vpop.f32.mrb[82].mxu0  ;;  %4005 = vmax.xlane.f32.xlu0 %v9854_v61 }
 0x6b6   : > { %13032 = vst [vmem:[#allocation258_spill] sm:$0xff] %v9944_v5  ;;  %v9947_v36 = vpop.f32.mrb[83].mxu0 }
 0x6b7   : > { %13033 = vst [vmem:[#allocation259_spill] sm:$0xff] %v9947_v36  ;;  %4007 = vmax.xlane.f32.xlu1 %v9860_v53  ;;  %6782 = vmatpush3.bf16.msra.mxu0 %v3610_v42 }
 0x6b8   : > { %v9950_v32 = vpop.f32.mrb[148].mxu1 }
 0x6b9   : > { %13034 = vst [vmem:[#allocation260_spill] sm:$0xff] %v9950_v32  ;;  %3969 = vmax.xlane.f32.xlu0 %v9918_v27  ;;  %v9953_v14 = vpop.f32.mrb[149].mxu1 }
 0x6ba   : > { %13035 = vst [vmem:[#allocation261_spill] sm:$0xff] %v9953_v14  ;;  %v9955_v44 = vpop.f32.mrb[150].mxu1 }
 0x6bb   : > { %13036 = vst [vmem:[#allocation262_spill] sm:$0xff] %v9955_v44  ;;  %v9957_v48 = vpop.f32.mrb[84].mxu0  ;;  %3971 = vmax.xlane.f32.xlu1 %v9925_v23  ;;  %v9960_v61 = vpop.f32.mrb[151].mxu1 }
 0x6bc   : > { %13037 = vst [vmem:[#allocation263_spill] sm:$0xff] %v9957_v48  ;;  %13038 = vst [vmem:[#allocation264_spill] sm:$0xff] %v9960_v61  ;;  %v9962_v53 = vpop.f32.mrb[85].mxu0 }
 0x6bd   : > { %13039 = vst [vmem:[#allocation265_spill] sm:$0xff] %v9962_v53  ;;  %v9964_v19 = vpop.f32.mrb[86].mxu0  ;;  %3973 = vmax.xlane.f32.xlu0 %v9942_v16 }
 0x6be   : > { %13040 = vst [vmem:[#allocation266_spill] sm:$0xff] %v9964_v19  ;;  %v9967_v27 = vpop.f32.mrb[87].mxu0 }
 0x6bf   : > { %13041 = vst [vmem:[#allocation267_spill] sm:$0xff] %v9967_v27  ;;  %3975 = vmax.xlane.f32.xlu1 %v9947_v36 }
 0x6c0   : > { %v9970_v14 = vpop.f32.mrb[152].mxu1 }
 0x6c1   : > { %13042 = vst [vmem:[#allocation268_spill] sm:$0xff] %v9970_v14  ;;  %4017 = vmax.xlane.f32.xlu0 %v9871_v4  ;;  %v9973_v23 = vpop.f32.mrb[153].mxu1 }
 0x6c2   : > { %13043 = vst [vmem:[#allocation269_spill] sm:$0xff] %v9973_v23  ;;  %v9975_v61 = vpop.f32.mrb[154].mxu1 }
 0x6c3   : > { %13044 = vst [vmem:[#allocation270_spill] sm:$0xff] %v9975_v61  ;;  %v9977_v44 = vpop.f32.mrb[88].mxu0  ;;  %4019 = vmax.xlane.f32.xlu1 %v9876_v35  ;;  %v9980_v42 = vpop.f32.mrb[155].mxu1 }
 0x6c4   : > { %13045 = vst [vmem:[#allocation271_spill] sm:$0xff] %v9977_v44  ;;  %13046 = vst [vmem:[#allocation272_spill] sm:$0xff] %v9980_v42  ;;  %v9982_v16 = vpop.f32.mrb[89].mxu0 }
 0x6c5   : > { %13047 = vst [vmem:[#allocation273_spill] sm:$0xff] %v9982_v16  ;;  %v9984_v32 = vpop.f32.mrb[90].mxu0  ;;  %4013 = vmax.xlane.f32.xlu0 %v9873_v29  ;;  %v3616_v29 = vld [vmem:[#allocation3 + $0xe8] sm:$0xff] }
 0x6c6   : > { %13048 = vst [vmem:[#allocation274_spill] sm:$0xff] %v9984_v32  ;;  %v9987_v4 = vpop.f32.mrb[91].mxu0  ;;  %6825 = vmatprep.subr.bf16.mxu1 %v3616_v29 }
 0x6c7   : > { %13049 = vst [vmem:[#allocation275_spill] sm:$0xff] %v9987_v4  ;;  %4015 = vmax.xlane.f32.xlu1 %v9880_v6  ;;  %6826 = vmatpush3.bf16.msra.mxu1 %v3616_v29  ;;  %v2531_v6 = vsub.f32 -inf, %v9234_v28  ;;  %v2535_v29 = vsub.f32 -inf, %v9258_v17  ;;  %v13061_v28 = vld [vmem:[#allocation78_spill] sm:$0xff]  ;;  %v2539_v17 = vsub.f32 -inf, %v9287_v47 }
 0x6c8   : > { %v9990_v36 = vpop.f32.mrb[156].mxu1 }
 0x6c9   : > { %13050 = vst [vmem:[#allocation276_spill] sm:$0xff] %v9990_v36  ;;  %3977 = vmax.xlane.f32.xlu0 %v9937_v0  ;;  %v9993_v35 = vpop.f32.mrb[157].mxu1 }
 0x6ca   : > { %13051 = vst [vmem:[#allocation277_spill] sm:$0xff] %v9993_v35  ;;  %v9995_v42 = vpop.f32.mrb[158].mxu1  ;;  %v13058_v35 = vld [vmem:[#allocation71_spill] sm:$0xff] }
 0x6cb   : > { %13052 = vst [vmem:[#allocation278_spill] sm:$0xff] %v9995_v42  ;;  %v9997_v23 = vpop.f32.mrb[92].mxu0  ;;  %3979 = vmax.xlane.f32.xlu1 %v9944_v5  ;;  %v10000_v61 = vpop.f32.mrb[159].mxu1  ;;  %v2529_v42 = vsub.f32 -inf, %v13058_v35  ;;  %v2532_v5 = vsub.f32 -inf, %v9240_v33  ;;  %v2534_v33 = vsub.f32 -inf, %v9272_v51 }
 0x6cc   : > { %13053 = vst [vmem:[#allocation279_spill] sm:$0xff] %v9997_v23  ;;  %13054 = vst [vmem:[#allocation280_spill] sm:$0xff] %v10000_v61  ;;  %v10002_v18 = vpop.f32.mrb[93].mxu0  ;;  %v13059_v61 = vld [vmem:[#allocation75_spill] sm:$0xff]  ;;  %v2597_v23 = vmul.f32 1.442695, %v2531_v6 }
 0x6cd   : > { %13055 = vst [vmem:[#allocation281_spill] sm:$0xff] %v10002_v18  ;;  %v10004_v14 = vpop.f32.mrb[94].mxu0  ;;  %3981 = vmax.xlane.f32.xlu0 %v9962_v53  ;;  %v2530_v36 = vsub.f32 -inf, %v13059_v61  ;;  %v2593_v53 = vmul.f32 1.442695, %v2529_v42 }
 0x6ce   : > { %13056 = vst [vmem:[#allocation282_spill] sm:$0xff] %v10004_v14  ;;  %v10007_v0 = vpop.f32.mrb[95].mxu0  ;;  %v3617_v14 = vld [vmem:[#allocation3 + $0xf0] sm:$0xff]  ;;  %v2599_v35 = vmul.f32 1.442695, %v2532_v5  ;;  %7386 = vpow2.f32 %v2597_v23 }
 0x6cf   : > { %13057 = vst [vmem:[#allocation283_spill] sm:$0xff] %v10007_v0  ;;  %3983 = vmax.xlane.f32.xlu1 %v9967_v27  ;;  %6827 = vmatprep.subr.bf16.mxu1 %v3617_v14  ;;  %v2536_v27 = vsub.f32 -inf, %v13060_v60  ;;  %v2595_v21 = vmul.f32 1.442695, %v2530_v36  ;;  %v2605_v6 = vmul.f32 1.442695, %v2535_v29  ;;  %7388 = vpow2.f32 %v2593_v53 }
 0x6d0   : > { %6828 = vmatpush3.bf16.msra.mxu1 %v3617_v14  ;;  %v13062_v60 = vld [vmem:[#allocation85_spill] sm:$0xff]  ;;  %7390 = vpow2.f32 %v2599_v35  ;;  %v2537_v36 = vsub.f32 -inf, %v9299_v26  ;;  %v2603_v5 = vmul.f32 1.442695, %v2534_v33  ;;  %v2613_v23 = vmul.f32 1.442695, %v2539_v17 }
 0x6d1   : > { %4025 = vmax.xlane.f32.xlu0 %v9891_v10  ;;  %v2533_v10 = vsub.f32 -inf, %v13061_v28  ;;  %v2607_v42 = vmul.f32 1.442695, %v2536_v27  ;;  %v2540_v61 = vsub.f32 -inf, %v13062_v60  ;;  %7392 = vpow2.f32 %v2595_v21  ;;  %v13063_v29 = vld [vmem:[#allocation93_spill] sm:$0xff] }
 0x6d2   : > { %7394 = vpow2.f32 %v2605_v6  ;;  %v2543_v53 = vsub.f32 -inf, %v9315_v37  ;;  %v2541_v35 = vsub.f32 -inf, %v9327_v59  ;;  %v2542_v21 = vsub.f32 -inf, %v9335_v63  ;;  %v13122_v63 = vld [vmem:[#allocation142_spill] sm:$0xff]  ;;  %v13129_v26 = vld [vmem:[#allocation69_spill] sm:$0xff] }
 0x6d3   : > { %4027 = vmax.xlane.f32.xlu1 %v9896_v43  ;;  %v3618_v43 = vld [vmem:[#allocation3 + $0xf8] sm:$0xff]  ;;  %v2601_v14 = vmul.f32 1.442695, %v2533_v10  ;;  %7396 = vpow2.f32 %v2607_v42  ;;  %v2615_v27 = vmul.f32 1.442695, %v2540_v61  ;;  %v2548_v6 = vsub.f32 -inf, %v9345_v45 }
 0x6d4   : > { %6829 = vmatprep.subr.bf16.mxu1 %v3618_v43  ;;  %v2609_v10 = vmul.f32 1.442695, %v2537_v36  ;;  %v2621_v17 = vmul.f32 1.442695, %v2543_v53  ;;  %v13069_v45 = vld [vmem:[#allocation279_spill] sm:$0xff]  ;;  %v13124_v59 = vld [vmem:[#allocation166_spill] sm:$0xff] }
 0x6d5   : > { %4021 = vmax.xlane.f32.xlu0 %v9893_v38  ;;  %6830 = vmatpush3.bf16.msra.mxu1 %v3618_v43  ;;  %v2544_v38 = vsub.f32 -inf, %v13063_v29  ;;  %7398 = vpow2.f32 %v2601_v14  ;;  %v2547_v43 = vsub.f32 -inf, %v9343_v41  ;;  %v2617_v14 = vmul.f32 1.442695, %v2541_v35  ;;  %v13081_v29 = vld [vmem:[#allocation260_spill] sm:$0xff] }
 0x6d6   : > { %7400 = vpow2.f32 %v2603_v5  ;;  %v2619_v5 = vmul.f32 1.442695, %v2542_v21  ;;  %v2552_v35 = vsub.f32 -inf, %v9361_v55  ;;  %v13065_v55 = vld [vmem:[#allocation141_spill] sm:$0xff]  ;;  %v2586_v60 = vsub.f32 -inf, %v13129_v26 }
 0x6d7   : > { %4023 = vmax.xlane.f32.xlu1 %v9900_v9  ;;  %v2538_v9 = vsub.f32 -inf, %v9307_v34  ;;  %7402 = vpow2.f32 %v2613_v23  ;;  %v2623_v61 = vmul.f32 1.442695, %v2544_v38  ;;  %v2546_v23 = vsub.f32 -inf, %v9355_v52  ;;  %v13078_v52 = vld [vmem:[#allocation145_spill] sm:$0xff] }
 0x6d8   : > { %7404 = vpow2.f32 %v2615_v27  ;;  %v10037_v42 = vpop.eup %7386  ;;  %v2629_v38 = vmul.f32 1.442695, %v2547_v43  ;;  %v2551_v27 = vsub.f32 -inf, %v9359_v11  ;;  %v2550_v43 = vsub.f32 -inf, %v9379_v7  ;;  %v13066_v11 = vld [vmem:[#allocation256_spill] sm:$0xff] }
 0x6d9   : > { %3985 = vmax.xlane.f32.xlu0 %v9957_v48  ;;  %v2611_v33 = vmul.f32 1.442695, %v2538_v9  ;;  %7406 = vpow2.f32 %v2609_v10  ;;  %v2545_v9 = vsub.f32 -inf, %v9351_v46  ;;  %v10040_v36 = vpop.eup %7388  ;;  %v2631_v10 = vmul.f32 1.442695, %v2548_v6  ;;  %v13067_v7 = vld [vmem:[#allocation144_spill] sm:$0xff] }
 0x6da   : > { %v10044_v53 = vpop.eup %7390  ;;  %v2637_v6 = vmul.f32 1.442695, %v2551_v27  ;;  %v2554_v27 = vsub.f32 -inf, %v9407_v39 }
 0x6db   : > { %3987 = vmax.xlane.f32.xlu1 %v9964_v19  ;;  %7408 = vpow2.f32 %v2611_v33  ;;  %v2625_v21 = vmul.f32 1.442695, %v2545_v9  ;;  %v2556_v9 = vsub.f32 -inf, %v9389_v30 }
 0x6dc   : > { %7410 = vpow2.f32 %v2621_v17  ;;  %v2627_v17 = vmul.f32 1.442695, %v2546_v23 }
 0x6dd   : > { %3989 = vmax.xlane.f32.xlu0 %v9982_v16  ;;  %7412 = vpow2.f32 %v2623_v61 }
 0x6de   : > { %7414 = vpow2.f32 %v2617_v14  ;;  %v2639_v14 = vmul.f32 1.442695, %v2552_v35 }
 0x6df   : > { %3991 = vmax.xlane.f32.xlu1 %v9987_v4  ;;  %v13064_v4 = vld [vmem:[#allocation108_spill] sm:$0xff]  ;;  %7416 = vpow2.f32 %v2619_v5 }
 0x6e0   : > { %7418 = vpow2.f32 %v2629_v38  ;;  %v2635_v38 = vmul.f32 1.442695, %v2550_v43 }
 0x6e1   : > { %4033 = vmax.xlane.f32.xlu0 %v9911_v49  ;;  %v10047_v49 = vpop.eup %7392  ;;  %7420 = vpow2.f32 %v2631_v10 }
 0x6e2   : > { %v10051_v33 = vpop.eup %7394  ;;  %7422 = vpow2.f32 %v2625_v21  ;;  %v2558_v21 = vsub.f32 -inf, %v9421_v56 }
 0x6e3   : > { %4035 = vmax.xlane.f32.xlu1 %v9916_v57  ;;  %v2549_v57 = vsub.f32 -inf, %v13064_v4  ;;  %v10054_v16 = vpop.eup %7396  ;;  %7424 = vpow2.f32 %v2627_v17 }
 0x6e4   : > { %v10058_v61 = vpop.eup %7398  ;;  %7426 = vpow2.f32 %v2637_v6  ;;  %v2564_v6 = vsub.f32 -inf, %v9437_v13 }
 0x6e5   : > { %4029 = vmax.xlane.f32.xlu0 %v9913_v1  ;;  %v2555_v1 = vsub.f32 -inf, %v9387_v3  ;;  %v10061_v19 = vpop.eup %7400  ;;  %v2633_v23 = vmul.f32 1.442695, %v2549_v57  ;;  %7428 = vpow2.f32 %v2639_v14  ;;  %v2647_v57 = vmul.f32 1.442695, %v2556_v9 }
 0x6e6   : > { %v10065_v5 = vpop.eup %7402  ;;  %v2561_v9 = vsub.f32 -inf, %v9445_v62  ;;  %v13089_v62 = vld [vmem:[#allocation261_spill] sm:$0xff] }
 0x6e7   : > { %4031 = vmax.xlane.f32.xlu1 %v9920_v22  ;;  %v2553_v22 = vsub.f32 -inf, %v9399_v40  ;;  %v10068_v48 = vpop.eup %7404  ;;  %v2645_v35 = vmul.f32 1.442695, %v2555_v1  ;;  %7430 = vpow2.f32 %v2633_v23  ;;  %v2643_v1 = vmul.f32 1.442695, %v2554_v27 }
 0x6e8   : > { %v10072_v10 = vpop.eup %7406  ;;  %7432 = vpow2.f32 %v2635_v38  ;;  %v2651_v23 = vmul.f32 1.442695, %v2558_v21  ;;  %v2657_v39 = vmul.f32 1.442695, %v2561_v9  ;;  %v2566_v21 = vsub.f32 -inf, %v9477_v24  ;;  %v13072_v24 = vld [vmem:[#allocation282_spill] sm:$0xff] }
 0x6e9   : > { %3993 = vmax.xlane.f32.xlu0 %v9977_v44  ;;  %v2557_v44 = vsub.f32 -inf, %v9415_v31  ;;  %v10075_v30 = vpop.eup %7408  ;;  %v2641_v43 = vmul.f32 1.442695, %v2553_v22  ;;  %7434 = vpow2.f32 %v2645_v35  ;;  %v2562_v22 = vsub.f32 -inf, %v9459_v50  ;;  %v13084_v50 = vld [vmem:[#allocation262_spill] sm:$0xff] }
 0x6ea   : > { %v10079_v17 = vpop.eup %7410  ;;  %7436 = vpow2.f32 %v2647_v57  ;;  %v2663_v35 = vmul.f32 1.442695, %v2564_v6 }
 0x6eb   : > { %3995 = vmax.xlane.f32.xlu1 %v9984_v32  ;;  %v2563_v32 = vsub.f32 -inf, %v9435_v58  ;;  %v10082_v3 = vpop.eup %7412  ;;  %v2649_v56 = vmul.f32 1.442695, %v2557_v44  ;;  %7438 = vpow2.f32 %v2641_v43  ;;  %v2567_v44 = vsub.f32 -inf, %v9471_v15 }
 0x6ec   : > { %v10086_v14 = vpop.eup %7414  ;;  %7440 = vpow2.f32 %v2643_v1  ;;  %v2659_v43 = vmul.f32 1.442695, %v2562_v22 }
 0x6ed   : > { %3997 = vmax.xlane.f32.xlu0 %v10002_v18  ;;  %v10089_v18 = vpop.eup %7416  ;;  %v2661_v27 = vmul.f32 1.442695, %v2563_v32  ;;  %7442 = vpow2.f32 %v2649_v56  ;;  %v2565_v32 = vsub.f32 -inf, %v9481_v25  ;;  %v2669_v9 = vmul.f32 1.442695, %v2567_v44 }
 0x6ee   : > { %v10093_v38 = vpop.eup %7418  ;;  %7444 = vpow2.f32 %v2651_v23  ;;  %v2571_v56 = vsub.f32 -inf, %v13065_v55  ;;  %v2667_v23 = vmul.f32 1.442695, %v2566_v21  ;;  %v13070_v55 = vld [vmem:[#allocation148_spill] sm:$0xff]  ;;  %v13071_v21 = vld [vmem:[#allocation149_spill] sm:$0xff] }
 0x6ef   : > { %3999 = vmax.xlane.f32.xlu1 %v10007_v0  ;;  %v2568_v0 = vsub.f32 -inf, %v9467_v54  ;;  %v10096_v31 = vpop.eup %7420  ;;  %7446 = vpow2.f32 %v2661_v27  ;;  %v13068_v27 = vld [vmem:[#allocation147_spill] sm:$0xff] }
 0x6f0   : > { %v10100_v57 = vpop.eup %7422  ;;  %7448 = vpow2.f32 %v2663_v35  ;;  %v13075_v54 = vld [vmem:[#allocation143_spill] sm:$0xff] }
 0x6f1   : > { %4041 = vmax.xlane.f32.xlu0 %v9930_v12  ;;  %v10103_v12 = vpop.eup %7424  ;;  %v2671_v6 = vmul.f32 1.442695, %v2568_v0  ;;  %7450 = vpow2.f32 %v2657_v39  ;;  %v2665_v0 = vmul.f32 1.442695, %v2565_v32  ;;  %v2677_v39 = vmul.f32 1.442695, %v2571_v56 }
 0x6f2   : > { %v10107_v1 = vpop.eup %7426  ;;  %7452 = vpow2.f32 %v2659_v43 }
 0x6f3   : > { %4043 = vmax.xlane.f32.xlu1 %v9935_v20  ;;  %v2572_v20 = vsub.f32 -inf, %v9485_v2  ;;  %v10110_v40 = vpop.eup %7428  ;;  %v2569_v2 = vsub.f32 -inf, %v13068_v27  ;;  %7454 = vpow2.f32 %v2671_v6  ;;  %v13073_v27 = vld [vmem:[#allocation152_spill] sm:$0xff]  ;;  %v13074_v6 = vld [vmem:[#allocation155_spill] sm:$0xff] }
 0x6f4   : > { %v10114_v22 = vpop.eup %7430  ;;  %7456 = vpow2.f32 %v2669_v9 }
 0x6f5   : > { %4037 = vmax.xlane.f32.xlu0 %v9933_v8  ;;  %v2570_v8 = vsub.f32 -inf, %v13067_v7  ;;  %v10117_v4 = vpop.eup %7432  ;;  %v2679_v44 = vmul.f32 1.442695, %v2572_v20  ;;  %v2575_v7 = vsub.f32 -inf, %v13071_v21  ;;  %7458 = vpow2.f32 %v2667_v23  ;;  %v13076_v21 = vld [vmem:[#allocation156_spill] sm:$0xff]  ;;  %v13077_v23 = vld [vmem:[#allocation157_spill] sm:$0xff] }
 0x6f6   : > { %v10121_v35 = vpop.eup %7434  ;;  %7460 = vpow2.f32 %v2665_v0  ;;  %v2673_v20 = vmul.f32 1.442695, %v2569_v2 }
 0x6f7   : > { %4039 = vmax.xlane.f32.xlu1 %v13066_v11  ;;  %v2576_v11 = vsub.f32 -inf, %v13070_v55  ;;  %v10124_v41 = vpop.eup %7436  ;;  %v2675_v32 = vmul.f32 1.442695, %v2570_v8  ;;  %v2573_v55 = vsub.f32 -inf, %v13074_v6  ;;  %7462 = vpow2.f32 %v2679_v44  ;;  %v13079_v6 = vld [vmem:[#allocation61_spill] sm:$0xff] }
 0x6f8   : > { %v10128_v43 = vpop.eup %7438  ;;  %7464 = vpow2.f32 %v2677_v39  ;;  %v2685_v8 = vmul.f32 1.442695, %v2575_v7  ;;  %v13080_v44 = vld [vmem:[#allocation161_spill] sm:$0xff] }
 0x6f9   : > { %4001 = vmax.xlane.f32.xlu0 %v13069_v45  ;;  %v2574_v45 = vsub.f32 -inf, %v13073_v27  ;;  %v10131_v25 = vpop.eup %7440  ;;  %v2687_v56 = vmul.f32 1.442695, %v2576_v11  ;;  %v2579_v27 = vsub.f32 -inf, %v13077_v23  ;;  %7466 = vpow2.f32 %v2675_v32  ;;  %v13082_v23 = vld [vmem:[#allocation60_spill] sm:$0xff]  ;;  %v13083_v32 = vld [vmem:[#allocation162_spill] sm:$0xff] }
 0x6fa   : > { %v10135_v9 = vpop.eup %7442  ;;  %7468 = vpow2.f32 %v2673_v20  ;;  %v2681_v11 = vmul.f32 1.442695, %v2573_v55  ;;  %v10159_v55 = vmul.f32 0.0, %v10037_v42  ;;  %v10172_v42 = vmul.f32 0.0, %v10044_v53 }
 0x6fb   : > { %4003 = vmax.xlane.f32.xlu1 %v13072_v24  ;;  %v2580_v24 = vsub.f32 -inf, %v13076_v21  ;;  %v10138_v15 = vpop.eup %7444  ;;  %v2683_v2 = vmul.f32 1.442695, %v2574_v45  ;;  %v2577_v21 = vsub.f32 -inf, %v13080_v44  ;;  %7470 = vpow2.f32 %v2687_v56  ;;  %v13086_v44 = vld [vmem:[#allocation176_spill] sm:$0xff] }
 0x6fc   : > { %v10142_v0 = vpop.eup %7446  ;;  %7472 = vpow2.f32 %v2685_v8  ;;  %v2693_v45 = vmul.f32 1.442695, %v2579_v27  ;;  %13085 = vst [vmem:[#allocation143_spill] sm:$0xff] %v10159_v55  ;;  %v2560_v56 = vsub.f32 -inf, %v13086_v44  ;;  %v13088_v8 = vld [vmem:[#allocation177_spill] sm:$0xff]  ;;  %13090 = vst [vmem:[#allocation284_spill] sm:$0xff] %v10172_v42 }
 0x6fd   : > { %3041 = vadd.xlane.f32.xlu0 %v13075_v54  ;;  %v2578_v54 = vsub.f32 -inf, %v13079_v6  ;;  %v10145_v46 = vpop.eup %7448  ;;  %v2695_v7 = vmul.f32 1.442695, %v2580_v24  ;;  %v2583_v6 = vsub.f32 -inf, %v13083_v32  ;;  %7474 = vpow2.f32 %v2683_v2 }
 0x6fe   : > { %v10149_v39 = vpop.eup %7450  ;;  %7476 = vpow2.f32 %v2681_v11  ;;  %v2689_v27 = vmul.f32 1.442695, %v2577_v21  ;;  %v2559_v32 = vsub.f32 -inf, %v13088_v8  ;;  %v10175_v2 = vmul.f32 0.0, %v10047_v49 }
 0x6ff   : > { %3043 = vadd.xlane.f32.xlu1 %v13078_v52  ;;  %v2584_v52 = vsub.f32 -inf, %v13082_v23  ;;  %v10152_v37 = vpop.eup %7452  ;;  %v10165_v23 = vmul.f32 0.0, %v10040_v36  ;;  %7478 = vpow2.f32 %v2695_v7  ;;  %v10180_v36 = vmul.f32 0.0, %v10051_v33 }
 0x700   : > { %v10156_v20 = vpop.eup %7454  ;;  %13091 = vst [vmem:[#allocation285_spill] sm:$0xff] %v10175_v2  ;;  %v10183_v21 = vmul.f32 0.0, %v10054_v16  ;;  %7480 = vpow2.f32 %v2693_v45  ;;  %v2701_v11 = vmul.f32 1.442695, %v2583_v6  ;;  %v10189_v53 = vmul.f32 0.0, %v10058_v61  ;;  %v13099_v45 = vld [vmem:[#allocation79_spill] sm:$0xff] }
 0x701   : > { %4049 = vmax.xlane.f32.xlu0 %v13081_v29  ;;  %v2691_v29 = vmul.f32 1.442695, %v2578_v54  ;;  %v10162_v24 = vpop.eup %7456  ;;  %13087 = vst [vmem:[#allocation145_spill] sm:$0xff] %v10165_v23  ;;  %v2703_v54 = vmul.f32 1.442695, %v2584_v52  ;;  %13092 = vst [vmem:[#allocation286_spill] sm:$0xff] %v10180_v36 }
 0x702   : > { %13093 = vst [vmem:[#allocation287_spill] sm:$0xff] %v10183_v21  ;;  %13095 = vst [vmem:[#allocation288_spill] sm:$0xff] %v10189_v53  ;;  %v10192_v49 = vmul.f32 0.0, %v10061_v19  ;;  %v2655_v7 = vmul.f32 1.442695, %v2560_v56  ;;  %v10195_v33 = vmul.f32 0.0, %v10065_v5 }
 0x703   : > { %4051 = vmax.xlane.f32.xlu1 %v13084_v50  ;;  %v10169_v50 = vpop.eup %7458  ;;  %7482 = vpow2.f32 %v2691_v29  ;;  %v10198_v16 = vmul.f32 0.0, %v10068_v48  ;;  %v2653_v6 = vmul.f32 1.442695, %v2559_v32  ;;  %v10202_v61 = vmul.f32 0.0, %v10072_v10  ;;  %v13106_v10 = vld [vmem:[#allocation82_spill] sm:$0xff] }
 0x704   : > { %v10177_v44 = vpop.eup %7460  ;;  %13096 = vst [vmem:[#allocation289_spill] sm:$0xff] %v10192_v49  ;;  %13097 = vst [vmem:[#allocation290_spill] sm:$0xff] %v10195_v33  ;;  %7484 = vpow2.f32 %v2689_v27  ;;  %v10205_v19 = vmul.f32 0.0, %v10075_v30  ;;  %v10208_v29 = vmul.f32 0.0, %v10079_v17  ;;  %v10211_v56 = vmul.f32 0.0, %v10086_v14 }
 0x705   : > { %4045 = vmax.xlane.f32.xlu0 %v13089_v62  ;;  %v13094_v62 = vld [vmem:[#allocation264_spill] sm:$0xff]  ;;  %v10186_v8 = vpop.eup %7462  ;;  %13098 = vst [vmem:[#allocation291_spill] sm:$0xff] %v10198_v16  ;;  %13100 = vst [vmem:[#allocation79_spill] sm:$0xff] %v10202_v61  ;;  %7486 = vpow2.f32 %v2703_v54  ;;  %v10214_v48 = vmul.f32 0.0, %v10082_v3  ;;  %v10217_v32 = vmul.f32 0.0, %v10089_v18  ;;  %v10221_v30 = vmul.f32 0.0, %v10093_v38 }
 0x706   : > { %v7465_v52 = vpop.eup %7464  ;;  %13101 = vst [vmem:[#allocation292_spill] sm:$0xff] %v10205_v19  ;;  %13102 = vst [vmem:[#allocation293_spill] sm:$0xff] %v10208_v29  ;;  %7488 = vpow2.f32 %v2701_v11  ;;  %v10224_v17 = vmul.f32 0.0, %v10100_v57  ;;  %v10227_v54 = vmul.f32 0.0, %v10096_v31  ;;  %v10230_v3 = vmul.f32 0.0, %v10103_v12  ;;  %v13112_v11 = vld [vmem:[#allocation65_spill] sm:$0xff] }
 0x707   : > { %4047 = vmax.xlane.f32.xlu1 %v13094_v62  ;;  %v7467_v62 = vpop.eup %7466  ;;  %13103 = vst [vmem:[#allocation294_spill] sm:$0xff] %v10211_v56  ;;  %13104 = vst [vmem:[#allocation295_spill] sm:$0xff] %v10214_v48  ;;  %7490 = vpow2.f32 %v2655_v7  ;;  %v10233_v18 = vmul.f32 0.0, %v10107_v1  ;;  %v10238_v57 = vmul.f32 0.0, %v10114_v22  ;;  %v10241_v31 = vmul.f32 0.0, %v10110_v40  ;;  %v13117_v12 = vld [vmem:[#allocation165_spill] sm:$0xff] }
 0x708   : > { %v7469_v5 = vpop.eup %7468  ;;  %13105 = vst [vmem:[#allocation296_spill] sm:$0xff] %v10217_v32  ;;  %13107 = vst [vmem:[#allocation82_spill] sm:$0xff] %v10221_v30  ;;  %7492 = vpow2.f32 %v2653_v6  ;;  %v10244_v7 = vmul.f32 0.0, %v10117_v4  ;;  %v2581_v13 = vsub.f32 -inf, %v13117_v12  ;;  %v10248_v1 = vmul.f32 0.0, %v10121_v35  ;;  %v13121_v22 = vld [vmem:[#allocation64_spill] sm:$0xff] }
 0x709   : > { %2977 = vadd.xlane.f32.xlu0 %v13099_v45  ;;  %v7471_v27 = vpop.eup %7470  ;;  %13108 = vst [vmem:[#allocation297_spill] sm:$0xff] %v10224_v17  ;;  %13109 = vst [vmem:[#allocation298_spill] sm:$0xff] %v10227_v54  ;;  %v2582_v45 = vsub.f32 -inf, %v13112_v11  ;;  %v10251_v6 = vmul.f32 0.0, %v10128_v43  ;;  %v2588_v11 = vsub.f32 -inf, %v13121_v22  ;;  %v10259_v4 = vmul.f32 0.0, %v10131_v25 }
 0x70a   : > { %v7473_v14 = vpop.eup %7472  ;;  %13110 = vst [vmem:[#allocation299_spill] sm:$0xff] %v10230_v3  ;;  %13111 = vst [vmem:[#allocation300_spill] sm:$0xff] %v10233_v18  ;;  %v2587_v12 = vsub.f32 -inf, %v13124_v59  ;;  %v10263_v34 = vmul.f32 0.0, %v10135_v9  ;;  %v10266_v35 = vmul.f32 0.0, %v10138_v15  ;;  %v10272_v22 = vmul.f32 0.0, %v10145_v46 }
 0x70b   : > { %2979 = vadd.xlane.f32.xlu1 %v13106_v10  ;;  %v13113_v10 = vld [vmem:[#allocation146_spill] sm:$0xff]  ;;  %v7475_v38 = vpop.eup %7474  ;;  %13115 = vst [vmem:[#allocation301_spill] sm:$0xff] %v10241_v31  ;;  %13116 = vst [vmem:[#allocation302_spill] sm:$0xff] %v10244_v7  ;;  %v13130_v25 = vld [vmem:[#allocation268_spill] sm:$0xff]  ;;  %v10277_v59 = vmul.f32 0.0, %v10149_v39  ;;  %v10280_v9 = vmul.f32 0.0, %v10152_v37 }
 0x70c   : > { %13114 = vst [vmem:[#allocation146_spill] sm:$0xff] %v10238_v57  ;;  %v7477_v58 = vpop.eup %7476  ;;  %13118 = vst [vmem:[#allocation303_spill] sm:$0xff] %v10248_v1  ;;  %v10283_v15 = vmul.f32 0.0, %v10156_v20  ;;  %v10286_v46 = vmul.f32 0.0, %v10162_v24  ;;  %v10292_v26 = vmul.f32 0.0, %v10169_v50  ;;  %v13135_v39 = vld [vmem:[#allocation270_spill] sm:$0xff] }
 0x70d   : > { %3045 = vadd.xlane.f32.xlu0 %v13113_v10  ;;  %13119 = vst [vmem:[#allocation304_spill] sm:$0xff] %v10251_v6  ;;  %v10254_v10 = vmul.f32 0.0, %v10124_v41  ;;  %v7479_v40 = vpop.eup %7478  ;;  %13123 = vst [vmem:[#allocation142_spill] sm:$0xff] %v10259_v4  ;;  %v10269_v41 = vmul.f32 0.0, %v10142_v0  ;;  %v2697_v0 = vmul.f32 1.442695, %v2581_v13 }
 0x70e   : > { %13125 = vst [vmem:[#allocation306_spill] sm:$0xff] %v10263_v34  ;;  %13126 = vst [vmem:[#allocation307_spill] sm:$0xff] %v10266_v35  ;;  %v7481_v43 = vpop.eup %7480  ;;  %v10295_v37 = vmul.f32 0.0, %v7465_v52  ;;  %v10298_v20 = vmul.f32 0.0, %v10186_v8  ;;  %v10300_v13 = vmul.f32 0.0, %v7467_v62  ;;  %v10302_v28 = vmul.f32 0.0, %v7469_v5 }
 0x70f   : > { %13120 = vst [vmem:[#allocation305_spill] sm:$0xff] %v10254_v10  ;;  %3047 = vadd.xlane.f32.xlu1 %v13122_v63  ;;  %13127 = vst [vmem:[#allocation308_spill] sm:$0xff] %v10269_v41  ;;  %v2699_v63 = vmul.f32 1.442695, %v2582_v45  ;;  %v7483_v47 = vpop.eup %7482  ;;  %v10289_v45 = vmul.f32 0.0, %v10177_v44  ;;  %v13140_v44 = vld [vmem:[#allocation169_spill] sm:$0xff] }
 0x710   : > { %13128 = vst [vmem:[#allocation309_spill] sm:$0xff] %v10272_v22  ;;  %13131 = vst [vmem:[#allocation310_spill] sm:$0xff] %v10283_v15  ;;  %v7485_v35 = vpop.eup %7484  ;;  %v2709_v51 = vmul.f32 1.442695, %v2587_v12  ;;  %v2585_v15 = vsub.f32 -inf, %v13140_v44  ;;  %v10308_v52 = vmul.f32 0.0, %v7471_v27 }
 0x711   : > { %4057 = vmax.xlane.f32.xlu0 %v13130_v25  ;;  %13132 = vst [vmem:[#allocation311_spill] sm:$0xff] %v10286_v46  ;;  %13133 = vst [vmem:[#allocation312_spill] sm:$0xff] %v10289_v45  ;;  %v2711_v25 = vmul.f32 1.442695, %v2588_v11  ;;  %v7487_v34 = vpop.eup %7486  ;;  %7494 = vpow2.f32 %v2699_v63  ;;  %v2707_v50 = vmul.f32 1.442695, %v2586_v60 }
 0x712   : > { %13134 = vst [vmem:[#allocation313_spill] sm:$0xff] %v10292_v26  ;;  %13136 = vst [vmem:[#allocation314_spill] sm:$0xff] %v10295_v37  ;;  %v7489_v24 = vpop.eup %7488  ;;  %v13141_v26 = vld [vmem:[#allocation269_spill] sm:$0xff]  ;;  %v10310_v37 = vmul.f32 0.0, %v7475_v38  ;;  %7496 = vpow2.f32 %v2697_v0  ;;  %v10312_v8 = vmul.f32 0.0, %v7477_v58  ;;  %v10314_v12 = vmul.f32 0.0, %v7481_v43 }
 0x713   : > { %4059 = vmax.xlane.f32.xlu1 %v13135_v39  ;;  %13137 = vst [vmem:[#allocation315_spill] sm:$0xff] %v10298_v20  ;;  %13138 = vst [vmem:[#allocation316_spill] sm:$0xff] %v10300_v13  ;;  %v7491_v11 = vpop.eup %7490  ;;  %v10306_v39 = vmul.f32 0.0, %v7473_v14  ;;  %v10316_v5 = vmul.f32 0.0, %v7479_v40  ;;  %7498 = vpow2.f32 %v2711_v25  ;;  %v13148_v63 = vld [vmem:[#allocation272_spill] sm:$0xff]  ;;  %v10319_v60 = vmul.f32 0.0, %v7485_v35 }
 0x714   : > { %13139 = vst [vmem:[#allocation317_spill] sm:$0xff] %v10302_v28  ;;  %13143 = vst [vmem:[#allocation319_spill] sm:$0xff] %v10308_v52  ;;  %v7493_v62 = vpop.eup %7492  ;;  %v10323_v14 = vmul.f32 0.0, %v7487_v34  ;;  %7500 = vpow2.f32 %v2709_v51  ;;  %v10325_v27 = vmul.f32 0.0, %v7489_v24  ;;  %v10327_v38 = vmul.f32 1.442695, %v2585_v15 }
 0x715   : > { %4053 = vmax.xlane.f32.xlu0 %v13141_v26  ;;  %13142 = vst [vmem:[#allocation318_spill] sm:$0xff] %v10306_v39  ;;  %13144 = vst [vmem:[#allocation320_spill] sm:$0xff] %v10310_v37  ;;  %v10321_v26 = vmul.f32 0.0, %v7483_v47  ;;  %7502 = vpow2.f32 %v2707_v50  ;;  %v13155_v0 = vld [vmem:[#allocation83_spill] sm:$0xff]  ;;  %v13156_v40 = vld [vmem:[#allocation30_spill] sm:$0xff]  ;;  %v10339_v34 = vmul.f32 0.0, %v7493_v62 }
 0x716   : > { %13145 = vst [vmem:[#allocation321_spill] sm:$0xff] %v10312_v8  ;;  %13146 = vst [vmem:[#allocation322_spill] sm:$0xff] %v10314_v12  ;;  %v10333_v25 = vadd.f32 %v13156_v40, %v10159_v55  ;;  %v13157_v35 = vld [vmem:[#allocation28_spill] sm:$0xff]  ;;  %v10341_v51 = vmul.f32 0.0, %v7491_v11  ;;  %v13160_v15 = vld [vmem:[#allocation34_spill] sm:$0xff] }
 0x717   : > { %13147 = vst [vmem:[#allocation323_spill] sm:$0xff] %v10316_v5  ;;  %4055 = vmax.xlane.f32.xlu1 %v13148_v63  ;;  %13149 = vst [vmem:[#allocation324_spill] sm:$0xff] %v10319_v60  ;;  %v10337_v47 = vadd.f32 %v13157_v35, %v10165_v23  ;;  %v10345_v24 = vadd.f32 %v13160_v15, %v10172_v42  ;;  %v13161_v50 = vld [vmem:[#allocation38_spill] sm:$0xff]  ;;  %v13163_v58 = vld [vmem:[#allocation36_spill] sm:$0xff] }
 0x718   : > { %13150 = vst [vmem:[#allocation325_spill] sm:$0xff] %v10321_v26  ;;  %13151 = vst [vmem:[#allocation326_spill] sm:$0xff] %v10323_v14  ;;  %v10349_v43 = vadd.f32 %v13161_v50, %v10175_v2  ;;  %v10357_v35 = vadd.f32 %v13163_v58, %v10189_v53  ;;  %v13164_v62 = vld [vmem:[#allocation81_spill] sm:$0xff]  ;;  %v13165_v11 = vld [vmem:[#allocation42_spill] sm:$0xff] }
 0x719   : > { %13152 = vst [vmem:[#allocation327_spill] sm:$0xff] %v10325_v27  ;;  %13153 = vst [vmem:[#allocation328_spill] sm:$0xff] %v10327_v38  ;;  %2981 = vadd.xlane.f32.xlu0 %v13155_v0  ;;  %v13162_v0 = vld [vmem:[#allocation32_spill] sm:$0xff]  ;;  %v10362_v55 = vadd.f32 %v13165_v11, %v10183_v21  ;;  %v13166_v15 = vld [vmem:[#allocation46_spill] sm:$0xff] }
 0x71a   : > { %13158 = vst [vmem:[#allocation83_spill] sm:$0xff] %v10339_v34  ;;  %13159 = vst [vmem:[#allocation30_spill] sm:$0xff] %v10341_v51  ;;  %v10353_v40 = vadd.f32 %v13162_v0, %v10180_v36  ;;  %v10366_v42 = vadd.f32 %v13166_v15, %v10192_v49  ;;  %v13167_v50 = vld [vmem:[#allocation40_spill] sm:$0xff]  ;;  %v13169_v58 = vld [vmem:[#allocation50_spill] sm:$0xff] }
 0x71b   : > { %2983 = vadd.xlane.f32.xlu1 %v13164_v62  ;;  %v10370_v63 = vadd.f32 %v13167_v50, %v10195_v33  ;;  %v13168_v0 = vld [vmem:[#allocation44_spill] sm:$0xff]  ;;  %v10378_v53 = vadd.f32 %v13169_v58, %v10198_v16  ;;  %v13170_v62 = vld [vmem:[#allocation54_spill] sm:$0xff]  ;;  %v13173_v33 = vld [vmem:[#allocation153_spill] sm:$0xff] }
 0x71c   : > { %v10374_v36 = vadd.f32 %v13168_v0, %v10202_v61  ;;  %v10382_v11 = vadd.f32 %v13170_v62, %v10205_v19  ;;  %v13171_v21 = vld [vmem:[#allocation48_spill] sm:$0xff]  ;;  %v13174_v0 = vld [vmem:[#allocation58_spill] sm:$0xff]  ;;  %v13175_v58 = vld [vmem:[#allocation31_spill] sm:$0xff] }
 0x71d   : > { %v10386_v15 = vadd.f32 %v13171_v21, %v10208_v29  ;;  %v13172_v49 = vld [vmem:[#allocation52_spill] sm:$0xff]  ;;  %3049 = vadd.xlane.f32.xlu0 %v13173_v33  ;;  %v10395_v61 = vadd.f32 %v13174_v0, %v10214_v48  ;;  %v10399_v16 = vadd.f32 %v13175_v58, %v10217_v32  ;;  %v13177_v21 = vld [vmem:[#allocation29_spill] sm:$0xff]  ;;  %v13179_v33 = vld [vmem:[#allocation35_spill] sm:$0xff] }
 0x71e   : > { %v10390_v50 = vadd.f32 %v13172_v49, %v10211_v56  ;;  %v13176_v62 = vld [vmem:[#allocation56_spill] sm:$0xff]  ;;  %v10407_v29 = vadd.f32 %v13177_v21, %v10224_v17  ;;  %v10409_v49 = vpop.eup %7494  ;;  %v10413_v56 = vadd.f32 %v13179_v33, %v10227_v54  ;;  %v13180_v0 = vld [vmem:[#allocation39_spill] sm:$0xff]  ;;  %v13181_v58 = vld [vmem:[#allocation33_spill] sm:$0xff] }
 0x71f   : > { %v10403_v19 = vadd.f32 %v13176_v62, %v10221_v30  ;;  %13178 = vst [vmem:[#allocation28_spill] sm:$0xff] %v10409_v49  ;;  %v10417_v48 = vadd.f32 %v13180_v0, %v10230_v3  ;;  %v10421_v32 = vadd.f32 %v13181_v58, %v10233_v18  ;;  %v13183_v62 = vld [vmem:[#allocation37_spill] sm:$0xff]  ;;  %v13185_v21 = vld [vmem:[#allocation151_spill] sm:$0xff]  ;;  %v10428_v17 = vpop.eup %7496  ;;  %v13207_v38 = vld [vmem:[#allocation72_spill] sm:$0xff] }
 0x720   : > { %v10425_v30 = vadd.f32 %v13183_v62, %v10238_v57  ;;  %3051 = vadd.xlane.f32.xlu1 %v13185_v21  ;;  %13186 = vst [vmem:[#allocation32_spill] sm:$0xff] %v10428_v17  ;;  %v13187_v44 = vld [vmem:[#allocation43_spill] sm:$0xff]  ;;  %v13191_v3 = vld [vmem:[#allocation41_spill] sm:$0xff]  ;;  %v10446_v57 = vpop.eup %7498 }
 0x721   : > { %13182 = vst [vmem:[#allocation34_spill] sm:$0xff] %v10421_v32  ;;  %v10432_v33 = vadd.f32 %v13187_v44, %v10241_v31  ;;  %v13189_v54 = vld [vmem:[#allocation47_spill] sm:$0xff]  ;;  %v10440_v58 = vadd.f32 %v13191_v3, %v10248_v1  ;;  %v13193_v18 = vld [vmem:[#allocation45_spill] sm:$0xff]  ;;  %13195 = vst [vmem:[#allocation40_spill] sm:$0xff] %v10446_v57  ;;  %v10465_v57 = vpop.eup %7500 }
 0x722   : > { %13184 = vst [vmem:[#allocation38_spill] sm:$0xff] %v10425_v30  ;;  %v10436_v0 = vadd.f32 %v13189_v54, %v10244_v7  ;;  %v10444_v62 = vadd.f32 %v13193_v18, %v10251_v6  ;;  %v13196_v21 = vld [vmem:[#allocation51_spill] sm:$0xff]  ;;  %v13200_v54 = vld [vmem:[#allocation49_spill] sm:$0xff]  ;;  %v3946_v18 = vpop.xlane.xlu0 %3945  ;;  %v13202_v6 = vld [vmem:[#allocation276_spill] sm:$0xff]  ;;  %v10480_v14 = vpop.eup %7502 }
 0x723   : > { %13188 = vst [vmem:[#allocation36_spill] sm:$0xff] %v10432_v33  ;;  %13192 = vst [vmem:[#allocation42_spill] sm:$0xff] %v10440_v58  ;;  %v10450_v49 = vadd.f32 %v13196_v21, %v10254_v10  ;;  %v13198_v44 = vld [vmem:[#allocation55_spill] sm:$0xff]  ;;  %v10458_v7 = vadd.f32 %v13200_v54, %v10269_v41  ;;  %v13201_v3 = vld [vmem:[#allocation53_spill] sm:$0xff]  ;;  %4065 = vmax.xlane.f32.xlu0 %v13202_v6 }
 0x724   : > { %13190 = vst [vmem:[#allocation81_spill] sm:$0xff] %v10436_v0  ;;  %13194 = vst [vmem:[#allocation46_spill] sm:$0xff] %v10444_v62  ;;  %v10454_v31 = vadd.f32 %v13198_v44, %v10259_v4  ;;  %v10462_v1 = vadd.f32 %v13201_v3, %v10277_v59  ;;  %v13204_v21 = vld [vmem:[#allocation59_spill] sm:$0xff]  ;;  %v13205_v44 = vld [vmem:[#allocation57_spill] sm:$0xff]  ;;  %v4071_v3 = vmax.f32 %v13207_v38, %v3946_v18 }
 0x725   : > { %13197 = vst [vmem:[#allocation44_spill] sm:$0xff] %v10450_v49  ;;  %13203 = vst [vmem:[#allocation54_spill] sm:$0xff] %v10465_v57  ;;  %v10469_v10 = vadd.f32 %v13204_v21, %v10272_v22  ;;  %v10473_v4 = vadd.f32 %v13205_v44, %v10280_v9  ;;  %v13206_v54 = vld [vmem:[#allocation188_spill] sm:$0xff]  ;;  %v13209_v6 = vld [vmem:[#allocation189_spill] sm:$0xff] }
 0x726   : > { %13199 = vst [vmem:[#allocation50_spill] sm:$0xff] %v10454_v31  ;;  %v10477_v17 = vadd.f32 %v13206_v54, %v10286_v46  ;;  %13208 = vst [vmem:[#allocation48_spill] sm:$0xff] %v10480_v14  ;;  %v10484_v31 = vadd.f32 %v13209_v6, %v10289_v45  ;;  %v13210_v57 = vld [vmem:[#allocation310_spill] sm:$0xff]  ;;  %v13212_v22 = vld [vmem:[#allocation313_spill] sm:$0xff]  ;;  %v3948_v46 = vpop.xlane.xlu1 %3947  ;;  %v4135_v6 = vsub.f32 %v13207_v38, %v4071_v3  ;;  %v3942_v38 = vpop.xlane.xlu0 %3941 }
 0x727   : > { %v13211_v49 = vld [vmem:[#allocation190_spill] sm:$0xff]  ;;  %v13213_v62 = vld [vmem:[#allocation191_spill] sm:$0xff]  ;;  %v13215_v58 = vld [vmem:[#allocation192_spill] sm:$0xff] }
 0x728   : > { %v10488_v21 = vadd.f32 %v13211_v49, %v13210_v57  ;;  %v10492_v44 = vadd.f32 %v13213_v62, %v13212_v22  ;;  %v13214_v41 = vld [vmem:[#allocation314_spill] sm:$0xff]  ;;  %v13218_v14 = vld [vmem:[#allocation193_spill] sm:$0xff]  ;;  %v13220_v45 = vld [vmem:[#allocation223_spill] sm:$0xff] }
 0x729   : > { %v10496_v54 = vadd.f32 %v13215_v58, %v13214_v41  ;;  %v13217_v18 = vld [vmem:[#allocation278_spill] sm:$0xff]  ;;  %v10501_v2 = vadd.f32 %v13218_v14, %v10302_v28  ;;  %v4327_v49 = vsub.f32 %v13220_v45, %v4071_v3  ;;  %v13224_v58 = vld [vmem:[#allocation195_spill] sm:$0xff]  ;;  %v13228_v14 = vld [vmem:[#allocation197_spill] sm:$0xff] }
 0x72a   : > { %4067 = vmax.xlane.f32.xlu1 %v13217_v18  ;;  %v13221_v57 = vld [vmem:[#allocation74_spill] sm:$0xff]  ;;  %v10512_v41 = vadd.f32 %v13224_v58, %v10300_v13  ;;  %v13226_v18 = vld [vmem:[#allocation196_spill] sm:$0xff]  ;;  %v10520_v28 = vadd.f32 %v13228_v14, %v10312_v8  ;;  %v13230_v45 = vld [vmem:[#allocation277_spill] sm:$0xff] }
 0x72b   : > { %13216 = vst [vmem:[#allocation52_spill] sm:$0xff] %v10496_v54  ;;  %13219 = vst [vmem:[#allocation153_spill] sm:$0xff] %v10501_v2  ;;  %v4072_v23 = vmax.f32 %v13221_v57, %v3948_v46  ;;  %v13222_v62 = vld [vmem:[#allocation194_spill] sm:$0xff]  ;;  %v10516_v0 = vadd.f32 %v13226_v18, %v10306_v39  ;;  %4061 = vmax.xlane.f32.xlu0 %v13230_v45  ;;  %v4201_v46 = vmul.f32 1.442695, %v4135_v6  ;;  %v13234_v18 = vld [vmem:[#allocation199_spill] sm:$0xff]  ;;  %v3944_v6 = vpop.xlane.xlu1 %3943 }
 0x72c   : > { %v10508_v22 = vadd.f32 %v13222_v62, %v10298_v20  ;;  %13225 = vst [vmem:[#allocation31_spill] sm:$0xff] %v10512_v41  ;;  %13229 = vst [vmem:[#allocation29_spill] sm:$0xff] %v10520_v28  ;;  %v4393_v3 = vmul.f32 1.442695, %v4327_v49  ;;  %v13231_v20 = vld [vmem:[#allocation226_spill] sm:$0xff]  ;;  %v10531_v39 = vadd.f32 %v13234_v18, %v10310_v37  ;;  %v13236_v14 = vld [vmem:[#allocation200_spill] sm:$0xff] }
 0x72d   : > { %13227 = vst [vmem:[#allocation56_spill] sm:$0xff] %v10516_v0  ;;  %v4136_v62 = vsub.f32 %v13221_v57, %v4072_v23  ;;  %v4328_v33 = vsub.f32 %v13231_v20, %v4072_v23  ;;  %v13232_v58 = vld [vmem:[#allocation198_spill] sm:$0xff]  ;;  %v10535_v8 = vadd.f32 %v13236_v14, %v10314_v12  ;;  %v13238_v28 = vld [vmem:[#allocation71_spill] sm:$0xff]  ;;  %v13239_v49 = vld [vmem:[#allocation280_spill] sm:$0xff]  ;;  %7504 = vpow2.f32 %v4201_v46  ;;  %v3954_v12 = vpop.xlane.xlu0 %3953 }
 0x72e   : > { %13223 = vst [vmem:[#allocation58_spill] sm:$0xff] %v10508_v22  ;;  %v10527_v13 = vadd.f32 %v13232_v58, %v10308_v52  ;;  %13235 = vst [vmem:[#allocation39_spill] sm:$0xff] %v10531_v39  ;;  %v4069_v45 = vmax.f32 %v13238_v28, %v3942_v38  ;;  %4063 = vmax.xlane.f32.xlu1 %v13239_v49  ;;  %v13240_v20 = vld [vmem:[#allocation75_spill] sm:$0xff]  ;;  %v13241_v58 = vld [vmem:[#allocation201_spill] sm:$0xff]  ;;  %7506 = vpow2.f32 %v4393_v3 }
 0x72f   : > { %13237 = vst [vmem:[#allocation33_spill] sm:$0xff] %v10535_v8  ;;  %v4203_v57 = vmul.f32 1.442695, %v4136_v62  ;;  %v4395_v23 = vmul.f32 1.442695, %v4328_v33  ;;  %v4070_v0 = vmax.f32 %v13240_v20, %v3944_v6  ;;  %v10542_v52 = vadd.f32 %v13241_v58, %v10319_v60  ;;  %v13243_v37 = vld [vmem:[#allocation225_spill] sm:$0xff] }
 0x730   : > { %13233 = vst [vmem:[#allocation35_spill] sm:$0xff] %v10527_v13  ;;  %v4133_v18 = vsub.f32 %v13238_v28, %v4069_v45  ;;  %v4325_v14 = vsub.f32 %v13243_v37, %v4069_v45  ;;  %v13244_v8 = vld [vmem:[#allocation87_spill] sm:$0xff]  ;;  %v13246_v33 = vld [vmem:[#allocation76_spill] sm:$0xff]  ;;  %v13247_v6 = vld [vmem:[#allocation202_spill] sm:$0xff]  ;;  %v3956_v28 = vpop.xlane.xlu1 %3955 }
 0x731   : > { %13242 = vst [vmem:[#allocation37_spill] sm:$0xff] %v10542_v52  ;;  %2985 = vadd.xlane.f32.xlu0 %v13244_v8  ;;  %7508 = vpow2.f32 %v4203_v57  ;;  %v4134_v38 = vsub.f32 %v13240_v20, %v4070_v0  ;;  %v13245_v46 = vld [vmem:[#allocation227_spill] sm:$0xff]  ;;  %v4075_v49 = vmax.f32 %v13246_v33, %v3954_v12  ;;  %v10552_v39 = vadd.f32 %v13247_v6, %v10316_v5  ;;  %v13249_v60 = vld [vmem:[#allocation89_spill] sm:$0xff]  ;;  %v13253_v12 = vld [vmem:[#allocation204_spill] sm:$0xff] }
 0x732   : > { %v4326_v62 = vsub.f32 %v13245_v46, %v4070_v0  ;;  %7510 = vpow2.f32 %v4395_v23  ;;  %v4197_v3 = vmul.f32 1.442695, %v4133_v18  ;;  %v4389_v58 = vmul.f32 1.442695, %v4325_v14  ;;  %2987 = vadd.xlane.f32.xlu1 %v13249_v60  ;;  %v13250_v57 = vld [vmem:[#allocation231_spill] sm:$0xff]  ;;  %v13255_v23 = vld [vmem:[#allocation77_spill] sm:$0xff]  ;;  %v3950_v14 = vpop.xlane.xlu0 %3949 }
 0x733   : > { %13248 = vst [vmem:[#allocation151_spill] sm:$0xff] %v10552_v39  ;;  %v4199_v37 = vmul.f32 1.442695, %v4134_v38  ;;  %v4139_v8 = vsub.f32 %v13246_v33, %v4075_v49  ;;  %v4331_v20 = vsub.f32 %v13250_v57, %v4075_v49  ;;  %v13251_v0 = vld [vmem:[#allocation203_spill] sm:$0xff]  ;;  %v10563_v6 = vadd.f32 %v13253_v12, %v10325_v27  ;;  %v13256_v5 = vld [vmem:[#allocation150_spill] sm:$0xff]  ;;  %v13330_v13 = vld [vmem:[#allocation109_spill] sm:$0xff] }
 0x734   : > { %v4391_v45 = vmul.f32 1.442695, %v4326_v62  ;;  %v10559_v46 = vadd.f32 %v13251_v0, %v10321_v26  ;;  %7512 = vpow2.f32 %v4197_v3  ;;  %v4076_v18 = vmax.f32 %v13255_v23, %v3956_v28  ;;  %v13257_v62 = vld [vmem:[#allocation78_spill] sm:$0xff]  ;;  %v13258_v49 = vld [vmem:[#allocation215_spill] sm:$0xff]  ;;  %v3952_v3 = vpop.xlane.xlu1 %3951  ;;  %v13369_v32 = vld [vmem:[#allocation117_spill] sm:$0xff] }
 0x735   : > { %13254 = vst [vmem:[#allocation47_spill] sm:$0xff] %v10563_v6  ;;  %3053 = vadd.xlane.f32.xlu0 %v13256_v5  ;;  %7514 = vpow2.f32 %v4389_v58  ;;  %v4209_v60 = vmul.f32 1.442695, %v4139_v8  ;;  %v4401_v38 = vmul.f32 1.442695, %v4331_v20  ;;  %v4073_v33 = vmax.f32 %v13257_v62, %v3950_v14  ;;  %v13260_v12 = vld [vmem:[#allocation234_spill] sm:$0xff] }
 0x736   : > { %13252 = vst [vmem:[#allocation43_spill] sm:$0xff] %v10559_v46  ;;  %v10570_v57 = vadd.f32 %v13258_v49, %v10339_v34  ;;  %7516 = vpow2.f32 %v4199_v37  ;;  %v4140_v0 = vsub.f32 %v13255_v23, %v4076_v18  ;;  %v4332_v27 = vsub.f32 %v13260_v12, %v4076_v18  ;;  %v13261_v26 = vld [vmem:[#allocation154_spill] sm:$0xff]  ;;  %v13262_v58 = vld [vmem:[#allocation233_spill] sm:$0xff]  ;;  %v13263_v8 = vld [vmem:[#allocation80_spill] sm:$0xff]  ;;  %v3962_v23 = vpop.xlane.xlu0 %3961 }
 0x737   : > { %3055 = vadd.xlane.f32.xlu1 %v13261_v26  ;;  %7518 = vpow2.f32 %v4391_v45  ;;  %v4137_v5 = vsub.f32 %v13257_v62, %v4073_v33  ;;  %v4329_v28 = vsub.f32 %v13262_v58, %v4073_v33  ;;  %v4074_v20 = vmax.f32 %v13263_v8, %v3952_v3  ;;  %v13264_v14 = vld [vmem:[#allocation306_spill] sm:$0xff]  ;;  %v13265_v6 = vld [vmem:[#allocation217_spill] sm:$0xff]  ;;  %v10583_v18 = vpop.eup %7504  ;;  %v13269_v12 = vld [vmem:[#allocation235_spill] sm:$0xff] }
 0x738   : > { %13259 = vst [vmem:[#allocation41_spill] sm:$0xff] %v10570_v57  ;;  %v10580_v46 = vadd.f32 %v13265_v6, %v13264_v14  ;;  %7520 = vpow2.f32 %v4209_v60  ;;  %v4211_v37 = vmul.f32 1.442695, %v4140_v0  ;;  %v4403_v49 = vmul.f32 1.442695, %v4332_v27  ;;  %v13267_v34 = vld [vmem:[#allocation90_spill] sm:$0xff]  ;;  %v10586_v33 = vpop.eup %7506  ;;  %v3964_v60 = vpop.xlane.xlu1 %3963 }
 0x739   : > { %2989 = vadd.xlane.f32.xlu0 %v13267_v34  ;;  %13268 = vst [vmem:[#allocation51_spill] sm:$0xff] %v10583_v18  ;;  %7522 = vpow2.f32 %v4401_v38  ;;  %v4205_v26 = vmul.f32 1.442695, %v4137_v5  ;;  %v4397_v45 = vmul.f32 1.442695, %v4329_v28  ;;  %v4138_v62 = vsub.f32 %v13263_v8, %v4074_v20  ;;  %v13270_v6 = vld [vmem:[#allocation84_spill] sm:$0xff] }
 0x73a   : > { %13266 = vst [vmem:[#allocation45_spill] sm:$0xff] %v10580_v46  ;;  %7524 = vpow2.f32 %v4211_v37  ;;  %v4330_v3 = vsub.f32 %v13269_v12, %v4074_v20  ;;  %v4079_v58 = vmax.f32 %v13270_v6, %v3962_v23  ;;  %v13271_v0 = vld [vmem:[#allocation86_spill] sm:$0xff]  ;;  %v10593_v27 = vmul.f32 %v10583_v18, %v10333_v25  ;;  %v13276_v8 = vld [vmem:[#allocation85_spill] sm:$0xff]  ;;  %v3958_v25 = vpop.xlane.xlu0 %3957  ;;  %v13282_v46 = vld [vmem:[#allocation159_spill] sm:$0xff] }
 0x73b   : > { %2991 = vadd.xlane.f32.xlu1 %v13271_v0  ;;  %v10595_v34 = vpop.eup %7508  ;;  %v13274_v38 = vld [vmem:[#allocation218_spill] sm:$0xff]  ;;  %7526 = vpow2.f32 %v4403_v49  ;;  %v4207_v28 = vmul.f32 1.442695, %v4138_v62  ;;  %v4080_v37 = vmax.f32 %v13276_v8, %v3964_v60  ;;  %v13277_v0 = vld [vmem:[#allocation239_spill] sm:$0xff]  ;;  %v13280_v49 = vld [vmem:[#allocation88_spill] sm:$0xff] }
 0x73c   : > { %13272 = vst [vmem:[#allocation55_spill] sm:$0xff] %v10593_v27  ;;  %13273 = vst [vmem:[#allocation49_spill] sm:$0xff] %v10595_v34  ;;  %v10599_v5 = vadd.f32 %v13274_v38, %v10341_v51  ;;  %v10602_v20 = vpop.eup %7510  ;;  %7528 = vpow2.f32 %v4205_v26  ;;  %v4399_v23 = vmul.f32 1.442695, %v4330_v3  ;;  %v4143_v12 = vsub.f32 %v13270_v6, %v4079_v58  ;;  %v13278_v27 = vld [vmem:[#allocation160_spill] sm:$0xff]  ;;  %v13279_v38 = vld [vmem:[#allocation242_spill] sm:$0xff]  ;;  %v3960_v3 = vpop.xlane.xlu1 %3959 }
 0x73d   : > { %v4335_v14 = vsub.f32 %v13277_v0, %v4079_v58  ;;  %3057 = vadd.xlane.f32.xlu0 %v13278_v27  ;;  %7530 = vpow2.f32 %v4397_v45  ;;  %v4144_v18 = vsub.f32 %v13276_v8, %v4080_v37  ;;  %v4336_v51 = vsub.f32 %v13279_v38, %v4080_v37  ;;  %v13284_v0 = vld [vmem:[#allocation241_spill] sm:$0xff]  ;;  %v13385_v22 = vld [vmem:[#allocation114_spill] sm:$0xff] }
 0x73e   : > { %13275 = vst [vmem:[#allocation53_spill] sm:$0xff] %v10599_v5  ;;  %v4077_v62 = vmax.f32 %v13280_v49, %v3958_v25  ;;  %v10610_v5 = vpop.eup %7512  ;;  %7532 = vpow2.f32 %v4207_v28  ;;  %v4217_v60 = vmul.f32 1.442695, %v4143_v12  ;;  %v4838_v6 = vpack.c.bf16 %v10602_v20, %v10586_v33  ;;  %v13285_v12 = vld [vmem:[#allocation91_spill] sm:$0xff] }
 0x73f   : > { %13281 = vst [vmem:[#allocation59_spill] sm:$0xff] %v10610_v5  ;;  %v4409_v26 = vmul.f32 1.442695, %v4335_v14  ;;  %3059 = vadd.xlane.f32.xlu1 %v13282_v46  ;;  %v10615_v58 = vpop.eup %7514  ;;  %7534 = vpow2.f32 %v4399_v23  ;;  %v4219_v45 = vmul.f32 1.442695, %v4144_v18  ;;  %v4078_v14 = vmax.f32 %v13285_v12, %v3960_v3  ;;  %v13286_v25 = vld [vmem:[#allocation95_spill] sm:$0xff] }
 0x740   : > { %v4411_v27 = vmul.f32 1.442695, %v4336_v51  ;;  %v4141_v8 = vsub.f32 %v13280_v49, %v4077_v62  ;;  %v10618_v37 = vpop.eup %7516  ;;  %7536 = vpow2.f32 %v4217_v60  ;;  %v4333_v28 = vsub.f32 %v13284_v0, %v4077_v62  ;;  %v3966_v51 = vpop.xlane.xlu0 %3965  ;;  %v13291_v3 = vld [vmem:[#allocation243_spill] sm:$0xff] }
 0x741   : > { %13283 = vst [vmem:[#allocation57_spill] sm:$0xff] %v10618_v37  ;;  %2993 = vadd.xlane.f32.xlu0 %v13286_v25  ;;  %v10625_v46 = vmul.f32 %v10610_v5, %v10337_v47  ;;  %v10627_v38 = vpop.eup %7518  ;;  %7538 = vpow2.f32 %v4409_v26  ;;  %v10631_v23 = vmul.f32 %v10595_v34, %v10345_v24  ;;  %v10635_v49 = vmul.f32 %v10618_v37, %v10349_v43  ;;  %v13292_v25 = vld [vmem:[#allocation97_spill] sm:$0xff]  ;;  %v3968_v43 = vpop.xlane.xlu1 %3967  ;;  %v13329_v37 = vld [vmem:[#allocation102_spill] sm:$0xff] }
 0x742   : > { %v4213_v18 = vmul.f32 1.442695, %v4141_v8  ;;  %v10637_v62 = vpop.eup %7520  ;;  %7540 = vpow2.f32 %v4219_v45  ;;  %v4405_v60 = vmul.f32 1.442695, %v4333_v28  ;;  %v4142_v47 = vsub.f32 %v13285_v12, %v4078_v14  ;;  %v13293_v8 = vld [vmem:[#allocation96_spill] sm:$0xff] }
 0x743   : > { %13287 = vst [vmem:[#allocation188_spill] sm:$0xff] %v10625_v46  ;;  %13288 = vst [vmem:[#allocation72_spill] sm:$0xff] %v10631_v23  ;;  %v4334_v0 = vsub.f32 %v13291_v3, %v4078_v14  ;;  %2995 = vadd.xlane.f32.xlu1 %v13292_v25  ;;  %v10642_v26 = vpop.eup %7522  ;;  %7542 = vpow2.f32 %v4411_v27  ;;  %v4081_v24 = vmax.f32 %v13293_v8, %v3966_v51  ;;  %v13296_v14 = vld [vmem:[#allocation99_spill] sm:$0xff]  ;;  %v13297_v25 = vld [vmem:[#allocation158_spill] sm:$0xff] }
 0x744   : > { %13289 = vst [vmem:[#allocation189_spill] sm:$0xff] %v10635_v49  ;;  %13290 = vst [vmem:[#allocation190_spill] sm:$0xff] %v10637_v62  ;;  %v4837_v23 = vpack.c.bf16 %v10627_v38, %v10615_v58  ;;  %v10649_v49 = vmul.f32 %v10637_v62, %v10353_v40  ;;  %v10651_v45 = vpop.eup %7524  ;;  %7544 = vpow2.f32 %v4213_v18  ;;  %v4215_v28 = vmul.f32 1.442695, %v4142_v47  ;;  %v13298_v46 = vld [vmem:[#allocation249_spill] sm:$0xff]  ;;  %v4010_v57 = vpop.xlane.xlu0 %4009  ;;  %v13312_v62 = vld [vmem:[#allocation94_spill] sm:$0xff] }
 0x745   : > { %13295 = vst [vmem:[#allocation192_spill] sm:$0xff] %v10651_v45  ;;  %v4407_v12 = vmul.f32 1.442695, %v4334_v0  ;;  %v4082_v3 = vmax.f32 %v13296_v14, %v3968_v43  ;;  %3061 = vadd.xlane.f32.xlu0 %v13297_v25  ;;  %v10655_v27 = vpop.eup %7526  ;;  %7546 = vpow2.f32 %v4405_v60  ;;  %v4145_v51 = vsub.f32 %v13293_v8, %v4081_v24  ;;  %v13301_v0 = vld [vmem:[#allocation251_spill] sm:$0xff]  ;;  %v13302_v25 = vld [vmem:[#allocation126_spill] sm:$0xff] }
 0x746   : > { %13294 = vst [vmem:[#allocation191_spill] sm:$0xff] %v10649_v49  ;;  %v4337_v34 = vsub.f32 %v13298_v46, %v4081_v24  ;;  %6783 = vmatprep.mubr.bf16.mxu0 %v4837_v23  ;;  %v10661_v40 = vmul.f32 %v10651_v45, %v10362_v55  ;;  %v10663_v18 = vpop.eup %7528  ;;  %7548 = vpow2.f32 %v4215_v28  ;;  %v4103_v60 = vmax.f32 %v13302_v25, %v4010_v57  ;;  %v13303_v49 = vld [vmem:[#allocation62_spill] sm:$0xff]  ;;  %v4012_v24 = vpop.xlane.xlu1 %4011 }
 0x747   : > { %13300 = vst [vmem:[#allocation223_spill] sm:$0xff] %v10663_v18  ;;  %6784 = vmatmul.mubr.bf16.vlgmr.msra.gmra.mrb[96].mxu0 %v4838_v6  ;;  %v4146_v47 = vsub.f32 %v13296_v14, %v4082_v3  ;;  %v4338_v43 = vsub.f32 %v13301_v0, %v4082_v3  ;;  %3063 = vadd.xlane.f32.xlu1 %v13303_v49  ;;  %v10669_v8 = vpop.eup %7530  ;;  %7550 = vpow2.f32 %v4407_v12  ;;  %v4221_v46 = vmul.f32 1.442695, %v4145_v51  ;;  %v13305_v3 = vld [vmem:[#allocation220_spill] sm:$0xff]  ;;  %v13306_v57 = vld [vmem:[#allocation98_spill] sm:$0xff]  ;;  %v13307_v12 = vld [vmem:[#allocation127_spill] sm:$0xff] }
 0x748   : > { %13299 = vst [vmem:[#allocation193_spill] sm:$0xff] %v10661_v40  ;;  %v4413_v23 = vmul.f32 1.442695, %v4337_v34  ;;  %v4840_v55 = vpack.c.bf16 %v10655_v27, %v10642_v26  ;;  %v10673_v40 = vpop.eup %7532  ;;  %v4167_v14 = vsub.f32 %v13302_v25, %v4103_v60  ;;  %v4359_v0 = vsub.f32 %v13305_v3, %v4103_v60  ;;  %v4006_v34 = vpop.xlane.xlu0 %4005  ;;  %v13311_v3 = vld [vmem:[#allocation130_spill] sm:$0xff] }
 0x749   : > { %13304 = vst [vmem:[#allocation74_spill] sm:$0xff] %v10673_v40  ;;  %v4223_v6 = vmul.f32 1.442695, %v4146_v47  ;;  %v4415_v28 = vmul.f32 1.442695, %v4338_v43  ;;  %2997 = vadd.xlane.f32.xlu0 %v13306_v57  ;;  %v10678_v49 = vpop.eup %7534  ;;  %7552 = vpow2.f32 %v4221_v46  ;;  %v4104_v51 = vmax.f32 %v13307_v12, %v4012_v24 }
 0x74a   : > { %v10683_v45 = vmul.f32 %v10663_v18, %v10357_v35  ;;  %v10687_v47 = vmul.f32 %v10673_v40, %v10366_v42  ;;  %v10689_v43 = vpop.eup %7536  ;;  %7554 = vpow2.f32 %v4413_v23  ;;  %v4265_v25 = vmul.f32 1.442695, %v4167_v14  ;;  %v13313_v35 = vld [vmem:[#allocation222_spill] sm:$0xff]  ;;  %v13315_v14 = vld [vmem:[#allocation221_spill] sm:$0xff]  ;;  %v13317_v18 = vld [vmem:[#allocation164_spill] sm:$0xff] }
 0x74b   : > { %13310 = vst [vmem:[#allocation196_spill] sm:$0xff] %v10689_v43  ;;  %v4457_v60 = vmul.f32 1.442695, %v4359_v0  ;;  %v4101_v57 = vmax.f32 %v13311_v3, %v4006_v34  ;;  %2999 = vadd.xlane.f32.xlu1 %v13312_v62  ;;  %v10693_v46 = vpop.eup %7538  ;;  %7556 = vpow2.f32 %v4223_v6  ;;  %v4168_v24 = vsub.f32 %v13307_v12, %v4104_v51  ;;  %v13316_v34 = vld [vmem:[#allocation133_spill] sm:$0xff] }
 0x74c   : > { %13308 = vst [vmem:[#allocation194_spill] sm:$0xff] %v10683_v45  ;;  %13309 = vst [vmem:[#allocation195_spill] sm:$0xff] %v10687_v47  ;;  %v4360_v45 = vsub.f32 %v13313_v35, %v4104_v51  ;;  %v4839_v42 = vpack.c.bf16 %v10678_v49, %v10669_v8  ;;  %v4008_v47 = vpop.xlane.xlu1 %4007  ;;  %v10699_v40 = vpop.eup %7540  ;;  %7558 = vpow2.f32 %v4415_v28  ;;  %v10709_v39 = vmul.f32 %v10689_v43, %v10370_v63 }
 0x74d   : > { %13314 = vst [vmem:[#allocation197_spill] sm:$0xff] %v10699_v40  ;;  %v4165_v23 = vsub.f32 %v13311_v3, %v4101_v57  ;;  %v4357_v0 = vsub.f32 %v13315_v14, %v4101_v57  ;;  %v4102_v62 = vmax.f32 %v13316_v34, %v4008_v47  ;;  %3065 = vadd.xlane.f32.xlu0 %v13317_v18  ;;  %v10705_v6 = vpop.eup %7542  ;;  %7560 = vpow2.f32 %v4265_v25  ;;  %v3970_v35 = vpop.xlane.xlu0 %3969  ;;  %v13320_v18 = vld [vmem:[#allocation63_spill] sm:$0xff] }
 0x74e   : > { %v4267_v12 = vmul.f32 1.442695, %v4168_v24  ;;  %v4459_v51 = vmul.f32 1.442695, %v4360_v45  ;;  %6787 = vmatprep.mubr.bf16.mxu0 %v4839_v42  ;;  %13318 = vst [vmem:[#allocation226_spill] sm:$0xff] %v10709_v39  ;;  %v10711_v28 = vpop.eup %7544  ;;  %7562 = vpow2.f32 %v4457_v60  ;;  %v13321_v45 = vld [vmem:[#allocation224_spill] sm:$0xff]  ;;  %v4842_v63 = vpack.c.bf16 %v10705_v6, %v10693_v46 }
 0x74f   : > { %13319 = vst [vmem:[#allocation198_spill] sm:$0xff] %v10711_v28  ;;  %v4261_v3 = vmul.f32 1.442695, %v4165_v23  ;;  %v4453_v57 = vmul.f32 1.442695, %v4357_v0  ;;  %6788 = vmatmul.mubr.bf16.gmra.mrb[100].mxu0 %v4840_v55  ;;  %v4166_v47 = vsub.f32 %v13316_v34, %v4102_v62  ;;  %3067 = vadd.xlane.f32.xlu1 %v13320_v18  ;;  %v10715_v14 = vpop.eup %7546  ;;  %v4358_v25 = vsub.f32 %v13321_v45, %v4102_v62  ;;  %v13322_v24 = vld [vmem:[#allocation92_spill] sm:$0xff] }
 0x750   : > { %7564 = vpow2.f32 %v4267_v12  ;;  %v4083_v42 = vmax.f32 %v13322_v24, %v3970_v35  ;;  %v3972_v52 = vpop.xlane.xlu1 %3971  ;;  %v10721_v39 = vpop.eup %7548  ;;  %v13324_v55 = vld [vmem:[#allocation93_spill] sm:$0xff]  ;;  %v13325_v0 = vld [vmem:[#allocation107_spill] sm:$0xff]  ;;  %v10727_v34 = vmul.f32 %v10711_v28, %v10374_v36  ;;  %v10751_v28 = vmul.f32 %v10699_v40, %v10378_v53 }
 0x751   : > { %13323 = vst [vmem:[#allocation199_spill] sm:$0xff] %v10721_v39  ;;  %7566 = vpow2.f32 %v4459_v51  ;;  %v4263_v60 = vmul.f32 1.442695, %v4166_v47  ;;  %v4084_v23 = vmax.f32 %v13324_v55, %v3972_v52  ;;  %3001 = vadd.xlane.f32.xlu0 %v13325_v0  ;;  %v10729_v12 = vpop.eup %7550  ;;  %v4455_v62 = vmul.f32 1.442695, %v4358_v25  ;;  %v13327_v18 = vld [vmem:[#allocation247_spill] sm:$0xff]  ;;  %v3974_v43 = vpop.xlane.xlu0 %3973 }
 0x752   : > { %13326 = vst [vmem:[#allocation200_spill] sm:$0xff] %v10727_v34  ;;  %7568 = vpow2.f32 %v4261_v3  ;;  %v4147_v35 = vsub.f32 %v13322_v24, %v4083_v42  ;;  %v4339_v45 = vsub.f32 %v13327_v18, %v4083_v42  ;;  %v13328_v47 = vld [vmem:[#allocation250_spill] sm:$0xff]  ;;  %v4085_v0 = vmax.f32 %v13329_v37, %v3974_v43  ;;  %v13332_v18 = vld [vmem:[#allocation163_spill] sm:$0xff]  ;;  %13336 = vst [vmem:[#allocation201_spill] sm:$0xff] %v10751_v28 }
 0x753   : > { %7570 = vpow2.f32 %v4453_v57  ;;  %v4148_v51 = vsub.f32 %v13324_v55, %v4084_v23  ;;  %v4340_v52 = vsub.f32 %v13328_v47, %v4084_v23  ;;  %3003 = vadd.xlane.f32.xlu1 %v13330_v13  ;;  %v10737_v36 = vpop.eup %7552  ;;  %v4841_v25 = vpack.c.bf16 %v10729_v12, %v10715_v14  ;;  %v13334_v13 = vld [vmem:[#allocation257_spill] sm:$0xff] }
 0x754   : > { %13331 = vst [vmem:[#allocation71_spill] sm:$0xff] %v10737_v36  ;;  %7572 = vpow2.f32 %v4263_v60  ;;  %v4225_v34 = vmul.f32 1.442695, %v4147_v35  ;;  %v4417_v3 = vmul.f32 1.442695, %v4339_v45  ;;  %v3976_v24 = vpop.xlane.xlu1 %3975  ;;  %v10741_v42 = vpop.eup %7554  ;;  %v4149_v23 = vsub.f32 %v13329_v37, %v4085_v0  ;;  %v13335_v35 = vld [vmem:[#allocation103_spill] sm:$0xff] }
 0x755   : > { %7574 = vpow2.f32 %v4455_v62  ;;  %v4227_v57 = vmul.f32 1.442695, %v4148_v51  ;;  %v4419_v55 = vmul.f32 1.442695, %v4340_v52  ;;  %3069 = vadd.xlane.f32.xlu0 %v13332_v18  ;;  %v10745_v43 = vpop.eup %7556  ;;  %v4341_v60 = vsub.f32 %v13334_v13, %v4085_v0  ;;  %6791 = vmatprep.mubr.bf16.mxu0 %v4841_v25  ;;  %v4018_v47 = vpop.xlane.xlu0 %4017  ;;  %v13337_v37 = vld [vmem:[#allocation137_spill] sm:$0xff]  ;;  %v13338_v18 = vld [vmem:[#allocation66_spill] sm:$0xff] }
 0x756   : > { %13333 = vst [vmem:[#allocation75_spill] sm:$0xff] %v10745_v43  ;;  %7576 = vpow2.f32 %v4225_v34  ;;  %v4086_v45 = vmax.f32 %v13335_v35, %v3976_v24  ;;  %v10753_v62 = vpop.eup %7558  ;;  %v4229_v51 = vmul.f32 1.442695, %v4149_v23  ;;  %v4107_v52 = vmax.f32 %v13337_v37, %v4018_v47  ;;  %v13341_v24 = vld [vmem:[#allocation259_spill] sm:$0xff]  ;;  %v13343_v23 = vld [vmem:[#allocation228_spill] sm:$0xff] }
 0x757   : > { %7578 = vpow2.f32 %v4417_v3  ;;  %6792 = vmatmul.mubr.bf16.gmra.mrb[104].mxu0 %v4842_v63  ;;  %3071 = vadd.xlane.f32.xlu1 %v13338_v18  ;;  %v10759_v34 = vmul.f32 %v10721_v39, %v10382_v11  ;;  %v10761_v0 = vpop.eup %7560  ;;  %v4421_v25 = vmul.f32 1.442695, %v4341_v60  ;;  %v4843_v11 = vpack.c.bf16 %v10753_v62, %v10741_v42  ;;  %v13344_v18 = vld [vmem:[#allocation110_spill] sm:$0xff] }
 0x758   : > { %13340 = vst [vmem:[#allocation87_spill] sm:$0xff] %v10761_v0  ;;  %7580 = vpow2.f32 %v4227_v57  ;;  %v4150_v53 = vsub.f32 %v13335_v35, %v4086_v45  ;;  %v4342_v13 = vsub.f32 %v13341_v24, %v4086_v45  ;;  %v4020_v28 = vpop.xlane.xlu1 %4019  ;;  %v10765_v3 = vpop.eup %7562  ;;  %v4171_v63 = vsub.f32 %v13337_v37, %v4107_v52  ;;  %v13346_v35 = vld [vmem:[#allocation136_spill] sm:$0xff]  ;;  %v13349_v39 = vld [vmem:[#allocation106_spill] sm:$0xff] }
 0x759   : > { %13339 = vst [vmem:[#allocation225_spill] sm:$0xff] %v10759_v34  ;;  %13342 = vst [vmem:[#allocation227_spill] sm:$0xff] %v10765_v3  ;;  %7582 = vpow2.f32 %v4419_v55  ;;  %v4363_v47 = vsub.f32 %v13343_v23, %v4107_v52  ;;  %3005 = vadd.xlane.f32.xlu0 %v13344_v18  ;;  %v4108_v45 = vmax.f32 %v13346_v35, %v4020_v28  ;;  %v4014_v24 = vpop.xlane.xlu0 %4013  ;;  %6795 = vmatprep.mubr.bf16.mxu0 %v4843_v11  ;;  %v13348_v52 = vld [vmem:[#allocation139_spill] sm:$0xff]  ;;  %v13353_v11 = vld [vmem:[#allocation138_spill] sm:$0xff] }
 0x75a   : > { %v10772_v34 = vpop.eup %7564  ;;  %7584 = vpow2.f32 %v4229_v51  ;;  %v4231_v57 = vmul.f32 1.442695, %v4150_v53  ;;  %v4423_v60 = vmul.f32 1.442695, %v4342_v13  ;;  %v4273_v55 = vmul.f32 1.442695, %v4171_v63 }
 0x75b   : > { %13345 = vst [vmem:[#allocation76_spill] sm:$0xff] %v10772_v34  ;;  %v10775_v40 = vpop.eup %7566  ;;  %7586 = vpow2.f32 %v4421_v25  ;;  %v4465_v37 = vmul.f32 1.442695, %v4363_v47  ;;  %v4105_v23 = vmax.f32 %v13348_v52, %v4014_v24  ;;  %3007 = vadd.xlane.f32.xlu1 %v13349_v39  ;;  %v4172_v51 = vsub.f32 %v13346_v35, %v4108_v45  ;;  %v13350_v53 = vld [vmem:[#allocation230_spill] sm:$0xff]  ;;  %v13352_v63 = vld [vmem:[#allocation229_spill] sm:$0xff]  ;;  %v13354_v24 = vld [vmem:[#allocation168_spill] sm:$0xff] }
 0x75c   : > { %13347 = vst [vmem:[#allocation202_spill] sm:$0xff] %v10775_v40  ;;  %v10779_v5 = vpop.eup %7568  ;;  %7588 = vpow2.f32 %v4231_v57  ;;  %v4364_v13 = vsub.f32 %v13350_v53, %v4108_v45  ;;  %v4016_v18 = vpop.xlane.xlu1 %4015  ;;  %v4854_v28 = vpack.c.bf16 %v10775_v40, %v10765_v3  ;;  %v10795_v40 = vmul.f32 %v10761_v0, %v10458_v7 }
 0x75d   : > { %v10785_v30 = vpop.eup %7570  ;;  %7590 = vpow2.f32 %v4423_v60  ;;  %v4169_v25 = vsub.f32 %v13348_v52, %v4105_v23  ;;  %v4361_v47 = vsub.f32 %v13352_v63, %v4105_v23  ;;  %v4106_v39 = vmax.f32 %v13353_v11, %v4016_v18  ;;  %3073 = vadd.xlane.f32.xlu0 %v13354_v24  ;;  %v3978_v53 = vpop.xlane.xlu0 %3977  ;;  %v13358_v18 = vld [vmem:[#allocation67_spill] sm:$0xff] }
 0x75e   : > { %13351 = vst [vmem:[#allocation89_spill] sm:$0xff] %v10785_v30  ;;  %v10791_v57 = vpop.eup %7572  ;;  %7592 = vpow2.f32 %v4273_v55  ;;  %v4275_v35 = vmul.f32 1.442695, %v4172_v51  ;;  %v4467_v45 = vmul.f32 1.442695, %v4364_v13  ;;  %13356 = vst [vmem:[#allocation203_spill] sm:$0xff] %v10795_v40  ;;  %v10839_v3 = vmul.f32 %v10772_v34, %v10469_v10 }
 0x75f   : > { %13355 = vst [vmem:[#allocation231_spill] sm:$0xff] %v10791_v57  ;;  %v10797_v41 = vpop.eup %7574  ;;  %7594 = vpow2.f32 %v4465_v37  ;;  %v4269_v60 = vmul.f32 1.442695, %v4169_v25  ;;  %v4461_v52 = vmul.f32 1.442695, %v4361_v47  ;;  %v4170_v23 = vsub.f32 %v13353_v11, %v4106_v39  ;;  %3075 = vadd.xlane.f32.xlu1 %v13358_v18  ;;  %v13360_v55 = vld [vmem:[#allocation232_spill] sm:$0xff] }
 0x760   : > { %13357 = vst [vmem:[#allocation204_spill] sm:$0xff] %v10797_v41  ;;  %v10801_v63 = vpop.eup %7576  ;;  %7596 = vpow2.f32 %v4275_v35  ;;  %v4362_v51 = vsub.f32 %v13360_v55, %v4106_v39  ;;  %v13361_v13 = vld [vmem:[#allocation100_spill] sm:$0xff]  ;;  %v4853_v7 = vpack.c.bf16 %v10797_v41, %v10785_v30  ;;  %v3980_v40 = vpop.xlane.xlu1 %3979  ;;  %v13362_v25 = vld [vmem:[#allocation101_spill] sm:$0xff]  ;;  %v13363_v11 = vld [vmem:[#allocation115_spill] sm:$0xff]  ;;  %v10813_v18 = vmul.f32 %v10779_v5, %v10462_v1 }
 0x761   : > { %13359 = vst [vmem:[#allocation77_spill] sm:$0xff] %v10801_v63  ;;  %v4087_v24 = vmax.f32 %v13361_v13, %v3978_v53  ;;  %v10807_v0 = vpop.eup %7578  ;;  %7598 = vpow2.f32 %v4467_v45  ;;  %v4271_v37 = vmul.f32 1.442695, %v4170_v23  ;;  %v4088_v47 = vmax.f32 %v13362_v25, %v3980_v40  ;;  %3009 = vadd.xlane.f32.xlu0 %v13363_v11  ;;  %v13366_v55 = vld [vmem:[#allocation255_spill] sm:$0xff]  ;;  %v3982_v30 = vpop.xlane.xlu0 %3981  ;;  %v13367_v23 = vld [vmem:[#allocation258_spill] sm:$0xff]  ;;  %v13368_v1 = vld [vmem:[#allocation108_spill] sm:$0xff] }
 0x762   : > { %13364 = vst [vmem:[#allocation150_spill] sm:$0xff] %v10813_v18  ;;  %v10815_v35 = vpop.eup %7580  ;;  %7600 = vpow2.f32 %v4269_v60  ;;  %v4463_v39 = vmul.f32 1.442695, %v4362_v51  ;;  %6831 = vmatprep.mubr.bf16.mxu1 %v4853_v7  ;;  %v4089_v18 = vmax.f32 %v13368_v1, %v3982_v30  ;;  %13373 = vst [vmem:[#allocation215_spill] sm:$0xff] %v10839_v3  ;;  %v13378_v10 = vld [vmem:[#allocation267_spill] sm:$0xff] }
 0x763   : > { %13365 = vst [vmem:[#allocation78_spill] sm:$0xff] %v10815_v35  ;;  %v4151_v53 = vsub.f32 %v13361_v13, %v4087_v24  ;;  %v4343_v41 = vsub.f32 %v13366_v55, %v4087_v24  ;;  %v10819_v45 = vpop.eup %7582  ;;  %7602 = vpow2.f32 %v4461_v52  ;;  %v4152_v40 = vsub.f32 %v13362_v25, %v4088_v47  ;;  %6832 = vmatmul.mubr.bf16.vlgmr.msra.gmra.mrb[160].mxu1 %v4854_v28 }
 0x764   : > { %v4344_v11 = vsub.f32 %v13367_v23, %v4088_v47  ;;  %3011 = vadd.xlane.f32.xlu1 %v13369_v32  ;;  %v10825_v60 = vpop.eup %7584  ;;  %7604 = vpow2.f32 %v4271_v37  ;;  %v4844_v24 = vpack.c.bf16 %v10819_v45, %v10807_v0  ;;  %v3984_v7 = vpop.xlane.xlu1 %3983  ;;  %v4153_v28 = vsub.f32 %v13368_v1, %v4089_v18  ;;  %v13370_v47 = vld [vmem:[#allocation167_spill] sm:$0xff]  ;;  %v13371_v32 = vld [vmem:[#allocation265_spill] sm:$0xff] }
 0x765   : > { %v4233_v51 = vmul.f32 1.442695, %v4151_v53  ;;  %v4425_v13 = vmul.f32 1.442695, %v4343_v41  ;;  %v10829_v55 = vpop.eup %7586  ;;  %7606 = vpow2.f32 %v4463_v39  ;;  %v4235_v52 = vmul.f32 1.442695, %v4152_v40  ;;  %3077 = vadd.xlane.f32.xlu0 %v13370_v47  ;;  %v4026_v23 = vpop.xlane.xlu0 %4025 }
 0x766   : > { %v4427_v25 = vmul.f32 1.442695, %v4344_v11  ;;  %v10833_v30 = vpop.eup %7588  ;;  %v4345_v37 = vsub.f32 %v13371_v32, %v4089_v18  ;;  %6796 = vmatmul.mubr.bf16.gmra.mrb[108].mxu0 %v4844_v24  ;;  %v13372_v41 = vld [vmem:[#allocation111_spill] sm:$0xff]  ;;  %v4237_v40 = vmul.f32 1.442695, %v4153_v28  ;;  %v13374_v11 = vld [vmem:[#allocation141_spill] sm:$0xff] }
 0x767   : > { %7608 = vpow2.f32 %v4233_v51  ;;  %v4090_v53 = vmax.f32 %v13372_v41, %v3984_v7  ;;  %v10841_v39 = vpop.eup %7590  ;;  %v4111_v1 = vmax.f32 %v13374_v11, %v4026_v23  ;;  %v13375_v47 = vld [vmem:[#allocation70_spill] sm:$0xff]  ;;  %v10847_v51 = vmul.f32 %v10801_v63, %v10386_v15  ;;  %v13380_v28 = vld [vmem:[#allocation236_spill] sm:$0xff] }
 0x768   : > { %7610 = vpow2.f32 %v4425_v13  ;;  %3079 = vadd.xlane.f32.xlu1 %v13375_v47  ;;  %v10849_v18 = vpop.eup %7592  ;;  %v4429_v24 = vmul.f32 1.442695, %v4345_v37  ;;  %v4028_v3 = vpop.xlane.xlu1 %4027  ;;  %v4845_v15 = vpack.c.bf16 %v10841_v39, %v10829_v55  ;;  %v13381_v47 = vld [vmem:[#allocation118_spill] sm:$0xff] }
 0x769   : > { %13376 = vst [vmem:[#allocation234_spill] sm:$0xff] %v10847_v51  ;;  %13377 = vst [vmem:[#allocation154_spill] sm:$0xff] %v10849_v18  ;;  %7612 = vpow2.f32 %v4235_v52  ;;  %v4154_v7 = vsub.f32 %v13372_v41, %v4090_v53  ;;  %v4346_v32 = vsub.f32 %v13378_v10, %v4090_v53  ;;  %v10853_v34 = vpop.eup %7594  ;;  %v4175_v13 = vsub.f32 %v13374_v11, %v4111_v1  ;;  %v13382_v41 = vld [vmem:[#allocation140_spill] sm:$0xff]  ;;  %v4022_v10 = vpop.xlane.xlu0 %4021 }
 0x76a   : > { %13379 = vst [vmem:[#allocation233_spill] sm:$0xff] %v10853_v34  ;;  %7614 = vpow2.f32 %v4427_v25  ;;  %v4367_v23 = vsub.f32 %v13380_v28, %v4111_v1  ;;  %3013 = vadd.xlane.f32.xlu0 %v13381_v47  ;;  %v10860_v51 = vpop.eup %7596  ;;  %v4112_v53 = vmax.f32 %v13382_v41, %v4028_v3  ;;  %6799 = vmatprep.mubr.bf16.mxu0 %v4845_v15  ;;  %v13384_v1 = vld [vmem:[#allocation147_spill] sm:$0xff]  ;;  %v13388_v15 = vld [vmem:[#allocation144_spill] sm:$0xff] }
 0x76b   : > { %7616 = vpow2.f32 %v4237_v40  ;;  %v4239_v52 = vmul.f32 1.442695, %v4154_v7  ;;  %v4431_v37 = vmul.f32 1.442695, %v4346_v32  ;;  %v10863_v63 = vpop.eup %7598  ;;  %v4281_v25 = vmul.f32 1.442695, %v4175_v13 }
 0x76c   : > { %13383 = vst [vmem:[#allocation80_spill] sm:$0xff] %v10863_v63  ;;  %7618 = vpow2.f32 %v4429_v24  ;;  %v4473_v11 = vmul.f32 1.442695, %v4367_v23  ;;  %v4109_v28 = vmax.f32 %v13384_v1, %v4022_v10  ;;  %3015 = vadd.xlane.f32.xlu1 %v13385_v22  ;;  %v10867_v2 = vpop.eup %7600  ;;  %v4176_v40 = vsub.f32 %v13382_v41, %v4112_v53  ;;  %v13386_v7 = vld [vmem:[#allocation238_spill] sm:$0xff]  ;;  %v4024_v47 = vpop.xlane.xlu1 %4023  ;;  %v13387_v13 = vld [vmem:[#allocation237_spill] sm:$0xff] }
 0x76d   : > { %7620 = vpow2.f32 %v4239_v52  ;;  %v4368_v32 = vsub.f32 %v13386_v7, %v4112_v53  ;;  %v4856_v3 = vpack.c.bf16 %v10863_v63, %v10853_v34  ;;  %v10873_v54 = vpop.eup %7602  ;;  %v4110_v22 = vmax.f32 %v13388_v15, %v4024_v47  ;;  %v13389_v10 = vld [vmem:[#allocation173_spill] sm:$0xff]  ;;  %v3986_v7 = vpop.xlane.xlu0 %3985  ;;  %v13392_v47 = vld [vmem:[#allocation172_spill] sm:$0xff] }
 0x76e   : > { %7622 = vpow2.f32 %v4431_v37  ;;  %v4173_v24 = vsub.f32 %v13384_v1, %v4109_v28  ;;  %v4365_v23 = vsub.f32 %v13387_v13, %v4109_v28  ;;  %3081 = vadd.xlane.f32.xlu0 %v13389_v10  ;;  %v10879_v52 = vpop.eup %7604  ;;  %v4283_v41 = vmul.f32 1.442695, %v4176_v40 }
 0x76f   : > { %7624 = vpow2.f32 %v4281_v25  ;;  %v4475_v53 = vmul.f32 1.442695, %v4368_v32  ;;  %v10883_v63 = vmul.f32 %v10791_v57, %v10473_v4  ;;  %v10885_v34 = vpop.eup %7606  ;;  %v4174_v28 = vsub.f32 %v13388_v15, %v4110_v22  ;;  %v13394_v25 = vld [vmem:[#allocation240_spill] sm:$0xff] }
 0x770   : > { %13391 = vst [vmem:[#allocation90_spill] sm:$0xff] %v10885_v34  ;;  %7626 = vpow2.f32 %v4473_v11  ;;  %v4277_v37 = vmul.f32 1.442695, %v4173_v24  ;;  %v4469_v1 = vmul.f32 1.442695, %v4365_v23  ;;  %3083 = vadd.xlane.f32.xlu1 %v13392_v47  ;;  %v4366_v40 = vsub.f32 %v13394_v25, %v4110_v22  ;;  %v13395_v32 = vld [vmem:[#allocation104_spill] sm:$0xff] }
 0x771   : > { %13390 = vst [vmem:[#allocation217_spill] sm:$0xff] %v10883_v63  ;;  %v10889_v13 = vpop.eup %7608  ;;  %7628 = vpow2.f32 %v4283_v41  ;;  %v4091_v10 = vmax.f32 %v13395_v32, %v3986_v7  ;;  %v4855_v4 = vpack.c.bf16 %v10885_v34, %v10873_v54  ;;  %v3988_v63 = vpop.xlane.xlu1 %3987  ;;  %v4279_v11 = vmul.f32 1.442695, %v4174_v28  ;;  %v13396_v24 = vld [vmem:[#allocation105_spill] sm:$0xff]  ;;  %v13398_v47 = vld [vmem:[#allocation263_spill] sm:$0xff] }
 0x772   : > { %13393 = vst [vmem:[#allocation235_spill] sm:$0xff] %v10889_v13  ;;  %v10895_v57 = vpop.eup %7610  ;;  %7630 = vpow2.f32 %v4475_v53  ;;  %v4092_v23 = vmax.f32 %v13396_v24, %v3988_v63  ;;  %4585 = vadd.xlane.f32.xlu0 %v10586_v33  ;;  %v10901_v15 = vmul.f32 %v10737_v36, %v10390_v50  ;;  %v4471_v22 = vmul.f32 1.442695, %v4366_v40  ;;  %v3990_v34 = vpop.xlane.xlu0 %3989  ;;  %v13399_v33 = vld [vmem:[#allocation266_spill] sm:$0xff]  ;;  %v13400_v50 = vld [vmem:[#allocation116_spill] sm:$0xff] }
 0x773   : > { %v10903_v41 = vpop.eup %7612  ;;  %7632 = vpow2.f32 %v4277_v37  ;;  %v4155_v7 = vsub.f32 %v13395_v32, %v4091_v10  ;;  %v4347_v25 = vsub.f32 %v13398_v47, %v4091_v10  ;;  %6835 = vmatprep.mubr.bf16.mxu1 %v4855_v4 }
 0x774   : > { %13397 = vst [vmem:[#allocation84_spill] sm:$0xff] %v10901_v15  ;;  %v10907_v53 = vpop.eup %7614  ;;  %7634 = vpow2.f32 %v4469_v1  ;;  %v4156_v63 = vsub.f32 %v13396_v24, %v4092_v23  ;;  %v4348_v28 = vsub.f32 %v13399_v33, %v4092_v23  ;;  %6836 = vmatmul.mubr.bf16.gmra.mrb[164].mxu1 %v4856_v3  ;;  %v4093_v15 = vmax.f32 %v13400_v50, %v3990_v34  ;;  %v13404_v23 = vld [vmem:[#allocation119_spill] sm:$0xff] }
 0x775   : > { %4587 = vadd.xlane.f32.xlu1 %v10602_v20  ;;  %v10913_v37 = vpop.eup %7616  ;;  %7636 = vpow2.f32 %v4279_v11  ;;  %v4241_v40 = vmul.f32 1.442695, %v4155_v7  ;;  %v4433_v32 = vmul.f32 1.442695, %v4347_v25  ;;  %v4846_v10 = vpack.c.bf16 %v10907_v53, %v10895_v57  ;;  %v3992_v4 = vpop.xlane.xlu1 %3991  ;;  %v13403_v20 = vld [vmem:[#allocation273_spill] sm:$0xff] }
 0x776   : > { %13401 = vst [vmem:[#allocation86_spill] sm:$0xff] %v10913_v37  ;;  %v10917_v47 = vpop.eup %7618  ;;  %7638 = vpow2.f32 %v4471_v22  ;;  %v4243_v1 = vmul.f32 1.442695, %v4156_v63  ;;  %v4435_v24 = vmul.f32 1.442695, %v4348_v28  ;;  %v4157_v3 = vsub.f32 %v13400_v50, %v4093_v15  ;;  %4581 = vadd.xlane.f32.xlu0 %v10615_v58  ;;  %v4034_v25 = vpop.xlane.xlu0 %4033  ;;  %v13406_v28 = vld [vmem:[#allocation149_spill] sm:$0xff] }
 0x777   : > { %v10921_v34 = vpop.eup %7620  ;;  %7640 = vpow2.f32 %v4241_v40  ;;  %v4349_v11 = vsub.f32 %v13403_v20, %v4093_v15  ;;  %6800 = vmatmul.mubr.bf16.gmra.mrb[112].mxu0 %v4846_v10  ;;  %v4094_v7 = vmax.f32 %v13404_v23, %v3992_v4  ;;  %v10927_v33 = vmul.f32 %v10815_v35, %v10395_v61  ;;  %v13408_v61 = vld [vmem:[#allocation275_spill] sm:$0xff] }
 0x778   : > { %13402 = vst [vmem:[#allocation218_spill] sm:$0xff] %v10921_v34  ;;  %v10929_v22 = vpop.eup %7622  ;;  %7642 = vpow2.f32 %v4433_v32  ;;  %v4245_v63 = vmul.f32 1.442695, %v4157_v3  ;;  %v4115_v50 = vmax.f32 %v13406_v28, %v4034_v25  ;;  %v10935_v58 = vmul.f32 %v10745_v43, %v10399_v16  ;;  %v13409_v3 = vld [vmem:[#allocation244_spill] sm:$0xff] }
 0x779   : > { %13405 = vst [vmem:[#allocation85_spill] sm:$0xff] %v10927_v33  ;;  %4583 = vadd.xlane.f32.xlu1 %v10627_v38  ;;  %v10937_v15 = vpop.eup %7624  ;;  %7644 = vpow2.f32 %v4243_v1  ;;  %v4437_v40 = vmul.f32 1.442695, %v4349_v11  ;;  %v4158_v10 = vsub.f32 %v13404_v23, %v4094_v7  ;;  %v4350_v4 = vsub.f32 %v13408_v61, %v4094_v7  ;;  %v4036_v20 = vpop.xlane.xlu1 %4035  ;;  %v13410_v23 = vld [vmem:[#allocation148_spill] sm:$0xff] }
 0x77a   : > { %13407 = vst [vmem:[#allocation239_spill] sm:$0xff] %v10935_v58  ;;  %v10941_v33 = vpop.eup %7626  ;;  %7646 = vpow2.f32 %v4435_v24  ;;  %v4179_v32 = vsub.f32 %v13406_v28, %v4115_v50  ;;  %v4371_v38 = vsub.f32 %v13409_v3, %v4115_v50  ;;  %v4847_v16 = vpack.c.bf16 %v10929_v22, %v10917_v47  ;;  %4593 = vadd.xlane.f32.xlu0 %v10642_v26  ;;  %v4030_v61 = vpop.xlane.xlu0 %4029  ;;  %v13411_v50 = vld [vmem:[#allocation155_spill] sm:$0xff] }
 0x77b   : > { %v10948_v25 = vpop.eup %7628  ;;  %7648 = vpow2.f32 %v4245_v63  ;;  %v4247_v1 = vmul.f32 1.442695, %v4158_v10  ;;  %v4439_v11 = vmul.f32 1.442695, %v4350_v4  ;;  %v4116_v7 = vmax.f32 %v13410_v23, %v4036_v20  ;;  %v13412_v63 = vld [vmem:[#allocation246_spill] sm:$0xff] }
 0x77c   : > { %v10951_v58 = vpop.eup %7630  ;;  %7650 = vpow2.f32 %v4437_v40  ;;  %v4289_v24 = vmul.f32 1.442695, %v4179_v32  ;;  %v4481_v28 = vmul.f32 1.442695, %v4371_v38  ;;  %6803 = vmatprep.mubr.bf16.mxu0 %v4847_v16  ;;  %v4113_v3 = vmax.f32 %v13411_v50, %v4030_v61  ;;  %v13414_v32 = vld [vmem:[#allocation245_spill] sm:$0xff]  ;;  %v13415_v16 = vld [vmem:[#allocation152_spill] sm:$0xff] }
 0x77d   : > { %4595 = vadd.xlane.f32.xlu1 %v10655_v27  ;;  %v10955_v35 = vpop.eup %7632  ;;  %7652 = vpow2.f32 %v4247_v1  ;;  %v4180_v26 = vsub.f32 %v13410_v23, %v4116_v7  ;;  %v4372_v10 = vsub.f32 %v13412_v63, %v4116_v7  ;;  %v4032_v4 = vpop.xlane.xlu1 %4031  ;;  %v4858_v20 = vpack.c.bf16 %v10951_v58, %v10941_v33 }
 0x77e   : > { %v10961_v43 = vpop.eup %7634  ;;  %7654 = vpow2.f32 %v4439_v11  ;;  %v4177_v40 = vsub.f32 %v13411_v50, %v4113_v3  ;;  %v4369_v38 = vsub.f32 %v13414_v32, %v4113_v3  ;;  %v4114_v27 = vmax.f32 %v13415_v16, %v4032_v4  ;;  %4589 = vadd.xlane.f32.xlu0 %v10669_v8  ;;  %v3994_v61 = vpop.xlane.xlu0 %3993 }
 0x77f   : > { %13413 = vst [vmem:[#allocation160_spill] sm:$0xff] %v10961_v43  ;;  %v10967_v1 = vpop.eup %7636  ;;  %7656 = vpow2.f32 %v4289_v24  ;;  %v4291_v23 = vmul.f32 1.442695, %v4180_v26  ;;  %v4483_v7 = vmul.f32 1.442695, %v4372_v10  ;;  %v10971_v63 = vmul.f32 %v10849_v18, %v10477_v17  ;;  %v13419_v24 = vld [vmem:[#allocation248_spill] sm:$0xff] }
 0x780   : > { %v10973_v36 = vpop.eup %7638  ;;  %7658 = vpow2.f32 %v4481_v28  ;;  %v4285_v11 = vmul.f32 1.442695, %v4177_v40  ;;  %v4477_v50 = vmul.f32 1.442695, %v4369_v38  ;;  %v4178_v3 = vsub.f32 %v13415_v16, %v4114_v27  ;;  %v13420_v10 = vld [vmem:[#allocation112_spill] sm:$0xff]  ;;  %v13421_v40 = vld [vmem:[#allocation113_spill] sm:$0xff] }
 0x781   : > { %13416 = vst [vmem:[#allocation242_spill] sm:$0xff] %v10971_v63  ;;  %13417 = vst [vmem:[#allocation88_spill] sm:$0xff] %v10973_v36  ;;  %4591 = vadd.xlane.f32.xlu1 %v10678_v49  ;;  %v10977_v8 = vpop.eup %7640  ;;  %7660 = vpow2.f32 %v4291_v23  ;;  %v4370_v26 = vsub.f32 %v13419_v24, %v4114_v27  ;;  %v4095_v4 = vmax.f32 %v13420_v10, %v3994_v61  ;;  %v3996_v32 = vpop.xlane.xlu1 %3995  ;;  %v7212_v63 = vld [vmem:[#allocation14 + $0x4] ss:$8 sps:$4 sm:$0xff]   ;;  %v7210_v49 = vld [vmem:[#allocation14] ss:$8 sps:$4 sm:$0xff]  }
 0x782   : > { %13418 = vst [vmem:[#allocation159_spill] sm:$0xff] %v10977_v8  ;;  %v4857_v17 = vpack.c.bf16 %v10973_v36, %v10961_v43  ;;  %v10983_v18 = vpop.eup %7642  ;;  %7662 = vpow2.f32 %v4483_v7  ;;  %v4287_v28 = vmul.f32 1.442695, %v4178_v3  ;;  %v4096_v38 = vmax.f32 %v13421_v40, %v3996_v32  ;;  %4601 = vadd.xlane.f32.xlu0 %v10693_v46  ;;  %v13424_v24 = vld [vmem:[#allocation271_spill] sm:$0xff]  ;;  %v3998_v7 = vpop.xlane.xlu0 %3997  ;;  %5683 = vmatprep.subr.bf16.mxu0 %v7212_v63  ;;  %v13425_v32 = vld [vmem:[#allocation274_spill] sm:$0xff] }
 0x783   : > { %v10989_v16 = vmul.f32 %v10867_v2, %v10484_v31  ;;  %v10991_v27 = vpop.eup %7644  ;;  %7664 = vpow2.f32 %v4285_v11  ;;  %v4479_v23 = vmul.f32 1.442695, %v4370_v26  ;;  %v4159_v61 = vsub.f32 %v13420_v10, %v4095_v4  ;;  %v13426_v31 = vld [vmem:[#allocation120_spill] sm:$0xff]  ;;  %5684 = vmatpush1.bf16.msra.mxu0 %v7210_v49 }
 0x784   : > { %13423 = vst [vmem:[#allocation91_spill] sm:$0xff] %v10991_v27  ;;  %v4351_v36 = vsub.f32 %v13424_v24, %v4095_v4  ;;  %6839 = vmatprep.mubr.bf16.mxu1 %v4857_v17  ;;  %v10995_v3 = vpop.eup %7646  ;;  %7666 = vpow2.f32 %v4477_v50  ;;  %v4160_v46 = vsub.f32 %v13421_v40, %v4096_v38  ;;  %v4352_v43 = vsub.f32 %v13425_v32, %v4096_v38  ;;  %v7215_v50 = vld [vmem:[#allocation14 + $0x14] ss:$8 sps:$4 sm:$0xff]  }
 0x785   : > { %13422 = vst [vmem:[#allocation241_spill] sm:$0xff] %v10989_v16  ;;  %6840 = vmatmul.mubr.bf16.gmra.mrb[168].mxu1 %v4858_v20  ;;  %v4097_v16 = vmax.f32 %v13426_v31, %v3998_v7  ;;  %4603 = vadd.xlane.f32.xlu1 %v10705_v6  ;;  %v11001_v11 = vpop.eup %7648  ;;  %7668 = vpow2.f32 %v4287_v28  ;;  %v4249_v26 = vmul.f32 1.442695, %v4159_v61  ;;  %v4848_v63 = vpack.c.bf16 %v10995_v3, %v10983_v18  ;;  %v4000_v4 = vpop.xlane.xlu1 %3999  ;;  %v7213_v6 = vld [vmem:[#allocation14 + $0x10] ss:$8 sps:$4 sm:$0xff]  }
 0x786   : > { %13427 = vst [vmem:[#allocation95_spill] sm:$0xff] %v11001_v11  ;;  %v4441_v10 = vmul.f32 1.442695, %v4351_v36  ;;  %v11005_v17 = vpop.eup %7650  ;;  %7670 = vpow2.f32 %v4479_v23  ;;  %v4251_v40 = vmul.f32 1.442695, %v4160_v46  ;;  %4597 = vadd.xlane.f32.xlu0 %v10715_v14  ;;  %v13430_v36 = vld [vmem:[#allocation281_spill] sm:$0xff]  ;;  %v4042_v49 = vpop.xlane.xlu0 %4041  ;;  %5685 = vmatprep.subr.bf16.mxu0 %v7215_v50  ;;  %v11015_v23 = vmul.f32 %v10860_v51, %v10488_v21 }
 0x787   : > { %13428 = vst [vmem:[#allocation243_spill] sm:$0xff] %v11005_v17  ;;  %v4443_v20 = vmul.f32 1.442695, %v4352_v43  ;;  %v4161_v38 = vsub.f32 %v13426_v31, %v4097_v16  ;;  %v11009_v24 = vpop.eup %7652  ;;  %7672 = vpow2.f32 %v4249_v26  ;;  %v4353_v28 = vsub.f32 %v13430_v36, %v4097_v16  ;;  %6804 = vmatmul.mubr.bf16.gmra.mrb[116].mxu0 %v4848_v63  ;;  %v13431_v61 = vld [vmem:[#allocation122_spill] sm:$0xff]  ;;  %v13434_v14 = vld [vmem:[#allocation157_spill] sm:$0xff]  ;;  %v13436_v21 = vld [vmem:[#allocation283_spill] sm:$0xff] }
 0x788   : > { %13429 = vst [vmem:[#allocation97_spill] sm:$0xff] %v11009_v24  ;;  %v4098_v7 = vmax.f32 %v13431_v61, %v4000_v4  ;;  %13432 = vst [vmem:[#allocation96_spill] sm:$0xff] %v11015_v23  ;;  %v11017_v43 = vpop.eup %7654  ;;  %7674 = vpow2.f32 %v4441_v10  ;;  %v4119_v32 = vmax.f32 %v13434_v14, %v4042_v49  ;;  %v11023_v16 = vmul.f32 %v10889_v13, %v10403_v19  ;;  %v7218_v10 = vld [vmem:[#allocation14 + $0x24] ss:$8 sps:$4 sm:$0xff]  }
 0x789   : > { %13433 = vst [vmem:[#allocation99_spill] sm:$0xff] %v11017_v43  ;;  %v4253_v46 = vmul.f32 1.442695, %v4161_v38  ;;  %4599 = vadd.xlane.f32.xlu1 %v10729_v12  ;;  %v11025_v31 = vpop.eup %7656  ;;  %7676 = vpow2.f32 %v4251_v40  ;;  %v4445_v26 = vmul.f32 1.442695, %v4353_v28  ;;  %v4044_v50 = vpop.xlane.xlu1 %4043  ;;  %5686 = vmatpush1.bf16.msra.mxu0 %v7213_v6  ;;  %v13437_v36 = vld [vmem:[#allocation252_spill] sm:$0xff]  ;;  %v4849_v19 = vpack.c.bf16 %v11017_v43, %v11005_v17 }
 0x78a   : > { %13435 = vst [vmem:[#allocation158_spill] sm:$0xff] %v11023_v16  ;;  %v4162_v63 = vsub.f32 %v13431_v61, %v4098_v7  ;;  %v4354_v4 = vsub.f32 %v13436_v21, %v4098_v7  ;;  %v11029_v38 = vpop.eup %7658  ;;  %7678 = vpow2.f32 %v4443_v20  ;;  %v4183_v12 = vsub.f32 %v13434_v14, %v4119_v32  ;;  %4609 = vadd.xlane.f32.xlu0 %v10807_v0  ;;  %v7216_v40 = vld [vmem:[#allocation14 + $0x20] ss:$8 sps:$4 sm:$0xff]   ;;  %v4038_v16 = vpop.xlane.xlu0 %4037 }
 0x78b   : > { %v4375_v49 = vsub.f32 %v13437_v36, %v4119_v32  ;;  %v11036_v28 = vpop.eup %7660  ;;  %7680 = vpow2.f32 %v4253_v46  ;;  %v13438_v6 = vld [vmem:[#allocation156_spill] sm:$0xff]  ;;  %5687 = vmatprep.subr.bf16.mxu0 %v7218_v10  ;;  %6807 = vmatprep.mubr.bf16.mxu0 %v4849_v19  ;;  %v13439_v36 = vld [vmem:[#allocation161_spill] sm:$0xff] }
 0x78c   : > { %v4255_v61 = vmul.f32 1.442695, %v4162_v63  ;;  %v4447_v7 = vmul.f32 1.442695, %v4354_v4  ;;  %v4120_v21 = vmax.f32 %v13438_v6, %v4044_v50  ;;  %v11039_v20 = vpop.eup %7662  ;;  %7682 = vpow2.f32 %v4445_v26  ;;  %v13440_v63 = vld [vmem:[#allocation254_spill] sm:$0xff]  ;;  %v13442_v19 = vld [vmem:[#allocation61_spill] sm:$0xff] }
 0x78d   : > { %v4297_v14 = vmul.f32 1.442695, %v4183_v12  ;;  %v4489_v32 = vmul.f32 1.442695, %v4375_v49  ;;  %v4117_v23 = vmax.f32 %v13439_v36, %v4038_v16  ;;  %4611 = vadd.xlane.f32.xlu1 %v10819_v45  ;;  %v11043_v0 = vpop.eup %7664  ;;  %v4040_v50 = vpop.xlane.xlu1 %4039  ;;  %v4860_v10 = vpack.c.bf16 %v11039_v20, %v11029_v38  ;;  %5688 = vmatpush1.bf16.msra.mxu0 %v7216_v40  ;;  %v7221_v26 = vld [vmem:[#allocation14 + $0x34] ss:$8 sps:$4 sm:$0xff]  }
 0x78e   : > { %7684 = vpow2.f32 %v4255_v61  ;;  %v4184_v46 = vsub.f32 %v13438_v6, %v4120_v21  ;;  %v4376_v4 = vsub.f32 %v13440_v63, %v4120_v21  ;;  %v11049_v12 = vpop.eup %7666  ;;  %v13441_v49 = vld [vmem:[#allocation253_spill] sm:$0xff]  ;;  %v4118_v13 = vmax.f32 %v13442_v19, %v4040_v50  ;;  %4605 = vadd.xlane.f32.xlu0 %v10741_v42  ;;  %v4002_v43 = vpop.xlane.xlu0 %4001  ;;  %5689 = vmatprep.subr.bf16.mxu0 %v7221_v26 }
 0x78f   : > { %7686 = vpow2.f32 %v4447_v7  ;;  %v4181_v16 = vsub.f32 %v13439_v36, %v4117_v23  ;;  %v4373_v45 = vsub.f32 %v13441_v49, %v4117_v23  ;;  %v7219_v61 = vld [vmem:[#allocation14 + $0x30] ss:$8 sps:$4 sm:$0xff]   ;;  %v11055_v6 = vpop.eup %7668  ;;  %v11059_v40 = vmul.f32 %v10879_v52, %v10492_v44 }
 0x790   : > { %7688 = vpow2.f32 %v4297_v14  ;;  %v4299_v21 = vmul.f32 1.442695, %v4184_v46  ;;  %v4491_v63 = vmul.f32 1.442695, %v4376_v4  ;;  %v11061_v7 = vpop.eup %7670  ;;  %v4182_v50 = vsub.f32 %v13442_v19, %v4118_v13  ;;  %v13446_v14 = vld [vmem:[#allocation256_spill] sm:$0xff]  ;;  %v13447_v4 = vld [vmem:[#allocation177_spill] sm:$0xff] }
 0x791   : > { %13443 = vst [vmem:[#allocation249_spill] sm:$0xff] %v11059_v40  ;;  %13444 = vst [vmem:[#allocation251_spill] sm:$0xff] %v11061_v7  ;;  %7690 = vpow2.f32 %v4489_v32  ;;  %v4293_v23 = vmul.f32 1.442695, %v4181_v16  ;;  %v4485_v36 = vmul.f32 1.442695, %v4373_v45  ;;  %4607 = vadd.xlane.f32.xlu1 %v10753_v62  ;;  %v11065_v42 = vpop.eup %7672  ;;  %v4374_v46 = vsub.f32 %v13446_v14, %v4118_v13  ;;  %v4004_v49 = vpop.xlane.xlu1 %4003  ;;  %5690 = vmatpush1.bf16.msra.mxu0 %v7219_v61 }
 0x792   : > { %13445 = vst [vmem:[#allocation126_spill] sm:$0xff] %v11065_v42  ;;  %7692 = vpow2.f32 %v4299_v21  ;;  %v4099_v26 = vmax.f32 %v13447_v4, %v4002_v43  ;;  %v4859_v44 = vpack.c.bf16 %v11061_v7, %v11049_v12  ;;  %v7224_v40 = vld [vmem:[#allocation14 + $0x44] ss:$8 sps:$4 sm:$0xff]   ;;  %v11071_v32 = vpop.eup %7674  ;;  %v4295_v16 = vmul.f32 1.442695, %v4182_v50  ;;  %4617 = vadd.xlane.f32.xlu0 %v10895_v57 }
 0x793   : > { %7694 = vpow2.f32 %v4491_v63  ;;  %v13448_v45 = vld [vmem:[#allocation176_spill] sm:$0xff]  ;;  %v11077_v13 = vmul.f32 %v10825_v60, %v10407_v29  ;;  %v11079_v43 = vpop.eup %7676  ;;  %v4487_v21 = vmul.f32 1.442695, %v4374_v46  ;;  %v13451_v14 = vld [vmem:[#allocation279_spill] sm:$0xff]  ;;  %v3042_v63 = vpop.xlane.xlu0 %3041  ;;  %5691 = vmatprep.subr.bf16.mxu0 %v7224_v40 }
 0x794   : > { %v4100_v19 = vmax.f32 %v13448_v45, %v4004_v49  ;;  %v7222_v62 = vld [vmem:[#allocation14 + $0x40] ss:$8 sps:$4 sm:$0xff]   ;;  %13450 = vst [vmem:[#allocation220_spill] sm:$0xff] %v11079_v43  ;;  %7696 = vpow2.f32 %v4293_v23  ;;  %v4163_v61 = vsub.f32 %v13447_v4, %v4099_v26  ;;  %v4355_v17 = vsub.f32 %v13451_v14, %v4099_v26  ;;  %6843 = vmatprep.mubr.bf16.mxu1 %v4859_v44  ;;  %v11083_v50 = vpop.eup %7678  ;;  %v13452_v49 = vld [vmem:[#allocation282_spill] sm:$0xff] }
 0x795   : > { %13449 = vst [vmem:[#allocation62_spill] sm:$0xff] %v11077_v13  ;;  %7698 = vpow2.f32 %v4485_v36  ;;  %6844 = vmatmul.mubr.bf16.gmra.mrb[172].mxu1 %v4860_v10  ;;  %v3137_v29 = vadd.f32 %v3042_v63, %v10277_v59  ;;  %4619 = vadd.xlane.f32.xlu1 %v10907_v53  ;;  %v11089_v23 = vpop.eup %7680  ;;  %v4850_v40 = vpack.c.bf16 %v11083_v50, %v11071_v32  ;;  %v3044_v26 = vpop.xlane.xlu1 %3043  ;;  %v7227_v36 = vld [vmem:[#allocation14 + $0x54] ss:$8 sps:$4 sm:$0xff]  }
 0x796   : > { %v4164_v57 = vsub.f32 %v13448_v45, %v4100_v19  ;;  %v4356_v7 = vsub.f32 %v13452_v49, %v4100_v19  ;;  %13453 = vst [vmem:[#allocation98_spill] sm:$0xff] %v11089_v23  ;;  %7700 = vpow2.f32 %v4295_v16  ;;  %v4257_v46 = vmul.f32 1.442695, %v4163_v61  ;;  %5692 = vmatpush1.bf16.msra.mxu0 %v7222_v62  ;;  %v11093_v44 = vpop.eup %7682  ;;  %v13455_v45 = vld [vmem:[#allocation307_spill] sm:$0xff]  ;;  %4613 = vadd.xlane.f32.xlu0 %v10829_v55  ;;  %v7225_v16 = vld [vmem:[#allocation14 + $0x50] ss:$8 sps:$4 sm:$0xff]  }
 0x797   : > { %v4449_v4 = vmul.f32 1.442695, %v4355_v17  ;;  %13454 = vst [vmem:[#allocation127_spill] sm:$0xff] %v11093_v44  ;;  %v13456_v19 = vld [vmem:[#allocation219_spill] sm:$0xff]  ;;  %7702 = vpow2.f32 %v4487_v21  ;;  %v3138_v53 = vadd.f32 %v3044_v26, %v10280_v9  ;;  %6808 = vmatmul.mubr.bf16.gmra.mrb[120].mxu0 %v4850_v40  ;;  %v4050_v14 = vpop.xlane.xlu0 %4049  ;;  %5693 = vmatprep.subr.bf16.mxu0 %v7227_v36  ;;  %v11104_v62 = vmul.f32 %v10779_v5, %v3137_v29  ;;  %v13462_v55 = vld [vmem:[#allocation162_spill] sm:$0xff]  ;;  %v13465_v5 = vld [vmem:[#allocation52_spill] sm:$0xff] }
 0x798   : > { %v11097_v10 = vadd.f32 %v13456_v19, %v13455_v45  ;;  %v4451_v59 = vmul.f32 1.442695, %v4356_v7  ;;  %v11101_v17 = vpop.eup %7684  ;;  %v4259_v61 = vmul.f32 1.442695, %v4164_v57  ;;  %v11108_v63 = vmul.f32 %v10903_v41, %v10413_v56  ;;  %v13463_v57 = vld [vmem:[#allocation231_spill] sm:$0xff]  ;;  %v13467_v26 = vld [vmem:[#allocation153_spill] sm:$0xff] }
 0x799   : > { %13457 = vst [vmem:[#allocation130_spill] sm:$0xff] %v11101_v17  ;;  %13458 = vst [vmem:[#allocation94_spill] sm:$0xff] %v11104_v62  ;;  %v11112_v7 = vmul.f32 %v10833_v30, %v10417_v48  ;;  %v11114_v9 = vpop.eup %7686  ;;  %7704 = vpow2.f32 %v4257_v46  ;;  %v4123_v21 = vmax.f32 %v13462_v55, %v4050_v14  ;;  %4615 = vadd.xlane.f32.xlu1 %v10841_v39  ;;  %v4052_v40 = vpop.xlane.xlu1 %4051  ;;  %v7230_v46 = vld [vmem:[#allocation14 + $0x64] ss:$8 sps:$4 sm:$0xff]   ;;  %v13469_v39 = vld [vmem:[#allocation58_spill] sm:$0xff] }
 0x79a   : > { %13459 = vst [vmem:[#allocation222_spill] sm:$0xff] %v11108_v63  ;;  %13461 = vst [vmem:[#allocation133_spill] sm:$0xff] %v11114_v9  ;;  %v11119_v49 = vmul.f32 %v13463_v57, %v3138_v53  ;;  %v11123_v29 = vmul.f32 %v10937_v15, %v13465_v5  ;;  %v11125_v56 = vpop.eup %7688  ;;  %7706 = vpow2.f32 %v4449_v4  ;;  %v4851_v48 = vpack.c.bf16 %v11114_v9, %v11093_v44  ;;  %v13471_v4 = vld [vmem:[#allocation260_spill] sm:$0xff]  ;;  %v13481_v63 = vld [vmem:[#allocation202_spill] sm:$0xff] }
 0x79b   : > { %13460 = vst [vmem:[#allocation221_spill] sm:$0xff] %v11112_v7  ;;  %5694 = vmatpush1.bf16.msra.mxu0 %v7225_v16  ;;  %v11131_v36 = vmul.f32 %v10955_v35, %v13467_v26  ;;  %v11135_v19 = vmul.f32 %v10948_v25, %v13469_v39  ;;  %v11137_v53 = vpop.eup %7690  ;;  %7708 = vpow2.f32 %v4451_v59  ;;  %v4187_v14 = vsub.f32 %v13462_v55, %v4123_v21  ;;  %v13472_v5 = vld [vmem:[#allocation60_spill] sm:$0xff]  ;;  %v4046_v26 = vpop.xlane.xlu0 %4045  ;;  %v13474_v39 = vld [vmem:[#allocation34_spill] sm:$0xff]  ;;  %v13476_v59 = vld [vmem:[#allocation31_spill] sm:$0xff] }
 0x79c   : > { %13464 = vst [vmem:[#allocation164_spill] sm:$0xff] %v11119_v49  ;;  %13466 = vst [vmem:[#allocation63_spill] sm:$0xff] %v11123_v29  ;;  %v4379_v57 = vsub.f32 %v13471_v4, %v4123_v21  ;;  %v4124_v45 = vmax.f32 %v13472_v5, %v4052_v40  ;;  %v13473_v29 = vld [vmem:[#allocation227_spill] sm:$0xff]  ;;  %v11143_v7 = vpop.eup %7692  ;;  %7710 = vpow2.f32 %v4259_v61  ;;  %6811 = vmatprep.mubr.bf16.mxu0 %v4851_v48  ;;  %5695 = vmatprep.subr.bf16.mxu0 %v7230_v46  ;;  %v13478_v21 = vld [vmem:[#allocation38_spill] sm:$0xff] }
 0x79d   : > { %13468 = vst [vmem:[#allocation224_spill] sm:$0xff] %v11131_v36  ;;  %13470 = vst [vmem:[#allocation92_spill] sm:$0xff] %v11135_v19  ;;  %4649 = vadd.xlane.f32.xlu0 %v13473_v29  ;;  %v7228_v16 = vld [vmem:[#allocation14 + $0x60] ss:$8 sps:$4 sm:$0xff]   ;;  %v11147_v19 = vmul.f32 %v10977_v8, %v13474_v39  ;;  %v11151_v55 = vmul.f32 %v10967_v1, %v13476_v59  ;;  %v11155_v40 = vmul.f32 %v10913_v37, %v13478_v21  ;;  %v11157_v29 = vpop.eup %7694  ;;  %v13480_v48 = vld [vmem:[#allocation262_spill] sm:$0xff]  ;;  %v4048_v59 = vpop.xlane.xlu1 %4047 }
 0x79e   : > { %v4305_v4 = vmul.f32 1.442695, %v4187_v14  ;;  %v4497_v36 = vmul.f32 1.442695, %v4379_v57  ;;  %v4188_v61 = vsub.f32 %v13472_v5, %v4124_v45  ;;  %v4380_v46 = vsub.f32 %v13480_v48, %v4124_v45  ;;  %4651 = vadd.xlane.f32.xlu1 %v13481_v63  ;;  %v11162_v39 = vpop.eup %7696  ;;  %v13483_v21 = vld [vmem:[#allocation36_spill] sm:$0xff]  ;;  %v13485_v14 = vld [vmem:[#allocation81_spill] sm:$0xff] }
 0x79f   : > { %13475 = vst [vmem:[#allocation93_spill] sm:$0xff] %v11147_v19  ;;  %13477 = vst [vmem:[#allocation107_spill] sm:$0xff] %v11151_v55  ;;  %v13482_v19 = vld [vmem:[#allocation165_spill] sm:$0xff]  ;;  %v4862_v55 = vpack.c.bf16 %v11157_v29, %v11137_v53  ;;  %5696 = vmatpush1.bf16.msra.mxu0 %v7228_v16  ;;  %v11173_v57 = vmul.f32 %v10921_v34, %v13485_v14  ;;  %v11175_v45 = vpop.eup %7698  ;;  %v13490_v14 = vld [vmem:[#allocation56_spill] sm:$0xff] }
 0x7a0   : > { %13479 = vst [vmem:[#allocation247_spill] sm:$0xff] %v11155_v40  ;;  %v4121_v8 = vmax.f32 %v13482_v19, %v4046_v26  ;;  %v11169_v40 = vmul.f32 %v10991_v27, %v13483_v21  ;;  %7712 = vpow2.f32 %v4305_v4  ;;  %v4307_v63 = vmul.f32 1.442695, %v4188_v61  ;;  %v13487_v48 = vld [vmem:[#allocation65_spill] sm:$0xff]  ;;  %v11179_v37 = vpop.eup %7700  ;;  %v2978_v27 = vpop.xlane.xlu0 %2977 }
 0x7a1   : > { %13486 = vst [vmem:[#allocation102_spill] sm:$0xff] %v11173_v57  ;;  %v4499_v5 = vmul.f32 1.442695, %v4380_v46  ;;  %v4122_v26 = vmax.f32 %v13487_v48, %v4048_v59  ;;  %v13488_v13 = vld [vmem:[#allocation89_spill] sm:$0xff]  ;;  %7714 = vpow2.f32 %v4497_v36  ;;  %v11185_v57 = vmul.f32 %v11025_v31, %v13490_v14  ;;  %v11187_v4 = vpop.eup %7702  ;;  %v13492_v46 = vld [vmem:[#allocation264_spill] sm:$0xff]  ;;  %v2980_v14 = vpop.xlane.xlu1 %2979 }
 0x7a2   : > { %13484 = vst [vmem:[#allocation250_spill] sm:$0xff] %v11169_v40  ;;  %4645 = vadd.xlane.f32.xlu0 %v13488_v13  ;;  %v4185_v16 = vsub.f32 %v13482_v19, %v4121_v8  ;;  %v13489_v21 = vld [vmem:[#allocation261_spill] sm:$0xff]  ;;  %7716 = vpow2.f32 %v4307_v63  ;;  %v13494_v36 = vld [vmem:[#allocation204_spill] sm:$0xff]  ;;  %v4861_v62 = vpack.c.bf16 %v11187_v4, %v11175_v45 }
 0x7a3   : > { %v4377_v40 = vsub.f32 %v13489_v21, %v4121_v8  ;;  %v7233_v49 = vld [vmem:[#allocation14 + $0x74] ss:$8 sps:$4 sm:$0xff]   ;;  %13491 = vst [vmem:[#allocation109_spill] sm:$0xff] %v11185_v57  ;;  %v4186_v61 = vsub.f32 %v13487_v48, %v4122_v26  ;;  %v4378_v13 = vsub.f32 %v13492_v46, %v4122_v26  ;;  %4647 = vadd.xlane.f32.xlu1 %v13494_v36  ;;  %v7231_v19 = vld [vmem:[#allocation14 + $0x70] ss:$8 sps:$4 sm:$0xff]   ;;  %7718 = vpow2.f32 %v4499_v5  ;;  %v11195_v57 = vpop.eup %7704  ;;  %v13497_v26 = vld [vmem:[#allocation123_spill] sm:$0xff] }
 0x7a4   : > { %v13493_v59 = vld [vmem:[#allocation145_spill] sm:$0xff]  ;;  %v4301_v8 = vmul.f32 1.442695, %v4185_v16  ;;  %5697 = vmatprep.subr.bf16.mxu0 %v7233_v49  ;;  %13495 = vst [vmem:[#allocation163_spill] sm:$0xff] %v11195_v57  ;;  %v11202_v5 = vpop.eup %7706  ;;  %6847 = vmatprep.mubr.bf16.mxu1 %v4861_v62  ;;  %v7236_v16 = vld [vmem:[#allocation14 + $0x84] ss:$8 sps:$4 sm:$0xff]  }
 0x7a5   : > { %v3105_v34 = vadd.f32 %v2978_v27, %v13493_v59  ;;  %v4493_v21 = vmul.f32 1.442695, %v4377_v40  ;;  %v4303_v63 = vmul.f32 1.442695, %v4186_v61  ;;  %v4495_v9 = vmul.f32 1.442695, %v4378_v13  ;;  %5698 = vmatpush1.bf16.msra.mxu0 %v7231_v19  ;;  %v3046_v40 = vpop.xlane.xlu0 %3045  ;;  %6848 = vmatmul.mubr.bf16.gmra.mrb[176].mxu1 %v4862_v55 }
 0x7a6   : > { %v13496_v48 = vld [vmem:[#allocation285_spill] sm:$0xff]  ;;  %3017 = vadd.xlane.f32.xlu0 %v13497_v26  ;;  %v13498_v27 = vld [vmem:[#allocation59_spill] sm:$0xff]  ;;  %13500 = vst [vmem:[#allocation103_spill] sm:$0xff] %v11202_v5  ;;  %7720 = vpow2.f32 %v4301_v8  ;;  %v13505_v36 = vld [vmem:[#allocation42_spill] sm:$0xff]  ;;  %5699 = vmatprep.subr.bf16.mxu0 %v7236_v16 }
 0x7a7   : > { %v3106_v44 = vadd.f32 %v2980_v14, %v13496_v48  ;;  %v11200_v46 = vmul.f32 %v13498_v27, %v3105_v34  ;;  %v13501_v59 = vld [vmem:[#allocation29_spill] sm:$0xff]  ;;  %v13503_v61 = vld [vmem:[#allocation35_spill] sm:$0xff]  ;;  %v11214_v14 = vmul.f32 %v11065_v42, %v13505_v36  ;;  %v11216_v34 = vpop.eup %7708  ;;  %7722 = vpow2.f32 %v4493_v21  ;;  %v13508_v19 = vld [vmem:[#allocation308_spill] sm:$0xff]  ;;  %v3048_v21 = vpop.xlane.xlu1 %3047 }
 0x7a8   : > { %v11206_v49 = vmul.f32 %v11043_v0, %v13501_v59  ;;  %v11210_v13 = vmul.f32 %v11036_v28, %v13503_v61  ;;  %13507 = vst [vmem:[#allocation228_spill] sm:$0xff] %v11216_v34  ;;  %v3139_v62 = vadd.f32 %v3046_v40, %v13508_v19  ;;  %v13509_v8 = vld [vmem:[#allocation124_spill] sm:$0xff]  ;;  %v13510_v48 = vld [vmem:[#allocation57_spill] sm:$0xff]  ;;  %v13512_v59 = vld [vmem:[#allocation39_spill] sm:$0xff]  ;;  %7724 = vpow2.f32 %v4303_v63 }
 0x7a9   : > { %13499 = vst [vmem:[#allocation257_spill] sm:$0xff] %v11200_v46  ;;  %13506 = vst [vmem:[#allocation259_spill] sm:$0xff] %v11214_v14  ;;  %3019 = vadd.xlane.f32.xlu1 %v13509_v8  ;;  %v11221_v26 = vmul.f32 %v13510_v48, %v3106_v44  ;;  %v7234_v27 = vld [vmem:[#allocation14 + $0x80] ss:$8 sps:$4 sm:$0xff]   ;;  %v11225_v61 = vmul.f32 %v11055_v6, %v13512_v59  ;;  %v4852_v36 = vpack.c.bf16 %v11216_v34, %v11202_v5  ;;  %v13515_v55 = vld [vmem:[#allocation46_spill] sm:$0xff] }
 0x7aa   : > { %13502 = vst [vmem:[#allocation137_spill] sm:$0xff] %v11206_v49  ;;  %13504 = vst [vmem:[#allocation66_spill] sm:$0xff] %v11210_v13  ;;  %v11227_v13 = vpop.eup %7710  ;;  %v11233_v40 = vmul.f32 %v11001_v11, %v13515_v55  ;;  %v13517_v19 = vld [vmem:[#allocation44_spill] sm:$0xff]  ;;  %7726 = vpow2.f32 %v4495_v9  ;;  %v13519_v8 = vld [vmem:[#allocation309_spill] sm:$0xff]  ;;  %4621 = vadd.xlane.f32.xlu0 %v10917_v47  ;;  %5700 = vmatpush1.bf16.msra.mxu0 %v7234_v27  ;;  %v4058_v55 = vpop.xlane.xlu0 %4057 }
 0x7ab   : > { %13511 = vst [vmem:[#allocation110_spill] sm:$0xff] %v11221_v26  ;;  %13513 = vst [vmem:[#allocation136_spill] sm:$0xff] %v11225_v61  ;;  %v11237_v44 = vmul.f32 %v11079_v43, %v13517_v19  ;;  %v3140_v48 = vadd.f32 %v3048_v21, %v13519_v8  ;;  %v13520_v63 = vld [vmem:[#allocation87_spill] sm:$0xff]  ;;  %v13522_v42 = vld [vmem:[#allocation50_spill] sm:$0xff]  ;;  %6812 = vmatmul.mubr.bf16.gmra.mrb[124].mxu0 %v4852_v36 }
 0x7ac   : > { %13514 = vst [vmem:[#allocation139_spill] sm:$0xff] %v11227_v13  ;;  %13516 = vst [vmem:[#allocation106_spill] sm:$0xff] %v11233_v40  ;;  %v11242_v59 = vmul.f32 %v13520_v63, %v3139_v62  ;;  %v11246_v16 = vmul.f32 %v11009_v24, %v13522_v42  ;;  %v7239_v40 = vld [vmem:[#allocation14 + $0x94] ss:$8 sps:$4 sm:$0xff]   ;;  %v13528_v47 = vld [vmem:[#allocation151_spill] sm:$0xff]  ;;  %v11264_v42 = vpop.eup %7712 }
 0x7ad   : > { %13518 = vst [vmem:[#allocation230_spill] sm:$0xff] %v11237_v44  ;;  %v13524_v61 = vld [vmem:[#allocation33_spill] sm:$0xff]  ;;  %v11258_v27 = vmul.f32 %v11143_v7, %v13528_v47  ;;  %13532 = vst [vmem:[#allocation101_spill] sm:$0xff] %v11264_v42  ;;  %v13533_v36 = vld [vmem:[#allocation166_spill] sm:$0xff]  ;;  %4623 = vadd.xlane.f32.xlu1 %v10929_v22  ;;  %5701 = vmatprep.subr.bf16.mxu0 %v7239_v40 }
 0x7ae   : > { %13521 = vst [vmem:[#allocation229_spill] sm:$0xff] %v11242_v59  ;;  %13523 = vst [vmem:[#allocation138_spill] sm:$0xff] %v11246_v16  ;;  %v11250_v19 = vmul.f32 %v11125_v56, %v13524_v61  ;;  %v13526_v9 = vld [vmem:[#allocation37_spill] sm:$0xff]  ;;  %v4127_v63 = vmax.f32 %v13533_v36, %v4058_v55  ;;  %v13534_v43 = vld [vmem:[#allocation76_spill] sm:$0xff]  ;;  %v4060_v55 = vpop.xlane.xlu1 %4059 }
 0x7af   : > { %v11254_v21 = vmul.f32 %v11162_v39, %v13526_v9  ;;  %13529 = vst [vmem:[#allocation232_spill] sm:$0xff] %v11258_v27  ;;  %v13530_v62 = vld [vmem:[#allocation41_spill] sm:$0xff]  ;;  %v13536_v9 = vld [vmem:[#allocation43_spill] sm:$0xff]  ;;  %v13558_v14 = vld [vmem:[#allocation80_spill] sm:$0xff] }
 0x7b0   : > { %13525 = vst [vmem:[#allocation168_spill] sm:$0xff] %v11250_v19  ;;  %v11262_v8 = vmul.f32 %v11195_v57, %v13530_v62  ;;  %v7237_v61 = vld [vmem:[#allocation14 + $0x90] ss:$8 sps:$4 sm:$0xff]   ;;  %v11269_v19 = vmul.f32 %v13534_v43, %v3140_v48  ;;  %v11279_v62 = vpop.eup %7714  ;;  %v11289_v43 = vmul.f32 %v11101_v17, %v11097_v10  ;;  %v13545_v48 = vld [vmem:[#allocation47_spill] sm:$0xff]  ;;  %v13552_v10 = vld [vmem:[#allocation32_spill] sm:$0xff] }
 0x7b1   : > { %13527 = vst [vmem:[#allocation67_spill] sm:$0xff] %v11254_v21  ;;  %v11273_v21 = vmul.f32 %v11179_v37, %v13536_v9  ;;  %v13538_v47 = vld [vmem:[#allocation45_spill] sm:$0xff]  ;;  %v13540_v57 = vld [vmem:[#allocation326_spill] sm:$0xff]  ;;  %v11293_v9 = vmul.f32 %v11264_v42, %v13545_v48  ;;  %5702 = vmatpush1.bf16.msra.mxu0 %v7237_v61  ;;  %v11305_v17 = vmul.f32 0.0, %v13552_v10  ;;  %v13553_v48 = vld [vmem:[#allocation28_spill] sm:$0xff]  ;;  %4659 = vadd.xlane.f32.xlu1 %v13558_v14 }
 0x7b2   : > { %13531 = vst [vmem:[#allocation100_spill] sm:$0xff] %v11262_v8  ;;  %13535 = vst [vmem:[#allocation115_spill] sm:$0xff] %v11269_v19  ;;  %v11277_v27 = vmul.f32 %v11089_v23, %v13538_v47  ;;  %v13541_v8 = vld [vmem:[#allocation206_spill] sm:$0xff]  ;;  %v13542_v22 = vld [vmem:[#allocation53_spill] sm:$0xff]  ;;  %v11295_v47 = vpop.eup %7716 }
 0x7b3   : > { %13537 = vst [vmem:[#allocation255_spill] sm:$0xff] %v11273_v21  ;;  %v3578_v16 = vadd.f32 %v13541_v8, %v13540_v57  ;;  %v11285_v44 = vmul.f32 %v11227_v13, %v13542_v22  ;;  %13544 = vst [vmem:[#allocation117_spill] sm:$0xff] %v11289_v43  ;;  %v13548_v23 = vld [vmem:[#allocation328_spill] sm:$0xff]  ;;  %v4191_v8 = vsub.f32 %v13533_v36, %v4127_v63  ;;  %v13551_v22 = vld [vmem:[#allocation233_spill] sm:$0xff]  ;;  %v11302_v13 = vpop.eup %7718 }
 0x7b4   : > { %13539 = vst [vmem:[#allocation258_spill] sm:$0xff] %v11277_v27  ;;  %13546 = vst [vmem:[#allocation167_spill] sm:$0xff] %v11293_v9  ;;  %7728 = vpow2.f32 %v13548_v23  ;;  %v13549_v27 = vld [vmem:[#allocation268_spill] sm:$0xff]  ;;  %4657 = vadd.xlane.f32.xlu0 %v13551_v22  ;;  %v11308_v9 = vmul.f32 0.0, %v13553_v48  ;;  %v13555_v43 = vld [vmem:[#allocation170_spill] sm:$0xff]  ;;  %v4054_v23 = vpop.xlane.xlu0 %4053  ;;  %v11317_v49 = vpop.eup %7720 }
 0x7b5   : > { %13543 = vst [vmem:[#allocation108_spill] sm:$0xff] %v11285_v44  ;;  %13547 = vst [vmem:[#allocation265_spill] sm:$0xff] %v11295_v47  ;;  %v4383_v40 = vsub.f32 %v13549_v27, %v4127_v63  ;;  %v13550_v21 = vld [vmem:[#allocation64_spill] sm:$0xff]  ;;  %v2591_v44 = vsub.f32 -inf, %v13555_v43  ;;  %v11312_v36 = vmul.f32 %v11295_v47, %v3578_v16  ;;  %v4313_v27 = vmul.f32 1.442695, %v4191_v8 }
 0x7b6   : > { %v4128_v57 = vmax.f32 %v13550_v21, %v4060_v55  ;;  %13554 = vst [vmem:[#allocation111_spill] sm:$0xff] %v11308_v9  ;;  %v7242_v42 = vld [vmem:[#allocation14 + $0xa4] ss:$8 sps:$4 sm:$0xff]   ;;  %v13557_v61 = vld [vmem:[#allocation270_spill] sm:$0xff]  ;;  %v7240_v10 = vld [vmem:[#allocation14 + $0xa0] ss:$8 sps:$4 sm:$0xff]   ;;  %v4864_v8 = vpack.c.bf16 %v11302_v13, %v11279_v62 }
 0x7b7   : > { %13556 = vst [vmem:[#allocation141_spill] sm:$0xff] %v11312_v36  ;;  %v4505_v63 = vmul.f32 1.442695, %v4383_v40  ;;  %13559 = vst [vmem:[#allocation70_spill] sm:$0xff] %v11317_v49  ;;  %v13560_v48 = vld [vmem:[#allocation205_spill] sm:$0xff]  ;;  %v13561_v11 = vld [vmem:[#allocation207_spill] sm:$0xff]  ;;  %v4056_v36 = vpop.xlane.xlu1 %4055  ;;  %5703 = vmatprep.subr.bf16.mxu0 %v7242_v42  ;;  %7730 = vpow2.f32 %v4313_v27 }
 0x7b8   : > { %v4192_v55 = vsub.f32 %v13550_v21, %v4128_v57  ;;  %v4384_v22 = vsub.f32 %v13557_v61, %v4128_v57  ;;  %v3575_v24 = vadd.f32 %v13560_v48, %v11305_v17  ;;  %v3576_v19 = vadd.f32 %v13561_v11, %v11308_v9  ;;  %v13562_v59 = vld [vmem:[#allocation169_spill] sm:$0xff]  ;;  %v11326_v21 = vpop.eup %7722  ;;  %4653 = vadd.xlane.f32.xlu0 %v10873_v54  ;;  %v2982_v34 = vpop.xlane.xlu0 %2981  ;;  %v13568_v54 = vld [vmem:[#allocation143_spill] sm:$0xff]  ;;  %v13570_v46 = vld [vmem:[#allocation284_spill] sm:$0xff] }
 0x7b9   : > { %v4125_v16 = vmax.f32 %v13562_v59, %v4054_v23  ;;  %v13563_v40 = vld [vmem:[#allocation69_spill] sm:$0xff]  ;;  %5704 = vmatpush1.bf16.msra.mxu0 %v7240_v10  ;;  %v11330_v48 = vpop.eup %7724  ;;  %7732 = vpow2.f32 %v4505_v63  ;;  %v13569_v10 = vld [vmem:[#allocation90_spill] sm:$0xff] }
 0x7ba   : > { %v4315_v57 = vmul.f32 1.442695, %v4192_v55  ;;  %v4507_v14 = vmul.f32 1.442695, %v4384_v22  ;;  %v4126_v61 = vmax.f32 %v13563_v40, %v4056_v36  ;;  %13564 = vst [vmem:[#allocation267_spill] sm:$0xff] %v11330_v48  ;;  %v13565_v23 = vld [vmem:[#allocation269_spill] sm:$0xff]  ;;  %v11335_v42 = vmul.f32 %v11317_v49, %v3575_v24  ;;  %v11337_v5 = vpop.eup %7726  ;;  %4655 = vadd.xlane.f32.xlu1 %v13569_v10 }
 0x7bb   : > { %v4189_v11 = vsub.f32 %v13562_v59, %v4125_v16  ;;  %v4381_v47 = vsub.f32 %v13565_v23, %v4125_v16  ;;  %v13567_v36 = vld [vmem:[#allocation272_spill] sm:$0xff]  ;;  %v3107_v22 = vadd.f32 %v2982_v34, %v13568_v54  ;;  %v4863_v16 = vpack.c.bf16 %v11337_v5, %v11326_v21  ;;  %v2984_v23 = vpop.xlane.xlu1 %2983  ;;  %v7243_v24 = vld [vmem:[#allocation14 + $0xb0] ss:$8 sps:$4 sm:$0xff]   ;;  %v13571_v49 = vld [vmem:[#allocation171_spill] sm:$0xff] }
 0x7bc   : > { %13566 = vst [vmem:[#allocation236_spill] sm:$0xff] %v11335_v42  ;;  %7734 = vpow2.f32 %v4315_v57  ;;  %v4190_v27 = vsub.f32 %v13563_v40, %v4126_v61  ;;  %v4382_v55 = vsub.f32 %v13567_v36, %v4126_v61  ;;  %v3108_v57 = vadd.f32 %v2984_v23, %v13570_v46  ;;  %3085 = vadd.xlane.f32.xlu0 %v13571_v49  ;;  %v13572_v40 = vld [vmem:[#allocation51_spill] sm:$0xff]  ;;  %v7245_v34 = vld [vmem:[#allocation14 + $0xb4] ss:$8 sps:$4 sm:$0xff]   ;;  %v13577_v46 = vld [vmem:[#allocation312_spill] sm:$0xff] }
 0x7bd   : > { %7736 = vpow2.f32 %v4507_v14  ;;  %v4309_v63 = vmul.f32 1.442695, %v4189_v11  ;;  %v4501_v59 = vmul.f32 1.442695, %v4381_v47  ;;  %v11348_v61 = vmul.f32 %v13572_v40, %v3107_v22  ;;  %v13574_v54 = vld [vmem:[#allocation73_spill] sm:$0xff]  ;;  %6851 = vmatprep.mubr.bf16.mxu1 %v4863_v16  ;;  %v3050_v47 = vpop.xlane.xlu0 %3049  ;;  %v13578_v22 = vld [vmem:[#allocation174_spill] sm:$0xff]  ;;  %5705 = vmatprep.subr.bf16.mxu0 %v7245_v34 }
 0x7be   : > { %v4311_v42 = vmul.f32 1.442695, %v4190_v27  ;;  %v4503_v26 = vmul.f32 1.442695, %v4382_v55  ;;  %v2717_v36 = vmul.f32 1.442695, %v2591_v44  ;;  %v11352_v10 = vmul.f32 %v11330_v48, %v3576_v19  ;;  %v7729_v27 = vpop.eup %7728  ;;  %6852 = vmatmul.mubr.bf16.gmra.mrb[180].mxu1 %v4864_v8  ;;  %3087 = vadd.xlane.f32.xlu1 %v13578_v22 }
 0x7bf   : > { %13573 = vst [vmem:[#allocation118_spill] sm:$0xff] %v11348_v61  ;;  %v2590_v14 = vsub.f32 -inf, %v13574_v54  ;;  %7738 = vpow2.f32 %v4309_v63  ;;  %v7248_v11 = vld [vmem:[#allocation14 + $0xc4] ss:$8 sps:$4 sm:$0xff]   ;;  %v3141_v49 = vadd.f32 %v3050_v47, %v13577_v46  ;;  %v13579_v23 = vld [vmem:[#allocation49_spill] sm:$0xff]  ;;  %v13580_v40 = vld [vmem:[#allocation54_spill] sm:$0xff]  ;;  %v3052_v16 = vpop.xlane.xlu1 %3051  ;;  %5706 = vmatpush1.bf16.msra.mxu0 %v7243_v24 }
 0x7c0   : > { %13575 = vst [vmem:[#allocation140_spill] sm:$0xff] %v11352_v10  ;;  %v13576_v55 = vld [vmem:[#allocation175_spill] sm:$0xff]  ;;  %7740 = vpow2.f32 %v4501_v59  ;;  %v11358_v44 = vmul.f32 %v13579_v23, %v3108_v57  ;;  %v11361_v63 = vmul.f32 0.0, %v13580_v40  ;;  %v13582_v19 = vld [vmem:[#allocation68_spill] sm:$0xff]  ;;  %v13584_v48 = vld [vmem:[#allocation313_spill] sm:$0xff]  ;;  %5707 = vmatprep.subr.bf16.mxu0 %v7248_v11 }
 0x7c1   : > { %v2589_v9 = vsub.f32 -inf, %v13576_v55  ;;  %7742 = vpow2.f32 %v4311_v42  ;;  %v13583_v10 = vsub.f32 -inf, %v13582_v19  ;;  %v3142_v59 = vadd.f32 %v3052_v16, %v13584_v48  ;;  %v13585_v8 = vld [vmem:[#allocation125_spill] sm:$0xff]  ;;  %v7246_v47 = vld [vmem:[#allocation14 + $0xc0] ss:$8 sps:$4 sm:$0xff]   ;;  %v4066_v40 = vpop.xlane.xlu0 %4065 }
 0x7c2   : > { %13581 = vst [vmem:[#allocation147_spill] sm:$0xff] %v11361_v63  ;;  %7744 = vpow2.f32 %v4503_v26  ;;  %3021 = vadd.xlane.f32.xlu0 %v13585_v8  ;;  %v11368_v46 = vmul.f32 %v10867_v2, %v3141_v49  ;;  %v13587_v57 = vld [vmem:[#allocation208_spill] sm:$0xff]  ;;  %v2715_v34 = vmul.f32 1.442695, %v2590_v14  ;;  %v11375_v26 = vpop.eup %7730  ;;  %v11378_v24 = vmax.f32 %v13555_v43, %v4066_v40  ;;  %v13591_v16 = vld [vmem:[#allocation121_spill] sm:$0xff]  ;;  %v13593_v8 = vld [vmem:[#allocation210_spill] sm:$0xff] }
 0x7c3   : > { %v2719_v61 = vmul.f32 1.442695, %v13583_v10  ;;  %v3581_v22 = vadd.f32 %v13587_v57, %v11361_v63  ;;  %v13588_v23 = vld [vmem:[#allocation40_spill] sm:$0xff]  ;;  %v7251_v10 = vld [vmem:[#allocation14 + $0xd4] ss:$8 sps:$4 sm:$0xff]   ;;  %13590 = vst [vmem:[#allocation237_spill] sm:$0xff] %v11375_v26  ;;  %7746 = vpow2.f32 %v2717_v36  ;;  %3023 = vadd.xlane.f32.xlu1 %v13591_v16  ;;  %v11382_v2 = vmul.f32 %v10879_v52, %v3142_v59  ;;  %v11384_v49 = vpop.eup %7732  ;;  %v4068_v57 = vpop.xlane.xlu1 %4067  ;;  %5708 = vmatpush1.bf16.msra.mxu0 %v7246_v47 }
 0x7c4   : > { %13586 = vst [vmem:[#allocation114_spill] sm:$0xff] %v11368_v46  ;;  %v11373_v42 = vmul.f32 0.0, %v13588_v23  ;;  %v2713_v48 = vmul.f32 1.442695, %v2589_v9  ;;  %v4195_v9 = vsub.f32 %v13555_v43, %v11378_v24  ;;  %v4132_v36 = vmax.f32 %v13582_v19, %v4068_v57  ;;  %v7249_v52 = vld [vmem:[#allocation14 + $0xd0] ss:$8 sps:$4 sm:$0xff]   ;;  %5709 = vmatprep.subr.bf16.mxu0 %v7251_v10 }
 0x7c5   : > { %13592 = vst [vmem:[#allocation144_spill] sm:$0xff] %v11382_v2  ;;  %v11389_v11 = vmul.f32 %v11375_v26, %v3581_v22  ;;  %7748 = vpow2.f32 %v2719_v61  ;;  %v11399_v40 = vmul.f32 0.0, %v7729_v27  ;;  %v13597_v16 = vld [vmem:[#allocation48_spill] sm:$0xff]  ;;  %v4062_v22 = vpop.xlane.xlu0 %4061  ;;  %v13602_v27 = vld [vmem:[#allocation209_spill] sm:$0xff] }
 0x7c6   : > { %13589 = vst [vmem:[#allocation238_spill] sm:$0xff] %v11373_v42  ;;  %v3582_v14 = vadd.f32 %v13593_v8, %v11373_v42  ;;  %v11391_v23 = vpop.eup %7734  ;;  %4665 = vadd.xlane.f32.xlu0 %v10941_v33  ;;  %v11402_v8 = vmul.f32 0.0, %v13597_v16  ;;  %7750 = vpow2.f32 %v2715_v34  ;;  %v4321_v43 = vmul.f32 1.442695, %v4195_v9  ;;  %v13600_v33 = vld [vmem:[#allocation278_spill] sm:$0xff]  ;;  %v13603_v34 = vld [vmem:[#allocation211_spill] sm:$0xff] }
 0x7c7   : > { %13594 = vst [vmem:[#allocation173_spill] sm:$0xff] %v11389_v11  ;;  %13595 = vst [vmem:[#allocation172_spill] sm:$0xff] %v11391_v23  ;;  %v11397_v59 = vpop.eup %7736  ;;  %7752 = vpow2.f32 %v2713_v48  ;;  %v4196_v57 = vsub.f32 %v13582_v19, %v4132_v36  ;;  %v4388_v47 = vsub.f32 %v13600_v33, %v4132_v36  ;;  %4667 = vadd.xlane.f32.xlu1 %v10951_v58  ;;  %v7254_v9 = vld [vmem:[#allocation14 + $0xe4] ss:$8 sps:$4 sm:$0xff]   ;;  %5710 = vmatpush1.bf16.msra.mxu0 %v7249_v52  ;;  %v13606_v42 = vld [vmem:[#allocation277_spill] sm:$0xff] }
 0x7c8   : > { %13596 = vst [vmem:[#allocation240_spill] sm:$0xff] %v11399_v40  ;;  %13598 = vst [vmem:[#allocation104_spill] sm:$0xff] %v11402_v8  ;;  %v11405_v61 = vmul.f32 %v11391_v23, %v3582_v14  ;;  %v3579_v16 = vadd.f32 %v13602_v27, %v11399_v40  ;;  %v3580_v26 = vadd.f32 %v13603_v34, %v11402_v8  ;;  %v4064_v14 = vpop.xlane.xlu1 %4063  ;;  %7754 = vpow2.f32 %v4321_v43  ;;  %v7252_v27 = vld [vmem:[#allocation14 + $0xe0] ss:$8 sps:$4 sm:$0xff]  }
 0x7c9   : > { %v11410_v11 = vpop.eup %7738  ;;  %v4129_v10 = vmax.f32 %v13576_v55, %v4062_v22  ;;  %v4866_v48 = vpack.c.bf16 %v11397_v59, %v11384_v49  ;;  %v4323_v36 = vmul.f32 1.442695, %v4196_v57  ;;  %v4515_v58 = vmul.f32 1.442695, %v4388_v47  ;;  %v13605_v22 = vld [vmem:[#allocation276_spill] sm:$0xff]  ;;  %v2986_v63 = vpop.xlane.xlu0 %2985  ;;  %5711 = vmatprep.subr.bf16.mxu0 %v7254_v9 }
 0x7ca   : > { %13599 = vst [vmem:[#allocation105_spill] sm:$0xff] %v11405_v61  ;;  %13601 = vst [vmem:[#allocation263_spill] sm:$0xff] %v11410_v11  ;;  %v11419_v19 = vpop.eup %7740  ;;  %v4130_v33 = vmax.f32 %v13574_v54, %v4064_v14  ;;  %v13604_v61 = vld [vmem:[#allocation160_spill] sm:$0xff]  ;;  %v4387_v34 = vsub.f32 %v13605_v22, %v11378_v24  ;;  %v11430_v43 = vmul.f32 %v11410_v11, %v3579_v16  ;;  %v7257_v24 = vld [vmem:[#allocation14 + $0xf4] ss:$8 sps:$4 sm:$0xff]  }
 0x7cb   : > { %4661 = vadd.xlane.f32.xlu0 %v13604_v61  ;;  %v11423_v23 = vpop.eup %7742  ;;  %v4193_v8 = vsub.f32 %v13576_v55, %v4129_v10  ;;  %v4385_v40 = vsub.f32 %v13606_v42, %v4129_v10  ;;  %7756 = vpow2.f32 %v4323_v36  ;;  %v13608_v61 = vld [vmem:[#allocation280_spill] sm:$0xff]  ;;  %v13611_v36 = vld [vmem:[#allocation289_spill] sm:$0xff]  ;;  %5712 = vmatpush1.bf16.msra.mxu0 %v7252_v27 }
 0x7cc   : > { %13607 = vst [vmem:[#allocation266_spill] sm:$0xff] %v11430_v43  ;;  %v11432_v57 = vpop.eup %7744  ;;  %v4194_v52 = vsub.f32 %v13574_v54, %v4130_v33  ;;  %v4386_v47 = vsub.f32 %v13608_v61, %v4130_v33  ;;  %v13609_v14 = vld [vmem:[#allocation288_spill] sm:$0xff]  ;;  %7758 = vpow2.f32 %v4515_v58  ;;  %v2988_v16 = vpop.xlane.xlu1 %2987  ;;  %v13612_v54 = vld [vmem:[#allocation223_spill] sm:$0xff]  ;;  %5713 = vmatprep.subr.bf16.mxu0 %v7257_v24  ;;  %v13617_v24 = vld [vmem:[#allocation310_spill] sm:$0xff] }
 0x7cd   : > { %v3109_v2 = vadd.f32 %v2986_v63, %v13609_v14  ;;  %v13610_v46 = vld [vmem:[#allocation88_spill] sm:$0xff]  ;;  %v4317_v55 = vmul.f32 1.442695, %v4193_v8  ;;  %v4509_v42 = vmul.f32 1.442695, %v4385_v40  ;;  %v4865_v10 = vpack.c.bf16 %v11432_v57, %v11419_v19  ;;  %v7747_v9 = vpop.eup %7746  ;;  %v3054_v40 = vpop.xlane.xlu0 %3053 }
 0x7ce   : > { %4663 = vadd.xlane.f32.xlu1 %v13610_v46  ;;  %v4319_v22 = vmul.f32 1.442695, %v4194_v52  ;;  %v4511_v43 = vmul.f32 1.442695, %v4386_v47  ;;  %v3110_v11 = vadd.f32 %v2988_v16, %v13611_v36  ;;  %v7255_v63 = vld [vmem:[#allocation14 + $0xf0] ss:$8 sps:$4 sm:$0xff]   ;;  %v11446_v8 = vmul.f32 %v11423_v23, %v3580_v26 }
 0x7cf   : > { %4625 = vadd.xlane.f32.xlu0 %v10983_v18  ;;  %v11443_v33 = vmul.f32 %v13612_v54, %v3109_v2  ;;  %v4513_v46 = vmul.f32 1.442695, %v4387_v34  ;;  %7760 = vpow2.f32 %v4317_v55  ;;  %6855 = vmatprep.mubr.bf16.mxu1 %v4865_v10  ;;  %v7749_v58 = vpop.eup %7748  ;;  %v13614_v52 = vld [vmem:[#allocation311_spill] sm:$0xff]  ;;  %v13615_v18 = vld [vmem:[#allocation74_spill] sm:$0xff]  ;;  %v11453_v47 = vmul.f32 0.0, %v7747_v9  ;;  %v13618_v55 = vld [vmem:[#allocation180_spill] sm:$0xff] }
 0x7d0   : > { %13613 = vst [vmem:[#allocation116_spill] sm:$0xff] %v11446_v8  ;;  %7762 = vpow2.f32 %v4509_v42  ;;  %6856 = vmatmul.mubr.bf16.gmra.mrb[184].mxu1 %v4866_v48  ;;  %v3143_v61 = vadd.f32 %v3054_v40, %v13614_v52  ;;  %v11451_v2 = vmul.f32 %v13615_v18, %v3110_v11  ;;  %v7751_v27 = vpop.eup %7750  ;;  %v3056_v34 = vpop.xlane.xlu1 %3055  ;;  %v13619_v42 = vld [vmem:[#allocation154_spill] sm:$0xff]  ;;  %5714 = vmatpush1.bf16.msra.mxu0 %v7255_v63  ;;  %v11462_v11 = vmul.f32 0.0, %v7749_v58  ;;  %v13628_v18 = vld [vmem:[#allocation287_spill] sm:$0xff] }
 0x7d1   : > { %13616 = vst [vmem:[#allocation273_spill] sm:$0xff] %v11453_v47  ;;  %7764 = vpow2.f32 %v4319_v22  ;;  %v7753_v14 = vpop.eup %7752  ;;  %v3144_v26 = vadd.f32 %v3056_v34, %v13617_v24  ;;  %v2990_v16 = vpop.xlane.xlu0 %2989  ;;  %v13623_v22 = vld [vmem:[#allocation286_spill] sm:$0xff] }
 0x7d2   : > { %4627 = vadd.xlane.f32.xlu1 %v10995_v3  ;;  %7766 = vpow2.f32 %v4511_v43  ;;  %v11458_v48 = vmul.f32 %v13619_v42, %v3143_v61  ;;  %v13620_v3 = vld [vmem:[#allocation212_spill] sm:$0xff]  ;;  %13621 = vst [vmem:[#allocation119_spill] sm:$0xff] %v11462_v11  ;;  %v11464_v9 = vpop.eup %7754  ;;  %v3111_v36 = vadd.f32 %v2990_v16, %v13623_v22  ;;  %v13624_v43 = vld [vmem:[#allocation179_spill] sm:$0xff]  ;;  %v13625_v40 = vld [vmem:[#allocation214_spill] sm:$0xff]  ;;  %v11492_v16 = vmul.f32 0.0, %v7751_v27 }
 0x7d3   : > { %3089 = vadd.xlane.f32.xlu0 %v13618_v55  ;;  %v3585_v10 = vadd.f32 %v13620_v3, %v11453_v47  ;;  %7768 = vpow2.f32 %v4513_v46  ;;  %13622 = vst [vmem:[#allocation149_spill] sm:$0xff] %v11464_v9  ;;  %v11469_v54 = vmul.f32 %v10860_v51, %v3144_v26  ;;  %v3586_v52 = vadd.f32 %v13625_v40, %v11462_v11  ;;  %v13629_v24 = vld [vmem:[#allocation190_spill] sm:$0xff]  ;;  %v13631_v3 = vld [vmem:[#allocation213_spill] sm:$0xff] }
 0x7d4   : > { %v2992_v63 = vpop.xlane.xlu1 %2991  ;;  %v11478_v46 = vmul.f32 0.0, %v7753_v14  ;;  %v11483_v55 = vmul.f32 %v13629_v24, %v3111_v36  ;;  %13632 = vst [vmem:[#allocation155_spill] sm:$0xff] %v11492_v16  ;;  %v13633_v14 = vld [vmem:[#allocation317_spill] sm:$0xff]  ;;  %v13637_v24 = vld [vmem:[#allocation316_spill] sm:$0xff] }
 0x7d5   : > { %v11474_v61 = vmul.f32 %v11464_v9, %v3585_v10  ;;  %v11476_v58 = vpop.eup %7756  ;;  %v3112_v34 = vadd.f32 %v2992_v63, %v13628_v18  ;;  %v3058_v26 = vpop.xlane.xlu0 %3057 }
 0x7d6   : > { %3091 = vadd.xlane.f32.xlu1 %v13624_v43  ;;  %13627 = vst [vmem:[#allocation244_spill] sm:$0xff] %v11476_v58  ;;  %v11485_v51 = vpop.eup %7758  ;;  %v11488_v42 = vmul.f32 %v11476_v58, %v3586_v52  ;;  %v3583_v10 = vadd.f32 %v13631_v3, %v11478_v46  ;;  %v3145_v22 = vadd.f32 %v3058_v26, %v13633_v14  ;;  %v13634_v43 = vld [vmem:[#allocation192_spill] sm:$0xff]  ;;  %v13640_v14 = vld [vmem:[#allocation79_spill] sm:$0xff] }
 0x7d7   : > { %13626 = vst [vmem:[#allocation275_spill] sm:$0xff] %v11474_v61  ;;  %4673 = vadd.xlane.f32.xlu0 %v11029_v38  ;;  %v11497_v38 = vmul.f32 %v13634_v43, %v3112_v34  ;;  %v13636_v52 = vld [vmem:[#allocation216_spill] sm:$0xff]  ;;  %v13641_v61 = vld [vmem:[#allocation251_spill] sm:$0xff] }
 0x7d8   : > { %13630 = vst [vmem:[#allocation148_spill] sm:$0xff] %v11488_v42  ;;  %v3060_v40 = vpop.xlane.xlu1 %3059  ;;  %v3584_v18 = vadd.f32 %v13636_v52, %v11492_v16  ;;  %v11508_v27 = vmul.f32 %v10955_v35, %v3145_v22  ;;  %v13648_v58 = vld [vmem:[#allocation199_spill] sm:$0xff] }
 0x7d9   : > { %v11499_v36 = vpop.eup %7760  ;;  %v3146_v42 = vadd.f32 %v3060_v40, %v13637_v24  ;;  %v2994_v26 = vpop.xlane.xlu0 %2993  ;;  %v13643_v40 = vld [vmem:[#allocation292_spill] sm:$0xff] }
 0x7da   : > { %4675 = vadd.xlane.f32.xlu1 %v11039_v20  ;;  %13635 = vst [vmem:[#allocation246_spill] sm:$0xff] %v11499_v36  ;;  %v11501_v63 = vpop.eup %7762  ;;  %v11511_v20 = vmul.f32 %v11499_v36, %v3583_v10  ;;  %v3113_v43 = vadd.f32 %v2994_v26, %v13640_v14 }
 0x7db   : > { %4669 = vadd.xlane.f32.xlu0 %v11049_v12  ;;  %v11513_v34 = vpop.eup %7764  ;;  %v11520_v52 = vmul.f32 %v10967_v1, %v3146_v42  ;;  %v13646_v42 = vld [vmem:[#allocation314_spill] sm:$0xff] }
 0x7dc   : > { %13638 = vst [vmem:[#allocation245_spill] sm:$0xff] %v11511_v20  ;;  %13639 = vst [vmem:[#allocation152_spill] sm:$0xff] %v11513_v34  ;;  %v11515_v3 = vpop.eup %7766  ;;  %v11523_v12 = vmul.f32 %v11513_v34, %v3584_v18  ;;  %v2996_v22 = vpop.xlane.xlu1 %2995  ;;  %v13644_v20 = vld [vmem:[#allocation129_spill] sm:$0xff]  ;;  %v13652_v34 = vld [vmem:[#allocation99_spill] sm:$0xff] }
 0x7dd   : > { %v11525_v35 = vpop.eup %7768  ;;  %v4867_v10 = vpack.c.bf16 %v11515_v3, %v11501_v63  ;;  %v3114_v24 = vadd.f32 %v2996_v22, %v13643_v40  ;;  %v3062_v1 = vpop.xlane.xlu0 %3061  ;;  %v13649_v22 = vld [vmem:[#allocation315_spill] sm:$0xff] }
 0x7de   : > { %4671 = vadd.xlane.f32.xlu1 %v13641_v61  ;;  %13642 = vst [vmem:[#allocation248_spill] sm:$0xff] %v11523_v12  ;;  %v4868_v26 = vpack.c.bf16 %v11485_v51, %v11525_v35  ;;  %v13645_v61 = vld [vmem:[#allocation198_spill] sm:$0xff]  ;;  %v3147_v18 = vadd.f32 %v3062_v1, %v13646_v42  ;;  %v13647_v12 = vld [vmem:[#allocation131_spill] sm:$0xff] }
 0x7df   : > { %3025 = vadd.xlane.f32.xlu0 %v13644_v20  ;;  %v11534_v14 = vmul.f32 %v13645_v61, %v3113_v43  ;;  %6859 = vmatprep.mubr.bf16.mxu1 %v4867_v10  ;;  %v11539_v9 = vmul.f32 %v13648_v58, %v3114_v24  ;;  %v13650_v20 = vld [vmem:[#allocation243_spill] sm:$0xff]  ;;  %v13651_v61 = vld [vmem:[#allocation290_spill] sm:$0xff]  ;;  %v13654_v24 = vld [vmem:[#allocation196_spill] sm:$0xff] }
 0x7e0   : > { %6860 = vmatmul.mubr.bf16.gmra.mrb[188].mxu1 %v4868_v26  ;;  %v3064_v11 = vpop.xlane.xlu1 %3063  ;;  %v11544_v47 = vmul.f32 %v10937_v15, %v3147_v18  ;;  %v13653_v1 = vld [vmem:[#allocation291_spill] sm:$0xff]  ;;  %v13656_v18 = vld [vmem:[#allocation197_spill] sm:$0xff] }
 0x7e1   : > { %v3148_v40 = vadd.f32 %v3064_v11, %v13649_v22  ;;  %v2998_v43 = vpop.xlane.xlu0 %2997  ;;  %v13655_v22 = vld [vmem:[#allocation321_spill] sm:$0xff] }
 0x7e2   : > { %3027 = vadd.xlane.f32.xlu1 %v13647_v12  ;;  %v3115_v10 = vadd.f32 %v2998_v43, %v13651_v61  ;;  %v13657_v43 = vld [vmem:[#allocation320_spill] sm:$0xff]  ;;  %v13658_v61 = vld [vmem:[#allocation294_spill] sm:$0xff] }
 0x7e3   : > { %4629 = vadd.xlane.f32.xlu0 %v13650_v20  ;;  %v11549_v26 = vmul.f32 %v10948_v25, %v3148_v40 }
 0x7e4   : > { %v3000_v12 = vpop.xlane.xlu1 %2999  ;;  %v11554_v11 = vmul.f32 %v13654_v24, %v3115_v10  ;;  %v13660_v24 = vld [vmem:[#allocation178_spill] sm:$0xff] }
 0x7e5   : > { %v3116_v58 = vadd.f32 %v3000_v12, %v13653_v1  ;;  %v3066_v42 = vpop.xlane.xlu0 %3065  ;;  %v13659_v1 = vld [vmem:[#allocation296_spill] sm:$0xff] }
 0x7e6   : > { %4631 = vadd.xlane.f32.xlu1 %v13652_v34  ;;  %v3149_v15 = vadd.f32 %v3066_v42, %v13655_v22  ;;  %v13661_v42 = vld [vmem:[#allocation71_spill] sm:$0xff] }
 0x7e7   : > { %4681 = vadd.xlane.f32.xlu0 %v11137_v53  ;;  %v11559_v20 = vmul.f32 %v13656_v18, %v3116_v58  ;;  %v13662_v18 = vld [vmem:[#allocation318_spill] sm:$0xff] }
 0x7e8   : > { %v3068_v34 = vpop.xlane.xlu1 %3067  ;;  %v11564_v40 = vmul.f32 %v11043_v0, %v3149_v15  ;;  %v13663_v15 = vld [vmem:[#allocation181_spill] sm:$0xff] }
 0x7e9   : > { %v3150_v25 = vadd.f32 %v3068_v34, %v13657_v43  ;;  %v3002_v53 = vpop.xlane.xlu0 %3001  ;;  %v13664_v34 = vld [vmem:[#allocation75_spill] sm:$0xff] }
 0x7ea   : > { %4683 = vadd.xlane.f32.xlu1 %v11157_v29  ;;  %v3117_v10 = vadd.f32 %v3002_v53, %v13658_v61  ;;  %v13665_v53 = vld [vmem:[#allocation319_spill] sm:$0xff] }
 0x7eb   : > { %4677 = vadd.xlane.f32.xlu0 %v11175_v45  ;;  %v11569_v12 = vmul.f32 %v11055_v6, %v3150_v25  ;;  %v13666_v25 = vld [vmem:[#allocation132_spill] sm:$0xff] }
 0x7ec   : > { %v3004_v29 = vpop.xlane.xlu1 %3003  ;;  %v11574_v22 = vmul.f32 %v13661_v42, %v3117_v10 }
 0x7ed   : > { %v3118_v58 = vadd.f32 %v3004_v29, %v13659_v1  ;;  %v3070_v45 = vpop.xlane.xlu0 %3069  ;;  %v13667_v1 = vld [vmem:[#allocation293_spill] sm:$0xff] }
 0x7ee   : > { %4679 = vadd.xlane.f32.xlu1 %v11187_v4  ;;  %v3151_v0 = vadd.f32 %v3070_v45, %v13662_v18  ;;  %v13669_v18 = vld [vmem:[#allocation295_spill] sm:$0xff] }
 0x7ef   : > { %3093 = vadd.xlane.f32.xlu0 %v13660_v24  ;;  %v11579_v43 = vmul.f32 %v13664_v34, %v3118_v58  ;;  %v13668_v24 = vld [vmem:[#allocation128_spill] sm:$0xff] }
 0x7f0   : > { %v3072_v4 = vpop.xlane.xlu1 %3071  ;;  %v11584_v61 = vmul.f32 %v11025_v31, %v3151_v0  ;;  %v13672_v0 = vld [vmem:[#allocation78_spill] sm:$0xff] }
 0x7f1   : > { %v3152_v6 = vadd.f32 %v3072_v4, %v13665_v53  ;;  %v3006_v29 = vpop.xlane.xlu0 %3005  ;;  %v13671_v53 = vld [vmem:[#allocation324_spill] sm:$0xff] }
 0x7f2   : > { %3095 = vadd.xlane.f32.xlu1 %v13663_v15  ;;  %v3119_v10 = vadd.f32 %v3006_v29, %v13667_v1  ;;  %v13670_v15 = vld [vmem:[#allocation77_spill] sm:$0xff] }
 0x7f3   : > { %3029 = vadd.xlane.f32.xlu0 %v13666_v25  ;;  %v11589_v42 = vmul.f32 %v11036_v28, %v3152_v6  ;;  %v13673_v1 = vld [vmem:[#allocation325_spill] sm:$0xff] }
 0x7f4   : > { %v3008_v45 = vpop.xlane.xlu1 %3007  ;;  %v11594_v34 = vmul.f32 %v13670_v15, %v3119_v10 }
 0x7f5   : > { %v3120_v58 = vadd.f32 %v3008_v45, %v13669_v18  ;;  %v3074_v4 = vpop.xlane.xlu0 %3073  ;;  %v13675_v18 = vld [vmem:[#allocation299_spill] sm:$0xff] }
 0x7f6   : > { %3031 = vadd.xlane.f32.xlu1 %v13668_v24  ;;  %v3153_v31 = vadd.f32 %v3074_v4, %v13671_v53  ;;  %v13674_v24 = vld [vmem:[#allocation297_spill] sm:$0xff]  ;;  %v13676_v4 = vld [vmem:[#allocation322_spill] sm:$0xff] }
 0x7f7   : > { %4689 = vadd.xlane.f32.xlu0 %v11279_v62  ;;  %v11599_v25 = vmul.f32 %v13672_v0, %v3120_v58  ;;  %v13678_v0 = vld [vmem:[#allocation184_spill] sm:$0xff] }
 0x7f8   : > { %v3076_v29 = vpop.xlane.xlu1 %3075  ;;  %v11604_v6 = vmul.f32 %v11162_v39, %v3153_v31  ;;  %v13677_v31 = vld [vmem:[#allocation323_spill] sm:$0xff] }
 0x7f9   : > { %v3154_v28 = vadd.f32 %v3076_v29, %v13673_v1  ;;  %v3010_v62 = vpop.xlane.xlu0 %3009  ;;  %v13679_v1 = vld [vmem:[#allocation82_spill] sm:$0xff] }
 0x7fa   : > { %4691 = vadd.xlane.f32.xlu1 %v11302_v13  ;;  %v3121_v10 = vadd.f32 %v3010_v62, %v13674_v24  ;;  %v13681_v24 = vld [vmem:[#allocation298_spill] sm:$0xff] }
 0x7fb   : > { %4685 = vadd.xlane.f32.xlu0 %v11326_v21  ;;  %v11609_v45 = vmul.f32 %v11179_v37, %v3154_v28  ;;  %v13680_v28 = vld [vmem:[#allocation183_spill] sm:$0xff] }
 0x7fc   : > { %v3012_v13 = vpop.xlane.xlu1 %3011  ;;  %v11614_v15 = vmul.f32 %v10825_v60, %v3121_v10  ;;  %v13682_v10 = vld [vmem:[#allocation235_spill] sm:$0xff] }
 0x7fd   : > { %v3122_v58 = vadd.f32 %v3012_v13, %v13675_v18  ;;  %v3078_v21 = vpop.xlane.xlu0 %3077 }
 0x7fe   : > { %4687 = vadd.xlane.f32.xlu1 %v11337_v5  ;;  %v3155_v39 = vadd.f32 %v3078_v21, %v13676_v4  ;;  %v13683_v4 = vld [vmem:[#allocation111_spill] sm:$0xff] }
 0x7ff   : > { %4633 = vadd.xlane.f32.xlu0 %v11071_v32  ;;  %v11619_v53 = vmul.f32 %v10833_v30, %v3122_v58 }
 0x800   : > { %v3080_v5 = vpop.xlane.xlu1 %3079  ;;  %v11624_v29 = vmul.f32 %v11125_v56, %v3155_v39  ;;  %v13684_v39 = vld [vmem:[#allocation70_spill] sm:$0xff] }
 0x801   : > { %v3156_v37 = vadd.f32 %v3080_v5, %v13677_v31  ;;  %v3014_v32 = vpop.xlane.xlu0 %3013  ;;  %v13685_v31 = vld [vmem:[#allocation267_spill] sm:$0xff] }
 0x802   : > { %4635 = vadd.xlane.f32.xlu1 %v11083_v50  ;;  %v3123_v60 = vadd.f32 %v3014_v32, %v13679_v1  ;;  %v13688_v1 = vld [vmem:[#allocation127_spill] sm:$0xff] }
 0x803   : > { %3097 = vadd.xlane.f32.xlu0 %v13678_v0  ;;  %v11629_v62 = vmul.f32 %v11143_v7, %v3156_v37  ;;  %v13686_v0 = vld [vmem:[#allocation134_spill] sm:$0xff] }
 0x804   : > { %v3016_v50 = vpop.xlane.xlu1 %3015  ;;  %v11634_v13 = vmul.f32 %v13682_v10, %v3123_v60  ;;  %v13692_v10 = vld [vmem:[#allocation118_spill] sm:$0xff] }
 0x805   : > { %v3124_v30 = vadd.f32 %v3016_v50, %v13681_v24  ;;  %v3082_v18 = vpop.xlane.xlu0 %3081  ;;  %v13690_v50 = vld [vmem:[#allocation182_spill] sm:$0xff] }
 0x806   : > { %3099 = vadd.xlane.f32.xlu1 %v13680_v28  ;;  %v3157_v56 = vadd.f32 %v3082_v18, %v11305_v17 }
 0x807   : > { %4697 = vadd.xlane.f32.xlu0 %v11384_v49  ;;  %v11639_v58 = vmul.f32 %v10903_v41, %v3124_v30  ;;  %v13687_v41 = vld [vmem:[#allocation135_spill] sm:$0xff] }
 0x808   : > { %v3084_v21 = vpop.xlane.xlu1 %3083  ;;  %v11644_v5 = vmul.f32 %v13684_v39, %v3157_v56 }
 0x809   : > { %v3158_v7 = vadd.f32 %v3084_v21, %v13683_v4  ;;  %v4586_v49 = vpop.xlane.xlu0 %4585  ;;  %v13693_v21 = vld [vmem:[#allocation257_spill] sm:$0xff] }
 0x80a   : > { %4699 = vadd.xlane.f32.xlu1 %v11397_v59  ;;  %v4711_v18 = vadd.f32 %v4586_v49, %v13692_v10  ;;  %v13696_v49 = vld [vmem:[#allocation186_spill] sm:$0xff]  ;;  %v13697_v10 = vld [vmem:[#allocation103_spill] sm:$0xff] }
 0x80b   : > { %4693 = vadd.xlane.f32.xlu0 %v11419_v19  ;;  %v11648_v37 = vmul.f32 %v13685_v31, %v3158_v7  ;;  %v13689_v19 = vld [vmem:[#allocation133_spill] sm:$0xff] }
 0x80c   : > { %v4588_v17 = vpop.xlane.xlu1 %4587  ;;  %7770 = vrcp.f32 %v4711_v18 }
 0x80d   : > { %v4582_v59 = vpop.xlane.xlu0 %4581  ;;  %v4712_v39 = vadd.f32 %v4588_v17, %v11358_v44 }
 0x80e   : > { %4695 = vadd.xlane.f32.xlu1 %v11432_v57  ;;  %v13691_v57 = vld [vmem:[#allocation185_spill] sm:$0xff]  ;;  %v4709_v4 = vadd.f32 %v4582_v59, %v13693_v21  ;;  %v13701_v21 = vld [vmem:[#allocation72_spill] sm:$0xff] }
 0x80f   : > { %3033 = vadd.xlane.f32.xlu0 %v13686_v0  ;;  %v13694_v0 = vld [vmem:[#allocation110_spill] sm:$0xff] }
 0x810   : > { %v4584_v32 = vpop.xlane.xlu1 %4583  ;;  %7772 = vrcp.f32 %v4709_v4 }
 0x811   : > { %v4594_v60 = vpop.xlane.xlu0 %4593  ;;  %7774 = vrcp.f32 %v4712_v39 }
 0x812   : > { %3035 = vadd.xlane.f32.xlu1 %v13687_v41  ;;  %v4710_v41 = vadd.f32 %v4584_v32, %v13694_v0 }
 0x813   : > { %4637 = vadd.xlane.f32.xlu0 %v13688_v1 }
 0x814   : > { %v4596_v28 = vpop.xlane.xlu1 %4595  ;;  %7776 = vrcp.f32 %v4710_v41  ;;  %v13702_v41 = vld [vmem:[#allocation189_spill] sm:$0xff] }
 0x815   : > { %v4590_v24 = vpop.xlane.xlu0 %4589 }
 0x816   : > { %4639 = vadd.xlane.f32.xlu1 %v13689_v19  ;;  %v13695_v19 = vld [vmem:[#allocation187_spill] sm:$0xff] }
 0x817   : > { %3101 = vadd.xlane.f32.xlu0 %v13690_v50 }
 0x818   : > { %v4592_v30 = vpop.xlane.xlu1 %4591 }
 0x819   : > { %v4602_v56 = vpop.xlane.xlu0 %4601  ;;  %v4714_v50 = vadd.f32 %v4592_v30, %v11451_v2  ;;  %v13700_v2 = vld [vmem:[#allocation188_spill] sm:$0xff] }
 0x81a   : > { %3103 = vadd.xlane.f32.xlu1 %v13691_v57  ;;  %v4719_v7 = vadd.f32 %v4602_v56, %v11554_v11  ;;  %v4713_v11 = vadd.f32 %v4590_v24, %v11443_v33  ;;  %v13698_v33 = vld [vmem:[#allocation55_spill] sm:$0xff] }
 0x81b   : > { %4701 = vadd.xlane.f32.xlu0 %v11501_v63 }
 0x81c   : > { %v4604_v31 = vpop.xlane.xlu1 %4603 }
 0x81d   : > { %v4720_v1 = vadd.f32 %v4604_v31, %v11559_v20  ;;  %v4598_v63 = vpop.xlane.xlu0 %4597  ;;  %v4716_v20 = vadd.f32 %v4596_v28, %v11497_v38  ;;  %v7771_v38 = vpop.eup %7770 }
 0x81e   : > { %4703 = vadd.xlane.f32.xlu1 %v11515_v3  ;;  %v4715_v3 = vadd.f32 %v4594_v60, %v11483_v55  ;;  %v6785_v55 = vpop.f32.mrb[96].mxu0  ;;  %v7773_v18 = vpop.eup %7772 }
 0x81f   : > { %3037 = vadd.xlane.f32.xlu0 %v13695_v19  ;;  %v5193_v60 = vadd.f32 %v6785_v55, %v13698_v33 }
 0x820   : > { %v4600_v59 = vpop.xlane.xlu1 %4599  ;;  %7778 = vrcp.f32 %v4715_v3 }
 0x821   : > { %v4610_v44 = vpop.xlane.xlu0 %4609  ;;  %7780 = vrcp.f32 %v4713_v11  ;;  %v11685_v56 = vmul.f32 %v7771_v38, %v5193_v60 }
 0x822   : > { %3039 = vadd.xlane.f32.xlu1 %v13696_v49  ;;  %v11670_v17 = vadd.f32 %v4610_v44, %v11594_v34  ;;  %v4903_v34 = vpop.f32.mrb[97].mxu0  ;;  %7782 = vrcp.f32 %v4716_v20  ;;  %v4717_v44 = vadd.f32 %v4598_v63, %v11534_v14 }
 0x823   : > { %4705 = vadd.xlane.f32.xlu0 %v11525_v35  ;;  %v5191_v28 = vadd.f32 %v4903_v34, %v13700_v2  ;;  %7784 = vrcp.f32 %v4714_v50 }
 0x824   : > { %v4612_v32 = vpop.xlane.xlu1 %4611  ;;  %7786 = vrcp.f32 %v4719_v7 }
 0x825   : > { %v11676_v57 = vadd.f32 %v4612_v32, %v11599_v25  ;;  %v4606_v35 = vpop.xlane.xlu0 %4605  ;;  %v6786_v25 = vpop.f32.mrb[98].mxu0  ;;  %v11691_v0 = vmul.f32 %v7773_v18, %v5191_v28  ;;  %7788 = vrcp.f32 %v4717_v44  ;;  %v13705_v28 = vld [vmem:[#allocation193_spill] sm:$0xff] }
 0x826   : > { %4707 = vadd.xlane.f32.xlu1 %v11485_v51  ;;  %v11681_v24 = vadd.f32 %v4606_v35, %v11574_v22  ;;  %v13699_v51 = vld [vmem:[#allocation228_spill] sm:$0xff]  ;;  %v5194_v4 = vadd.f32 %v6786_v25, %v13701_v21  ;;  %v4906_v39 = vpop.f32.mrb[99].mxu0  ;;  %v7775_v22 = vpop.eup %7774  ;;  %7790 = vrcp.f32 %v4720_v1  ;;  %v13707_v44 = vld [vmem:[#allocation229_spill] sm:$0xff] }
 0x827   : > { %4641 = vadd.xlane.f32.xlu0 %v13697_v10  ;;  %v5192_v19 = vadd.f32 %v4906_v39, %v13702_v41  ;;  %v7777_v3 = vpop.eup %7776  ;;  %v6789_v63 = vpop.f32.mrb[100].mxu0 }
 0x828   : > { %v4608_v30 = vpop.xlane.xlu1 %4607  ;;  %v11695_v11 = vmul.f32 %v7775_v22, %v5194_v4  ;;  %v4919_v60 = vpop.f32.mrb[101].mxu0 }
 0x829   : > { %v11689_v31 = vadd.f32 %v4608_v30, %v11579_v43  ;;  %v4618_v49 = vpop.xlane.xlu0 %4617  ;;  %v11700_v32 = vmul.f32 %v7777_v3, %v5192_v19  ;;  %v4718_v43 = vadd.f32 %v4600_v59, %v11539_v9 }
 0x82a   : > { %4643 = vadd.xlane.f32.xlu1 %v13699_v51  ;;  %v11698_v20 = vadd.f32 %v4618_v49, %v11634_v13  ;;  %v13703_v13 = vld [vmem:[#allocation191_spill] sm:$0xff]  ;;  %v7779_v9 = vpop.eup %7778  ;;  %v6790_v51 = vpop.f32.mrb[102].mxu0 }
 0x82b   : > { %v5197_v33 = vadd.f32 %v6789_v63, %v13703_v13  ;;  %v7781_v2 = vpop.eup %7780  ;;  %7792 = vrcp.f32 %v4718_v43  ;;  %v5198_v25 = vadd.f32 %v6790_v51, %v13705_v28  ;;  %v4922_v30 = vpop.f32.mrb[103].mxu0  ;;  %v13723_v63 = vld [vmem:[#allocation217_spill] sm:$0xff] }
 0x82c   : > { %v4620_v50 = vpop.xlane.xlu1 %4619  ;;  %v7783_v21 = vpop.eup %7782 }
 0x82d   : > { %v11704_v10 = vadd.f32 %v4620_v50, %v11639_v58  ;;  %v4614_v35 = vpop.xlane.xlu0 %4613  ;;  %v13704_v58 = vld [vmem:[#allocation194_spill] sm:$0xff]  ;;  %v11715_v7 = vmul.f32 %v7779_v9, %v5197_v33  ;;  %v7785_v22 = vpop.eup %7784  ;;  %v11724_v41 = vmul.f32 %v7783_v21, %v5198_v25 }
 0x82e   : > { %v11712_v34 = vadd.f32 %v4614_v35, %v11614_v15  ;;  %v5195_v59 = vadd.f32 %v4919_v60, %v13704_v58  ;;  %v13706_v15 = vld [vmem:[#allocation195_spill] sm:$0xff]  ;;  %v6793_v43 = vpop.f32.mrb[104].mxu0  ;;  %v13708_v35 = vld [vmem:[#allocation226_spill] sm:$0xff]  ;;  %v7787_v58 = vpop.eup %7786 }
 0x82f   : > { %v5196_v39 = vadd.f32 %v4922_v30, %v13706_v15  ;;  %v5201_v13 = vadd.f32 %v6793_v43, %v13708_v35  ;;  %v4935_v33 = vpop.f32.mrb[105].mxu0  ;;  %v13709_v60 = vld [vmem:[#allocation94_spill] sm:$0xff]  ;;  %v7789_v30 = vpop.eup %7788  ;;  %v13712_v15 = vld [vmem:[#allocation201_spill] sm:$0xff] }
 0x830   : > { %v4616_v38 = vpop.xlane.xlu1 %4615  ;;  %v11721_v4 = vmul.f32 %v7781_v2, %v5195_v59  ;;  %v13710_v59 = vld [vmem:[#allocation200_spill] sm:$0xff]  ;;  %v6794_v28 = vpop.f32.mrb[106].mxu0 }
 0x831   : > { %v11719_v18 = vadd.f32 %v4616_v38, %v11619_v53  ;;  %v4650_v1 = vpop.xlane.xlu0 %4649  ;;  %v11726_v19 = vmul.f32 %v7785_v22, %v5196_v39  ;;  %v5199_v51 = vadd.f32 %v4935_v33, %v13710_v59  ;;  %v13711_v38 = vld [vmem:[#allocation115_spill] sm:$0xff]  ;;  %v11737_v21 = vmul.f32 %v7787_v58, %v5201_v13  ;;  %v13713_v22 = vld [vmem:[#allocation164_spill] sm:$0xff]  ;;  %v7791_v43 = vpop.eup %7790 }
 0x832   : > { %v4743_v50 = vadd.f32 %v4650_v1, %v13707_v44  ;;  %v5202_v39 = vadd.f32 %v6794_v28, %v13712_v15  ;;  %v4938_v1 = vpop.f32.mrb[107].mxu0 }
 0x833   : > { %v11741_v35 = vmul.f32 %v7789_v30, %v5199_v51 }
 0x834   : > { %v4652_v49 = vpop.xlane.xlu1 %4651 }
 0x835   : > { %v4646_v53 = vpop.xlane.xlu0 %4645  ;;  %v4744_v2 = vadd.f32 %v4652_v49, %v13711_v38  ;;  %v7793_v59 = vpop.eup %7792  ;;  %v11744_v49 = vmul.f32 %v7791_v43, %v5202_v39  ;;  %v13715_v38 = vld [vmem:[#allocation146_spill] sm:$0xff] }
 0x836   : > { %v4741_v9 = vadd.f32 %v4646_v53, %v13709_v60  ;;  %v13714_v53 = vld [vmem:[#allocation225_spill] sm:$0xff]  ;;  %v6833_v43 = vpop.f32.mrb[160].mxu1  ;;  %v13722_v39 = vld [vmem:[#allocation234_spill] sm:$0xff] }
 0x837   : > { %v5200_v60 = vadd.f32 %v4938_v1, %v13714_v53  ;;  %v13718_v1 = vld [vmem:[#allocation218_spill] sm:$0xff] }
 0x838   : > { %v4648_v25 = vpop.xlane.xlu1 %4647  ;;  %7794 = vrcp.f32 %v4741_v9  ;;  %v13716_v9 = vld [vmem:[#allocation302_spill] sm:$0xff] }
 0x839   : > { %v4742_v44 = vadd.f32 %v4648_v25, %v13713_v22  ;;  %7796 = vrcp.f32 %v4743_v50  ;;  %v3018_v33 = vpop.xlane.xlu0 %3017  ;;  %v11747_v58 = vmul.f32 %v7793_v59, %v5200_v60  ;;  %v13717_v50 = vld [vmem:[#allocation86_spill] sm:$0xff]  ;;  %v5064_v59 = vpop.f32.mrb[161].mxu1 }
 0x83a   : > { %v3125_v13 = vadd.f32 %v3018_v33, %v13715_v38  ;;  %v13719_v33 = vld [vmem:[#allocation203_spill] sm:$0xff] }
 0x83b   : > { %7798 = vrcp.f32 %v4742_v44 }
 0x83c   : > { %7800 = vrcp.f32 %v4744_v2  ;;  %v3020_v28 = vpop.xlane.xlu1 %3019  ;;  %v4537_v51 = vmul.f32 %v13717_v50, %v3125_v13  ;;  %v13720_v13 = vld [vmem:[#allocation150_spill] sm:$0xff] }
 0x83d   : > { %7802 = vrcp.f32 %v11670_v17  ;;  %v3126_v25 = vadd.f32 %v3020_v28, %v13716_v9  ;;  %v4622_v15 = vpop.xlane.xlu0 %4621  ;;  %v5223_v28 = vadd.f32 %v5064_v59, %v13720_v13  ;;  %v6834_v9 = vpop.f32.mrb[162].mxu1  ;;  %v13724_v13 = vld [vmem:[#allocation84_spill] sm:$0xff] }
 0x83e   : > { %7804 = vrcp.f32 %v11681_v24  ;;  %v11758_v2 = vadd.f32 %v4622_v15, %v4537_v51  ;;  %v5225_v24 = vadd.f32 %v6833_v43, %v13719_v33  ;;  %v13721_v15 = vld [vmem:[#allocation215_spill] sm:$0xff] }
 0x83f   : > { %7806 = vrcp.f32 %v11676_v57  ;;  %v4538_v22 = vmul.f32 %v13718_v1, %v3126_v25  ;;  %v5226_v25 = vadd.f32 %v6834_v9, %v13721_v15  ;;  %v6797_v1 = vpop.f32.mrb[108].mxu0 }
 0x840   : > { %7808 = vrcp.f32 %v11689_v31  ;;  %v4624_v17 = vpop.xlane.xlu1 %4623  ;;  %v5067_v31 = vpop.f32.mrb[163].mxu1  ;;  %v5205_v3 = vadd.f32 %v6797_v1, %v13722_v39 }
 0x841   : > { %v11762_v44 = vadd.f32 %v4624_v17, %v4538_v22  ;;  %v4658_v53 = vpop.xlane.xlu0 %4657  ;;  %v5224_v43 = vadd.f32 %v5067_v31, %v13723_v63  ;;  %v4951_v33 = vpop.f32.mrb[109].mxu0  ;;  %v13727_v31 = vld [vmem:[#allocation239_spill] sm:$0xff] }
 0x842   : > { %v7795_v60 = vpop.eup %7794  ;;  %v4747_v17 = vadd.f32 %v4658_v53, %v11458_v48  ;;  %v5203_v8 = vadd.f32 %v4951_v33, %v13724_v13  ;;  %v6798_v36 = vpop.f32.mrb[110].mxu0  ;;  %v13726_v48 = vld [vmem:[#allocation85_spill] sm:$0xff] }
 0x843   : > { %v7797_v38 = vpop.eup %7796  ;;  %v5351_v22 = vmul.f32 %v7795_v60, %v5223_v28  ;;  %v5206_v53 = vadd.f32 %v6798_v36, %v13726_v48  ;;  %v4954_v39 = vpop.f32.mrb[111].mxu0 }
 0x844   : > { %v4660_v57 = vpop.xlane.xlu1 %4659  ;;  %v5353_v51 = vmul.f32 %v7797_v38, %v5225_v24  ;;  %v13725_v24 = vld [vmem:[#allocation114_spill] sm:$0xff] }
 0x845   : > { %v7799_v50 = vpop.eup %7798  ;;  %v4654_v55 = vpop.xlane.xlu0 %4653  ;;  %v4748_v60 = vadd.f32 %v4660_v57, %v11469_v54 }
 0x846   : > { %v7801_v30 = vpop.eup %7800  ;;  %v4745_v38 = vadd.f32 %v4654_v55, %v13725_v24  ;;  %v5352_v16 = vmul.f32 %v7799_v50, %v5224_v43  ;;  %v13729_v50 = vpack.c.bf16 %v11700_v32, %v11691_v0 }
 0x847   : > { %v7803_v14 = vpop.eup %7802  ;;  %v5354_v59 = vmul.f32 %v7801_v30, %v5226_v25  ;;  %v5204_v30 = vadd.f32 %v4954_v39, %v13727_v31  ;;  %v13728_v25 = vld [vmem:[#allocation144_spill] sm:$0xff] }
 0x848   : > { %v7805_v9 = vpop.eup %7804  ;;  %v11772_v15 = vmul.f32 %v7803_v14, %v5205_v3  ;;  %v4656_v28 = vpop.xlane.xlu1 %4655  ;;  %7810 = vrcp.f32 %v4745_v38  ;;  %v5415_v3 = vpack.c.bf16 %v5352_v16, %v5351_v22  ;;  %v13731_v38 = vld [vmem:[#allocation242_spill] sm:$0xff]  ;;  %v13734_v31 = vld [vmem:[#allocation96_spill] sm:$0xff] }
 0x849   : > { %v7807_v63 = vpop.eup %7806  ;;  %v11776_v1 = vmul.f32 %v7805_v9, %v5203_v8  ;;  %v4746_v33 = vadd.f32 %v4656_v28, %v13728_v25  ;;  %7812 = vrcp.f32 %v4747_v17  ;;  %v11782_v14 = vpop.xlane.xlu0 %3085  ;;  %v5416_v54 = vpack.c.bf16 %v5354_v59, %v5353_v51  ;;  %v13733_v28 = vld [vmem:[#allocation301_spill] sm:$0xff] }
 0x84a   : > { %v7809_v13 = vpop.eup %7808  ;;  %v11780_v55 = vmul.f32 %v7807_v63, %v5206_v53  ;;  %5715 = vmatprep.mubr.bf16.mxu0 %v5415_v3  ;;  %v6837_v17 = vpop.f32.mrb[164].mxu1 }
 0x84b   : > { %v11784_v57 = vmul.f32 %v7809_v13, %v5204_v30  ;;  %7814 = vrcp.f32 %v4746_v33  ;;  %5716 = vmatmul.mubr.bf16.vlgmr.msra.gmra.mrb[128].mxu0 %v13729_v50  ;;  %v5229_v0 = vadd.f32 %v6837_v17, %v13731_v38  ;;  %v5080_v32 = vpop.f32.mrb[165].mxu1  ;;  %v6801_v30 = vpop.f32.mrb[112].mxu0  ;;  %v13735_v33 = vpack.c.bf16 %v11695_v11, %v11685_v56  ;;  %v13736_v50 = vld [vmem:[#allocation158_spill] sm:$0xff]  ;;  %v13737_v17 = vld [vmem:[#allocation249_spill] sm:$0xff] }
 0x84c   : > { %7816 = vrcp.f32 %v4748_v60  ;;  %v11786_v8 = vpop.xlane.xlu1 %3087  ;;  %v5390_v36 = vpack.c.bf16 %v11780_v55, %v11772_v15  ;;  %5725 = vmatprep.mubr.bf16.mxu0 %v5416_v54  ;;  %v13732_v60 = vld [vmem:[#allocation241_spill] sm:$0xff]  ;;  %v6838_v53 = vpop.f32.mrb[166].mxu1 }
 0x84d   : > { %7818 = vrcp.f32 %v11698_v20  ;;  %v5389_v16 = vpack.c.bf16 %v11784_v57, %v11776_v1  ;;  %v13730_v20 = vld [vmem:[#allocation300_spill] sm:$0xff]  ;;  %v5227_v48 = vadd.f32 %v5080_v32, %v13732_v60  ;;  %v5083_v25 = vpop.f32.mrb[167].mxu1  ;;  %v4967_v38 = vpop.f32.mrb[113].mxu0 }
 0x84e   : > { %7820 = vrcp.f32 %v11712_v34 }
 0x84f   : > { %v3022_v51 = vpop.xlane.xlu0 %3021  ;;  %7822 = vrcp.f32 %v11704_v10 }
 0x850   : > { %7824 = vrcp.f32 %v11719_v18  ;;  %v3024_v22 = vpop.xlane.xlu1 %3023  ;;  %v3127_v24 = vadd.f32 %v3022_v51, %v13730_v20  ;;  %v5230_v18 = vadd.f32 %v6838_v53, %v13734_v31  ;;  %v5209_v51 = vadd.f32 %v6801_v30, %v13736_v50  ;;  %v6802_v53 = vpop.f32.mrb[114].mxu0  ;;  %v13739_v31 = vld [vmem:[#allocation159_spill] sm:$0xff] }
 0x851   : > { %v3128_v63 = vadd.f32 %v3024_v22, %v13733_v28  ;;  %v5228_v20 = vadd.f32 %v5083_v25, %v13737_v17  ;;  %v4970_v30 = vpop.f32.mrb[115].mxu0 }
 0x852   : > { %v7811_v59 = vpop.eup %7810  ;;  %v4539_v56 = vmul.f32 %v13739_v31, %v3127_v24  ;;  %v13744_v31 = vld [vmem:[#allocation63_spill] sm:$0xff] }
 0x853   : > { %v4666_v43 = vpop.xlane.xlu0 %4665  ;;  %v7813_v9 = vpop.eup %7812  ;;  %5726 = vmatmul.mubr.bf16.gmra.mrb[132].mxu0 %v13735_v33  ;;  %v5355_v3 = vmul.f32 %v7811_v59, %v5227_v48 }
 0x854   : > { %v4668_v34 = vpop.xlane.xlu1 %4667  ;;  %v5357_v10 = vmul.f32 %v7813_v9, %v5229_v0  ;;  %v4751_v54 = vadd.f32 %v4666_v43, %v11544_v47  ;;  %v13738_v9 = vld [vmem:[#allocation62_spill] sm:$0xff] }
 0x855   : > { %v7815_v39 = vpop.eup %7814  ;;  %v5207_v60 = vadd.f32 %v4967_v38, %v13738_v9  ;;  %v4752_v47 = vadd.f32 %v4668_v34, %v11549_v26  ;;  %v13740_v43 = vld [vmem:[#allocation222_spill] sm:$0xff] }
 0x856   : > { %v7817_v13 = vpop.eup %7816  ;;  %v5356_v59 = vmul.f32 %v7815_v39, %v5228_v20  ;;  %v5210_v48 = vadd.f32 %v6802_v53, %v13740_v43 }
 0x857   : > { %v7819_v22 = vpop.eup %7818  ;;  %v5358_v0 = vmul.f32 %v7817_v13, %v5230_v18  ;;  %v13741_v18 = vld [vmem:[#allocation221_spill] sm:$0xff] }
 0x858   : > { %v4662_v32 = vpop.xlane.xlu0 %4661  ;;  %v7821_v11 = vpop.eup %7820  ;;  %v11813_v33 = vmul.f32 %v7819_v22, %v5209_v51  ;;  %v5208_v13 = vadd.f32 %v4970_v30, %v13741_v18  ;;  %v5417_v39 = vpack.c.bf16 %v5356_v59, %v5355_v3  ;;  %v13746_v30 = vld [vmem:[#allocation92_spill] sm:$0xff] }
 0x859   : > { %v4749_v28 = vadd.f32 %v4662_v32, %v11508_v27  ;;  %v7823_v50 = vpop.eup %7822  ;;  %v11817_v17 = vmul.f32 %v7821_v11, %v5207_v60  ;;  %v5418_v20 = vpack.c.bf16 %v5358_v0, %v5357_v10  ;;  %v13742_v32 = vld [vmem:[#allocation91_spill] sm:$0xff]  ;;  %v6841_v0 = vpop.f32.mrb[168].mxu1  ;;  %v13745_v11 = vld [vmem:[#allocation224_spill] sm:$0xff] }
 0x85a   : > { %v7825_v38 = vpop.eup %7824  ;;  %v11821_v24 = vmul.f32 %v7823_v50, %v5210_v48  ;;  %v4540_v22 = vmul.f32 %v13742_v32, %v3128_v63  ;;  %5735 = vmatprep.mubr.bf16.mxu0 %v5417_v39  ;;  %v6805_v50 = vpop.f32.mrb[116].mxu0 }
 0x85b   : > { %v4664_v25 = vpop.xlane.xlu1 %4663  ;;  %7826 = vrcp.f32 %v4749_v28  ;;  %v11823_v26 = vmul.f32 %v7825_v38, %v5208_v13  ;;  %v4983_v32 = vpop.f32.mrb[117].mxu0 }
 0x85c   : > { %v4750_v27 = vadd.f32 %v4664_v25, %v11520_v52  ;;  %7828 = vrcp.f32 %v4751_v54  ;;  %v4626_v51 = vpop.xlane.xlu0 %4625  ;;  %v5392_v60 = vpack.c.bf16 %v11821_v24, %v11813_v33  ;;  %v13743_v52 = vpack.c.bf16 %v11726_v19, %v11721_v4  ;;  %v5096_v19 = vpop.f32.mrb[169].mxu1 }
 0x85d   : > { %v4731_v34 = vadd.f32 %v4626_v51, %v4539_v56  ;;  %v5391_v10 = vpack.c.bf16 %v11823_v26, %v11817_v17  ;;  %v5233_v4 = vadd.f32 %v6841_v0, %v13744_v31  ;;  %v5231_v59 = vadd.f32 %v5096_v19, %v13745_v11  ;;  %v13748_v51 = vld [vmem:[#allocation93_spill] sm:$0xff]  ;;  %v6806_v31 = vpop.f32.mrb[118].mxu0  ;;  %v13787_v26 = vld [vmem:[#allocation167_spill] sm:$0xff] }
 0x85e   : > { %7830 = vrcp.f32 %v4750_v27  ;;  %5736 = vmatmul.mubr.bf16.gmra.mrb[136].mxu0 %v13743_v52  ;;  %v5213_v39 = vadd.f32 %v6805_v50, %v13748_v51 }
 0x85f   : > { %7832 = vrcp.f32 %v4752_v47  ;;  %v4628_v9 = vpop.xlane.xlu1 %4627  ;;  %5745 = vmatprep.mubr.bf16.mxu0 %v5418_v20  ;;  %v6842_v47 = vpop.f32.mrb[170].mxu1  ;;  %v13749_v20 = vld [vmem:[#allocation107_spill] sm:$0xff] }
 0x860   : > { %7834 = vrcp.f32 %v4731_v34  ;;  %v4732_v54 = vadd.f32 %v4628_v9, %v4540_v22  ;;  %v11834_v3 = vpop.xlane.xlu0 %3089  ;;  %v5234_v25 = vadd.f32 %v6842_v47, %v13746_v30  ;;  %v5099_v18 = vpop.f32.mrb[171].mxu1  ;;  %v13752_v30 = vld [vmem:[#allocation102_spill] sm:$0xff] }
 0x861   : > { %7836 = vrcp.f32 %v11758_v2  ;;  %v5232_v34 = vadd.f32 %v5099_v18, %v13749_v20 }
 0x862   : > { %7838 = vrcp.f32 %v4732_v54  ;;  %v13750_v54 = vld [vmem:[#allocation247_spill] sm:$0xff] }
 0x863   : > { %7840 = vrcp.f32 %v11762_v44  ;;  %v11837_v63 = vpop.xlane.xlu1 %3091  ;;  %v13747_v44 = vpack.c.bf16 %v11724_v41, %v11715_v7  ;;  %v5211_v0 = vadd.f32 %v4983_v32, %v13750_v54  ;;  %v13756_v32 = vld [vmem:[#allocation95_spill] sm:$0xff] }
 0x864   : > { %v4674_v53 = vpop.xlane.xlu0 %4673 }
 0x865   : > { %v7827_v28 = vpop.eup %7826  ;;  %v4755_v38 = vadd.f32 %v4674_v53, %v11584_v61  ;;  %v13751_v61 = vld [vmem:[#allocation250_spill] sm:$0xff] }
 0x866   : > { %v7829_v56 = vpop.eup %7828  ;;  %5746 = vmatmul.mubr.bf16.gmra.mrb[140].mxu0 %v13747_v44  ;;  %v5359_v27 = vmul.f32 %v7827_v28, %v5231_v59  ;;  %v5214_v53 = vadd.f32 %v6806_v31, %v13751_v61 }
 0x867   : > { %v4676_v43 = vpop.xlane.xlu1 %4675  ;;  %v5361_v48 = vmul.f32 %v7829_v56, %v5233_v4  ;;  %v4986_v56 = vpop.f32.mrb[119].mxu0 }
 0x868   : > { %v7831_v2 = vpop.eup %7830  ;;  %v4670_v22 = vpop.xlane.xlu0 %4669  ;;  %v4756_v28 = vadd.f32 %v4676_v43, %v11589_v42  ;;  %v13753_v43 = vld [vmem:[#allocation304_spill] sm:$0xff] }
 0x869   : > { %v7833_v13 = vpop.eup %7832  ;;  %v4753_v4 = vadd.f32 %v4670_v22, %v11564_v40  ;;  %v5360_v41 = vmul.f32 %v7831_v2, %v5232_v34 }
 0x86a   : > { %v7835_v9 = vpop.eup %7834  ;;  %v5362_v52 = vmul.f32 %v7833_v13, %v5234_v25  ;;  %v5212_v25 = vadd.f32 %v4986_v56, %v13752_v30 }
 0x86b   : > { %v7837_v19 = vpop.eup %7836  ;;  %v11850_v7 = vmul.f32 %v7835_v9, %v5213_v39  ;;  %v4672_v11 = vpop.xlane.xlu1 %4671  ;;  %7842 = vrcp.f32 %v4753_v4  ;;  %v5419_v2 = vpack.c.bf16 %v5360_v41, %v5359_v27 }
 0x86c   : > { %v7839_v59 = vpop.eup %7838  ;;  %v11854_v47 = vmul.f32 %v7837_v19, %v5211_v0  ;;  %v4754_v50 = vadd.f32 %v4672_v11, %v11569_v12  ;;  %7844 = vrcp.f32 %v4755_v38  ;;  %v3026_v44 = vpop.xlane.xlu0 %3025  ;;  %v5420_v13 = vpack.c.bf16 %v5362_v52, %v5361_v48  ;;  %v13755_v38 = vld [vmem:[#allocation142_spill] sm:$0xff]  ;;  %v13757_v52 = vld [vmem:[#allocation97_spill] sm:$0xff] }
 0x86d   : > { %v7841_v18 = vpop.eup %7840  ;;  %v11858_v40 = vmul.f32 %v7839_v59, %v5214_v53  ;;  %v3129_v51 = vadd.f32 %v3026_v44, %v13753_v43  ;;  %5755 = vmatprep.mubr.bf16.mxu0 %v5419_v2  ;;  %v13754_v12 = vpack.c.bf16 %v11747_v58, %v11741_v35  ;;  %v6845_v4 = vpop.f32.mrb[172].mxu1  ;;  %v13758_v35 = vld [vmem:[#allocation109_spill] sm:$0xff] }
 0x86e   : > { %v11860_v42 = vmul.f32 %v7841_v18, %v5212_v25  ;;  %7846 = vrcp.f32 %v4754_v50  ;;  %v5237_v58 = vadd.f32 %v6845_v4, %v13758_v35  ;;  %v13759_v53 = vld [vmem:[#allocation137_spill] sm:$0xff]  ;;  %v13760_v50 = vld [vmem:[#allocation66_spill] sm:$0xff]  ;;  %v6809_v44 = vpop.f32.mrb[120].mxu0 }
 0x86f   : > { %7848 = vrcp.f32 %v4756_v28  ;;  %v3028_v39 = vpop.xlane.xlu1 %3027  ;;  %v5394_v20 = vpack.c.bf16 %v11858_v40, %v11850_v7  ;;  %5756 = vmatmul.mubr.bf16.gmra.mrb[144].mxu0 %v13754_v12  ;;  %v4541_v27 = vmul.f32 %v13756_v32, %v3129_v51  ;;  %v5112_v28 = vpop.f32.mrb[173].mxu1  ;;  %v13762_v12 = vld [vmem:[#allocation259_spill] sm:$0xff]  ;;  %v13766_v35 = vld [vmem:[#allocation138_spill] sm:$0xff] }
 0x870   : > { %v3130_v34 = vadd.f32 %v3028_v39, %v13755_v38  ;;  %v5393_v48 = vpack.c.bf16 %v11860_v42, %v11854_v47  ;;  %5765 = vmatprep.mubr.bf16.mxu0 %v5420_v13  ;;  %v4630_v22 = vpop.xlane.xlu0 %4629  ;;  %v5235_v56 = vadd.f32 %v5112_v28, %v13759_v53  ;;  %v6846_v11 = vpop.f32.mrb[174].mxu1  ;;  %v13761_v13 = vpack.c.bf16 %v11744_v49, %v11737_v21  ;;  %v13765_v49 = vld [vmem:[#allocation230_spill] sm:$0xff]  ;;  %v13799_v42 = vld [vmem:[#allocation173_spill] sm:$0xff] }
 0x871   : > { %v4733_v9 = vadd.f32 %v4630_v22, %v4541_v27  ;;  %v5238_v18 = vadd.f32 %v6846_v11, %v13760_v50  ;;  %v5115_v2 = vpop.f32.mrb[175].mxu1  ;;  %v11881_v38 = vadd.f32 %v6809_v44, %v13762_v12  ;;  %v4999_v27 = vpop.f32.mrb[121].mxu0  ;;  %v13769_v12 = vld [vmem:[#allocation168_spill] sm:$0xff] }
 0x872   : > { %v4542_v54 = vmul.f32 %v13757_v52, %v3130_v34  ;;  %v13763_v34 = vld [vmem:[#allocation136_spill] sm:$0xff]  ;;  %v13764_v52 = vld [vmem:[#allocation106_spill] sm:$0xff] }
 0x873   : > { %v4632_v0 = vpop.xlane.xlu1 %4631  ;;  %7850 = vrcp.f32 %v4733_v9  ;;  %v5236_v32 = vadd.f32 %v5115_v2, %v13763_v34  ;;  %v13768_v2 = vld [vmem:[#allocation326_spill] sm:$0xff]  ;;  %v13770_v34 = vld [vmem:[#allocation303_spill] sm:$0xff] }
 0x874   : > { %v4734_v31 = vadd.f32 %v4632_v0, %v4542_v54  ;;  %v4682_v19 = vpop.xlane.xlu0 %4681  ;;  %v5215_v54 = vadd.f32 %v4999_v27, %v13764_v52  ;;  %v6810_v0 = vpop.f32.mrb[122].mxu0  ;;  %v13771_v27 = vld [vmem:[#allocation67_spill] sm:$0xff] }
 0x875   : > { %v7843_v41 = vpop.eup %7842  ;;  %v4759_v39 = vadd.f32 %v4682_v19, %v11624_v29  ;;  %v5002_v29 = vpop.f32.mrb[123].mxu0 }
 0x876   : > { %7852 = vrcp.f32 %v4734_v31  ;;  %v7845_v61 = vpop.eup %7844  ;;  %v5363_v51 = vmul.f32 %v7843_v41, %v5235_v56  ;;  %v11888_v41 = vadd.f32 %v6810_v0, %v13765_v49 }
 0x877   : > { %v4684_v59 = vpop.xlane.xlu1 %4683  ;;  %v5365_v25 = vmul.f32 %v7845_v61, %v5237_v58  ;;  %5766 = vmatmul.mubr.bf16.gmra.mrb[148].mxu0 %v13761_v13  ;;  %v5216_v58 = vadd.f32 %v5002_v29, %v13766_v35  ;;  %v3160_v13 = vadd.f32 %v11786_v8, %v13768_v2  ;;  %v13774_v29 = vld [vmem:[#allocation265_spill] sm:$0xff] }
 0x878   : > { %v7847_v30 = vpop.eup %7846  ;;  %v4678_v22 = vpop.xlane.xlu0 %4677  ;;  %v4760_v21 = vadd.f32 %v4684_v59, %v11629_v62 }
 0x879   : > { %v7849_v43 = vpop.eup %7848  ;;  %v4757_v31 = vadd.f32 %v4678_v22, %v11604_v6  ;;  %v5364_v4 = vmul.f32 %v7847_v30, %v5236_v32 }
 0x87a   : > { %v5366_v9 = vmul.f32 %v7849_v43, %v5238_v18  ;;  %v6849_v43 = vpop.f32.mrb[176].mxu1 }
 0x87b   : > { %v4680_v19 = vpop.xlane.xlu1 %4679  ;;  %7854 = vrcp.f32 %v4757_v31  ;;  %v5421_v56 = vpack.c.bf16 %v5364_v4, %v5363_v51  ;;  %v5241_v1 = vadd.f32 %v6849_v43, %v13769_v12  ;;  %v5128_v57 = vpop.f32.mrb[177].mxu1  ;;  %v13773_v4 = vld [vmem:[#allocation232_spill] sm:$0xff]  ;;  %v13778_v12 = vld [vmem:[#allocation258_spill] sm:$0xff] }
 0x87c   : > { %v4758_v28 = vadd.f32 %v4680_v19, %v11609_v45  ;;  %v5422_v61 = vpack.c.bf16 %v5366_v9, %v5365_v25  ;;  %7856 = vrcp.f32 %v4759_v39  ;;  %v11892_v53 = vpop.xlane.xlu0 %3093  ;;  %v13767_v25 = vld [vmem:[#allocation327_spill] sm:$0xff]  ;;  %v5239_v22 = vadd.f32 %v5128_v57, %v13771_v27  ;;  %v13772_v9 = vld [vmem:[#allocation101_spill] sm:$0xff]  ;;  %v6850_v52 = vpop.f32.mrb[178].mxu1 }
 0x87d   : > { %v7851_v11 = vpop.eup %7850  ;;  %5775 = vmatprep.mubr.bf16.mxu0 %v5421_v56  ;;  %v3159_v50 = vadd.f32 %v11782_v14, %v13767_v25  ;;  %v5131_v49 = vpop.f32.mrb[179].mxu1  ;;  %v4572_v19 = vmul.f32 %v13774_v29, %v3160_v13  ;;  %v13784_v29 = vld [vmem:[#allocation240_spill] sm:$0xff] }
 0x87e   : > { %7858 = vrcp.f32 %v4758_v28  ;;  %v11894_v6 = vmul.f32 %v7851_v11, %v5215_v54  ;;  %v6813_v8 = vpop.f32.mrb[124].mxu0  ;;  %v13776_v11 = vld [vmem:[#allocation255_spill] sm:$0xff] }
 0x87f   : > { %7860 = vrcp.f32 %v4760_v21  ;;  %v11896_v62 = vpop.xlane.xlu1 %3095  ;;  %5776 = vmatmul.mubr.bf16.gmra.mrb[152].mxu0 %v5389_v16  ;;  %v4571_v14 = vmul.f32 %v13772_v9, %v3159_v50  ;;  %v5242_v21 = vadd.f32 %v6850_v52, %v13773_v4  ;;  %v13777_v50 = vld [vmem:[#allocation305_spill] sm:$0xff] }
 0x880   : > { %v7853_v59 = vpop.eup %7852  ;;  %5785 = vmatprep.mubr.bf16.mxu0 %v5422_v61  ;;  %v3030_v45 = vpop.xlane.xlu0 %3029  ;;  %v13775_v61 = vld [vmem:[#allocation100_spill] sm:$0xff] }
 0x881   : > { %v11901_v30 = vmul.f32 %v7853_v59, %v5216_v58  ;;  %v3131_v32 = vadd.f32 %v3030_v45, %v13770_v34  ;;  %v11919_v56 = vadd.f32 %v6813_v8, %v13775_v61  ;;  %v5240_v59 = vadd.f32 %v5131_v49, %v13776_v11  ;;  %v5015_v45 = vpop.f32.mrb[125].mxu0  ;;  %v13780_v34 = vld [vmem:[#allocation126_spill] sm:$0xff] }
 0x882   : > { %v6814_v15 = vpop.f32.mrb[126].mxu0 }
 0x883   : > { %v3032_v18 = vpop.xlane.xlu1 %3031  ;;  %v5395_v44 = vpack.c.bf16 %v11901_v30, %v11894_v6  ;;  %v5018_v57 = vpop.f32.mrb[127].mxu0  ;;  %v4543_v27 = vmul.f32 %v13780_v34, %v3131_v32 }
 0x884   : > { %v4690_v51 = vpop.xlane.xlu0 %4689  ;;  %v3132_v2 = vadd.f32 %v3032_v18, %v13777_v50  ;;  %v13788_v50 = vld [vmem:[#allocation236_spill] sm:$0xff] }
 0x885   : > { %v7855_v39 = vpop.eup %7854  ;;  %v4763_v28 = vadd.f32 %v4690_v51, %v4571_v14 }
 0x886   : > { %v7857_v16 = vpop.eup %7856  ;;  %v5367_v58 = vmul.f32 %v7855_v39, %v5239_v22  ;;  %v13779_v39 = vld [vmem:[#allocation108_spill] sm:$0xff]  ;;  %v13781_v22 = vld [vmem:[#allocation117_spill] sm:$0xff] }
 0x887   : > { %v4692_v54 = vpop.xlane.xlu1 %4691  ;;  %v5369_v31 = vmul.f32 %v7857_v16, %v5241_v1  ;;  %5786 = vmatmul.mubr.bf16.gmra.mrb[156].mxu0 %v5390_v36  ;;  %v11924_v1 = vadd.f32 %v5015_v45, %v13778_v12  ;;  %v11928_v51 = vadd.f32 %v6814_v15, %v13779_v39  ;;  %v11932_v9 = vadd.f32 %v5018_v57, %v13781_v22 }
 0x888   : > { %v7859_v0 = vpop.eup %7858  ;;  %v4686_v25 = vpop.xlane.xlu0 %4685  ;;  %v4764_v13 = vadd.f32 %v4692_v54, %v4572_v19  ;;  %v13782_v54 = vld [vmem:[#allocation220_spill] sm:$0xff]  ;;  %v3161_v19 = vadd.f32 %v11834_v3, %v13784_v29 }
 0x889   : > { %v7861_v35 = vpop.eup %7860  ;;  %v4761_v55 = vadd.f32 %v4686_v25, %v11644_v5  ;;  %v5368_v36 = vmul.f32 %v7859_v0, %v5240_v59  ;;  %v4544_v0 = vmul.f32 %v13782_v54, %v3132_v2  ;;  %v13786_v59 = vld [vmem:[#allocation104_spill] sm:$0xff] }
 0x88a   : > { %v5370_v43 = vmul.f32 %v7861_v35, %v5242_v21  ;;  %v13785_v35 = vld [vmem:[#allocation238_spill] sm:$0xff]  ;;  %v3162_v17 = vadd.f32 %v11837_v63, %v13786_v59  ;;  %v13791_v63 = vld [vmem:[#allocation263_spill] sm:$0xff] }
 0x88b   : > { %v4688_v16 = vpop.xlane.xlu1 %4687  ;;  %7862 = vrcp.f32 %v4761_v55  ;;  %v5423_v4 = vpack.c.bf16 %v5368_v36, %v5367_v58  ;;  %v3164_v58 = vadd.f32 %v11896_v62, %v13785_v35  ;;  %v13790_v36 = vld [vmem:[#allocation141_spill] sm:$0xff]  ;;  %v4573_v39 = vmul.f32 %v13791_v63, %v3161_v19  ;;  %v13796_v59 = vld [vmem:[#allocation98_spill] sm:$0xff] }
 0x88c   : > { %v4762_v18 = vadd.f32 %v4688_v16, %v11648_v37  ;;  %v5424_v14 = vpack.c.bf16 %v5370_v43, %v5369_v31  ;;  %7864 = vrcp.f32 %v4763_v28  ;;  %v4634_v52 = vpop.xlane.xlu0 %4633  ;;  %v13783_v37 = vld [vmem:[#allocation147_spill] sm:$0xff] }
 0x88d   : > { %v4735_v5 = vadd.f32 %v4634_v52, %v4543_v27  ;;  %5795 = vmatprep.mubr.bf16.mxu0 %v5423_v4  ;;  %v3163_v31 = vadd.f32 %v11892_v53, %v13783_v37  ;;  %v13789_v53 = vld [vmem:[#allocation237_spill] sm:$0xff]  ;;  %v13792_v27 = vld [vmem:[#allocation140_spill] sm:$0xff] }
 0x88e   : > { %7866 = vrcp.f32 %v4762_v18  ;;  %v13793_v18 = vld [vmem:[#allocation172_spill] sm:$0xff] }
 0x88f   : > { %7868 = vrcp.f32 %v4764_v13  ;;  %v4636_v21 = vpop.xlane.xlu1 %4635  ;;  %5796 = vmatmul.mubr.bf16.gmra.mrb[160].mxu0 %v5391_v10  ;;  %v4575_v43 = vmul.f32 %v13789_v53, %v3163_v31 }
 0x890   : > { %7870 = vrcp.f32 %v4735_v5  ;;  %v4736_v32 = vadd.f32 %v4636_v21, %v4544_v0  ;;  %5805 = vmatprep.mubr.bf16.mxu0 %v5424_v14  ;;  %v3098_v8 = vpop.xlane.xlu0 %3097  ;;  %v4576_v14 = vmul.f32 %v13793_v18, %v3164_v58  ;;  %v4574_v0 = vmul.f32 %v11423_v23, %v3162_v17  ;;  %v13794_v58 = vld [vmem:[#allocation306_spill] sm:$0xff]  ;;  %v13803_v18 = vld [vmem:[#allocation116_spill] sm:$0xff] }
 0x891   : > { %v6853_v28 = vpop.f32.mrb[180].mxu1 }
 0x892   : > { %7872 = vrcp.f32 %v4736_v32  ;;  %v5245_v10 = vadd.f32 %v6853_v28, %v13787_v26  ;;  %v5144_v45 = vpop.f32.mrb[181].mxu1 }
 0x893   : > { %v3100_v49 = vpop.xlane.xlu1 %3099  ;;  %v5243_v2 = vadd.f32 %v5144_v45, %v13788_v50  ;;  %v6854_v12 = vpop.f32.mrb[182].mxu1  ;;  %v3165_v50 = vadd.f32 %v3098_v8, %v11478_v46 }
 0x894   : > { %v4698_v61 = vpop.xlane.xlu0 %4697  ;;  %v5246_v62 = vadd.f32 %v6854_v12, %v13790_v36  ;;  %v5147_v13 = vpop.f32.mrb[183].mxu1  ;;  %v13800_v36 = vld [vmem:[#allocation266_spill] sm:$0xff] }
 0x895   : > { %v7863_v11 = vpop.eup %7862  ;;  %v4767_v34 = vadd.f32 %v4698_v61, %v4575_v43  ;;  %v5244_v22 = vadd.f32 %v5147_v13, %v13792_v27  ;;  %v13795_v61 = vld [vmem:[#allocation307_spill] sm:$0xff] }
 0x896   : > { %v7865_v25 = vpop.eup %7864  ;;  %v5371_v16 = vmul.f32 %v7863_v11, %v5243_v2 }
 0x897   : > { %v4700_v15 = vpop.xlane.xlu1 %4699  ;;  %v5373_v55 = vmul.f32 %v7865_v25, %v5245_v10  ;;  %5806 = vmatmul.mubr.bf16.gmra.mrb[164].mxu0 %v5392_v60  ;;  %v13797_v10 = vld [vmem:[#allocation130_spill] sm:$0xff] }
 0x898   : > { %v7867_v3 = vpop.eup %7866  ;;  %v4694_v52 = vpop.xlane.xlu0 %4693  ;;  %v4768_v32 = vadd.f32 %v4700_v15, %v4576_v14  ;;  %v13798_v15 = vld [vmem:[#allocation155_spill] sm:$0xff] }
 0x899   : > { %v7869_v57 = vpop.eup %7868  ;;  %v4765_v54 = vadd.f32 %v4694_v52, %v4573_v39  ;;  %v5372_v21 = vmul.f32 %v7867_v3, %v5244_v22  ;;  %v3166_v47 = vadd.f32 %v3100_v49, %v13798_v15 }
 0x89a   : > { %v7871_v4 = vpop.eup %7870  ;;  %v5374_v5 = vmul.f32 %v7869_v57, %v5246_v62 }
 0x89b   : > { %v4696_v37 = vpop.xlane.xlu1 %4695  ;;  %v11959_v33 = vmul.f32 %v7871_v4, %v11881_v38  ;;  %7874 = vrcp.f32 %v4765_v54  ;;  %v5425_v19 = vpack.c.bf16 %v5372_v21, %v5371_v16  ;;  %v13801_v16 = vld [vmem:[#allocation105_spill] sm:$0xff]  ;;  %v13804_v54 = vld [vmem:[#allocation152_spill] sm:$0xff] }
 0x89c   : > { %v7873_v24 = vpop.eup %7872  ;;  %v4766_v60 = vadd.f32 %v4696_v37, %v4574_v0  ;;  %v5426_v31 = vpack.c.bf16 %v5374_v5, %v5373_v55  ;;  %7876 = vrcp.f32 %v4767_v34  ;;  %v3034_v29 = vpop.xlane.xlu0 %3033  ;;  %v13802_v34 = vld [vmem:[#allocation246_spill] sm:$0xff]  ;;  %v4578_v0 = vmul.f32 %v13804_v54, %v3166_v47  ;;  %v13805_v37 = vld [vmem:[#allocation273_spill] sm:$0xff] }
 0x89d   : > { %v11962_v35 = vmul.f32 %v7873_v24, %v11888_v41  ;;  %v3133_v28 = vadd.f32 %v3034_v29, %v13794_v58  ;;  %5815 = vmatprep.mubr.bf16.mxu0 %v5425_v19  ;;  %v4577_v49 = vmul.f32 %v13802_v34, %v3165_v50  ;;  %v13806_v29 = vld [vmem:[#allocation119_spill] sm:$0xff]  ;;  %v13810_v50 = vld [vmem:[#allocation244_spill] sm:$0xff] }
 0x89e   : > { %7878 = vrcp.f32 %v4766_v60 }
 0x89f   : > { %7880 = vrcp.f32 %v4768_v32  ;;  %v3036_v23 = vpop.xlane.xlu1 %3035  ;;  %v5396_v38 = vpack.c.bf16 %v11962_v35, %v11959_v33  ;;  %5816 = vmatmul.mubr.bf16.gmra.mrb[168].mxu0 %v5393_v48  ;;  %v4545_v17 = vmul.f32 %v13796_v59, %v3133_v28  ;;  %v13808_v59 = vld [vmem:[#allocation149_spill] sm:$0xff] }
 0x8a0   : > { %v3134_v11 = vadd.f32 %v3036_v23, %v13795_v61  ;;  %5825 = vmatprep.mubr.bf16.mxu0 %v5426_v31  ;;  %v4638_v41 = vpop.xlane.xlu0 %4637  ;;  %v13807_v61 = vld [vmem:[#allocation83_spill] sm:$0xff] }
 0x8a1   : > { %v4737_v26 = vadd.f32 %v4638_v41, %v4545_v17 }
 0x8a2   : > { %v4546_v45 = vmul.f32 %v13797_v10, %v3134_v11  ;;  %v13809_v10 = vld [vmem:[#allocation30_spill] sm:$0xff] }
 0x8a3   : > { %v4640_v25 = vpop.xlane.xlu1 %4639  ;;  %7882 = vrcp.f32 %v4737_v26  ;;  %v6857_v53 = vpop.f32.mrb[184].mxu1 }
 0x8a4   : > { %v4738_v2 = vadd.f32 %v4640_v25, %v4546_v45  ;;  %v3102_v43 = vpop.xlane.xlu0 %3101  ;;  %v5249_v48 = vadd.f32 %v6857_v53, %v13799_v42  ;;  %v5160_v3 = vpop.f32.mrb[185].mxu1 }
 0x8a5   : > { %v7875_v12 = vpop.eup %7874  ;;  %v5247_v62 = vadd.f32 %v5160_v3, %v13800_v36  ;;  %v6858_v13 = vpop.f32.mrb[186].mxu1  ;;  %v3167_v24 = vadd.f32 %v3102_v43, %v13805_v37  ;;  %v13814_v36 = vld [vmem:[#allocation245_spill] sm:$0xff]  ;;  %v13818_v37 = vld [vmem:[#allocation27_spill] sm:$0xff] }
 0x8a6   : > { %7884 = vrcp.f32 %v4738_v2  ;;  %v7877_v55 = vpop.eup %7876  ;;  %v5250_v46 = vadd.f32 %v6858_v13, %v13801_v16  ;;  %v5163_v8 = vpop.f32.mrb[187].mxu1 }
 0x8a7   : > { %v3104_v63 = vpop.xlane.xlu1 %3103  ;;  %v5377_v57 = vmul.f32 %v7877_v55, %v5249_v48  ;;  %5826 = vmatmul.mubr.bf16.gmra.mrb[172].mxu0 %v5394_v20  ;;  %v5375_v22 = vmul.f32 %v7875_v12, %v5247_v62  ;;  %v5248_v14 = vadd.f32 %v5163_v8, %v13803_v18  ;;  %v4579_v17 = vmul.f32 %v13808_v59, %v3167_v24  ;;  %v13811_v12 = vld [vmem:[#allocation163_spill] sm:$0xff] }
 0x8a8   : > { %v7879_v39 = vpop.eup %7878  ;;  %v4702_v52 = vpop.xlane.xlu0 %4701  ;;  %v3168_v19 = vadd.f32 %v3104_v63, %v13806_v29  ;;  %v13819_v24 = vsub.s32 0, %v13818_v37 }
 0x8a9   : > { %v7881_v27 = vpop.eup %7880  ;;  %v4769_v5 = vadd.f32 %v4702_v52, %v4577_v49  ;;  %v5376_v21 = vmul.f32 %v7879_v39, %v5248_v14  ;;  %v13816_v49 = vld [vmem:[#allocation248_spill] sm:$0xff] }
 0x8aa   : > { %v5378_v4 = vmul.f32 %v7881_v27, %v5250_v46  ;;  %v4580_v2 = vmul.f32 %v13810_v50, %v3168_v19 }
 0x8ab   : > { %v4704_v32 = vpop.xlane.xlu1 %4703  ;;  %7886 = vrcp.f32 %v4769_v5  ;;  %v5427_v40 = vpack.c.bf16 %v5376_v21, %v5375_v22 }
 0x8ac   : > { %v4770_v60 = vadd.f32 %v4704_v32, %v4578_v0  ;;  %v5428_v31 = vpack.c.bf16 %v5378_v4, %v5377_v57  ;;  %v3038_v7 = vpop.xlane.xlu0 %3037  ;;  %v13815_v57 = vld [vmem:[#allocation148_spill] sm:$0xff]  ;;  %v5511_v32 = vld [vmem:[%s13817_s10] sm:$0x3]  ;;  %s8221_s10 = smov [#allocation16]  }
 0x8ad   : > { %v7883_v20 = vpop.eup %7882  ;;  %5835 = vmatprep.mubr.bf16.mxu0 %v5427_v40  ;;  %v3135_v11 = vadd.f32 %v3038_v7, %v13807_v61  ;;  %s8074_s3 = sshll.u32 %s8221_s10, 4  ;;  %s8075_s3 = int_to_ptr.vmem [resolvable:$false] %s8074_s3 }
 0x8ae   : > { %7888 = vrcp.f32 %v4770_v60  ;;  %v5347_v28 = vmul.f32 %v7883_v20, %v11924_v1  ;;  %v12011_v60 = vrot.slane %v5511_v32, %v13819_v24  ;;  %s8076_s4 = scalar_lea.vmem %s8075_s3, 16384  ;;  %p8077_p4 = scmp.lt.s32.totalorder %s12144_s28, %s8075_s3 }
 0x8af   : > { %v3040_v58 = vpop.xlane.xlu1 %3039  ;;  %5836 = vmatmul.mubr.bf16.gmra.mrb[176].mxu0 %v5395_v44  ;;  %v4547_v15 = vmul.f32 %v13811_v12, %v3135_v11  ;;  %v13812_v44 = vld [vmem:[#allocation275_spill] sm:$0xff]  ;;  %p8078_p10 = scmp.lt.s32.totalorder %s8076_s4, %s8070_s12 }
 0x8b0   : > { %v7885_v23 = vpop.eup %7884  ;;  %5845 = vmatprep.mubr.bf16.mxu0 %v5428_v31  ;;  %v4706_v41 = vpop.xlane.xlu0 %4705  ;;  %v3136_v45 = vadd.f32 %v3040_v58, %v13809_v10  ;;  %v13820_v31 = vsub.s32 1, %v13818_v37 }
 0x8b1   : > { %v5348_v26 = vmul.f32 %v7885_v23, %v11932_v9  ;;  %v4771_v25 = vadd.f32 %v4706_v41, %v4579_v17  ;;  %v13813_v9 = vld [vmem:[#allocation139_spill] sm:$0xff]  ;;  %p8079_p5 = por %p8078_p10, %p8077_p4 }
 0x8b2   : > { %v4548_v55 = vmul.f32 %v13813_v9, %v3136_v45 }
 0x8b3   : > { %v4708_v53 = vpop.xlane.xlu1 %4707  ;;  %v5397_v1 = vpack.c.bf16 %v5348_v26, %v5347_v28  ;;  %7890 = vrcp.f32 %v4771_v25  ;;  %v6861_v47 = vpop.f32.mrb[188].mxu1  ;;  %p8080_p6 = pnand %p8079_p5, %p8073_p13 }
 0x8b4   : > { %v4772_v43 = vadd.f32 %v4708_v53, %v4580_v2  ;;  %v4642_v6 = vpop.xlane.xlu0 %4641  ;;  %v5253_v42 = vadd.f32 %v6861_v47, %v13812_v44  ;;  %v5176_v48 = vpop.f32.mrb[189].mxu1 }
 0x8b5   : > { %v7887_v30 = vpop.eup %7886  ;;  %v4739_v3 = vadd.f32 %v4642_v6, %v4547_v15  ;;  %v5251_v62 = vadd.f32 %v5176_v48, %v13814_v36  ;;  %v6862_v13 = vpop.f32.mrb[190].mxu1 }
 0x8b6   : > { %7892 = vrcp.f32 %v4772_v43  ;;  %v5254_v16 = vadd.f32 %v6862_v13, %v13815_v57  ;;  %v5179_v46 = vpop.f32.mrb[191].mxu1 }
 0x8b7   : > { %v4644_v63 = vpop.xlane.xlu1 %4643  ;;  %7894 = vrcp.f32 %v4739_v3  ;;  %5846 = vmatmul.mubr.bf16.gmra.mrb[180].mxu0 %v5396_v38  ;;  %v5379_v34 = vmul.f32 %v7887_v30, %v5251_v62  ;;  %v5252_v27 = vadd.f32 %v5179_v46, %v13816_v49 }
 0x8b8   : > { %v7889_v39 = vpop.eup %7888  ;;  %v4740_v8 = vadd.f32 %v4644_v63, %v4548_v55 }
 0x8b9   : > { %v5380_v22 = vmul.f32 %v7889_v39, %v5252_v27 }
 0x8ba   : > { %7896 = vrcp.f32 %v4740_v8 }
 0x8bb   : > { %v5429_v18 = vpack.c.bf16 %v5380_v22, %v5379_v34 }
 0x8bd   : > { %v7891_v14 = vpop.eup %7890  ;;  %5855 = vmatprep.mubr.bf16.mxu0 %v5429_v18 }
 0x8be   : > { %v5381_v52 = vmul.f32 %v7891_v14, %v5253_v42 }
 0x8bf   : > { %5856 = vmatmul.mubr.bf16.gmra.mrb[184].mxu0 %v5397_v1 }
 0x8c0   : > { %v7893_v4 = vpop.eup %7892 }
 0x8c1   : > { %v5382_v5 = vmul.f32 %v7893_v4, %v5254_v16  ;;  %v7895_v54 = vpop.eup %7894 }
 0x8c2   : > { %v5349_v21 = vmul.f32 %v7895_v54, %v11919_v56  ;;  %v12015_v56 = vrot.slane %v5511_v32, %v13820_v31 }
 0x8c3   : > { %v5430_v0 = vpack.c.bf16 %v5382_v5, %v5381_v52 }
 0x8c4   : > { %v7897_v33 = vpop.eup %7896 }
 0x8c5   : > { %5865 = vmatprep.mubr.bf16.mxu0 %v5430_v0  ;;  %v5350_v35 = vmul.f32 %v7897_v33, %v11928_v51 }
 0x8c7   : > { %v5398_v38 = vpack.c.bf16 %v5350_v35, %v5349_v21 }
 0x8c9   : > { %5866 = vmatmul.mubr.bf16.gmra.mrb[188].mxu0 %v5398_v38 }
 0x91e   : > { %v5717_v7 = vpop.f32.mrb[128].mxu0 }
 0x91f   : > { %v5718_v40 = vadd.f32 %v5717_v7, %v12011_v60  ;;  %v5719_v51 = vpop.f32.mrb[129].mxu0 }
 0x920   : > { %v5720_v20 = vadd.f32 %v5719_v51, %v12015_v56  ;;  %v5721_v29 = vpop.f32.mrb[130].mxu0 }
 0x921   : > { %5876 = vst [vmem:[%s8640_s20] sm:$0xff] %v5718_v40  ;;  %v5722_v19 = vadd.f32 %v5721_v29, %v12011_v60  ;;  %v5723_v58 = vpop.f32.mrb[131].mxu0 }
 0x922   : > { %5877 = vst [vmem:[%s8640_s20 + $0x8] sm:$0xff] %v5720_v20  ;;  %v5724_v28 = vadd.f32 %v5723_v58, %v12015_v56 }
 0x923   : > { %5878 = vst [vmem:[%s8640_s20 + $0x10] sm:$0xff] %v5722_v19 }
 0x924   : > { %5879 = vst [vmem:[%s8640_s20 + $0x18] sm:$0xff] %v5724_v28 }
 0x926   : > { %v5727_v23 = vpop.f32.mrb[132].mxu0 }
 0x927   : > { %v5728_v61 = vadd.f32 %v5727_v23, %v12011_v60  ;;  %v5729_v11 = vpop.f32.mrb[133].mxu0 }
 0x928   : > { %v5730_v59 = vadd.f32 %v5729_v11, %v12015_v56  ;;  %v5731_v17 = vpop.f32.mrb[134].mxu0 }
 0x929   : > { %5880 = vst [vmem:[%s8640_s20 + $0x20] sm:$0xff] %v5728_v61  ;;  %v5732_v41 = vadd.f32 %v5731_v17, %v12011_v60  ;;  %v5733_v26 = vpop.f32.mrb[135].mxu0 }
 0x92a   : > { %5881 = vst [vmem:[%s8640_s20 + $0x28] sm:$0xff] %v5730_v59  ;;  %v5734_v10 = vadd.f32 %v5733_v26, %v12015_v56 }
 0x92b   : > { %5882 = vst [vmem:[%s8640_s20 + $0x30] sm:$0xff] %v5732_v41 }
 0x92c   : > { %5883 = vst [vmem:[%s8640_s20 + $0x38] sm:$0xff] %v5734_v10 }
 0x931   : > { %v5737_v45 = vpop.f32.mrb[136].mxu0 }
 0x932   : > { %v5738_v25 = vadd.f32 %v5737_v45, %v12011_v60  ;;  %v5739_v50 = vpop.f32.mrb[137].mxu0 }
 0x933   : > { %v5740_v2 = vadd.f32 %v5739_v50, %v12015_v56  ;;  %v5741_v53 = vpop.f32.mrb[138].mxu0 }
 0x934   : > { %5884 = vst [vmem:[%s8640_s20 + $0x40] sm:$0xff] %v5738_v25  ;;  %v5742_v1 = vadd.f32 %v5741_v53, %v12011_v60  ;;  %v5743_v43 = vpop.f32.mrb[139].mxu0 }
 0x935   : > { %5885 = vst [vmem:[%s8640_s20 + $0x48] sm:$0xff] %v5740_v2  ;;  %v5744_v12 = vadd.f32 %v5743_v43, %v12015_v56 }
 0x936   : > { %5886 = vst [vmem:[%s8640_s20 + $0x50] sm:$0xff] %v5742_v1 }
 0x937   : > { %5887 = vst [vmem:[%s8640_s20 + $0x58] sm:$0xff] %v5744_v12 }
 0x939   : > { %v5747_v15 = vpop.f32.mrb[140].mxu0 }
 0x93a   : > { %v5748_v47 = vadd.f32 %v5747_v15, %v12011_v60  ;;  %v5749_v6 = vpop.f32.mrb[141].mxu0 }
 0x93b   : > { %v5750_v30 = vadd.f32 %v5749_v6, %v12015_v56  ;;  %v5751_v44 = vpop.f32.mrb[142].mxu0 }
 0x93c   : > { %5888 = vst [vmem:[%s8640_s20 + $0x60] sm:$0xff] %v5748_v47  ;;  %v5752_v42 = vadd.f32 %v5751_v44, %v12011_v60  ;;  %v5753_v48 = vpop.f32.mrb[143].mxu0 }
 0x93d   : > { %5889 = vst [vmem:[%s8640_s20 + $0x68] sm:$0xff] %v5750_v30  ;;  %v5754_v3 = vadd.f32 %v5753_v48, %v12015_v56 }
 0x93e   : > { %5890 = vst [vmem:[%s8640_s20 + $0x70] sm:$0xff] %v5752_v42 }
 0x93f   : > { %5891 = vst [vmem:[%s8640_s20 + $0x78] sm:$0xff] %v5754_v3 }
 0x942   : > { %v5757_v9 = vpop.f32.mrb[144].mxu0 }
 0x943   : > { %v5758_v55 = vadd.f32 %v5757_v9, %v12011_v60  ;;  %v5759_v36 = vpop.f32.mrb[145].mxu0 }
 0x944   : > { %v5760_v62 = vadd.f32 %v5759_v36, %v12015_v56  ;;  %v5761_v13 = vpop.f32.mrb[146].mxu0 }
 0x945   : > { %5892 = vst [vmem:[%s8640_s20 + $0x80] sm:$0xff] %v5758_v55  ;;  %v5762_v63 = vadd.f32 %v5761_v13, %v12011_v60  ;;  %v5763_v39 = vpop.f32.mrb[147].mxu0 }
 0x946   : > { %5893 = vst [vmem:[%s8640_s20 + $0x88] sm:$0xff] %v5760_v62  ;;  %v5764_v57 = vadd.f32 %v5763_v39, %v12015_v56 }
 0x947   : > { %5894 = vst [vmem:[%s8640_s20 + $0x90] sm:$0xff] %v5762_v63 }
 0x948   : > { %5895 = vst [vmem:[%s8640_s20 + $0x98] sm:$0xff] %v5764_v57 }
 0x94a   : > { %v5767_v16 = vpop.f32.mrb[148].mxu0 }
 0x94b   : > { %v5768_v46 = vadd.f32 %v5767_v16, %v12011_v60  ;;  %v5769_v8 = vpop.f32.mrb[149].mxu0 }
 0x94c   : > { %v5770_v34 = vadd.f32 %v5769_v8, %v12015_v56  ;;  %v5771_v49 = vpop.f32.mrb[150].mxu0 }
 0x94d   : > { %5896 = vst [vmem:[%s8640_s20 + $0xa0] sm:$0xff] %v5768_v46  ;;  %v5772_v27 = vadd.f32 %v5771_v49, %v12011_v60  ;;  %v5773_v22 = vpop.f32.mrb[151].mxu0 }
 0x94e   : > { %5897 = vst [vmem:[%s8640_s20 + $0xa8] sm:$0xff] %v5770_v34  ;;  %v5774_v18 = vadd.f32 %v5773_v22, %v12015_v56 }
 0x94f   : > { %5898 = vst [vmem:[%s8640_s20 + $0xb0] sm:$0xff] %v5772_v27 }
 0x950   : > { %5899 = vst [vmem:[%s8640_s20 + $0xb8] sm:$0xff] %v5774_v18 }
 0x952   : > { %v5777_v14 = vpop.f32.mrb[152].mxu0 }
 0x953   : > { %v5778_v52 = vadd.f32 %v5777_v14, %v12011_v60  ;;  %v5779_v4 = vpop.f32.mrb[153].mxu0 }
 0x954   : > { %v5780_v5 = vadd.f32 %v5779_v4, %v12015_v56  ;;  %v5781_v54 = vpop.f32.mrb[154].mxu0 }
 0x955   : > { %5900 = vst [vmem:[%s8640_s20 + $0xc0] sm:$0xff] %v5778_v52  ;;  %v5782_v0 = vadd.f32 %v5781_v54, %v12011_v60  ;;  %v5783_v21 = vpop.f32.mrb[155].mxu0 }
 0x956   : > { %5901 = vst [vmem:[%s8640_s20 + $0xc8] sm:$0xff] %v5780_v5  ;;  %v5784_v33 = vadd.f32 %v5783_v21, %v12015_v56 }
 0x957   : > { %5902 = vst [vmem:[%s8640_s20 + $0xd0] sm:$0xff] %v5782_v0 }
 0x958   : > { %5903 = vst [vmem:[%s8640_s20 + $0xd8] sm:$0xff] %v5784_v33 }
 0x95a   : > { %v5787_v35 = vpop.f32.mrb[156].mxu0 }
 0x95b   : > { %v5788_v38 = vadd.f32 %v5787_v35, %v12011_v60  ;;  %v5789_v32 = vpop.f32.mrb[157].mxu0 }
 0x95c   : > { %v5790_v37 = vadd.f32 %v5789_v32, %v12015_v56  ;;  %v5791_v24 = vpop.f32.mrb[158].mxu0 }
 0x95d   : > { %5904 = vst [vmem:[%s8640_s20 + $0xe0] sm:$0xff] %v5788_v38  ;;  %v5792_v31 = vadd.f32 %v5791_v24, %v12011_v60  ;;  %v5793_v7 = vpop.f32.mrb[159].mxu0 }
 0x95e   : > { %5905 = vst [vmem:[%s8640_s20 + $0xe8] sm:$0xff] %v5790_v37  ;;  %v5794_v40 = vadd.f32 %v5793_v7, %v12015_v56 }
 0x95f   : > { %5906 = vst [vmem:[%s8640_s20 + $0xf0] sm:$0xff] %v5792_v31 }
 0x960   : > { %5907 = vst [vmem:[%s8640_s20 + $0xf8] sm:$0xff] %v5794_v40 }
 0x962   : > { %v5797_v51 = vpop.f32.mrb[160].mxu0 }
 0x963   : > { %v5798_v20 = vadd.f32 %v5797_v51, %v12011_v60  ;;  %v5799_v29 = vpop.f32.mrb[161].mxu0 }
 0x964   : > { %v5800_v19 = vadd.f32 %v5799_v29, %v12015_v56  ;;  %v5801_v58 = vpop.f32.mrb[162].mxu0 }
 0x965   : > { %5908 = vst [vmem:[%s8640_s20 + $0x100] sm:$0xff] %v5798_v20  ;;  %v5802_v28 = vadd.f32 %v5801_v58, %v12011_v60  ;;  %v5803_v23 = vpop.f32.mrb[163].mxu0 }
 0x966   : > { %5909 = vst [vmem:[%s8640_s20 + $0x108] sm:$0xff] %v5800_v19  ;;  %v5804_v61 = vadd.f32 %v5803_v23, %v12015_v56 }
 0x967   : > { %5910 = vst [vmem:[%s8640_s20 + $0x110] sm:$0xff] %v5802_v28 }
 0x968   : > { %5911 = vst [vmem:[%s8640_s20 + $0x118] sm:$0xff] %v5804_v61 }
 0x96a   : > { %v5807_v11 = vpop.f32.mrb[164].mxu0 }
 0x96b   : > { %v5808_v59 = vadd.f32 %v5807_v11, %v12011_v60  ;;  %v5809_v17 = vpop.f32.mrb[165].mxu0 }
 0x96c   : > { %v5810_v41 = vadd.f32 %v5809_v17, %v12015_v56  ;;  %v5811_v26 = vpop.f32.mrb[166].mxu0 }
 0x96d   : > { %5912 = vst [vmem:[%s8640_s20 + $0x120] sm:$0xff] %v5808_v59  ;;  %v5812_v10 = vadd.f32 %v5811_v26, %v12011_v60  ;;  %v5813_v45 = vpop.f32.mrb[167].mxu0 }
 0x96e   : > { %5913 = vst [vmem:[%s8640_s20 + $0x128] sm:$0xff] %v5810_v41  ;;  %v5814_v25 = vadd.f32 %v5813_v45, %v12015_v56 }
 0x96f   : > { %5914 = vst [vmem:[%s8640_s20 + $0x130] sm:$0xff] %v5812_v10 }
 0x970   : > { %5915 = vst [vmem:[%s8640_s20 + $0x138] sm:$0xff] %v5814_v25 }
 0x972   : > { %v5817_v50 = vpop.f32.mrb[168].mxu0 }
 0x973   : > { %v5818_v2 = vadd.f32 %v5817_v50, %v12011_v60  ;;  %v5819_v53 = vpop.f32.mrb[169].mxu0 }
 0x974   : > { %v5820_v1 = vadd.f32 %v5819_v53, %v12015_v56  ;;  %v5821_v43 = vpop.f32.mrb[170].mxu0 }
 0x975   : > { %5916 = vst [vmem:[%s8640_s20 + $0x140] sm:$0xff] %v5818_v2  ;;  %v5822_v12 = vadd.f32 %v5821_v43, %v12011_v60  ;;  %v5823_v15 = vpop.f32.mrb[171].mxu0 }
 0x976   : > { %5917 = vst [vmem:[%s8640_s20 + $0x148] sm:$0xff] %v5820_v1  ;;  %v5824_v47 = vadd.f32 %v5823_v15, %v12015_v56 }
 0x977   : > { %5918 = vst [vmem:[%s8640_s20 + $0x150] sm:$0xff] %v5822_v12 }
 0x978   : > { %5919 = vst [vmem:[%s8640_s20 + $0x158] sm:$0xff] %v5824_v47 }
 0x97a   : > { %v5827_v6 = vpop.f32.mrb[172].mxu0 }
 0x97b   : > { %v5828_v30 = vadd.f32 %v5827_v6, %v12011_v60  ;;  %v5829_v44 = vpop.f32.mrb[173].mxu0 }
 0x97c   : > { %v5830_v42 = vadd.f32 %v5829_v44, %v12015_v56  ;;  %v5831_v48 = vpop.f32.mrb[174].mxu0 }
 0x97d   : > { %5920 = vst [vmem:[%s8640_s20 + $0x160] sm:$0xff] %v5828_v30  ;;  %v5832_v3 = vadd.f32 %v5831_v48, %v12011_v60  ;;  %v5833_v9 = vpop.f32.mrb[175].mxu0 }
 0x97e   : > { %5921 = vst [vmem:[%s8640_s20 + $0x168] sm:$0xff] %v5830_v42  ;;  %v5834_v55 = vadd.f32 %v5833_v9, %v12015_v56 }
 0x97f   : > { %5922 = vst [vmem:[%s8640_s20 + $0x170] sm:$0xff] %v5832_v3 }
 0x980   : > { %5923 = vst [vmem:[%s8640_s20 + $0x178] sm:$0xff] %v5834_v55 }
 0x982   : > { %v5837_v36 = vpop.f32.mrb[176].mxu0 }
 0x983   : > { %v5838_v62 = vadd.f32 %v5837_v36, %v12011_v60  ;;  %v5839_v13 = vpop.f32.mrb[177].mxu0 }
 0x984   : > { %v5840_v63 = vadd.f32 %v5839_v13, %v12015_v56  ;;  %v5841_v39 = vpop.f32.mrb[178].mxu0 }
 0x985   : > { %5924 = vst [vmem:[%s8640_s20 + $0x180] sm:$0xff] %v5838_v62  ;;  %v5842_v57 = vadd.f32 %v5841_v39, %v12011_v60  ;;  %v5843_v16 = vpop.f32.mrb[179].mxu0 }
 0x986   : > { %5925 = vst [vmem:[%s8640_s20 + $0x188] sm:$0xff] %v5840_v63  ;;  %v5844_v46 = vadd.f32 %v5843_v16, %v12015_v56 }
 0x987   : > { %5926 = vst [vmem:[%s8640_s20 + $0x190] sm:$0xff] %v5842_v57 }
 0x988   : > { %5927 = vst [vmem:[%s8640_s20 + $0x198] sm:$0xff] %v5844_v46 }
 0x98a   : > { %v5847_v8 = vpop.f32.mrb[180].mxu0 }
 0x98b   : > { %v5848_v34 = vadd.f32 %v5847_v8, %v12011_v60  ;;  %v5849_v49 = vpop.f32.mrb[181].mxu0 }
 0x98c   : > { %v5850_v27 = vadd.f32 %v5849_v49, %v12015_v56  ;;  %v5851_v22 = vpop.f32.mrb[182].mxu0 }
 0x98d   : > { %5928 = vst [vmem:[%s8640_s20 + $0x1a0] sm:$0xff] %v5848_v34  ;;  %v5852_v18 = vadd.f32 %v5851_v22, %v12011_v60  ;;  %v5853_v14 = vpop.f32.mrb[183].mxu0 }
 0x98e   : > { %5929 = vst [vmem:[%s8640_s20 + $0x1a8] sm:$0xff] %v5850_v27  ;;  %v5854_v52 = vadd.f32 %v5853_v14, %v12015_v56 }
 0x98f   : > { %5930 = vst [vmem:[%s8640_s20 + $0x1b0] sm:$0xff] %v5852_v18 }
 0x990   : > { %5931 = vst [vmem:[%s8640_s20 + $0x1b8] sm:$0xff] %v5854_v52 }
 0x992   : > { %v5857_v4 = vpop.f32.mrb[184].mxu0 }
 0x993   : > { %v5858_v5 = vadd.f32 %v5857_v4, %v12011_v60  ;;  %v5859_v54 = vpop.f32.mrb[185].mxu0 }
 0x994   : > { %v5860_v0 = vadd.f32 %v5859_v54, %v12015_v56  ;;  %v5861_v21 = vpop.f32.mrb[186].mxu0 }
 0x995   : > { %5932 = vst [vmem:[%s8640_s20 + $0x1c0] sm:$0xff] %v5858_v5  ;;  %v5862_v33 = vadd.f32 %v5861_v21, %v12011_v60  ;;  %v5863_v35 = vpop.f32.mrb[187].mxu0 }
 0x996   : > { %5933 = vst [vmem:[%s8640_s20 + $0x1c8] sm:$0xff] %v5860_v0  ;;  %v5864_v38 = vadd.f32 %v5863_v35, %v12015_v56 }
 0x997   : > { %5934 = vst [vmem:[%s8640_s20 + $0x1d0] sm:$0xff] %v5862_v33 }
 0x998   : > { %5935 = vst [vmem:[%s8640_s20 + $0x1d8] sm:$0xff] %v5864_v38 }
 0x99c   : > { %v5867_v32 = vpop.f32.mrb[188].mxu0 }
 0x99d   : > { %v5868_v37 = vadd.f32 %v5867_v32, %v12011_v60  ;;  %v5869_v24 = vpop.f32.mrb[189].mxu0 }
 0x99e   : > { %v5870_v31 = vadd.f32 %v5869_v24, %v12015_v56  ;;  %v5871_v7 = vpop.f32.mrb[190].mxu0 }
 0x99f   : > { %5936 = vst [vmem:[%s8640_s20 + $0x1e0] sm:$0xff] %v5868_v37  ;;  %v5872_v40 = vadd.f32 %v5871_v7, %v12011_v60  ;;  %v5873_v51 = vpop.f32.mrb[191].mxu0 }
 0x9a0   : > { %5937 = vst [vmem:[%s8640_s20 + $0x1e8] sm:$0xff] %v5870_v31  ;;  %v5874_v20 = vadd.f32 %v5873_v51, %v12015_v56 }
 0x9a1   : > { %5938 = vst [vmem:[%s8640_s20 + $0x1f0] sm:$0xff] %v5872_v40 }
 0x9a2   : > { %5939 = vst [vmem:[%s8640_s20 + $0x1f8] sm:$0xff] %v5874_v20 }
 0x9a3   : > { %8083 = shalt.err (!%p8080_p6)
}
 0x9a4   : > { %s8084_s20 = scalar_lea.hbm %s12151_s6, 8192  ;;  %s8088_s11 = scalar_lea.hbm %s13823_s30, 32768 }
 0x9a5   : > { %p8085_p2 = scmp.ne.s32.totalorder %s12151_s6, %s8084_s20  ;;  %p8089_p3 = scmp.lt.u32.totalorder %s12151_s6, %s13823_s30 }
 0x9a6   : > { %p8090_p7 = scmp.lt.u32.totalorder %s8088_s11, %s8084_s20  ;;  %p8092_p9 = scmp.lt.u32.totalorder %s8084_s20, %s12151_s6 }
 0x9a7   : > { %p8086_p0 = pnand %p8085_p2, %p13824_p8 }
 0x9a8   : > { %p8091_p1 = por %p8090_p7, %p8089_p3 }
 0x9a9   : > { %p8087_p11 = pneg %p8086_p0 }
 0x9aa   : > { %p8093_p12 = por %p8092_p9, %p8091_p1 }
 0x9ac   : > { %p8094_p13 = pnand %p8093_p12, %p8087_p11 }
 0x9ae   : > { %8097 = shalt.err (!%p8094_p13)
}
 0x9af   : > { %s8222_s26 = smov 256   ;;  %s8223_s12 = smov 16  }
 0x9b0   : > { %6915 = dma.vmem_to_hbm [thread:$0]  (%p13824_p8), %s12144_s28, 8192, %s12151_s6, %s5941_s9, %s8222_s26, %s8222_s26, %s8223_s12  }
 0x9b1 PF: > { %p6950_p4 = scmp.ge.s32.totalorder %s8208_s23, 2  ;;  %s5972_s10 = sand.u32 1, %s8180_s16  }
 0x9b2   : > { %p13825_p10 = scmp.ne.s32.totalorder %s12690_s13, 0  ;;  %s5973_s3 = scalar_lea.sflag [#allocation7], %s5972_s10 }
 0x9b4   : > { %p6938_p5 = pnand %p6950_p4, %p13825_p10 }
 0x9b6   : > { %8163 = dma.done.wait (!%p6938_p5), %s5973_s3, 8192  }
 0x9b7   : > { %8165 = vsyncadd (!%p6938_p5), %s5973_s3, 4294959104  ;;  %s31_s23 = sadd.s32 1, %s8208_s23   ;;  %s13826_s13 = smov %s8172_s14 }
 0x9b8   : > { %p28_p6 = scmp.ge.s32.totalorder %s31_s23, 6   ;;  %s13827_s14 = smov %s8176_s15 }
 0x9b9   : > { %s13828_s15 = smov %s8558_s8  ;;  %s13829_s16 = smov %s8184_s17 }
 0x9ba   : > { %s13830_s17 = smov %s8188_s18  ;;  %s13831_s18 = smov %s8502_s25 }
 0x9bb   : > { %s13832_s19 = smov %s8200_s21  ;;  %s13833_s20 = smov %s8204_s22 }
 0x9bc   : > { %s13834_s21 = smov %s13837_s27  ;;  %s13835_s22 = smov %s13841_s2 }
 0x9bd   :  { %30 = sbr.rel (!%p28_p6) target bundleno = 24 (0x18), region = 140 }
 0x9c4   :  { %5978 = vsyncpa [#allocation6], 1 }
 0x9c5   :  { %5980 = vsyncpa [#allocation6 + $0x1], 1 }
 0x9c6   :  { %5981 = vsyncpa [#allocation9], 1 }
 0x9c7   :  { %5983 = vsyncpa [#allocation9 + $0x1], 1 }
 0x9c8   :  { %5984 = vsyncpa [#allocation12], 1 }
 0x9c9   :  { %5985 = vsyncpa [#allocation15], 1 }
 0x9ca   :  { %5986 = vsyncpa [#allocation7], 1 }
 0x9cb   :  { %5988 = vsyncpa [#allocation7 + $0x1], 1 }

</bundles_post_ra>
